<compile_context>
chip_gen: v7x
topology: tpu7x:2x2x1
jax: 0.10.0
libtpu: 0.0.40
codegen_flags: <defaults>
</compile_context>

<pallas_src>
import jax
import jax.numpy as jnp
from jax.experimental import pallas as pl
from jax.experimental.pallas import tpu as pltpu


NUM_ENCODING = 6
XYZ_DIM = 3 + 3 * 2 * NUM_ENCODING       # 39
VIEW_DIM = 3 + 3 * 2 * NUM_ENCODING      # 39  (use_viewdirs=True)
IN_DIM = XYZ_DIM + VIEW_DIM              # 78
HIDDEN = 128
CAT4_DIM = HIDDEN + VIEW_DIM             # 167  (layer4 input: cat(feat, view))
HEAD_DIM = 2 * HIDDEN                    # 256  (fused head input: cat(h5, h2))
OUT_DIM = 4                              # rgb(3) + sigma(1)
OUT_PAD = 128                            # lane-dense padded output width


def _relu(x):
    return jnp.maximum(x, 0.0)


def nerf_kernel(xyz_ref, view_ref,
                w1_ref, b1_ref, w2_ref, b2_ref,
                w32_ref, b32_ref,
                w4_ref, b4_ref,
                w5_ref, b5_ref,
                wh_ref, bh_ref,
                o_ref):
    """Fully fused MultiHeadNeRF forward for one batch tile (6 MXU dots + VPU relu)."""
    f32 = jnp.float32
    xyz = xyz_ref[...]
    view = view_ref[...]

    h1 = _relu(jnp.dot(xyz, w1_ref[...], preferred_element_type=f32) + b1_ref[...])
    h2 = _relu(jnp.dot(h1, w2_ref[...], preferred_element_type=f32) + b2_ref[...])
    feat = _relu(jnp.dot(h2, w32_ref[...], preferred_element_type=f32) + b32_ref[...])

    # layer4 on cat(feat, view): feat is exactly 128 lanes, so this concat is
    # lane-aligned (cheap) and the single K=167 dot replaces two split dots.
    cat4 = jnp.concatenate([feat, view], axis=-1)                       # (tile, 167)
    h4 = _relu(jnp.dot(cat4, w4_ref[...], preferred_element_type=f32) + b4_ref[...])
    h5 = _relu(jnp.dot(h4, w5_ref[...], preferred_element_type=f32) + b5_ref[...])

    # Fused output head: one K=256 dot computes rgb (from h5-rows of wh) and
    # sigma (from h2-rows of wh) into a lane-dense 128-wide padded block
    # (cols 0..2 = rgb, col 3 = sigma).
    head_in = jnp.concatenate([h5, h2], axis=-1)                        # (tile, 256)
    out = jnp.dot(head_in, wh_ref[...], preferred_element_type=f32) + bh_ref[...]
    o_ref[...] = out.astype(o_ref.dtype)


def _pack_kernel_params(params):
    """Turn natural per-layer params into the layout the fused kernel expects."""
    (w1, b1, w2, b2, w31, b31, w32, b32, w4, b4, w5, b5, w6, b6) = params

    # Fused, padded 128-wide output head:
    #   rows   0..127 (consume h5):  cols 0..2 <- layer6  (rgb)
    #   rows 128..255 (consume h2):  col  3    <- layer3_1 (sigma)
    w_head = (jnp.zeros((HEAD_DIM, OUT_PAD), jnp.float32)
              .at[:HIDDEN, 0:3].set(w6)
              .at[HIDDEN:, 3:4].set(w31))
    b_head = (jnp.zeros((1, OUT_PAD), jnp.float32)
              .at[:, 0:3].set(b6)
              .at[:, 3:4].set(b31))

    # layer4 weight stays in its natural cat(feat, view) row order: rows 0..127
    # act on feat, rows 128..166 act on view (matches in-kernel concat order).
    return (w1, b1, w2, b2, w32, b32, w4, b4, w5, b5, w_head, b_head)


def multihead_nerf_forward(x, params, *, batch_tile=1024):
    """x: (B, 78) float32 -> (B, 4) float32  (rgb[3], sigma[1])."""
    B, din = x.shape
    assert din == IN_DIM, din

    xyz = x[:, :XYZ_DIM]
    view = x[:, XYZ_DIM:]

    n_tiles = pl.cdiv(B, batch_tile)
    Bp = n_tiles * batch_tile
    if Bp != B:
        pad = Bp - B
        xyz = jnp.pad(xyz, ((0, pad), (0, 0)))
        view = jnp.pad(view, ((0, pad), (0, 0)))

    kp = _pack_kernel_params(params)

    rep = lambda i: (0, 0)   # weights/biases: same full block for every batch tile

    in_specs = [
        pl.BlockSpec((batch_tile, XYZ_DIM), lambda i: (i, 0)),   # xyz
        pl.BlockSpec((batch_tile, VIEW_DIM), lambda i: (i, 0)),  # view
        pl.BlockSpec((XYZ_DIM, HIDDEN), rep),                    # w1
        pl.BlockSpec((1, HIDDEN), rep),                          # b1
        pl.BlockSpec((HIDDEN, HIDDEN), rep),                     # w2
        pl.BlockSpec((1, HIDDEN), rep),                          # b2
        pl.BlockSpec((HIDDEN, HIDDEN), rep),                     # w32
        pl.BlockSpec((1, HIDDEN), rep),                          # b32
        pl.BlockSpec((CAT4_DIM, HIDDEN), rep),                   # w4 (167, 128)
        pl.BlockSpec((1, HIDDEN), rep),                          # b4
        pl.BlockSpec((HIDDEN, HIDDEN), rep),                     # w5
        pl.BlockSpec((1, HIDDEN), rep),                          # b5
        pl.BlockSpec((HEAD_DIM, OUT_PAD), rep),                  # w_head (256, 128)
        pl.BlockSpec((1, OUT_PAD), rep),                         # b_head
    ]

    # Advisory cost estimate for XLA's scheduler.
    flops_per_row = 2 * (XYZ_DIM * HIDDEN + 3 * HIDDEN * HIDDEN
                         + CAT4_DIM * HIDDEN + HEAD_DIM * OUT_PAD)
    weight_bytes = sum(int(p.size) * 4 for p in kp)
    cost = pl.CostEstimate(
        flops=flops_per_row * Bp,
        transcendentals=0,
        bytes_accessed=Bp * (IN_DIM + OUT_PAD) * 4 + weight_bytes,
    )

    out_padded = pl.pallas_call(
        nerf_kernel,
        out_shape=jax.ShapeDtypeStruct((Bp, OUT_PAD), jnp.float32),
        grid_spec=pltpu.PrefetchScalarGridSpec(
            num_scalar_prefetch=0,
            grid=(n_tiles,),
            in_specs=in_specs,
            out_specs=pl.BlockSpec((batch_tile, OUT_PAD), lambda i: (i, 0)),
        ),
        compiler_params=pltpu.CompilerParams(
            dimension_semantics=("parallel",),
            vmem_limit_bytes=32 * 1024 * 1024),
        cost_estimate=cost,
    )(xyz, view, *kp)

    return out_padded[:B, :OUT_DIM]


def init_params(key):
    """PyTorch-style uniform(-1/sqrt(fan_in)) init, weights stored pre-transposed (in, out)."""
    keys = jax.random.split(key, 14)

    def linear(kw, kb, fan_in, fan_out):
        bound = 1.0 / (fan_in ** 0.5)
        w = jax.random.uniform(kw, (fan_in, fan_out), jnp.float32, -bound, bound)
        b = jax.random.uniform(kb, (1, fan_out), jnp.float32, -bound, bound)
        return w, b

    w1, b1 = linear(keys[0], keys[1], XYZ_DIM, HIDDEN)            # layer1
    w2, b2 = linear(keys[2], keys[3], HIDDEN, HIDDEN)             # layer2
    w31, b31 = linear(keys[4], keys[5], HIDDEN, 1)                # layer3_1 (sigma)
    w32, b32 = linear(keys[6], keys[7], HIDDEN, HIDDEN)           # layer3_2 (feat)
    w4, b4 = linear(keys[8], keys[9], HIDDEN + VIEW_DIM, HIDDEN)  # layer4
    w5, b5 = linear(keys[10], keys[11], HIDDEN, HIDDEN)           # layer5
    w6, b6 = linear(keys[12], keys[13], HIDDEN, 3)                # layer6 (rgb)
    return (w1, b1, w2, b2, w31, b31, w32, b32, w4, b4, w5, b5, w6, b6)


def reference_forward(x, params):
    """Pure-JAX reference matching the PyTorch module semantics."""
    (w1, b1, w2, b2, w31, b31, w32, b32, w4, b4, w5, b5, w6, b6) = params
    hp = jax.lax.Precision.HIGHEST
    xyz, view = x[:, :XYZ_DIM], x[:, XYZ_DIM:]
    h = _relu(jnp.dot(xyz, w1, precision=hp) + b1)
    h = _relu(jnp.dot(h, w2, precision=hp) + b2)
    sigma = jnp.dot(h, w31, precision=hp) + b31
    feat = _relu(jnp.dot(h, w32, precision=hp) + b32)
    cat = jnp.concatenate([feat, view], axis=-1)
    h = _relu(jnp.dot(cat, w4, precision=hp) + b4)
    h = _relu(jnp.dot(h, w5, precision=hp) + b5)
    rgb = jnp.dot(h, w6, precision=hp) + b6
    return jnp.concatenate([rgb, sigma], axis=-1)


if __name__ == "__main__":
    key = jax.random.PRNGKey(0)
    k_x, k_p = jax.random.split(key)

    batch = 600  # deliberately NOT a multiple of the batch tile to exercise padding
    x = jax.random.normal(k_x, (batch, IN_DIM), dtype=jnp.float32)
    params = init_params(k_p)

    ref = reference_forward(x, params)

    # Default tile (1024): grid=(1,), exercises the padding path.
    out = multihead_nerf_forward(x, params)
    out = jax.block_until_ready(out)
    assert out.shape == (batch, OUT_DIM), out.shape
    assert jnp.allclose(out, ref, atol=1e-3, rtol=1e-3), "mismatch vs reference (tile=1024)"

    # Small tile (256): grid=(3,), exercises the multi-tile "parallel" path.
    out2 = multihead_nerf_forward(x, params, batch_tile=256)
    out2 = jax.block_until_ready(out2)
    assert jnp.allclose(out2, ref, atol=1e-3, rtol=1e-3), "mismatch vs reference (tile=256)"

    print("KERNEL_OK")
</pallas_src>

<mosaic_0001>
module attributes {stable_mosaic.version = 11 : i64} {
  func.func @nerf_kernel(%arg0: i32, %arg1: memref<1024x39xf32, #tpu.memory_space<vmem>>, %arg2: memref<1024x39xf32, #tpu.memory_space<vmem>>, %arg3: memref<39x128xf32, #tpu.memory_space<vmem>>, %arg4: memref<1x128xf32, #tpu.memory_space<vmem>>, %arg5: memref<128x128xf32, #tpu.memory_space<vmem>>, %arg6: memref<1x128xf32, #tpu.memory_space<vmem>>, %arg7: memref<128x128xf32, #tpu.memory_space<vmem>>, %arg8: memref<1x128xf32, #tpu.memory_space<vmem>>, %arg9: memref<167x128xf32, #tpu.memory_space<vmem>>, %arg10: memref<1x128xf32, #tpu.memory_space<vmem>>, %arg11: memref<128x128xf32, #tpu.memory_space<vmem>>, %arg12: memref<1x128xf32, #tpu.memory_space<vmem>>, %arg13: memref<256x128xf32, #tpu.memory_space<vmem>>, %arg14: memref<1x128xf32, #tpu.memory_space<vmem>>, %arg15: memref<1024x128xf32, #tpu.memory_space<vmem>>) attributes {dimension_semantics = [#tpu.dimension_semantics<parallel>], iteration_bounds = array<i64: 1>, scalar_prefetch = 0 : i64, scratch_operands = 0 : i64, tpu.core_type = #tpu.core_type<tc>, window_params = [{transform_indices = @transform_0, window_bounds = array<i64: 1024, 39>}, {transform_indices = @transform_1, window_bounds = array<i64: 1024, 39>}, {pipeline_mode = #tpu.pipeline_mode<synchronous>, transform_indices = @transform_2, window_bounds = array<i64: 39, 128>}, {pipeline_mode = #tpu.pipeline_mode<synchronous>, transform_indices = @transform_3, window_bounds = array<i64: 1, 128>}, {pipeline_mode = #tpu.pipeline_mode<synchronous>, transform_indices = @transform_4, window_bounds = array<i64: 128, 128>}, {pipeline_mode = #tpu.pipeline_mode<synchronous>, transform_indices = @transform_5, window_bounds = array<i64: 1, 128>}, {pipeline_mode = #tpu.pipeline_mode<synchronous>, transform_indices = @transform_6, window_bounds = array<i64: 128, 128>}, {pipeline_mode = #tpu.pipeline_mode<synchronous>, transform_indices = @transform_7, window_bounds = array<i64: 1, 128>}, {pipeline_mode = #tpu.pipeline_mode<synchronous>, transform_indices = @transform_8, window_bounds = array<i64: 167, 128>}, {pipeline_mode = #tpu.pipeline_mode<synchronous>, transform_indices = @transform_9, window_bounds = array<i64: 1, 128>}, {pipeline_mode = #tpu.pipeline_mode<synchronous>, transform_indices = @transform_10, window_bounds = array<i64: 128, 128>}, {pipeline_mode = #tpu.pipeline_mode<synchronous>, transform_indices = @transform_11, window_bounds = array<i64: 1, 128>}, {pipeline_mode = #tpu.pipeline_mode<synchronous>, transform_indices = @transform_12, window_bounds = array<i64: 256, 128>}, {pipeline_mode = #tpu.pipeline_mode<synchronous>, transform_indices = @transform_13, window_bounds = array<i64: 1, 128>}, {transform_indices = @transform_14, window_bounds = array<i64: 1024, 128>}]} {
    %c0 = arith.constant 0 : index
    %c0_0 = arith.constant 0 : index
    %0 = vector.load %arg1[%c0, %c0_0] : memref<1024x39xf32, #tpu.memory_space<vmem>>, vector<1024x39xf32>
    %c0_1 = arith.constant 0 : index
    %c0_2 = arith.constant 0 : index
    %1 = vector.load %arg2[%c0_1, %c0_2] : memref<1024x39xf32, #tpu.memory_space<vmem>>, vector<1024x39xf32>
    %c0_3 = arith.constant 0 : index
    %c0_4 = arith.constant 0 : index
    %2 = vector.load %arg3[%c0_3, %c0_4] : memref<39x128xf32, #tpu.memory_space<vmem>>, vector<39x128xf32>
    %cst = arith.constant dense<0.000000e+00> : vector<1024x128xf32>
    %3 = tpu.matmul %0, %2, %cst {dimension_numbers = #tpu.dot_dimension_numbers<[1], [0], [0], [1], [0, 0, 1, 1], [], []>} : vector<1024x39xf32>, vector<39x128xf32>, vector<1024x128xf32> -> vector<1024x128xf32>
    %c0_5 = arith.constant 0 : index
    %c0_6 = arith.constant 0 : index
    %4 = vector.load %arg4[%c0_5, %c0_6] : memref<1x128xf32, #tpu.memory_space<vmem>>, vector<1x128xf32>
    %5 = vector.broadcast %4 : vector<1x128xf32> to vector<1024x128xf32>
    %6 = arith.addf %3, %5 : vector<1024x128xf32>
    %cst_7 = arith.constant 0.000000e+00 : f32
    %7 = vector.broadcast %cst_7 : f32 to vector<1024x128xf32>
    %8 = arith.maximumf %6, %7 : vector<1024x128xf32>
    %c0_8 = arith.constant 0 : index
    %c0_9 = arith.constant 0 : index
    %9 = vector.load %arg5[%c0_8, %c0_9] : memref<128x128xf32, #tpu.memory_space<vmem>>, vector<128x128xf32>
    %cst_10 = arith.constant dense<0.000000e+00> : vector<1024x128xf32>
    %10 = tpu.matmul %8, %9, %cst_10 {dimension_numbers = #tpu.dot_dimension_numbers<[1], [0], [0], [1], [0, 0, 1, 1], [], []>} : vector<1024x128xf32>, vector<128x128xf32>, vector<1024x128xf32> -> vector<1024x128xf32>
    %c0_11 = arith.constant 0 : index
    %c0_12 = arith.constant 0 : index
    %11 = vector.load %arg6[%c0_11, %c0_12] : memref<1x128xf32, #tpu.memory_space<vmem>>, vector<1x128xf32>
    %12 = vector.broadcast %11 : vector<1x128xf32> to vector<1024x128xf32>
    %13 = arith.addf %10, %12 : vector<1024x128xf32>
    %cst_13 = arith.constant 0.000000e+00 : f32
    %14 = vector.broadcast %cst_13 : f32 to vector<1024x128xf32>
    %15 = arith.maximumf %13, %14 : vector<1024x128xf32>
    %c0_14 = arith.constant 0 : index
    %c0_15 = arith.constant 0 : index
    %16 = vector.load %arg7[%c0_14, %c0_15] : memref<128x128xf32, #tpu.memory_space<vmem>>, vector<128x128xf32>
    %cst_16 = arith.constant dense<0.000000e+00> : vector<1024x128xf32>
    %17 = tpu.matmul %15, %16, %cst_16 {dimension_numbers = #tpu.dot_dimension_numbers<[1], [0], [0], [1], [0, 0, 1, 1], [], []>} : vector<1024x128xf32>, vector<128x128xf32>, vector<1024x128xf32> -> vector<1024x128xf32>
    %c0_17 = arith.constant 0 : index
    %c0_18 = arith.constant 0 : index
    %18 = vector.load %arg8[%c0_17, %c0_18] : memref<1x128xf32, #tpu.memory_space<vmem>>, vector<1x128xf32>
    %19 = vector.broadcast %18 : vector<1x128xf32> to vector<1024x128xf32>
    %20 = arith.addf %17, %19 : vector<1024x128xf32>
    %cst_19 = arith.constant 0.000000e+00 : f32
    %21 = vector.broadcast %cst_19 : f32 to vector<1024x128xf32>
    %22 = arith.maximumf %20, %21 : vector<1024x128xf32>
    %23 = tpu.concatenate %22, %1 in 1 : vector<1024x128xf32>, vector<1024x39xf32> -> vector<1024x167xf32>
    %c0_20 = arith.constant 0 : index
    %c0_21 = arith.constant 0 : index
    %24 = vector.load %arg9[%c0_20, %c0_21] : memref<167x128xf32, #tpu.memory_space<vmem>>, vector<167x128xf32>
    %cst_22 = arith.constant dense<0.000000e+00> : vector<1024x128xf32>
    %25 = tpu.matmul %23, %24, %cst_22 {dimension_numbers = #tpu.dot_dimension_numbers<[1], [0], [0], [1], [0, 0, 1, 1], [], []>} : vector<1024x167xf32>, vector<167x128xf32>, vector<1024x128xf32> -> vector<1024x128xf32>
    %c0_23 = arith.constant 0 : index
    %c0_24 = arith.constant 0 : index
    %26 = vector.load %arg10[%c0_23, %c0_24] : memref<1x128xf32, #tpu.memory_space<vmem>>, vector<1x128xf32>
    %27 = vector.broadcast %26 : vector<1x128xf32> to vector<1024x128xf32>
    %28 = arith.addf %25, %27 : vector<1024x128xf32>
    %cst_25 = arith.constant 0.000000e+00 : f32
    %29 = vector.broadcast %cst_25 : f32 to vector<1024x128xf32>
    %30 = arith.maximumf %28, %29 : vector<1024x128xf32>
    %c0_26 = arith.constant 0 : index
    %c0_27 = arith.constant 0 : index
    %31 = vector.load %arg11[%c0_26, %c0_27] : memref<128x128xf32, #tpu.memory_space<vmem>>, vector<128x128xf32>
    %cst_28 = arith.constant dense<0.000000e+00> : vector<1024x128xf32>
    %32 = tpu.matmul %30, %31, %cst_28 {dimension_numbers = #tpu.dot_dimension_numbers<[1], [0], [0], [1], [0, 0, 1, 1], [], []>} : vector<1024x128xf32>, vector<128x128xf32>, vector<1024x128xf32> -> vector<1024x128xf32>
    %c0_29 = arith.constant 0 : index
    %c0_30 = arith.constant 0 : index
    %33 = vector.load %arg12[%c0_29, %c0_30] : memref<1x128xf32, #tpu.memory_space<vmem>>, vector<1x128xf32>
    %34 = vector.broadcast %33 : vector<1x128xf32> to vector<1024x128xf32>
    %35 = arith.addf %32, %34 : vector<1024x128xf32>
    %cst_31 = arith.constant 0.000000e+00 : f32
    %36 = vector.broadcast %cst_31 : f32 to vector<1024x128xf32>
    %37 = arith.maximumf %35, %36 : vector<1024x128xf32>
    %38 = tpu.concatenate %37, %15 in 1 : vector<1024x128xf32>, vector<1024x128xf32> -> vector<1024x256xf32>
    %c0_32 = arith.constant 0 : index
    %c0_33 = arith.constant 0 : index
    %39 = vector.load %arg13[%c0_32, %c0_33] : memref<256x128xf32, #tpu.memory_space<vmem>>, vector<256x128xf32>
    %cst_34 = arith.constant dense<0.000000e+00> : vector<1024x128xf32>
    %40 = tpu.matmul %38, %39, %cst_34 {dimension_numbers = #tpu.dot_dimension_numbers<[1], [0], [0], [1], [0, 0, 1, 1], [], []>} : vector<1024x256xf32>, vector<256x128xf32>, vector<1024x128xf32> -> vector<1024x128xf32>
    %c0_35 = arith.constant 0 : index
    %c0_36 = arith.constant 0 : index
    %41 = vector.load %arg14[%c0_35, %c0_36] : memref<1x128xf32, #tpu.memory_space<vmem>>, vector<1x128xf32>
    %42 = vector.broadcast %41 : vector<1x128xf32> to vector<1024x128xf32>
    %43 = arith.addf %40, %42 : vector<1024x128xf32>
    %c0_37 = arith.constant 0 : index
    %c0_38 = arith.constant 0 : index
    %44 = vector.load %arg15[%c0_37, %c0_38] : memref<1024x128xf32, #tpu.memory_space<vmem>>, vector<1024x128xf32>
    tpu.vector_store %arg15[%c0_37, %c0_38], %43 {strides = array<i32>} : memref<1024x128xf32, #tpu.memory_space<vmem>>, vector<1024x128xf32>,
    return
  }
  func.func @transform_0(%arg0: i32) -> (i32, i32) {
    %c0_i32 = arith.constant 0 : i32
    %c0_i32_0 = arith.constant 0 : i32
    return %arg0, %c0_i32 : i32, i32
  }
  func.func @transform_1(%arg0: i32) -> (i32, i32) {
    %c0_i32 = arith.constant 0 : i32
    %c0_i32_0 = arith.constant 0 : i32
    return %arg0, %c0_i32 : i32, i32
  }
  func.func @transform_2(%arg0: i32) -> (i32, i32) {
    %c0_i32 = arith.constant 0 : i32
    %c0_i32_0 = arith.constant 0 : i32
    %c0_i32_1 = arith.constant 0 : i32
    return %c0_i32, %c0_i32_0 : i32, i32
  }
  func.func @transform_3(%arg0: i32) -> (i32, i32) {
    %c0_i32 = arith.constant 0 : i32
    %c0_i32_0 = arith.constant 0 : i32
    %c0_i32_1 = arith.constant 0 : i32
    return %c0_i32, %c0_i32_0 : i32, i32
  }
  func.func @transform_4(%arg0: i32) -> (i32, i32) {
    %c0_i32 = arith.constant 0 : i32
    %c0_i32_0 = arith.constant 0 : i32
    %c0_i32_1 = arith.constant 0 : i32
    return %c0_i32, %c0_i32_0 : i32, i32
  }
  func.func @transform_5(%arg0: i32) -> (i32, i32) {
    %c0_i32 = arith.constant 0 : i32
    %c0_i32_0 = arith.constant 0 : i32
    %c0_i32_1 = arith.constant 0 : i32
    return %c0_i32, %c0_i32_0 : i32, i32
  }
  func.func @transform_6(%arg0: i32) -> (i32, i32) {
    %c0_i32 = arith.constant 0 : i32
    %c0_i32_0 = arith.constant 0 : i32
    %c0_i32_1 = arith.constant 0 : i32
    return %c0_i32, %c0_i32_0 : i32, i32
  }
  func.func @transform_7(%arg0: i32) -> (i32, i32) {
    %c0_i32 = arith.constant 0 : i32
    %c0_i32_0 = arith.constant 0 : i32
    %c0_i32_1 = arith.constant 0 : i32
    return %c0_i32, %c0_i32_0 : i32, i32
  }
  func.func @transform_8(%arg0: i32) -> (i32, i32) {
    %c0_i32 = arith.constant 0 : i32
    %c0_i32_0 = arith.constant 0 : i32
    %c0_i32_1 = arith.constant 0 : i32
    return %c0_i32, %c0_i32_0 : i32, i32
  }
  func.func @transform_9(%arg0: i32) -> (i32, i32) {
    %c0_i32 = arith.constant 0 : i32
    %c0_i32_0 = arith.constant 0 : i32
    %c0_i32_1 = arith.constant 0 : i32
    return %c0_i32, %c0_i32_0 : i32, i32
  }
  func.func @transform_10(%arg0: i32) -> (i32, i32) {
    %c0_i32 = arith.constant 0 : i32
    %c0_i32_0 = arith.constant 0 : i32
    %c0_i32_1 = arith.constant 0 : i32
    return %c0_i32, %c0_i32_0 : i32, i32
  }
  func.func @transform_11(%arg0: i32) -> (i32, i32) {
    %c0_i32 = arith.constant 0 : i32
    %c0_i32_0 = arith.constant 0 : i32
    %c0_i32_1 = arith.constant 0 : i32
    return %c0_i32, %c0_i32_0 : i32, i32
  }
  func.func @transform_12(%arg0: i32) -> (i32, i32) {
    %c0_i32 = arith.constant 0 : i32
    %c0_i32_0 = arith.constant 0 : i32
    %c0_i32_1 = arith.constant 0 : i32
    return %c0_i32, %c0_i32_0 : i32, i32
  }
  func.func @transform_13(%arg0: i32) -> (i32, i32) {
    %c0_i32 = arith.constant 0 : i32
    %c0_i32_0 = arith.constant 0 : i32
    %c0_i32_1 = arith.constant 0 : i32
    return %c0_i32, %c0_i32_0 : i32, i32
  }
  func.func @transform_14(%arg0: i32) -> (i32, i32) {
    %c0_i32 = arith.constant 0 : i32
    %c0_i32_0 = arith.constant 0 : i32
    return %arg0, %c0_i32 : i32, i32
  }
}

</mosaic_0001>

<bundles_post_ra>
// kernel: tpu_custom_call.1
= control target key start
LH: loop header
LB: loop body
LE: loop exit
PB: predicated region body
PF: predicated region fallthrough
CT: control target
= control target key end

     0   :  { %vm316_vm0 = vcmask 318464   ;;  %vm701_vm1 = vcmask 1046528   ;;  %s11986_s0 = inlined_call_operand.vmem [shape: f32[1024,39], index: 0, kind: input, shape index: {}]   ;;  %s11987_s1 = inlined_call_operand.vmem [shape: f32[1024,39], index: 1, kind: input, shape index: {}]   ;;  %s11988_s2 = inlined_call_operand.vmem [shape: f32[39,128], index: 2, kind: input, shape index: {}]   ;;  %s11989_s3 = inlined_call_operand.vmem [shape: f32[1,128], index: 3, kind: input, shape index: {}]   ;;  %s11990_s4 = inlined_call_operand.vmem [shape: f32[128,128], index: 4, kind: input, shape index: {}]   ;;  %s11991_s5 = inlined_call_operand.vmem [shape: f32[1,128], index: 5, kind: input, shape index: {}]   ;;  %s11992_s6 = inlined_call_operand.vmem [shape: f32[128,128], index: 6, kind: input, shape index: {}]   ;;  %s11993_s7 = inlined_call_operand.vmem [shape: f32[1,128], index: 7, kind: input, shape index: {}]   ;;  %s11994_s8 = inlined_call_operand.vmem [shape: f32[167,128], index: 8, kind: input, shape index: {}]   ;;  %s11995_s9 = inlined_call_operand.vmem [shape: f32[1,128], index: 9, kind: input, shape index: {}]   ;;  %s11996_s10 = inlined_call_operand.vmem [shape: f32[128,128], index: 10, kind: input, shape index: {}]   ;;  %s11997_s11 = inlined_call_operand.vmem [shape: f32[1,128], index: 11, kind: input, shape index: {}]   ;;  %s11998_s12 = inlined_call_operand.vmem [shape: f32[256,128], index: 12, kind: input, shape index: {}]   ;;  %s11999_s13 = inlined_call_operand.vmem [shape: f32[1,128], index: 13, kind: input, shape index: {}]   ;;  %s12000_s14 = inlined_call_operand.hbm [shape: f32[1024,128], index: 14, kind: output, shape index: {}]  }
   0x1   :  { %v304_v0 = vld [vmem:[%s11988_s2] sm:$0xff]  ;;  %v305_v1 = vld [vmem:[%s11988_s2 + $0x8] sm:$0xff]  ;;  %v306_v2 = vld [vmem:[%s11988_s2 + $0x10] sm:$0xff] }
   0x2   :  { %v7945_v3 = vpack.c.bf16 %v305_v1, %v304_v0  ;;  %v307_v4 = vld [vmem:[%s11988_s2 + $0x18] sm:$0xff]  ;;  %v48_v5 = vld [vmem:[%s11986_s0] sm:$0xff]  ;;  %v49_v8 = vld [vmem:[%s11986_s0 + $0x8] sm:$0xff] }
   0x3   :  { %v7949_v6 = vpack.c.bf16 %v307_v4, %v306_v2  ;;  %7081 = vmatprep.mubr.msk.f32.mxu0 %vm316_vm0, %v48_v5  ;;  %v308_v7 = vld [vmem:[%s11988_s2 + $0x20] sm:$0x7f]  ;;  %v50_v9 = vld [vmem:[%s11986_s0 + $0x10] sm:$0xff]  ;;  %v51_v10 = vld [vmem:[%s11986_s0 + $0x18] sm:$0xff] }
   0x4   :  { %7946 = vmatprep.subr.bf16.mxu0 %v7945_v3  ;;  %v52_v11 = vld [vmem:[%s11986_s0 + $0x20] sm:$0xff]  ;;  %v53_v13 = vld [vmem:[%s11986_s0 + $0x28] sm:$0xff]  ;;  %v54_v16 = vld [vmem:[%s11986_s0 + $0x30] sm:$0xff] }
   0x5   :  { %7948 = vmatpush3.bf16.msra.mxu0 %v7945_v3  ;;  %v2394_v12 = vld [vmem:[%s11992_s6] sm:$0xff]  ;;  %v2395_v14 = vld [vmem:[%s11992_s6 + $0x8] sm:$0xff]  ;;  %v1540_v19 = vld [vmem:[%s11990_s4 + $0x10] sm:$0xff] }
   0x6   :  { %7950 = vmatprep.subr.bf16.mxu0 %v7949_v6  ;;  %v1538_v15 = vld [vmem:[%s11990_s4] sm:$0xff]  ;;  %v7985_v17 = vpack.c.bf16 %v2395_v14, %v2394_v12  ;;  %v1539_v18 = vld [vmem:[%s11990_s4 + $0x8] sm:$0xff]  ;;  %v1541_v21 = vld [vmem:[%s11990_s4 + $0x18] sm:$0xff] }
   0x7   :  { %v7953_v20 = vpack.c.bf16 %v1539_v18, %v1538_v15  ;;  %v7957_v22 = vpack.c.bf16 %v1541_v21, %v1540_v19  ;;  %v55_v23 = vld [vmem:[%s11986_s0 + $0x38] sm:$0xff]  ;;  %v1542_v24 = vld [vmem:[%s11990_s4 + $0x20] sm:$0xff]  ;;  %v1543_v25 = vld [vmem:[%s11990_s4 + $0x28] sm:$0xff] }
   0x8   :  { %v56_v26 = vld [vmem:[%s11986_s0 + $0x40] sm:$0xff]  ;;  %v7961_v27 = vpack.c.bf16 %v1543_v25, %v1542_v24 }
   0x9   :  { %7952 = vmatpush3.bf16.msra.mxu0 %v7949_v6  ;;  %7954 = vmatprep.subr.bf16.mxu1 %v7953_v20 }
   0xa   :  { %7079 = vmatprep.subr.msk.mxu0 %vm701_vm1, %v308_v7  ;;  %7956 = vmatpush3.bf16.msra.mxu1 %v7953_v20 }
   0xb   :  { %7958 = vmatprep.subr.bf16.mxu1 %v7957_v22 }
   0xd   :  { %7080 = vmatpush3.msk.msra.mxu0 %vm701_vm1, %v308_v7 }
   0xe   :  { %7082 = vmatmul.mubr.msk.f32.vlgmr.msra.gmra.mrb[0].mxu0 %vm316_vm0, %v49_v8  ;;  %7986 = vmatprep.subr.bf16.mxu0 %v7985_v17 }
   0xf   :  { %7084 = vmatprep.mubr.msk.f32.mxu0 %vm316_vm0, %v50_v9  ;;  %7988 = vmatpush3.bf16.msra.mxu0 %v7985_v17 }
  0x12   :  { %7085 = vmatmul.mubr.msk.f32.gmra.mrb[2].mxu0 %vm316_vm0, %v51_v10 }
  0x13   :  { %7087 = vmatprep.mubr.msk.f32.mxu0 %vm316_vm0, %v52_v11 }
  0x16   :  { %7088 = vmatmul.mubr.msk.f32.gmra.mrb[4].mxu0 %vm316_vm0, %v53_v13 }
  0x17   :  { %7090 = vmatprep.mubr.msk.f32.mxu0 %vm316_vm0, %v54_v16 }
  0x1a   :  { %7091 = vmatmul.mubr.msk.f32.gmra.mrb[6].mxu0 %vm316_vm0, %v55_v23 }
  0x1b   :  { %19 = vsyncpa [#allocation3], 0  ;;  %7093 = vmatprep.mubr.msk.f32.mxu0 %vm316_vm0, %v56_v26  ;;  %v57_v28 = vld [vmem:[%s11986_s0 + $0x48] sm:$0xff]  ;;  %v1544_v29 = vld [vmem:[%s11990_s4 + $0x30] sm:$0xff]  ;;  %7960 = vmatpush3.bf16.msra.mxu1 %v7957_v22 }
  0x1c   :  { %v1545_v30 = vld [vmem:[%s11990_s4 + $0x38] sm:$0xff]  ;;  %v58_v31 = vld [vmem:[%s11986_s0 + $0x50] sm:$0xff]  ;;  %7962 = vmatprep.subr.bf16.mxu1 %v7961_v27  ;;  %v1546_v34 = vld [vmem:[%s11990_s4 + $0x40] sm:$0xff] }
  0x1d   :  { %v7965_v32 = vpack.c.bf16 %v1545_v30, %v1544_v29  ;;  %v59_v33 = vld [vmem:[%s11986_s0 + $0x58] sm:$0xff]  ;;  %v1547_v35 = vld [vmem:[%s11990_s4 + $0x48] sm:$0xff]  ;;  %v60_v36 = vld [vmem:[%s11986_s0 + $0x60] sm:$0xff] }
  0x1e   :  { %7094 = vmatmul.mubr.msk.f32.gmra.mrb[8].mxu0 %vm316_vm0, %v57_v28  ;;  %v7969_v37 = vpack.c.bf16 %v1547_v35, %v1546_v34  ;;  %v61_v38 = vld [vmem:[%s11986_s0 + $0x68] sm:$0xff]  ;;  %v1548_v39 = vld [vmem:[%s11990_s4 + $0x50] sm:$0xff]  ;;  %v1549_v40 = vld [vmem:[%s11990_s4 + $0x58] sm:$0xff] }
  0x1f   :  { %7096 = vmatprep.mubr.msk.f32.mxu0 %vm316_vm0, %v58_v31  ;;  %7964 = vmatpush3.bf16.msra.mxu1 %v7961_v27  ;;  %v62_v41 = vld [vmem:[%s11986_s0 + $0x70] sm:$0xff]  ;;  %v7973_v42 = vpack.c.bf16 %v1549_v40, %v1548_v39  ;;  %v63_v43 = vld [vmem:[%s11986_s0 + $0x78] sm:$0xff]  ;;  %v1550_v44 = vld [vmem:[%s11990_s4 + $0x60] sm:$0xff] }
  0x20   :  { %7966 = vmatprep.subr.bf16.mxu1 %v7965_v32  ;;  %v1551_v45 = vld [vmem:[%s11990_s4 + $0x68] sm:$0xff]  ;;  %v64_v46 = vld [vmem:[%s11986_s0 + $0x80] sm:$0xff]  ;;  %v66_v49 = vld [vmem:[%s11986_s0 + $0x90] sm:$0xff] }
  0x21   :  { %v7977_v47 = vpack.c.bf16 %v1551_v45, %v1550_v44  ;;  %v65_v48 = vld [vmem:[%s11986_s0 + $0x88] sm:$0xff]  ;;  %v67_v50 = vld [vmem:[%s11986_s0 + $0x98] sm:$0xff]  ;;  %v68_v51 = vld [vmem:[%s11986_s0 + $0xa0] sm:$0xff] }
  0x22   :  { %7097 = vmatmul.mubr.msk.f32.gmra.mrb[10].mxu0 %vm316_vm0, %v59_v33  ;;  %v69_v52 = vld [vmem:[%s11986_s0 + $0xa8] sm:$0xff]  ;;  %v70_v53 = vld [vmem:[%s11986_s0 + $0xb0] sm:$0xff]  ;;  %v71_v54 = vld [vmem:[%s11986_s0 + $0xb8] sm:$0xff] }
  0x23   :  { %7099 = vmatprep.mubr.msk.f32.mxu0 %vm316_vm0, %v60_v36  ;;  %7968 = vmatpush3.bf16.msra.mxu1 %v7965_v32  ;;  %v72_v55 = vld [vmem:[%s11986_s0 + $0xc0] sm:$0xff]  ;;  %v73_v56 = vld [vmem:[%s11986_s0 + $0xc8] sm:$0xff]  ;;  %v74_v57 = vld [vmem:[%s11986_s0 + $0xd0] sm:$0xff] }
  0x24   :  { %7970 = vmatprep.subr.bf16.mxu1 %v7969_v37  ;;  %v75_v58 = vld [vmem:[%s11986_s0 + $0xd8] sm:$0xff]  ;;  %v76_v59 = vld [vmem:[%s11986_s0 + $0xe0] sm:$0xff]  ;;  %v77_v60 = vld [vmem:[%s11986_s0 + $0xe8] sm:$0xff] }
  0x25   :  { %v78_v61 = vld [vmem:[%s11986_s0 + $0xf0] sm:$0xff]  ;;  %v79_v62 = vld [vmem:[%s11986_s0 + $0xf8] sm:$0xff]  ;;  %v80_v63 = vld [vmem:[%s11986_s0 + $0x100] sm:$0xff] }
  0x26   :  { %7100 = vmatmul.mubr.msk.f32.gmra.mrb[12].mxu0 %vm316_vm0, %v61_v38  ;;  %v81_v0 = vld [vmem:[%s11986_s0 + $0x108] sm:$0xff]  ;;  %v82_v1 = vld [vmem:[%s11986_s0 + $0x110] sm:$0xff]  ;;  %v83_v2 = vld [vmem:[%s11986_s0 + $0x118] sm:$0xff] }
  0x27   :  { %7102 = vmatprep.mubr.msk.f32.mxu0 %vm316_vm0, %v62_v41  ;;  %7972 = vmatpush3.bf16.msra.mxu1 %v7969_v37  ;;  %v84_v3 = vld [vmem:[%s11986_s0 + $0x120] sm:$0xff]  ;;  %v85_v4 = vld [vmem:[%s11986_s0 + $0x128] sm:$0xff]  ;;  %v86_v5 = vld [vmem:[%s11986_s0 + $0x130] sm:$0xff] }
  0x28   :  { %7974 = vmatprep.subr.bf16.mxu1 %v7973_v42  ;;  %v87_v6 = vld [vmem:[%s11986_s0 + $0x138] sm:$0xff]  ;;  %v88_v7 = vld [vmem:[%s11986_s0 + $0x140] sm:$0xff]  ;;  %v89_v8 = vld [vmem:[%s11986_s0 + $0x148] sm:$0xff] }
  0x29   :  { %v90_v9 = vld [vmem:[%s11986_s0 + $0x150] sm:$0xff]  ;;  %v91_v10 = vld [vmem:[%s11986_s0 + $0x158] sm:$0xff]  ;;  %v92_v11 = vld [vmem:[%s11986_s0 + $0x160] sm:$0xff] }
  0x2a   :  { %7103 = vmatmul.mubr.msk.f32.gmra.mrb[14].mxu0 %vm316_vm0, %v63_v43  ;;  %v1552_v12 = vld [vmem:[%s11990_s4 + $0x70] sm:$0xff]  ;;  %v1553_v13 = vld [vmem:[%s11990_s4 + $0x78] sm:$0xff]  ;;  %v93_v17 = vld [vmem:[%s11986_s0 + $0x168] sm:$0xff] }
  0x2b   :  { %7105 = vmatprep.mubr.msk.f32.mxu0 %vm316_vm0, %v64_v46  ;;  %7976 = vmatpush3.bf16.msra.mxu1 %v7973_v42  ;;  %v2396_v14 = vld [vmem:[%s11992_s6 + $0x10] sm:$0xff]  ;;  %v2397_v15 = vld [vmem:[%s11992_s6 + $0x18] sm:$0xff]  ;;  %v7981_v16 = vpack.c.bf16 %v1553_v13, %v1552_v12  ;;  %v96_v21 = vld [vmem:[%s11986_s0 + $0x180] sm:$0xff] }
  0x2c   :  { %7978 = vmatprep.subr.bf16.mxu1 %v7977_v47  ;;  %v7989_v18 = vpack.c.bf16 %v2397_v15, %v2396_v14  ;;  %v94_v19 = vld [vmem:[%s11986_s0 + $0x170] sm:$0xff]  ;;  %v95_v20 = vld [vmem:[%s11986_s0 + $0x178] sm:$0xff]  ;;  %v97_v22 = vld [vmem:[%s11986_s0 + $0x188] sm:$0xff] }
  0x2d   :  { %v98_v23 = vld [vmem:[%s11986_s0 + $0x190] sm:$0xff]  ;;  %v99_v24 = vld [vmem:[%s11986_s0 + $0x198] sm:$0xff]  ;;  %v100_v25 = vld [vmem:[%s11986_s0 + $0x1a0] sm:$0xff] }
  0x2e   :  { %7106 = vmatmul.mubr.msk.f32.gmra.mrb[16].mxu0 %vm316_vm0, %v65_v48  ;;  %7990 = vmatprep.subr.bf16.mxu0 %v7989_v18  ;;  %v101_v26 = vld [vmem:[%s11986_s0 + $0x1a8] sm:$0xff]  ;;  %v102_v27 = vld [vmem:[%s11986_s0 + $0x1b0] sm:$0xff]  ;;  %v2398_v28 = vld [vmem:[%s11992_s6 + $0x20] sm:$0xff] }
  0x2f   :  { %7108 = vmatprep.mubr.msk.f32.mxu0 %vm316_vm0, %v66_v49  ;;  %7980 = vmatpush3.bf16.msra.mxu1 %v7977_v47  ;;  %v2399_v29 = vld [vmem:[%s11992_s6 + $0x28] sm:$0xff]  ;;  %v103_v31 = vld [vmem:[%s11986_s0 + $0x1b8] sm:$0xff]  ;;  %v104_v32 = vld [vmem:[%s11986_s0 + $0x1c0] sm:$0xff] }
  0x30   :  { %7982 = vmatprep.subr.bf16.mxu1 %v7981_v16  ;;  %7992 = vmatpush3.bf16.msra.mxu0 %v7989_v18  ;;  %v7993_v30 = vpack.c.bf16 %v2399_v29, %v2398_v28  ;;  %v105_v33 = vld [vmem:[%s11986_s0 + $0x1c8] sm:$0xff]  ;;  %v106_v34 = vld [vmem:[%s11986_s0 + $0x1d0] sm:$0xff]  ;;  %v107_v35 = vld [vmem:[%s11986_s0 + $0x1d8] sm:$0xff] }
  0x31   :  { %v108_v36 = vld [vmem:[%s11986_s0 + $0x1e0] sm:$0xff]  ;;  %v109_v37 = vld [vmem:[%s11986_s0 + $0x1e8] sm:$0xff]  ;;  %v110_v38 = vld [vmem:[%s11986_s0 + $0x1f0] sm:$0xff] }
  0x32   :  { %7109 = vmatmul.mubr.msk.f32.gmra.mrb[18].mxu0 %vm316_vm0, %v67_v50  ;;  %7994 = vmatprep.subr.bf16.mxu0 %v7993_v30  ;;  %v2400_v39 = vld [vmem:[%s11992_s6 + $0x30] sm:$0xff]  ;;  %v2401_v40 = vld [vmem:[%s11992_s6 + $0x38] sm:$0xff]  ;;  %v112_v43 = vld [vmem:[%s11986_s0 + $0x200] sm:$0xff] }
  0x33   :  { %7111 = vmatprep.mubr.msk.f32.mxu0 %vm316_vm0, %v68_v51  ;;  %7984 = vmatpush3.bf16.msra.mxu1 %v7981_v16  ;;  %v7997_v41 = vpack.c.bf16 %v2401_v40, %v2400_v39  ;;  %v111_v42 = vld [vmem:[%s11986_s0 + $0x1f8] sm:$0xff]  ;;  %v113_v44 = vld [vmem:[%s11986_s0 + $0x208] sm:$0xff]  ;;  %v114_v45 = vld [vmem:[%s11986_s0 + $0x210] sm:$0xff] }
  0x34   :  { %7996 = vmatpush3.bf16.msra.mxu0 %v7993_v30  ;;  %v115_v46 = vld [vmem:[%s11986_s0 + $0x218] sm:$0xff]  ;;  %v116_v47 = vld [vmem:[%s11986_s0 + $0x220] sm:$0xff]  ;;  %v117_v48 = vld [vmem:[%s11986_s0 + $0x228] sm:$0xff] }
  0x35   :  { %7998 = vmatprep.subr.bf16.mxu0 %v7997_v41  ;;  %v118_v49 = vld [vmem:[%s11986_s0 + $0x230] sm:$0xff]  ;;  %v2402_v50 = vld [vmem:[%s11992_s6 + $0x40] sm:$0xff]  ;;  %v2403_v51 = vld [vmem:[%s11992_s6 + $0x48] sm:$0xff] }
  0x36   :  { %7112 = vmatmul.mubr.msk.f32.gmra.mrb[20].mxu0 %vm316_vm0, %v69_v52  ;;  %v8001_v52 = vpack.c.bf16 %v2403_v51, %v2402_v50  ;;  %v136_v12 = vld [vmem:[%s11986_s0 + $0x2c0] sm:$0xff]  ;;  %v137_v13 = vld [vmem:[%s11986_s0 + $0x2c8] sm:$0xff]  ;;  %v138_v14 = vld [vmem:[%s11986_s0 + $0x2d0] sm:$0xff] }
  0x37   :  { %7114 = vmatprep.mubr.msk.f32.mxu0 %vm316_vm0, %v70_v53  ;;  %v119_v53 = vld [vmem:[%s11986_s0 + $0x238] sm:$0xff]  ;;  %v140_v16 = vld [vmem:[%s11986_s0 + $0x2e0] sm:$0xff]  ;;  %v142_v18 = vld [vmem:[%s11986_s0 + $0x2f0] sm:$0xff] }
  0x38   :  { %8000 = vmatpush3.bf16.msra.mxu0 %v7997_v41  ;;  %v139_v15 = vld [vmem:[%s11986_s0 + $0x2d8] sm:$0xff]  ;;  %v148_v28 = vld [vmem:[%s11986_s0 + $0x320] sm:$0xff]  ;;  %v149_v29 = vld [vmem:[%s11986_s0 + $0x328] sm:$0xff] }
  0x39   :  { %8002 = vmatprep.subr.bf16.mxu0 %v8001_v52  ;;  %v150_v30 = vld [vmem:[%s11986_s0 + $0x330] sm:$0xff]  ;;  %v3250_v41 = vld [vmem:[%s11994_s8] sm:$0xff] }
  0x3a   :  { %7115 = vmatmul.mubr.msk.f32.gmra.mrb[22].mxu0 %vm316_vm0, %v71_v54  ;;  %v120_v54 = vld [vmem:[%s11986_s0 + $0x240] sm:$0xff] }
  0x3b   :  { %7117 = vmatprep.mubr.msk.f32.mxu0 %vm316_vm0, %v72_v55  ;;  %v121_v55 = vld [vmem:[%s11986_s0 + $0x248] sm:$0xff] }
  0x3c   :  { %8004 = vmatpush3.bf16.msra.mxu0 %v8001_v52  ;;  %v3252_v52 = vld [vmem:[%s11994_s8 + $0x10] sm:$0xff] }
  0x3e   :  { %7118 = vmatmul.mubr.msk.f32.gmra.mrb[24].mxu0 %vm316_vm0, %v73_v56  ;;  %v122_v56 = vld [vmem:[%s11986_s0 + $0x250] sm:$0xff] }
  0x3f   :  { %7120 = vmatprep.mubr.msk.f32.mxu0 %vm316_vm0, %v74_v57  ;;  %v123_v57 = vld [vmem:[%s11986_s0 + $0x258] sm:$0xff] }
  0x42   :  { %7121 = vmatmul.mubr.msk.f32.gmra.mrb[26].mxu0 %vm316_vm0, %v75_v58  ;;  %v124_v58 = vld [vmem:[%s11986_s0 + $0x260] sm:$0xff] }
  0x43   :  { %7123 = vmatprep.mubr.msk.f32.mxu0 %vm316_vm0, %v76_v59  ;;  %v125_v59 = vld [vmem:[%s11986_s0 + $0x268] sm:$0xff] }
  0x46   :  { %7124 = vmatmul.mubr.msk.f32.gmra.mrb[28].mxu0 %vm316_vm0, %v77_v60  ;;  %v126_v60 = vld [vmem:[%s11986_s0 + $0x270] sm:$0xff] }
  0x47   :  { %7126 = vmatprep.mubr.msk.f32.mxu0 %vm316_vm0, %v78_v61  ;;  %v2404_v61 = vld [vmem:[%s11992_s6 + $0x50] sm:$0xff] }
  0x4a   :  { %7127 = vmatmul.mubr.msk.f32.gmra.mrb[30].mxu0 %vm316_vm0, %v79_v62  ;;  %v2405_v62 = vld [vmem:[%s11992_s6 + $0x58] sm:$0xff] }
  0x4b   :  { %7129 = vmatprep.mubr.msk.f32.mxu0 %vm316_vm0, %v80_v63  ;;  %v8005_v63 = vpack.c.bf16 %v2405_v62, %v2404_v61 }
  0x4d   :  { %8006 = vmatprep.subr.bf16.mxu0 %v8005_v63 }
  0x4e   :  { %7130 = vmatmul.mubr.msk.f32.gmra.mrb[32].mxu0 %vm316_vm0, %v81_v0  ;;  %v127_v0 = vld [vmem:[%s11986_s0 + $0x278] sm:$0xff] }
  0x4f   :  { %7132 = vmatprep.mubr.msk.f32.mxu0 %vm316_vm0, %v82_v1  ;;  %v128_v1 = vld [vmem:[%s11986_s0 + $0x280] sm:$0xff]  ;;  %8008 = vmatpush3.bf16.msra.mxu0 %v8005_v63 }
  0x52   :  { %7133 = vmatmul.mubr.msk.f32.gmra.mrb[34].mxu0 %vm316_vm0, %v83_v2  ;;  %v129_v2 = vld [vmem:[%s11986_s0 + $0x288] sm:$0xff] }
  0x53   :  { %7135 = vmatprep.mubr.msk.f32.mxu0 %vm316_vm0, %v84_v3  ;;  %v130_v3 = vld [vmem:[%s11986_s0 + $0x290] sm:$0xff] }
  0x56   :  { %7136 = vmatmul.mubr.msk.f32.gmra.mrb[36].mxu0 %vm316_vm0, %v85_v4  ;;  %v131_v4 = vld [vmem:[%s11986_s0 + $0x298] sm:$0xff] }
  0x57   :  { %7138 = vmatprep.mubr.msk.f32.mxu0 %vm316_vm0, %v86_v5  ;;  %v132_v5 = vld [vmem:[%s11986_s0 + $0x2a0] sm:$0xff] }
  0x5a   :  { %7139 = vmatmul.mubr.msk.f32.gmra.mrb[38].mxu0 %vm316_vm0, %v87_v6  ;;  %v133_v6 = vld [vmem:[%s11986_s0 + $0x2a8] sm:$0xff] }
  0x5b   :  { %7141 = vmatprep.mubr.msk.f32.mxu0 %vm316_vm0, %v88_v7  ;;  %v134_v7 = vld [vmem:[%s11986_s0 + $0x2b0] sm:$0xff] }
  0x5e   :  { %7142 = vmatmul.mubr.msk.f32.gmra.mrb[40].mxu0 %vm316_vm0, %v89_v8  ;;  %v2406_v8 = vld [vmem:[%s11992_s6 + $0x60] sm:$0xff] }
  0x5f   :  { %7144 = vmatprep.mubr.msk.f32.mxu0 %vm316_vm0, %v90_v9  ;;  %v2407_v9 = vld [vmem:[%s11992_s6 + $0x68] sm:$0xff] }
  0x62   :  { %7145 = vmatmul.mubr.msk.f32.gmra.mrb[42].mxu0 %vm316_vm0, %v91_v10  ;;  %v8009_v10 = vpack.c.bf16 %v2407_v9, %v2406_v8  ;;  %v163_v8 = vld [vmem:[%s11986_s0 + $0x398] sm:$0xff] }
  0x63   :  { %7147 = vmatprep.mubr.msk.f32.mxu0 %vm316_vm0, %v92_v11  ;;  %v135_v11 = vld [vmem:[%s11986_s0 + $0x2b8] sm:$0xff] }
  0x64   :  { %8010 = vmatprep.subr.bf16.mxu0 %v8009_v10 }
  0x65   :  { %8012 = vmatpush3.bf16.msra.mxu0 %v8009_v10  ;;  %v164_v10 = vld [vmem:[%s11986_s0 + $0x3a0] sm:$0xff] }
  0x66   :  { %7148 = vmatmul.mubr.msk.f32.gmra.mrb[44].mxu0 %vm316_vm0, %v93_v17  ;;  %v141_v17 = vld [vmem:[%s11986_s0 + $0x2e8] sm:$0xff] }
  0x67   :  { %7150 = vmatprep.mubr.msk.f32.mxu0 %vm316_vm0, %v94_v19  ;;  %v12053_v19 = vmov 0.0|0.0  }
  0x68   :  { %8017 = vmatprep.subr.bf16.mxu1 %v12053_v19 }
  0x6a   :  { %7151 = vmatmul.mubr.msk.f32.gmra.mrb[46].mxu0 %vm316_vm0, %v95_v20  ;;  %v2408_v20 = vld [vmem:[%s11992_s6 + $0x70] sm:$0xff] }
  0x6b   :  { %7153 = vmatprep.mubr.msk.f32.mxu0 %vm316_vm0, %v96_v21  ;;  %v2409_v21 = vld [vmem:[%s11992_s6 + $0x78] sm:$0xff] }
  0x6e   :  { %7154 = vmatmul.mubr.msk.f32.gmra.mrb[48].mxu0 %vm316_vm0, %v97_v22  ;;  %v143_v22 = vld [vmem:[%s11986_s0 + $0x2f8] sm:$0xff] }
  0x6f   :  { %7156 = vmatprep.mubr.msk.f32.mxu0 %vm316_vm0, %v98_v23  ;;  %v8013_v23 = vpack.c.bf16 %v2409_v21, %v2408_v20 }
  0x71   :  { %8014 = vmatprep.subr.bf16.mxu0 %v8013_v23 }
  0x72   :  { %7157 = vmatmul.mubr.msk.f32.gmra.mrb[50].mxu0 %vm316_vm0, %v99_v24  ;;  %v144_v24 = vld [vmem:[%s11986_s0 + $0x300] sm:$0xff] }
  0x73   :  { %7159 = vmatprep.mubr.msk.f32.mxu0 %vm316_vm0, %v100_v25  ;;  %v145_v25 = vld [vmem:[%s11986_s0 + $0x308] sm:$0xff]  ;;  %8016 = vmatpush3.bf16.msra.mxu0 %v8013_v23 }
  0x76   :  { %7160 = vmatmul.mubr.msk.f32.gmra.mrb[52].mxu0 %vm316_vm0, %v101_v26  ;;  %v146_v26 = vld [vmem:[%s11986_s0 + $0x310] sm:$0xff] }
  0x77   :  { %7162 = vmatprep.mubr.msk.f32.mxu0 %vm316_vm0, %v102_v27  ;;  %v147_v27 = vld [vmem:[%s11986_s0 + $0x318] sm:$0xff] }
  0x7a   :  { %7163 = vmatmul.mubr.msk.f32.gmra.mrb[54].mxu0 %vm316_vm0, %v103_v31  ;;  %v151_v31 = vld [vmem:[%s11986_s0 + $0x338] sm:$0xff] }
  0x7b   :  { %7165 = vmatprep.mubr.msk.f32.mxu0 %vm316_vm0, %v104_v32  ;;  %v152_v32 = vld [vmem:[%s11986_s0 + $0x340] sm:$0xff] }
  0x7e   :  { %7166 = vmatmul.mubr.msk.f32.gmra.mrb[56].mxu0 %vm316_vm0, %v105_v33  ;;  %v153_v33 = vld [vmem:[%s11986_s0 + $0x348] sm:$0xff] }
  0x7f   :  { %7168 = vmatprep.mubr.msk.f32.mxu0 %vm316_vm0, %v106_v34  ;;  %v154_v34 = vld [vmem:[%s11986_s0 + $0x350] sm:$0xff] }
  0x82   :  { %7169 = vmatmul.mubr.msk.f32.gmra.mrb[58].mxu0 %vm316_vm0, %v107_v35  ;;  %v8820_v35 = vld [vmem:[%s11989_s3] ss:$0 sm:$0xff] }
  0x83   :  { %7171 = vmatprep.mubr.msk.f32.mxu0 %vm316_vm0, %v108_v36  ;;  %v155_v36 = vld [vmem:[%s11986_s0 + $0x358] sm:$0xff] }
  0x86   :  { %7172 = vmatmul.mubr.msk.f32.gmra.mrb[60].mxu0 %vm316_vm0, %v109_v37  ;;  %v156_v37 = vld [vmem:[%s11986_s0 + $0x360] sm:$0xff] }
  0x87   :  { %7174 = vmatprep.mubr.msk.f32.mxu0 %vm316_vm0, %v110_v38 }
  0x8a   :  { %7175 = vmatmul.mubr.msk.f32.gmra.mrb[62].mxu0 %vm316_vm0, %v111_v42  ;;  %v3251_v42 = vld [vmem:[%s11994_s8 + $0x8] sm:$0xff] }
  0x8b   :  { %7177 = vmatprep.mubr.msk.f32.mxu0 %vm316_vm0, %v112_v43 }
  0x8e   :  { %7178 = vmatmul.mubr.msk.f32.gmra.mrb[64].mxu0 %vm316_vm0, %v113_v44  ;;  %v157_v44 = vld [vmem:[%s11986_s0 + $0x368] sm:$0xff] }
  0x8f   :  { %7180 = vmatprep.mubr.msk.f32.mxu0 %vm316_vm0, %v114_v45  ;;  %v158_v45 = vld [vmem:[%s11986_s0 + $0x370] sm:$0xff] }
  0x92   :  { %7181 = vmatmul.mubr.msk.f32.gmra.mrb[66].mxu0 %vm316_vm0, %v115_v46 }
  0x93   :  { %7183 = vmatprep.mubr.msk.f32.mxu0 %vm316_vm0, %v116_v47 }
  0x96   :  { %7184 = vmatmul.mubr.msk.f32.gmra.mrb[68].mxu0 %vm316_vm0, %v117_v48  ;;  %v8018_v48 = vpack.c.bf16 %v3251_v42, %v3250_v41  ;;  %v171_v42 = vld [vmem:[%s11986_s0 + $0x3d8] sm:$0xff] }
  0x97   :  { %7186 = vmatprep.mubr.msk.f32.mxu0 %vm316_vm0, %v118_v49 }
  0x9a   :  { %7187 = vmatmul.mubr.msk.f32.gmra.mrb[70].mxu0 %vm316_vm0, %v119_v53  ;;  %v3253_v53 = vld [vmem:[%s11994_s8 + $0x18] sm:$0xff] }
  0x9b   :  { %7189 = vmatprep.mubr.msk.f32.mxu0 %vm316_vm0, %v120_v54 }
  0x9e   :  { %7190 = vmatmul.mubr.msk.f32.gmra.mrb[72].mxu0 %vm316_vm0, %v121_v55  ;;  %v159_v55 = vld [vmem:[%s11986_s0 + $0x378] sm:$0xff] }
  0x9f   :  { %7192 = vmatprep.mubr.msk.f32.mxu0 %vm316_vm0, %v122_v56 }
  0xa2   :  { %7193 = vmatmul.mubr.msk.f32.gmra.mrb[74].mxu0 %vm316_vm0, %v123_v57  ;;  %v160_v57 = vld [vmem:[%s11986_s0 + $0x380] sm:$0xff] }
  0xa3   :  { %7195 = vmatprep.mubr.msk.f32.mxu0 %vm316_vm0, %v124_v58 }
  0xa6   :  { %7196 = vmatmul.mubr.msk.f32.gmra.mrb[76].mxu0 %vm316_vm0, %v125_v59 }
  0xa7   :  { %7198 = vmatprep.mubr.msk.f32.mxu0 %vm316_vm0, %v126_v60  ;;  %v8021_v60 = vpack.c.bf16 %v3253_v53, %v3252_v52  ;;  %v174_v52 = vld [vmem:[%s11986_s0 + $0x3f0] sm:$0xff] }
  0xaa   :  { %7199 = vmatmul.mubr.msk.f32.gmra.mrb[78].mxu0 %vm316_vm0, %v127_v0  ;;  %v161_v0 = vld [vmem:[%s11986_s0 + $0x388] sm:$0xff] }
  0xab   :  { %7201 = vmatprep.mubr.msk.f32.mxu0 %vm316_vm0, %v128_v1 }
  0xae   :  { %7202 = vmatmul.mubr.msk.f32.gmra.mrb[80].mxu0 %vm316_vm0, %v129_v2  ;;  %v162_v2 = vld [vmem:[%s11986_s0 + $0x390] sm:$0xff] }
  0xaf   :  { %7204 = vmatprep.mubr.msk.f32.mxu0 %vm316_vm0, %v130_v3 }
  0xb2   :  { %7205 = vmatmul.mubr.msk.f32.gmra.mrb[82].mxu0 %vm316_vm0, %v131_v4 }
  0xb3   :  { %7207 = vmatprep.mubr.msk.f32.mxu0 %vm316_vm0, %v132_v5 }
  0xb6   :  { %7208 = vmatmul.mubr.msk.f32.gmra.mrb[84].mxu0 %vm316_vm0, %v133_v6 }
  0xb7   :  { %7210 = vmatprep.mubr.msk.f32.mxu0 %vm316_vm0, %v134_v7 }
  0xba   :  { %7211 = vmatmul.mubr.msk.f32.gmra.mrb[86].mxu0 %vm316_vm0, %v135_v11 }
  0xbb   :  { %7213 = vmatprep.mubr.msk.f32.mxu0 %vm316_vm0, %v136_v12 }
  0xbe   :  { %7214 = vmatmul.mubr.msk.f32.gmra.mrb[88].mxu0 %vm316_vm0, %v137_v13 }
  0xbf   :  { %7216 = vmatprep.mubr.msk.f32.mxu0 %vm316_vm0, %v138_v14 }
  0xc2   :  { %7217 = vmatmul.mubr.msk.f32.gmra.mrb[90].mxu0 %vm316_vm0, %v139_v15 }
  0xc3   :  { %7219 = vmatprep.mubr.msk.f32.mxu0 %vm316_vm0, %v140_v16  ;;  %v165_v16 = vld [vmem:[%s11986_s0 + $0x3a8] sm:$0xff] }
  0xc6   :  { %7220 = vmatmul.mubr.msk.f32.gmra.mrb[92].mxu0 %vm316_vm0, %v141_v17 }
  0xc7   :  { %7222 = vmatprep.mubr.msk.f32.mxu0 %vm316_vm0, %v142_v18  ;;  %v166_v18 = vld [vmem:[%s11986_s0 + $0x3b0] sm:$0xff] }
  0xca   :  { %7223 = vmatmul.mubr.msk.f32.gmra.mrb[94].mxu0 %vm316_vm0, %v143_v22 }
  0xcb   :  { %7225 = vmatprep.mubr.msk.f32.mxu0 %vm316_vm0, %v144_v24 }
  0xce   :  { %7226 = vmatmul.mubr.msk.f32.gmra.mrb[96].mxu0 %vm316_vm0, %v145_v25  ;;  %v167_v25 = vld [vmem:[%s11986_s0 + $0x3b8] sm:$0xff] }
  0xcf   :  { %7228 = vmatprep.mubr.msk.f32.mxu0 %vm316_vm0, %v146_v26 }
  0xd2   :  { %7229 = vmatmul.mubr.msk.f32.gmra.mrb[98].mxu0 %vm316_vm0, %v147_v27  ;;  %v168_v27 = vld [vmem:[%s11986_s0 + $0x3c0] sm:$0xff] }
  0xd3   :  { %7231 = vmatprep.mubr.msk.f32.mxu0 %vm316_vm0, %v148_v28 }
  0xd6   :  { %7232 = vmatmul.mubr.msk.f32.gmra.mrb[100].mxu0 %vm316_vm0, %v149_v29 }
  0xd7   :  { %7234 = vmatprep.mubr.msk.f32.mxu0 %vm316_vm0, %v150_v30 }
  0xda   :  { %7235 = vmatmul.mubr.msk.f32.gmra.mrb[102].mxu0 %vm316_vm0, %v151_v31 }
  0xdb   :  { %7237 = vmatprep.mubr.msk.f32.mxu0 %vm316_vm0, %v152_v32 }
  0xde   :  { %7238 = vmatmul.mubr.msk.f32.gmra.mrb[104].mxu0 %vm316_vm0, %v153_v33  ;;  %v169_v33 = vld [vmem:[%s11986_s0 + $0x3c8] sm:$0xff] }
  0xdf   :  { %7240 = vmatprep.mubr.msk.f32.mxu0 %vm316_vm0, %v154_v34 }
  0xe1   :  { %v7083_v38 = vpop.f32.mrb[0].mxu0 }
  0xe2   :  { %v777_v39 = vadd.f32 %v7083_v38, %v8820_v35  ;;  %v771_v40 = vpop.f32.mrb[1].mxu0  ;;  %7241 = vmatmul.mubr.msk.f32.gmra.mrb[106].mxu0 %vm316_vm0, %v155_v36  ;;  %v170_v36 = vld [vmem:[%s11986_s0 + $0x3d0] sm:$0xff] }
  0xe3   :  { %v772_v43 = vadd.f32 %v8820_v35, %v771_v40  ;;  %7243 = vmatprep.mubr.msk.f32.mxu0 %vm316_vm0, %v156_v37 }
  0xe4   :  { %v1411_v51 = vmax.f32 %v777_v39, 0.0 }
  0xe5   :  { %v7086_v46 = vpop.f32.mrb[2].mxu0  ;;  %v1410_v47 = vmax.f32 %v772_v43, 0.0 }
  0xe6   :  { %v787_v49 = vadd.f32 %v7086_v46, %v8820_v35  ;;  %v781_v50 = vpop.f32.mrb[3].mxu0  ;;  %7244 = vmatmul.mubr.msk.f32.gmra.mrb[108].mxu0 %vm316_vm0, %v157_v44  ;;  %v172_v44 = vld [vmem:[%s11986_s0 + $0x3e0] sm:$0xff] }
  0xe7   :  { %v782_v54 = vadd.f32 %v8820_v35, %v781_v50  ;;  %7305 = vmatprep.mubr.f32.mxu1 %v1410_v47  ;;  %7246 = vmatprep.mubr.msk.f32.mxu0 %vm316_vm0, %v158_v45  ;;  %v173_v50 = vld [vmem:[%s11986_s0 + $0x3e8] sm:$0xff] }
  0xe8   :  { %7306 = vmatmul.mubr.f32.vlgmr.msra.gmra.mrb[0].mxu1 %v1411_v51  ;;  %v1413_v56 = vmax.f32 %v787_v49, 0.0 }
  0xe9   :  { %v1412_v58 = vmax.f32 %v782_v54, 0.0  ;;  %v7089_v59 = vpop.f32.mrb[4].mxu0  ;;  %8019 = vmatpush1.bf16.msra.mxu1 %v8018_v48 }
  0xea   :  { %v797_v61 = vadd.f32 %v7089_v59, %v8820_v35  ;;  %v791_v62 = vpop.f32.mrb[5].mxu0  ;;  %7247 = vmatmul.mubr.msk.f32.gmra.mrb[110].mxu0 %vm316_vm0, %v159_v55  ;;  %8020 = vmatprep.subr.bf16.mxu1 %v12053_v19 }
  0xeb   :  { %7308 = vmatprep.mubr.f32.mxu1 %v1412_v58  ;;  %v792_v63 = vadd.f32 %v8820_v35, %v791_v62  ;;  %7249 = vmatprep.mubr.msk.f32.mxu0 %vm316_vm0, %v160_v57  ;;  %v175_v58 = vld [vmem:[%s11986_s0 + $0x3f8] sm:$0xff] }
  0xec   :  { %7309 = vmatmul.mubr.f32.gmra.mrb[2].mxu1 %v1413_v56  ;;  %v1415_v1 = vmax.f32 %v797_v61, 0.0 }
  0xed   :  { %v1414_v3 = vmax.f32 %v792_v63, 0.0  ;;  %v7092_v4 = vpop.f32.mrb[6].mxu0  ;;  %8022 = vmatpush1.bf16.msra.mxu1 %v8021_v60 }
  0xee   :  { %v807_v5 = vadd.f32 %v7092_v4, %v8820_v35  ;;  %v801_v6 = vpop.f32.mrb[7].mxu0  ;;  %7250 = vmatmul.mubr.msk.f32.gmra.mrb[112].mxu0 %vm316_vm0, %v161_v0  ;;  %8023 = vmatprep.subr.bf16.mxu1 %v12053_v19 }
  0xef   :  { %7311 = vmatprep.mubr.f32.mxu1 %v1414_v3  ;;  %v802_v7 = vadd.f32 %v8820_v35, %v801_v6  ;;  %7252 = vmatprep.mubr.msk.f32.mxu0 %vm316_vm0, %v162_v2 }
  0xf0   :  { %7312 = vmatmul.mubr.f32.gmra.mrb[4].mxu1 %v1415_v1  ;;  %v1417_v9 = vmax.f32 %v807_v5, 0.0 }
  0xf1   :  { %v1416_v11 = vmax.f32 %v802_v7, 0.0  ;;  %v7095_v12 = vpop.f32.mrb[8].mxu0 }
  0xf2   :  { %v817_v13 = vadd.f32 %v7095_v12, %v8820_v35  ;;  %v811_v14 = vpop.f32.mrb[9].mxu0  ;;  %7253 = vmatmul.mubr.msk.f32.gmra.mrb[114].mxu0 %vm316_vm0, %v163_v8 }
  0xf3   :  { %7314 = vmatprep.mubr.f32.mxu1 %v1416_v11  ;;  %v812_v15 = vadd.f32 %v8820_v35, %v811_v14  ;;  %7255 = vmatprep.mubr.msk.f32.mxu0 %vm316_vm0, %v164_v10 }
  0xf4   :  { %7315 = vmatmul.mubr.f32.gmra.mrb[6].mxu1 %v1417_v9  ;;  %v1419_v17 = vmax.f32 %v817_v13, 0.0 }
  0xf5   :  { %v1418_v20 = vmax.f32 %v812_v15, 0.0  ;;  %v7098_v21 = vpop.f32.mrb[10].mxu0 }
  0xf6   :  { %v827_v22 = vadd.f32 %v7098_v21, %v8820_v35  ;;  %v821_v23 = vpop.f32.mrb[11].mxu0  ;;  %7256 = vmatmul.mubr.msk.f32.gmra.mrb[116].mxu0 %vm316_vm0, %v165_v16 }
  0xf7   :  { %7317 = vmatprep.mubr.f32.mxu1 %v1418_v20  ;;  %v822_v24 = vadd.f32 %v8820_v35, %v821_v23  ;;  %7258 = vmatprep.mubr.msk.f32.mxu0 %vm316_vm0, %v166_v18 }
  0xf8   :  { %7318 = vmatmul.mubr.f32.gmra.mrb[8].mxu1 %v1419_v17  ;;  %v1421_v26 = vmax.f32 %v827_v22, 0.0 }
  0xf9   :  { %v1420_v28 = vmax.f32 %v822_v24, 0.0  ;;  %v7101_v29 = vpop.f32.mrb[12].mxu0 }
  0xfa   :  { %v837_v30 = vadd.f32 %v7101_v29, %v8820_v35  ;;  %v831_v31 = vpop.f32.mrb[13].mxu0  ;;  %7259 = vmatmul.mubr.msk.f32.gmra.mrb[118].mxu0 %vm316_vm0, %v167_v25 }
  0xfb   :  { %7320 = vmatprep.mubr.f32.mxu1 %v1420_v28  ;;  %v832_v32 = vadd.f32 %v8820_v35, %v831_v31  ;;  %7261 = vmatprep.mubr.msk.f32.mxu0 %vm316_vm0, %v168_v27 }
  0xfc   :  { %7321 = vmatmul.mubr.f32.gmra.mrb[10].mxu1 %v1421_v26  ;;  %v1423_v34 = vmax.f32 %v837_v30, 0.0 }
  0xfd   :  { %v1422_v37 = vmax.f32 %v832_v32, 0.0  ;;  %v7104_v38 = vpop.f32.mrb[14].mxu0 }
  0xfe   :  { %v847_v39 = vadd.f32 %v7104_v38, %v8820_v35  ;;  %v841_v40 = vpop.f32.mrb[15].mxu0  ;;  %7262 = vmatmul.mubr.msk.f32.gmra.mrb[120].mxu0 %vm316_vm0, %v169_v33 }
  0xff   :  { %7323 = vmatprep.mubr.f32.mxu1 %v1422_v37  ;;  %v842_v41 = vadd.f32 %v8820_v35, %v841_v40  ;;  %7264 = vmatprep.mubr.msk.f32.mxu0 %vm316_vm0, %v170_v36 }
 0x100   :  { %7324 = vmatmul.mubr.f32.gmra.mrb[12].mxu1 %v1423_v34  ;;  %v1425_v43 = vmax.f32 %v847_v39, 0.0 }
 0x101   :  { %v1424_v45 = vmax.f32 %v842_v41, 0.0  ;;  %v7107_v46 = vpop.f32.mrb[16].mxu0 }
 0x102   :  { %v857_v47 = vadd.f32 %v7107_v46, %v8820_v35  ;;  %v851_v48 = vpop.f32.mrb[17].mxu0  ;;  %7265 = vmatmul.mubr.msk.f32.gmra.mrb[122].mxu0 %vm316_vm0, %v171_v42 }
 0x103   :  { %7326 = vmatprep.mubr.f32.mxu1 %v1424_v45  ;;  %v852_v49 = vadd.f32 %v8820_v35, %v851_v48  ;;  %7267 = vmatprep.mubr.msk.f32.mxu0 %vm316_vm0, %v172_v44 }
 0x104   :  { %7327 = vmatmul.mubr.f32.gmra.mrb[14].mxu1 %v1425_v43  ;;  %v1427_v51 = vmax.f32 %v857_v47, 0.0 }
 0x105   :  { %v1426_v53 = vmax.f32 %v852_v49, 0.0  ;;  %v7110_v54 = vpop.f32.mrb[18].mxu0 }
 0x106   :  { %v867_v55 = vadd.f32 %v7110_v54, %v8820_v35  ;;  %v861_v56 = vpop.f32.mrb[19].mxu0  ;;  %7268 = vmatmul.mubr.msk.f32.gmra.mrb[124].mxu0 %vm316_vm0, %v173_v50 }
 0x107   :  { %7329 = vmatprep.mubr.f32.mxu1 %v1426_v53  ;;  %v862_v57 = vadd.f32 %v8820_v35, %v861_v56  ;;  %7270 = vmatprep.mubr.msk.f32.mxu0 %vm316_vm0, %v174_v52 }
 0x108   :  { %7330 = vmatmul.mubr.f32.gmra.mrb[16].mxu1 %v1427_v51  ;;  %v1429_v59 = vmax.f32 %v867_v55, 0.0 }
 0x109   :  { %v1428_v60 = vmax.f32 %v862_v57, 0.0  ;;  %v7113_v61 = vpop.f32.mrb[20].mxu0 }
 0x10a   :  { %v877_v62 = vadd.f32 %v7113_v61, %v8820_v35  ;;  %v871_v63 = vpop.f32.mrb[21].mxu0  ;;  %7271 = vmatmul.mubr.msk.f32.gmra.mrb[126].mxu0 %vm316_vm0, %v175_v58 }
 0x10b   :  { %7332 = vmatprep.mubr.f32.mxu1 %v1428_v60  ;;  %v872_v0 = vadd.f32 %v8820_v35, %v871_v63 }
 0x10c   :  { %7333 = vmatmul.mubr.f32.gmra.mrb[18].mxu1 %v1429_v59  ;;  %v1431_v1 = vmax.f32 %v877_v62, 0.0 }
 0x10d   :  { %v1430_v2 = vmax.f32 %v872_v0, 0.0  ;;  %v7116_v3 = vpop.f32.mrb[22].mxu0 }
 0x10e   :  { %v887_v4 = vadd.f32 %v7116_v3, %v8820_v35  ;;  %v881_v5 = vpop.f32.mrb[23].mxu0 }
 0x10f   :  { %7335 = vmatprep.mubr.f32.mxu1 %v1430_v2  ;;  %v882_v6 = vadd.f32 %v8820_v35, %v881_v5 }
 0x110   :  { %7336 = vmatmul.mubr.f32.gmra.mrb[20].mxu1 %v1431_v1  ;;  %v1433_v7 = vmax.f32 %v887_v4, 0.0 }
 0x111   :  { %v1432_v8 = vmax.f32 %v882_v6, 0.0  ;;  %v7119_v9 = vpop.f32.mrb[24].mxu0 }
 0x112   :  { %v897_v10 = vadd.f32 %v7119_v9, %v8820_v35  ;;  %v891_v11 = vpop.f32.mrb[25].mxu0 }
 0x113   :  { %7338 = vmatprep.mubr.f32.mxu1 %v1432_v8  ;;  %v892_v12 = vadd.f32 %v8820_v35, %v891_v11 }
 0x114   :  { %7339 = vmatmul.mubr.f32.gmra.mrb[22].mxu1 %v1433_v7  ;;  %v1435_v13 = vmax.f32 %v897_v10, 0.0 }
 0x115   :  { %v1434_v14 = vmax.f32 %v892_v12, 0.0  ;;  %v7122_v15 = vpop.f32.mrb[26].mxu0 }
 0x116   :  { %v907_v16 = vadd.f32 %v7122_v15, %v8820_v35  ;;  %v901_v17 = vpop.f32.mrb[27].mxu0 }
 0x117   :  { %7341 = vmatprep.mubr.f32.mxu1 %v1434_v14  ;;  %v902_v18 = vadd.f32 %v8820_v35, %v901_v17 }
 0x118   :  { %7342 = vmatmul.mubr.f32.gmra.mrb[24].mxu1 %v1435_v13  ;;  %v1437_v20 = vmax.f32 %v907_v16, 0.0 }
 0x119   :  { %v1436_v21 = vmax.f32 %v902_v18, 0.0  ;;  %v7125_v22 = vpop.f32.mrb[28].mxu0 }
 0x11a   :  { %v917_v23 = vadd.f32 %v7125_v22, %v8820_v35  ;;  %v911_v24 = vpop.f32.mrb[29].mxu0 }
 0x11b   :  { %7344 = vmatprep.mubr.f32.mxu1 %v1436_v21  ;;  %v912_v25 = vadd.f32 %v8820_v35, %v911_v24 }
 0x11c   :  { %7345 = vmatmul.mubr.f32.gmra.mrb[26].mxu1 %v1437_v20  ;;  %v1439_v26 = vmax.f32 %v917_v23, 0.0 }
 0x11d   :  { %v1438_v27 = vmax.f32 %v912_v25, 0.0  ;;  %v7128_v28 = vpop.f32.mrb[30].mxu0 }
 0x11e   :  { %v927_v29 = vadd.f32 %v7128_v28, %v8820_v35  ;;  %v921_v30 = vpop.f32.mrb[31].mxu0 }
 0x11f   :  { %7347 = vmatprep.mubr.f32.mxu1 %v1438_v27  ;;  %v922_v31 = vadd.f32 %v8820_v35, %v921_v30  ;;  %v3255_v30 = vld [vmem:[%s11994_s8 + $0x28] sm:$0xff] }
 0x120   :  { %7348 = vmatmul.mubr.f32.gmra.mrb[28].mxu1 %v1439_v26  ;;  %v1441_v32 = vmax.f32 %v927_v29, 0.0  ;;  %v3254_v29 = vld [vmem:[%s11994_s8 + $0x20] sm:$0xff] }
 0x121   :  { %v1440_v33 = vmax.f32 %v922_v31, 0.0  ;;  %v7131_v34 = vpop.f32.mrb[32].mxu0 }
 0x122   :  { %v937_v36 = vadd.f32 %v7131_v34, %v8820_v35  ;;  %v931_v37 = vpop.f32.mrb[33].mxu0 }
 0x123   :  { %7350 = vmatprep.mubr.f32.mxu1 %v1440_v33  ;;  %v932_v38 = vadd.f32 %v8820_v35, %v931_v37 }
 0x124   :  { %7351 = vmatmul.mubr.f32.gmra.mrb[30].mxu1 %v1441_v32  ;;  %v1443_v39 = vmax.f32 %v937_v36, 0.0  ;;  %v8024_v32 = vpack.c.bf16 %v3255_v30, %v3254_v29  ;;  %v3260_v30 = vld [vmem:[%s11994_s8 + $0x50] sm:$0xff] }
 0x125   :  { %v1442_v40 = vmax.f32 %v932_v38, 0.0  ;;  %v7134_v41 = vpop.f32.mrb[34].mxu0 }
 0x126   :  { %v947_v42 = vadd.f32 %v7134_v41, %v8820_v35  ;;  %v941_v43 = vpop.f32.mrb[35].mxu0  ;;  %8025 = vmatpush1.bf16.msra.mxu1 %v8024_v32 }
 0x127   :  { %7353 = vmatprep.mubr.f32.mxu1 %v1442_v40  ;;  %v942_v44 = vadd.f32 %v8820_v35, %v941_v43  ;;  %8026 = vmatprep.subr.bf16.mxu1 %v12053_v19 }
 0x128   :  { %7354 = vmatmul.mubr.f32.gmra.mrb[32].mxu1 %v1443_v39  ;;  %v1445_v45 = vmax.f32 %v947_v42, 0.0 }
 0x129   :  { %v1444_v46 = vmax.f32 %v942_v44, 0.0  ;;  %v7137_v47 = vpop.f32.mrb[36].mxu0 }
 0x12a   :  { %v957_v48 = vadd.f32 %v7137_v47, %v8820_v35  ;;  %v951_v49 = vpop.f32.mrb[37].mxu0 }
 0x12b   :  { %7356 = vmatprep.mubr.f32.mxu1 %v1444_v46  ;;  %v952_v50 = vadd.f32 %v8820_v35, %v951_v49 }
 0x12c   :  { %7357 = vmatmul.mubr.f32.gmra.mrb[34].mxu1 %v1445_v45  ;;  %v1447_v51 = vmax.f32 %v957_v48, 0.0 }
 0x12d   :  { %v1446_v52 = vmax.f32 %v952_v50, 0.0  ;;  %v7140_v53 = vpop.f32.mrb[38].mxu0 }
 0x12e   :  { %v967_v54 = vadd.f32 %v7140_v53, %v8820_v35  ;;  %v961_v55 = vpop.f32.mrb[39].mxu0 }
 0x12f   :  { %7359 = vmatprep.mubr.f32.mxu1 %v1446_v52  ;;  %v962_v56 = vadd.f32 %v8820_v35, %v961_v55  ;;  %v3257_v52 = vld [vmem:[%s11994_s8 + $0x38] sm:$0xff] }
 0x130   :  { %7360 = vmatmul.mubr.f32.gmra.mrb[36].mxu1 %v1447_v51  ;;  %v1449_v57 = vmax.f32 %v967_v54, 0.0  ;;  %v3256_v51 = vld [vmem:[%s11994_s8 + $0x30] sm:$0xff] }
 0x131   :  { %v1448_v58 = vmax.f32 %v962_v56, 0.0  ;;  %v7143_v59 = vpop.f32.mrb[40].mxu0  ;;  %v8027_v54 = vpack.c.bf16 %v3257_v52, %v3256_v51  ;;  %v3262_v52 = vld [vmem:[%s11994_s8 + $0x60] sm:$0xff] }
 0x132   :  { %v977_v60 = vadd.f32 %v7143_v59, %v8820_v35  ;;  %v971_v61 = vpop.f32.mrb[41].mxu0 }
 0x133   :  { %7362 = vmatprep.mubr.f32.mxu1 %v1448_v58  ;;  %v972_v62 = vadd.f32 %v8820_v35, %v971_v61  ;;  %8028 = vmatpush1.bf16.msra.mxu1 %v8027_v54 }
 0x134   :  { %7363 = vmatmul.mubr.f32.gmra.mrb[38].mxu1 %v1449_v57  ;;  %v1451_v63 = vmax.f32 %v977_v60, 0.0  ;;  %8029 = vmatprep.subr.bf16.mxu1 %v12053_v19 }
 0x135   :  { %v1450_v0 = vmax.f32 %v972_v62, 0.0  ;;  %v7146_v1 = vpop.f32.mrb[42].mxu0 }
 0x136   :  { %v987_v2 = vadd.f32 %v7146_v1, %v8820_v35  ;;  %v981_v3 = vpop.f32.mrb[43].mxu0 }
 0x137   :  { %7365 = vmatprep.mubr.f32.mxu1 %v1450_v0  ;;  %v982_v4 = vadd.f32 %v8820_v35, %v981_v3 }
 0x138   :  { %7366 = vmatmul.mubr.f32.gmra.mrb[40].mxu1 %v1451_v63  ;;  %v1453_v5 = vmax.f32 %v987_v2, 0.0 }
 0x139   :  { %v1452_v6 = vmax.f32 %v982_v4, 0.0  ;;  %v7149_v7 = vpop.f32.mrb[44].mxu0 }
 0x13a   :  { %v997_v8 = vadd.f32 %v7149_v7, %v8820_v35  ;;  %v991_v9 = vpop.f32.mrb[45].mxu0 }
 0x13b   :  { %7368 = vmatprep.mubr.f32.mxu1 %v1452_v6  ;;  %v992_v10 = vadd.f32 %v8820_v35, %v991_v9  ;;  %v3259_v9 = vld [vmem:[%s11994_s8 + $0x48] sm:$0xff] }
 0x13c   :  { %7369 = vmatmul.mubr.f32.gmra.mrb[42].mxu1 %v1453_v5  ;;  %v1455_v11 = vmax.f32 %v997_v8, 0.0  ;;  %v3258_v8 = vld [vmem:[%s11994_s8 + $0x40] sm:$0xff] }
 0x13d   :  { %v1454_v12 = vmax.f32 %v992_v10, 0.0  ;;  %v7152_v13 = vpop.f32.mrb[46].mxu0 }
 0x13e   :  { %v1007_v14 = vadd.f32 %v7152_v13, %v8820_v35  ;;  %v1001_v15 = vpop.f32.mrb[47].mxu0 }
 0x13f   :  { %7371 = vmatprep.mubr.f32.mxu1 %v1454_v12  ;;  %v1002_v16 = vadd.f32 %v8820_v35, %v1001_v15 }
 0x140   :  { %7372 = vmatmul.mubr.f32.gmra.mrb[44].mxu1 %v1455_v11  ;;  %v1457_v17 = vmax.f32 %v1007_v14, 0.0  ;;  %v8030_v11 = vpack.c.bf16 %v3259_v9, %v3258_v8  ;;  %v3264_v9 = vld [vmem:[%s11994_s8 + $0x70] sm:$0xff] }
 0x141   :  { %v1456_v18 = vmax.f32 %v1002_v16, 0.0  ;;  %v7155_v20 = vpop.f32.mrb[48].mxu0 }
 0x142   :  { %v1017_v21 = vadd.f32 %v7155_v20, %v8820_v35  ;;  %v1011_v22 = vpop.f32.mrb[49].mxu0  ;;  %8031 = vmatpush1.bf16.msra.mxu1 %v8030_v11 }
 0x143   :  { %7374 = vmatprep.mubr.f32.mxu1 %v1456_v18  ;;  %v1012_v23 = vadd.f32 %v8820_v35, %v1011_v22  ;;  %8032 = vmatprep.subr.bf16.mxu1 %v12053_v19 }
 0x144   :  { %7375 = vmatmul.mubr.f32.gmra.mrb[46].mxu1 %v1457_v17  ;;  %v1459_v24 = vmax.f32 %v1017_v21, 0.0 }
 0x145   :  { %v1458_v25 = vmax.f32 %v1012_v23, 0.0  ;;  %v7158_v26 = vpop.f32.mrb[50].mxu0 }
 0x146   :  { %v1027_v27 = vadd.f32 %v7158_v26, %v8820_v35  ;;  %v1021_v28 = vpop.f32.mrb[51].mxu0 }
 0x147   :  { %7377 = vmatprep.mubr.f32.mxu1 %v1458_v25  ;;  %v1022_v31 = vadd.f32 %v8820_v35, %v1021_v28 }
 0x148   :  { %7378 = vmatmul.mubr.f32.gmra.mrb[48].mxu1 %v1459_v24  ;;  %v1461_v33 = vmax.f32 %v1027_v27, 0.0 }
 0x149   :  { %v1460_v34 = vmax.f32 %v1022_v31, 0.0  ;;  %v7161_v36 = vpop.f32.mrb[52].mxu0  ;;  %v3261_v31 = vld [vmem:[%s11994_s8 + $0x58] sm:$0xff] }
 0x14a   :  { %v1037_v37 = vadd.f32 %v7161_v36, %v8820_v35  ;;  %v1031_v38 = vpop.f32.mrb[53].mxu0 }
 0x14b   :  { %7380 = vmatprep.mubr.f32.mxu1 %v1460_v34  ;;  %v1032_v39 = vadd.f32 %v8820_v35, %v1031_v38 }
 0x14c   :  { %7381 = vmatmul.mubr.f32.gmra.mrb[50].mxu1 %v1461_v33  ;;  %v1463_v40 = vmax.f32 %v1037_v37, 0.0  ;;  %v8033_v33 = vpack.c.bf16 %v3261_v31, %v3260_v30  ;;  %v3266_v31 = vld [vmem:[%s11994_s8 + $0x80] sm:$0xff] }
 0x14d   :  { %v1462_v41 = vmax.f32 %v1032_v39, 0.0  ;;  %v7164_v42 = vpop.f32.mrb[54].mxu0 }
 0x14e   :  { %v1047_v43 = vadd.f32 %v7164_v42, %v8820_v35  ;;  %v1041_v44 = vpop.f32.mrb[55].mxu0  ;;  %8034 = vmatpush1.bf16.msra.mxu1 %v8033_v33 }
 0x14f   :  { %7383 = vmatprep.mubr.f32.mxu1 %v1462_v41  ;;  %v1042_v45 = vadd.f32 %v8820_v35, %v1041_v44  ;;  %8035 = vmatprep.subr.bf16.mxu1 %v12053_v19 }
 0x150   :  { %7384 = vmatmul.mubr.f32.gmra.mrb[52].mxu1 %v1463_v40  ;;  %v1465_v46 = vmax.f32 %v1047_v43, 0.0 }
 0x151   :  { %v1464_v47 = vmax.f32 %v1042_v45, 0.0  ;;  %v7167_v48 = vpop.f32.mrb[56].mxu0 }
 0x152   :  { %v1057_v49 = vadd.f32 %v7167_v48, %v8820_v35  ;;  %v1051_v50 = vpop.f32.mrb[57].mxu0 }
 0x153   :  { %7386 = vmatprep.mubr.f32.mxu1 %v1464_v47  ;;  %v1052_v53 = vadd.f32 %v8820_v35, %v1051_v50 }
 0x154   :  { %7387 = vmatmul.mubr.f32.gmra.mrb[54].mxu1 %v1465_v46  ;;  %v1467_v55 = vmax.f32 %v1057_v49, 0.0 }
 0x155   :  { %v1466_v56 = vmax.f32 %v1052_v53, 0.0  ;;  %v7170_v57 = vpop.f32.mrb[58].mxu0  ;;  %v3263_v53 = vld [vmem:[%s11994_s8 + $0x68] sm:$0xff] }
 0x156   :  { %v1067_v58 = vadd.f32 %v7170_v57, %v8820_v35  ;;  %v1061_v59 = vpop.f32.mrb[59].mxu0 }
 0x157   :  { %7389 = vmatprep.mubr.f32.mxu1 %v1466_v56  ;;  %v1062_v60 = vadd.f32 %v8820_v35, %v1061_v59 }
 0x158   :  { %7390 = vmatmul.mubr.f32.gmra.mrb[56].mxu1 %v1467_v55  ;;  %v1469_v61 = vmax.f32 %v1067_v58, 0.0  ;;  %v8036_v55 = vpack.c.bf16 %v3263_v53, %v3262_v52  ;;  %v3268_v53 = vld [vmem:[%s11994_s8 + $0x90] sm:$0xff] }
 0x159   :  { %v1468_v62 = vmax.f32 %v1062_v60, 0.0  ;;  %v7173_v63 = vpop.f32.mrb[60].mxu0 }
 0x15a   :  { %v1077_v0 = vadd.f32 %v7173_v63, %v8820_v35  ;;  %v1071_v1 = vpop.f32.mrb[61].mxu0  ;;  %8037 = vmatpush1.bf16.msra.mxu1 %v8036_v55 }
 0x15b   :  { %7392 = vmatprep.mubr.f32.mxu1 %v1468_v62  ;;  %v1072_v2 = vadd.f32 %v8820_v35, %v1071_v1  ;;  %8038 = vmatprep.subr.bf16.mxu1 %v12053_v19 }
 0x15c   :  { %7393 = vmatmul.mubr.f32.gmra.mrb[58].mxu1 %v1469_v61  ;;  %v1471_v3 = vmax.f32 %v1077_v0, 0.0 }
 0x15d   :  { %v1470_v4 = vmax.f32 %v1072_v2, 0.0  ;;  %v7176_v5 = vpop.f32.mrb[62].mxu0 }
 0x15e   :  { %v1087_v6 = vadd.f32 %v7176_v5, %v8820_v35  ;;  %v1081_v7 = vpop.f32.mrb[63].mxu0 }
 0x15f   :  { %7395 = vmatprep.mubr.f32.mxu1 %v1470_v4  ;;  %v1082_v10 = vadd.f32 %v8820_v35, %v1081_v7 }
 0x160   :  { %7396 = vmatmul.mubr.f32.gmra.mrb[60].mxu1 %v1471_v3  ;;  %v1473_v12 = vmax.f32 %v1087_v6, 0.0 }
 0x161   :  { %v1472_v13 = vmax.f32 %v1082_v10, 0.0  ;;  %v7179_v14 = vpop.f32.mrb[64].mxu0  ;;  %v3265_v10 = vld [vmem:[%s11994_s8 + $0x78] sm:$0xff] }
 0x162   :  { %v1097_v15 = vadd.f32 %v7179_v14, %v8820_v35  ;;  %v1091_v16 = vpop.f32.mrb[65].mxu0 }
 0x163   :  { %7398 = vmatprep.mubr.f32.mxu1 %v1472_v13  ;;  %v1092_v17 = vadd.f32 %v8820_v35, %v1091_v16 }
 0x164   :  { %7399 = vmatmul.mubr.f32.gmra.mrb[62].mxu1 %v1473_v12  ;;  %v1475_v18 = vmax.f32 %v1097_v15, 0.0  ;;  %v8039_v12 = vpack.c.bf16 %v3265_v10, %v3264_v9  ;;  %v3270_v9 = vld [vmem:[%s11994_s8 + $0xa0] sm:$0x7f] }
 0x165   :  { %v1474_v20 = vmax.f32 %v1092_v17, 0.0  ;;  %v7182_v21 = vpop.f32.mrb[66].mxu0 }
 0x166   :  { %v1107_v22 = vadd.f32 %v7182_v21, %v8820_v35  ;;  %v1101_v23 = vpop.f32.mrb[67].mxu0  ;;  %8040 = vmatpush1.bf16.msra.mxu1 %v8039_v12 }
 0x167   :  { %7401 = vmatprep.mubr.f32.mxu1 %v1474_v20  ;;  %v1102_v24 = vadd.f32 %v8820_v35, %v1101_v23  ;;  %8041 = vmatprep.subr.bf16.mxu1 %v12053_v19 }
 0x168   :  { %7402 = vmatmul.mubr.f32.gmra.mrb[64].mxu1 %v1475_v18  ;;  %v1477_v25 = vmax.f32 %v1107_v22, 0.0 }
 0x169   :  { %v1476_v26 = vmax.f32 %v1102_v24, 0.0  ;;  %v7185_v27 = vpop.f32.mrb[68].mxu0 }
 0x16a   :  { %v1117_v28 = vadd.f32 %v7185_v27, %v8820_v35  ;;  %v1111_v29 = vpop.f32.mrb[69].mxu0 }
 0x16b   :  { %7404 = vmatprep.mubr.f32.mxu1 %v1476_v26  ;;  %v1112_v32 = vadd.f32 %v8820_v35, %v1111_v29 }
 0x16c   :  { %7405 = vmatmul.mubr.f32.gmra.mrb[66].mxu1 %v1477_v25  ;;  %v1479_v34 = vmax.f32 %v1117_v28, 0.0 }
 0x16d   :  { %v1478_v36 = vmax.f32 %v1112_v32, 0.0  ;;  %v7188_v37 = vpop.f32.mrb[70].mxu0  ;;  %v3267_v32 = vld [vmem:[%s11994_s8 + $0x88] sm:$0xff] }
 0x16e   :  { %v1127_v38 = vadd.f32 %v7188_v37, %v8820_v35  ;;  %v1121_v39 = vpop.f32.mrb[71].mxu0 }
 0x16f   :  { %7407 = vmatprep.mubr.f32.mxu1 %v1478_v36  ;;  %v1122_v40 = vadd.f32 %v8820_v35, %v1121_v39 }
 0x170   :  { %7408 = vmatmul.mubr.f32.gmra.mrb[68].mxu1 %v1479_v34  ;;  %v1481_v41 = vmax.f32 %v1127_v38, 0.0  ;;  %v8042_v34 = vpack.c.bf16 %v3267_v32, %v3266_v31 }
 0x171   :  { %v1480_v42 = vmax.f32 %v1122_v40, 0.0  ;;  %v7191_v43 = vpop.f32.mrb[72].mxu0 }
 0x172   :  { %v1137_v44 = vadd.f32 %v7191_v43, %v8820_v35  ;;  %v1131_v45 = vpop.f32.mrb[73].mxu0  ;;  %8043 = vmatpush1.bf16.msra.mxu1 %v8042_v34 }
 0x173   :  { %7410 = vmatprep.mubr.f32.mxu1 %v1480_v42  ;;  %v1132_v46 = vadd.f32 %v8820_v35, %v1131_v45  ;;  %8044 = vmatprep.subr.bf16.mxu1 %v12053_v19 }
 0x174   :  { %7411 = vmatmul.mubr.f32.gmra.mrb[70].mxu1 %v1481_v41  ;;  %v1483_v47 = vmax.f32 %v1137_v44, 0.0 }
 0x175   :  { %v1482_v48 = vmax.f32 %v1132_v46, 0.0  ;;  %v7194_v49 = vpop.f32.mrb[74].mxu0 }
 0x176   :  { %v1147_v50 = vadd.f32 %v7194_v49, %v8820_v35  ;;  %v1141_v51 = vpop.f32.mrb[75].mxu0 }
 0x177   :  { %7413 = vmatprep.mubr.f32.mxu1 %v1482_v48  ;;  %v1142_v54 = vadd.f32 %v8820_v35, %v1141_v51 }
 0x178   :  { %7414 = vmatmul.mubr.f32.gmra.mrb[72].mxu1 %v1483_v47  ;;  %v1485_v56 = vmax.f32 %v1147_v50, 0.0 }
 0x179   :  { %v1484_v57 = vmax.f32 %v1142_v54, 0.0  ;;  %v7197_v58 = vpop.f32.mrb[76].mxu0  ;;  %v3269_v54 = vld [vmem:[%s11994_s8 + $0x98] sm:$0xff] }
 0x17a   :  { %v1157_v59 = vadd.f32 %v7197_v58, %v8820_v35  ;;  %v1151_v60 = vpop.f32.mrb[77].mxu0 }
 0x17b   :  { %7416 = vmatprep.mubr.f32.mxu1 %v1484_v57  ;;  %v1152_v61 = vadd.f32 %v8820_v35, %v1151_v60 }
 0x17c   :  { %7417 = vmatmul.mubr.f32.gmra.mrb[74].mxu1 %v1485_v56  ;;  %v1487_v62 = vmax.f32 %v1157_v59, 0.0  ;;  %v8045_v56 = vpack.c.bf16 %v3269_v54, %v3268_v53 }
 0x17d   :  { %v1486_v63 = vmax.f32 %v1152_v61, 0.0  ;;  %v7200_v0 = vpop.f32.mrb[78].mxu0 }
 0x17e   :  { %v1167_v1 = vadd.f32 %v7200_v0, %v8820_v35  ;;  %v1161_v2 = vpop.f32.mrb[79].mxu0  ;;  %8046 = vmatpush1.bf16.msra.mxu1 %v8045_v56 }
 0x17f   :  { %7419 = vmatprep.mubr.f32.mxu1 %v1486_v63  ;;  %v1162_v3 = vadd.f32 %v8820_v35, %v1161_v2 }
 0x180   :  { %7420 = vmatmul.mubr.f32.gmra.mrb[76].mxu1 %v1487_v62  ;;  %v1489_v4 = vmax.f32 %v1167_v1, 0.0 }
 0x181   :  { %v1488_v5 = vmax.f32 %v1162_v3, 0.0  ;;  %v7203_v6 = vpop.f32.mrb[80].mxu0 }
 0x182   :  { %v1177_v7 = vadd.f32 %v7203_v6, %v8820_v35  ;;  %v1171_v8 = vpop.f32.mrb[81].mxu0 }
 0x183   :  { %7422 = vmatprep.mubr.f32.mxu1 %v1488_v5  ;;  %v1172_v11 = vadd.f32 %v8820_v35, %v1171_v8  ;;  %v8197_v5 = vmov 0.0  }
 0x184   :  { %7423 = vmatmul.mubr.f32.gmra.mrb[78].mxu1 %v1489_v4  ;;  %v1491_v13 = vmax.f32 %v1177_v7, 0.0  ;;  %3705 = vmatprep.subr.mxu1 %v8197_v5 }
 0x185   :  { %v1490_v14 = vmax.f32 %v1172_v11, 0.0  ;;  %v7206_v15 = vpop.f32.mrb[82].mxu0  ;;  %6375 = vmatpush1.msk.msra.mxu1 %vm701_vm1, %v3270_v9 }
 0x186   :  { %v1187_v16 = vadd.f32 %v7206_v15, %v8820_v35  ;;  %v1181_v17 = vpop.f32.mrb[83].mxu0  ;;  %8127 = vmatprep.subr.bf16.mxu1 %v12053_v19 }
 0x187   :  { %7425 = vmatprep.mubr.f32.mxu1 %v1490_v14  ;;  %v1182_v18 = vadd.f32 %v8820_v35, %v1181_v17 }
 0x188   :  { %7426 = vmatmul.mubr.f32.gmra.mrb[80].mxu1 %v1491_v13  ;;  %v1493_v20 = vmax.f32 %v1187_v16, 0.0 }
 0x189   :  { %v1492_v21 = vmax.f32 %v1182_v18, 0.0  ;;  %v7209_v22 = vpop.f32.mrb[84].mxu0 }
 0x18a   :  { %v1197_v23 = vadd.f32 %v7209_v22, %v8820_v35  ;;  %v1191_v24 = vpop.f32.mrb[85].mxu0 }
 0x18b   :  { %7428 = vmatprep.mubr.f32.mxu1 %v1492_v21  ;;  %v1192_v25 = vadd.f32 %v8820_v35, %v1191_v24 }
 0x18c   :  { %7429 = vmatmul.mubr.f32.gmra.mrb[82].mxu1 %v1493_v20  ;;  %v1495_v26 = vmax.f32 %v1197_v23, 0.0 }
 0x18d   :  { %v1494_v27 = vmax.f32 %v1192_v25, 0.0  ;;  %v7212_v28 = vpop.f32.mrb[86].mxu0 }
 0x18e   :  { %v1207_v29 = vadd.f32 %v7212_v28, %v8820_v35  ;;  %v1201_v30 = vpop.f32.mrb[87].mxu0 }
 0x18f   :  { %7431 = vmatprep.mubr.f32.mxu1 %v1494_v27  ;;  %v1202_v33 = vadd.f32 %v8820_v35, %v1201_v30 }
 0x190   :  { %7432 = vmatmul.mubr.f32.gmra.mrb[84].mxu1 %v1495_v26  ;;  %v1497_v36 = vmax.f32 %v1207_v29, 0.0  ;;  %v9088_v29 = vld [vmem:[%s11989_s3] ss:$0 sm:$0xff] }
 0x191   :  { %v1496_v37 = vmax.f32 %v1202_v33, 0.0  ;;  %v7215_v38 = vpop.f32.mrb[88].mxu0 }
 0x192   :  { %v1217_v39 = vadd.f32 %v7215_v38, %v8820_v35  ;;  %v1211_v40 = vpop.f32.mrb[89].mxu0 }
 0x193   :  { %7434 = vmatprep.mubr.f32.mxu1 %v1496_v37  ;;  %v1212_v41 = vadd.f32 %v8820_v35, %v1211_v40  ;;  %v9097_v40 = vld [vmem:[%s11991_s5] ss:$0 sm:$0xff] }
 0x194   :  { %7435 = vmatmul.mubr.f32.gmra.mrb[86].mxu1 %v1497_v36  ;;  %v1499_v42 = vmax.f32 %v1217_v39, 0.0 }
 0x195   :  { %v1498_v43 = vmax.f32 %v1212_v41, 0.0  ;;  %v7218_v44 = vpop.f32.mrb[90].mxu0 }
 0x196   :  { %v1227_v45 = vadd.f32 %v7218_v44, %v8820_v35  ;;  %v1221_v46 = vpop.f32.mrb[91].mxu0 }
 0x197   :  { %7437 = vmatprep.mubr.f32.mxu1 %v1498_v43  ;;  %v1222_v47 = vadd.f32 %v8820_v35, %v1221_v46 }
 0x198   :  { %7438 = vmatmul.mubr.f32.gmra.mrb[88].mxu1 %v1499_v42  ;;  %v1501_v48 = vmax.f32 %v1227_v45, 0.0 }
 0x199   :  { %v7221_v49 = vpop.f32.mrb[92].mxu0  ;;  %v1500_v50 = vmax.f32 %v1222_v47, 0.0 }
 0x19a   :  { %v1237_v51 = vadd.f32 %v7221_v49, %v8820_v35  ;;  %v1231_v52 = vpop.f32.mrb[93].mxu0 }
 0x19b   :  { %v1232_v55 = vadd.f32 %v8820_v35, %v1231_v52  ;;  %7440 = vmatprep.mubr.f32.mxu1 %v1500_v50 }
 0x19c   :  { %7441 = vmatmul.mubr.f32.gmra.mrb[90].mxu1 %v1501_v48  ;;  %v1503_v57 = vmax.f32 %v1237_v51, 0.0 }
 0x19d   :  { %v7224_v58 = vpop.f32.mrb[94].mxu0  ;;  %v1502_v59 = vmax.f32 %v1232_v55, 0.0 }
 0x19e   :  { %v1247_v60 = vadd.f32 %v7224_v58, %v8820_v35  ;;  %v1241_v61 = vpop.f32.mrb[95].mxu0 }
 0x19f   :  { %v1242_v62 = vadd.f32 %v8820_v35, %v1241_v61  ;;  %7443 = vmatprep.mubr.f32.mxu1 %v1502_v59 }
 0x1a0   :  { %7444 = vmatmul.mubr.f32.gmra.mrb[92].mxu1 %v1503_v57  ;;  %v1505_v63 = vmax.f32 %v1247_v60, 0.0 }
 0x1a1   :  { %v7227_v0 = vpop.f32.mrb[96].mxu0  ;;  %v1504_v1 = vmax.f32 %v1242_v62, 0.0 }
 0x1a2   :  { %v1257_v2 = vadd.f32 %v7227_v0, %v8820_v35  ;;  %v1251_v3 = vpop.f32.mrb[97].mxu0 }
 0x1a3   :  { %v1252_v4 = vadd.f32 %v8820_v35, %v1251_v3  ;;  %7446 = vmatprep.mubr.f32.mxu1 %v1504_v1 }
 0x1a4   :  { %7447 = vmatmul.mubr.f32.gmra.mrb[94].mxu1 %v1505_v63  ;;  %v1507_v6 = vmax.f32 %v1257_v2, 0.0 }
 0x1a5   :  { %v7230_v7 = vpop.f32.mrb[98].mxu0  ;;  %v1506_v8 = vmax.f32 %v1252_v4, 0.0 }
 0x1a6   :  { %v1267_v10 = vadd.f32 %v7230_v7, %v8820_v35  ;;  %v1261_v11 = vpop.f32.mrb[99].mxu0 }
 0x1a7   :  { %v1262_v12 = vadd.f32 %v8820_v35, %v1261_v11  ;;  %7449 = vmatprep.mubr.f32.mxu1 %v1506_v8 }
 0x1a8   :  { %7450 = vmatmul.mubr.f32.gmra.mrb[96].mxu1 %v1507_v6  ;;  %v1509_v13 = vmax.f32 %v1267_v10, 0.0 }
 0x1a9   :  { %v7233_v14 = vpop.f32.mrb[100].mxu0  ;;  %v1508_v15 = vmax.f32 %v1262_v12, 0.0 }
 0x1aa   :  { %v1277_v16 = vadd.f32 %v7233_v14, %v8820_v35  ;;  %v1271_v17 = vpop.f32.mrb[101].mxu0 }
 0x1ab   :  { %v1272_v18 = vadd.f32 %v8820_v35, %v1271_v17  ;;  %7452 = vmatprep.mubr.f32.mxu1 %v1508_v15 }
 0x1ac   :  { %7453 = vmatmul.mubr.f32.gmra.mrb[98].mxu1 %v1509_v13  ;;  %v1511_v20 = vmax.f32 %v1277_v16, 0.0 }
 0x1ad   :  { %v7236_v21 = vpop.f32.mrb[102].mxu0  ;;  %v1510_v22 = vmax.f32 %v1272_v18, 0.0 }
 0x1ae   :  { %v1287_v23 = vadd.f32 %v7236_v21, %v8820_v35  ;;  %v1281_v24 = vpop.f32.mrb[103].mxu0 }
 0x1af   :  { %v1282_v25 = vadd.f32 %v8820_v35, %v1281_v24  ;;  %7455 = vmatprep.mubr.f32.mxu1 %v1510_v22 }
 0x1b0   :  { %7456 = vmatmul.mubr.f32.gmra.mrb[100].mxu1 %v1511_v20  ;;  %v1513_v26 = vmax.f32 %v1287_v23, 0.0 }
 0x1b1   :  { %v7239_v27 = vpop.f32.mrb[104].mxu0  ;;  %v1512_v28 = vmax.f32 %v1282_v25, 0.0 }
 0x1b2   :  { %v1297_v30 = vadd.f32 %v9088_v29, %v7239_v27  ;;  %v1291_v31 = vpop.f32.mrb[105].mxu0 }
 0x1b3   :  { %v1292_v32 = vadd.f32 %v9088_v29, %v1291_v31  ;;  %7458 = vmatprep.mubr.f32.mxu1 %v1512_v28 }
 0x1b4   :  { %7459 = vmatmul.mubr.f32.gmra.mrb[102].mxu1 %v1513_v26  ;;  %v1515_v33 = vmax.f32 %v1297_v30, 0.0 }
 0x1b5   :  { %v7242_v34 = vpop.f32.mrb[106].mxu0  ;;  %v1514_v35 = vmax.f32 %v1292_v32, 0.0 }
 0x1b6   :  { %v1307_v36 = vadd.f32 %v9088_v29, %v7242_v34  ;;  %v1301_v37 = vpop.f32.mrb[107].mxu0 }
 0x1b7   :  { %v1302_v38 = vadd.f32 %v9088_v29, %v1301_v37  ;;  %7461 = vmatprep.mubr.f32.mxu1 %v1514_v35 }
 0x1b8   :  { %7462 = vmatmul.mubr.f32.gmra.mrb[104].mxu1 %v1515_v33  ;;  %v1517_v39 = vmax.f32 %v1307_v36, 0.0 }
 0x1b9   :  { %v7245_v41 = vpop.f32.mrb[108].mxu0  ;;  %v1516_v42 = vmax.f32 %v1302_v38, 0.0 }
 0x1ba   :  { %v1317_v43 = vadd.f32 %v9088_v29, %v7245_v41  ;;  %v1311_v44 = vpop.f32.mrb[109].mxu0 }
 0x1bb   :  { %v7307_v45 = vpop.f32.mrb[0].mxu1  ;;  %v1312_v46 = vadd.f32 %v9088_v29, %v1311_v44  ;;  %7464 = vmatprep.mubr.f32.mxu1 %v1516_v42 }
 0x1bc   :  { %v9102_v47 = vadd.f32 %v7307_v45, %v9097_v40  ;;  %v1627_v48 = vpop.f32.mrb[1].mxu1  ;;  %7465 = vmatmul.mubr.f32.gmra.mrb[106].mxu1 %v1517_v39  ;;  %v1519_v49 = vmax.f32 %v1317_v43, 0.0 }
 0x1bd   :  { %v9105_v50 = vadd.f32 %v9097_v40, %v1627_v48  ;;  %v7248_v51 = vpop.f32.mrb[110].mxu0  ;;  %v1518_v52 = vmax.f32 %v1312_v46, 0.0 }
 0x1be   :  { %12256 = vst [vmem:[#allocation5_spill] sm:$0xff] %v9102_v47  ;;  %v1327_v53 = vadd.f32 %v9088_v29, %v7248_v51  ;;  %v1321_v54 = vpop.f32.mrb[111].mxu0  ;;  %v12049_v58 = vmax.f32 %v9102_v47, 0.0 }
 0x1bf   :  { %12257 = vst [vmem:[#allocation6_spill] sm:$0xff] %v9105_v50  ;;  %v7310_v55 = vpop.f32.mrb[2].mxu1  ;;  %v12050_v56 = vmax.f32 %v9105_v50, 0.0  ;;  %v1322_v57 = vadd.f32 %v9088_v29, %v1321_v54  ;;  %7467 = vmatprep.mubr.f32.mxu1 %v1518_v52 }
 0x1c0   :  { %v9112_v59 = vadd.f32 %v7310_v55, %v9097_v40  ;;  %v1637_v60 = vpop.f32.mrb[3].mxu1  ;;  %7468 = vmatmul.mubr.f32.gmra.mrb[108].mxu1 %v1519_v49  ;;  %v1521_v61 = vmax.f32 %v1327_v53, 0.0 }
 0x1c1   :  { %v9115_v62 = vadd.f32 %v9097_v40, %v1637_v60  ;;  %7529 = vmatprep.mubr.f32.mxu0 %v12050_v56  ;;  %v7251_v63 = vpop.f32.mrb[112].mxu0  ;;  %v1520_v0 = vmax.f32 %v1322_v57, 0.0 }
 0x1c2   :  { %12258 = vst [vmem:[#allocation7_spill] sm:$0xff] %v9112_v59  ;;  %7530 = vmatmul.mubr.f32.vlgmr.msra.gmra.mrb[128].mxu0 %v12049_v58  ;;  %v12045_v1 = vmax.f32 %v9112_v59, 0.0  ;;  %v1337_v2 = vadd.f32 %v9088_v29, %v7251_v63  ;;  %v1331_v3 = vpop.f32.mrb[113].mxu0 }
 0x1c3   :  { %12259 = vst [vmem:[#allocation8_spill] sm:$0xff] %v9115_v62  ;;  %v12046_v4 = vmax.f32 %v9115_v62, 0.0  ;;  %v7313_v5 = vpop.f32.mrb[4].mxu1  ;;  %v1332_v6 = vadd.f32 %v9088_v29, %v1331_v3  ;;  %7470 = vmatprep.mubr.f32.mxu1 %v1520_v0 }
 0x1c4   :  { %v9126_v7 = vadd.f32 %v7313_v5, %v9097_v40  ;;  %v1647_v8 = vpop.f32.mrb[5].mxu1  ;;  %7471 = vmatmul.mubr.f32.gmra.mrb[110].mxu1 %v1521_v61  ;;  %v1523_v9 = vmax.f32 %v1337_v2, 0.0 }
 0x1c5   :  { %7532 = vmatprep.mubr.f32.mxu0 %v12046_v4  ;;  %v9131_v10 = vadd.f32 %v9097_v40, %v1647_v8  ;;  %v7254_v11 = vpop.f32.mrb[114].mxu0  ;;  %v1522_v12 = vmax.f32 %v1332_v6, 0.0 }
 0x1c6   :  { %12260 = vst [vmem:[#allocation9_spill] sm:$0xff] %v9126_v7  ;;  %7533 = vmatmul.mubr.f32.gmra.mrb[130].mxu0 %v12045_v1  ;;  %v12041_v13 = vmax.f32 %v9126_v7, 0.0  ;;  %v1347_v14 = vadd.f32 %v9088_v29, %v7254_v11  ;;  %v1341_v15 = vpop.f32.mrb[115].mxu0 }
 0x1c7   :  { %12261 = vst [vmem:[#allocation10_spill] sm:$0xff] %v9131_v10  ;;  %v12042_v16 = vmax.f32 %v9131_v10, 0.0  ;;  %v7316_v17 = vpop.f32.mrb[6].mxu1  ;;  %v1342_v18 = vadd.f32 %v9088_v29, %v1341_v15  ;;  %7473 = vmatprep.mubr.f32.mxu1 %v1522_v12 }
 0x1c8   :  { %v9140_v20 = vadd.f32 %v7316_v17, %v9097_v40  ;;  %v1657_v21 = vpop.f32.mrb[7].mxu1  ;;  %7474 = vmatmul.mubr.f32.gmra.mrb[112].mxu1 %v1523_v9  ;;  %v1525_v22 = vmax.f32 %v1347_v14, 0.0 }
 0x1c9   :  { %7535 = vmatprep.mubr.f32.mxu0 %v12042_v16  ;;  %v9145_v23 = vadd.f32 %v9097_v40, %v1657_v21  ;;  %v7257_v24 = vpop.f32.mrb[116].mxu0  ;;  %v1524_v25 = vmax.f32 %v1342_v18, 0.0 }
 0x1ca   :  { %12262 = vst [vmem:[#allocation11_spill] sm:$0xff] %v9140_v20  ;;  %7536 = vmatmul.mubr.f32.gmra.mrb[132].mxu0 %v12041_v13  ;;  %v12037_v26 = vmax.f32 %v9140_v20, 0.0  ;;  %v1357_v27 = vadd.f32 %v9088_v29, %v7257_v24  ;;  %v1351_v28 = vpop.f32.mrb[117].mxu0 }
 0x1cb   :  { %12263 = vst [vmem:[#allocation12_spill] sm:$0xff] %v9145_v23  ;;  %v12038_v30 = vmax.f32 %v9145_v23, 0.0  ;;  %v7319_v31 = vpop.f32.mrb[8].mxu1  ;;  %v1352_v32 = vadd.f32 %v9088_v29, %v1351_v28  ;;  %7476 = vmatprep.mubr.f32.mxu1 %v1524_v25 }
 0x1cc   :  { %v9154_v33 = vadd.f32 %v7319_v31, %v9097_v40  ;;  %v1667_v34 = vpop.f32.mrb[9].mxu1  ;;  %7477 = vmatmul.mubr.f32.gmra.mrb[114].mxu1 %v1525_v22  ;;  %v1527_v35 = vmax.f32 %v1357_v27, 0.0 }
 0x1cd   :  { %7538 = vmatprep.mubr.f32.mxu0 %v12038_v30  ;;  %v9159_v36 = vadd.f32 %v9097_v40, %v1667_v34  ;;  %v7260_v37 = vpop.f32.mrb[118].mxu0  ;;  %v1526_v38 = vmax.f32 %v1352_v32, 0.0 }
 0x1ce   :  { %12264 = vst [vmem:[#allocation13_spill] sm:$0xff] %v9154_v33  ;;  %7539 = vmatmul.mubr.f32.gmra.mrb[134].mxu0 %v12037_v26  ;;  %v12033_v39 = vmax.f32 %v9154_v33, 0.0  ;;  %v1367_v41 = vadd.f32 %v9088_v29, %v7260_v37  ;;  %v1361_v42 = vpop.f32.mrb[119].mxu0 }
 0x1cf   :  { %12265 = vst [vmem:[#allocation14_spill] sm:$0xff] %v9159_v36  ;;  %v12034_v43 = vmax.f32 %v9159_v36, 0.0  ;;  %v7322_v44 = vpop.f32.mrb[10].mxu1  ;;  %v1362_v45 = vadd.f32 %v9088_v29, %v1361_v42  ;;  %7479 = vmatprep.mubr.f32.mxu1 %v1526_v38  ;;  %v207_v36 = vld [vmem:[%s11987_s1 + $0xf8] sm:$0xff] }
 0x1d0   :  { %v9168_v46 = vadd.f32 %v7322_v44, %v9097_v40  ;;  %v1677_v48 = vpop.f32.mrb[11].mxu1  ;;  %7480 = vmatmul.mubr.f32.gmra.mrb[116].mxu1 %v1527_v35  ;;  %v1529_v49 = vmax.f32 %v1367_v41, 0.0 }
 0x1d1   :  { %7541 = vmatprep.mubr.f32.mxu0 %v12034_v43  ;;  %v9173_v51 = vadd.f32 %v9097_v40, %v1677_v48  ;;  %v7263_v52 = vpop.f32.mrb[120].mxu0  ;;  %v1528_v53 = vmax.f32 %v1362_v45, 0.0 }
 0x1d2   :  { %12266 = vst [vmem:[#allocation15_spill] sm:$0xff] %v9168_v46  ;;  %7542 = vmatmul.mubr.f32.gmra.mrb[136].mxu0 %v12033_v39  ;;  %v12029_v54 = vmax.f32 %v9168_v46, 0.0  ;;  %v1377_v55 = vadd.f32 %v9088_v29, %v7263_v52  ;;  %v1371_v57 = vpop.f32.mrb[121].mxu0 }
 0x1d3   :  { %12267 = vst [vmem:[#allocation16_spill] sm:$0xff] %v9173_v51  ;;  %v12030_v60 = vmax.f32 %v9173_v51, 0.0  ;;  %v7325_v61 = vpop.f32.mrb[12].mxu1  ;;  %v1372_v63 = vadd.f32 %v9088_v29, %v1371_v57  ;;  %7482 = vmatprep.mubr.f32.mxu1 %v1528_v53 }
 0x1d4   :  { %v9182_v0 = vadd.f32 %v7325_v61, %v9097_v40  ;;  %v1687_v2 = vpop.f32.mrb[13].mxu1  ;;  %7483 = vmatmul.mubr.f32.gmra.mrb[118].mxu1 %v1529_v49  ;;  %v1531_v3 = vmax.f32 %v1377_v55, 0.0 }
 0x1d5   :  { %7544 = vmatprep.mubr.f32.mxu0 %v12030_v60  ;;  %v9187_v5 = vadd.f32 %v9097_v40, %v1687_v2  ;;  %v7266_v6 = vpop.f32.mrb[122].mxu0  ;;  %v1530_v8 = vmax.f32 %v1372_v63, 0.0 }
 0x1d6   :  { %12268 = vst [vmem:[#allocation17_spill] sm:$0xff] %v9182_v0  ;;  %7545 = vmatmul.mubr.f32.gmra.mrb[138].mxu0 %v12029_v54  ;;  %v12025_v9 = vmax.f32 %v9182_v0, 0.0  ;;  %v1387_v11 = vadd.f32 %v9088_v29, %v7266_v6  ;;  %v1381_v12 = vpop.f32.mrb[123].mxu0 }
 0x1d7   :  { %12269 = vst [vmem:[#allocation18_spill] sm:$0xff] %v9187_v5  ;;  %v12026_v14 = vmax.f32 %v9187_v5, 0.0  ;;  %v7328_v15 = vpop.f32.mrb[14].mxu1  ;;  %v1382_v17 = vadd.f32 %v9088_v29, %v1381_v12  ;;  %7485 = vmatprep.mubr.f32.mxu1 %v1530_v8 }
 0x1d8   :  { %v9196_v18 = vadd.f32 %v7328_v15, %v9097_v40  ;;  %v1697_v21 = vpop.f32.mrb[15].mxu1  ;;  %7486 = vmatmul.mubr.f32.gmra.mrb[120].mxu1 %v1531_v3  ;;  %v1533_v22 = vmax.f32 %v1387_v11, 0.0 }
 0x1d9   :  { %7547 = vmatprep.mubr.f32.mxu0 %v12026_v14  ;;  %v9201_v24 = vadd.f32 %v9097_v40, %v1697_v21  ;;  %v7269_v25 = vpop.f32.mrb[124].mxu0  ;;  %v1532_v27 = vmax.f32 %v1382_v17, 0.0 }
 0x1da   :  { %12270 = vst [vmem:[#allocation19_spill] sm:$0xff] %v9196_v18  ;;  %7548 = vmatmul.mubr.f32.gmra.mrb[140].mxu0 %v12025_v9  ;;  %v12021_v28 = vmax.f32 %v9196_v18, 0.0  ;;  %v1397_v31 = vadd.f32 %v9088_v29, %v7269_v25  ;;  %v1391_v32 = vpop.f32.mrb[125].mxu0 }
 0x1db   :  { %12271 = vst [vmem:[#allocation20_spill] sm:$0xff] %v9201_v24  ;;  %v12022_v34 = vmax.f32 %v9201_v24, 0.0  ;;  %v7331_v35 = vpop.f32.mrb[16].mxu1  ;;  %v1392_v37 = vadd.f32 %v9088_v29, %v1391_v32  ;;  %7488 = vmatprep.mubr.f32.mxu1 %v1532_v27 }
 0x1dc   :  { %v9210_v38 = vadd.f32 %v7331_v35, %v9097_v40  ;;  %v1707_v41 = vpop.f32.mrb[17].mxu1  ;;  %7489 = vmatmul.mubr.f32.gmra.mrb[122].mxu1 %v1533_v22  ;;  %v1535_v42 = vmax.f32 %v1397_v31, 0.0 }
 0x1dd   :  { %7550 = vmatprep.mubr.f32.mxu0 %v12022_v34  ;;  %v9215_v44 = vadd.f32 %v9097_v40, %v1707_v41  ;;  %v7272_v45 = vpop.f32.mrb[126].mxu0  ;;  %v1534_v48 = vmax.f32 %v1392_v37, 0.0 }
 0x1de   :  { %12272 = vst [vmem:[#allocation21_spill] sm:$0xff] %v9210_v38  ;;  %7551 = vmatmul.mubr.f32.gmra.mrb[142].mxu0 %v12021_v28  ;;  %v12017_v49 = vmax.f32 %v9210_v38, 0.0  ;;  %v1407_v52 = vadd.f32 %v9088_v29, %v7272_v45  ;;  %v1401_v53 = vpop.f32.mrb[127].mxu0 }
 0x1df   :  { %12273 = vst [vmem:[#allocation22_spill] sm:$0xff] %v9215_v44  ;;  %v12018_v55 = vmax.f32 %v9215_v44, 0.0  ;;  %v7334_v57 = vpop.f32.mrb[18].mxu1  ;;  %v1402_v61 = vadd.f32 %v9088_v29, %v1401_v53  ;;  %7491 = vmatprep.mubr.f32.mxu1 %v1534_v48 }
 0x1e0   :  { %v9224_v63 = vadd.f32 %v7334_v57, %v9097_v40  ;;  %v1717_v2 = vpop.f32.mrb[19].mxu1  ;;  %7492 = vmatmul.mubr.f32.gmra.mrb[124].mxu1 %v1535_v42  ;;  %v1537_v3 = vmax.f32 %v1407_v52, 0.0 }
 0x1e1   :  { %7553 = vmatprep.mubr.f32.mxu0 %v12018_v55  ;;  %v9229_v6 = vadd.f32 %v9097_v40, %v1717_v2  ;;  %v1536_v8 = vmax.f32 %v1402_v61, 0.0 }
 0x1e2   :  { %12274 = vst [vmem:[#allocation23_spill] sm:$0xff] %v9224_v63  ;;  %7554 = vmatmul.mubr.f32.gmra.mrb[144].mxu0 %v12017_v49  ;;  %v12013_v11 = vmax.f32 %v9224_v63, 0.0 }
 0x1e3   :  { %12275 = vst [vmem:[#allocation24_spill] sm:$0xff] %v9229_v6  ;;  %v12014_v29 = vmax.f32 %v9229_v6, 0.0  ;;  %v7337_v12 = vpop.f32.mrb[20].mxu1  ;;  %7494 = vmatprep.mubr.f32.mxu1 %v1536_v8 }
 0x1e4   :  { %v9236_v15 = vadd.f32 %v7337_v12, %v9097_v40  ;;  %v1727_v17 = vpop.f32.mrb[21].mxu1  ;;  %7495 = vmatmul.mubr.f32.gmra.mrb[126].mxu1 %v1537_v3 }
 0x1e5   :  { %7556 = vmatprep.mubr.f32.mxu0 %v12014_v29  ;;  %v9241_v21 = vadd.f32 %v9097_v40, %v1727_v17 }
 0x1e6   :  { %12276 = vst [vmem:[#allocation25_spill] sm:$0xff] %v9236_v15  ;;  %7557 = vmatmul.mubr.f32.gmra.mrb[146].mxu0 %v12013_v11  ;;  %v12009_v22 = vmax.f32 %v9236_v15, 0.0 }
 0x1e7   :  { %12277 = vst [vmem:[#allocation26_spill] sm:$0xff] %v9241_v21  ;;  %v12010_v25 = vmax.f32 %v9241_v21, 0.0  ;;  %v7340_v27 = vpop.f32.mrb[22].mxu1 }
 0x1e8   :  { %v9248_v31 = vadd.f32 %v7340_v27, %v9097_v40  ;;  %v1737_v32 = vpop.f32.mrb[23].mxu1 }
 0x1e9   :  { %7559 = vmatprep.mubr.f32.mxu0 %v12010_v25  ;;  %v9253_v35 = vadd.f32 %v9097_v40, %v1737_v32 }
 0x1ea   :  { %12278 = vst [vmem:[#allocation27_spill] sm:$0xff] %v9248_v31  ;;  %7560 = vmatmul.mubr.f32.gmra.mrb[148].mxu0 %v12009_v22  ;;  %v12005_v37 = vmax.f32 %v9248_v31, 0.0 }
 0x1eb   :  { %12279 = vst [vmem:[#allocation28_spill] sm:$0xff] %v9253_v35  ;;  %v12006_v41 = vmax.f32 %v9253_v35, 0.0  ;;  %v7343_v42 = vpop.f32.mrb[24].mxu1 }
 0x1ec   :  { %v9260_v45 = vadd.f32 %v7343_v42, %v9097_v40  ;;  %v1747_v48 = vpop.f32.mrb[25].mxu1 }
 0x1ed   :  { %7562 = vmatprep.mubr.f32.mxu0 %v12006_v41  ;;  %v9265_v52 = vadd.f32 %v9097_v40, %v1747_v48 }
 0x1ee   :  { %12280 = vst [vmem:[#allocation29_spill] sm:$0xff] %v9260_v45  ;;  %7563 = vmatmul.mubr.f32.gmra.mrb[150].mxu0 %v12005_v37  ;;  %v12001_v53 = vmax.f32 %v9260_v45, 0.0 }
 0x1ef   :  { %12281 = vst [vmem:[#allocation30_spill] sm:$0xff] %v9265_v52  ;;  %v12002_v57 = vmax.f32 %v9265_v52, 0.0  ;;  %v7346_v61 = vpop.f32.mrb[26].mxu1 }
 0x1f0   :  { %v9272_v2 = vadd.f32 %v7346_v61, %v9097_v40  ;;  %v1757_v3 = vpop.f32.mrb[27].mxu1 }
 0x1f1   :  { %7565 = vmatprep.mubr.f32.mxu0 %v12002_v57  ;;  %v9277_v8 = vadd.f32 %v9097_v40, %v1757_v3 }
 0x1f2   :  { %12282 = vst [vmem:[#allocation31_spill] sm:$0xff] %v9272_v2  ;;  %7566 = vmatmul.mubr.f32.gmra.mrb[152].mxu0 %v12001_v53  ;;  %v12004_v12 = vmax.f32 %v9272_v2, 0.0 }
 0x1f3   :  { %12283 = vst [vmem:[#allocation32_spill] sm:$0xff] %v9277_v8  ;;  %v12003_v17 = vmax.f32 %v9277_v8, 0.0  ;;  %v7349_v27 = vpop.f32.mrb[28].mxu1  ;;  %v178_v8 = vld [vmem:[%s11987_s1 + $0x10] sm:$0xff] }
 0x1f4   :  { %v9284_v32 = vadd.f32 %v7349_v27, %v9097_v40  ;;  %v1767_v42 = vpop.f32.mrb[29].mxu1 }
 0x1f5   :  { %7568 = vmatprep.mubr.f32.mxu0 %v12003_v17  ;;  %v9289_v48 = vadd.f32 %v9097_v40, %v1767_v42 }
 0x1f6   :  { %12284 = vst [vmem:[#allocation33_spill] sm:$0xff] %v9284_v32  ;;  %7569 = vmatmul.mubr.f32.gmra.mrb[154].mxu0 %v12004_v12  ;;  %v12008_v61 = vmax.f32 %v9284_v32, 0.0 }
 0x1f7   :  { %12285 = vst [vmem:[#allocation34_spill] sm:$0xff] %v9289_v48  ;;  %v12007_v3 = vmax.f32 %v9289_v48, 0.0  ;;  %v7352_v53 = vpop.f32.mrb[30].mxu1 }
 0x1f8   :  { %v9296_v57 = vadd.f32 %v7352_v53, %v9097_v40  ;;  %v1777_v27 = vpop.f32.mrb[31].mxu1 }
 0x1f9   :  { %7571 = vmatprep.mubr.f32.mxu0 %v12007_v3  ;;  %v9301_v17 = vadd.f32 %v9097_v40, %v1777_v27 }
 0x1fa   :  { %12286 = vst [vmem:[#allocation35_spill] sm:$0xff] %v9296_v57  ;;  %7572 = vmatmul.mubr.f32.gmra.mrb[156].mxu0 %v12008_v61  ;;  %v12012_v42 = vmax.f32 %v9296_v57, 0.0 }
 0x1fb   :  { %12287 = vst [vmem:[#allocation36_spill] sm:$0xff] %v9301_v17  ;;  %v12011_v12 = vmax.f32 %v9301_v17, 0.0  ;;  %v7355_v37 = vpop.f32.mrb[32].mxu1 }
 0x1fc   :  { %v9308_v41 = vadd.f32 %v7355_v37, %v9097_v40  ;;  %v1787_v53 = vpop.f32.mrb[33].mxu1 }
 0x1fd   :  { %7574 = vmatprep.mubr.f32.mxu0 %v12011_v12  ;;  %v9313_v3 = vadd.f32 %v9097_v40, %v1787_v53 }
 0x1fe   :  { %12288 = vst [vmem:[#allocation37_spill] sm:$0xff] %v9308_v41  ;;  %7575 = vmatmul.mubr.f32.gmra.mrb[158].mxu0 %v12012_v42  ;;  %v12016_v27 = vmax.f32 %v9308_v41, 0.0 }
 0x1ff   :  { %12289 = vst [vmem:[#allocation38_spill] sm:$0xff] %v9313_v3  ;;  %v12015_v61 = vmax.f32 %v9313_v3, 0.0  ;;  %v7358_v22 = vpop.f32.mrb[34].mxu1 }
 0x200   :  { %v9320_v25 = vadd.f32 %v7358_v22, %v9097_v40  ;;  %v1797_v37 = vpop.f32.mrb[35].mxu1 }
 0x201   :  { %7577 = vmatprep.mubr.f32.mxu0 %v12015_v61  ;;  %v9325_v12 = vadd.f32 %v9097_v40, %v1797_v37 }
 0x202   :  { %12290 = vst [vmem:[#allocation39_spill] sm:$0xff] %v9320_v25  ;;  %7578 = vmatmul.mubr.f32.gmra.mrb[160].mxu0 %v12016_v27  ;;  %v12020_v53 = vmax.f32 %v9320_v25, 0.0 }
 0x203   :  { %12291 = vst [vmem:[#allocation40_spill] sm:$0xff] %v9325_v12  ;;  %v12019_v42 = vmax.f32 %v9325_v12, 0.0  ;;  %v7361_v11 = vpop.f32.mrb[36].mxu1  ;;  %v9650_v12 = vld [vmem:[%s11993_s7] ss:$0 sm:$0xff] }
 0x204   :  { %v9332_v29 = vadd.f32 %v7361_v11, %v9097_v40  ;;  %v1807_v22 = vpop.f32.mrb[37].mxu1 }
 0x205   :  { %7580 = vmatprep.mubr.f32.mxu0 %v12019_v42  ;;  %v9337_v61 = vadd.f32 %v9097_v40, %v1807_v22 }
 0x206   :  { %12292 = vst [vmem:[#allocation41_spill] sm:$0xff] %v9332_v29  ;;  %7581 = vmatmul.mubr.f32.gmra.mrb[162].mxu0 %v12020_v53  ;;  %v12024_v37 = vmax.f32 %v9332_v29, 0.0 }
 0x207   :  { %12293 = vst [vmem:[#allocation42_spill] sm:$0xff] %v9337_v61  ;;  %v12023_v27 = vmax.f32 %v9337_v61, 0.0  ;;  %v7364_v49 = vpop.f32.mrb[38].mxu1 }
 0x208   :  { %v9344_v55 = vadd.f32 %v7364_v49, %v9097_v40  ;;  %v1817_v11 = vpop.f32.mrb[39].mxu1 }
 0x209   :  { %7583 = vmatprep.mubr.f32.mxu0 %v12023_v27  ;;  %v9349_v42 = vadd.f32 %v9097_v40, %v1817_v11 }
 0x20a   :  { %12294 = vst [vmem:[#allocation43_spill] sm:$0xff] %v9344_v55  ;;  %7584 = vmatmul.mubr.f32.gmra.mrb[164].mxu0 %v12024_v37  ;;  %v12028_v22 = vmax.f32 %v9344_v55, 0.0 }
 0x20b   :  { %12295 = vst [vmem:[#allocation44_spill] sm:$0xff] %v9349_v42  ;;  %v12027_v53 = vmax.f32 %v9349_v42, 0.0  ;;  %v7367_v28 = vpop.f32.mrb[40].mxu1 }
 0x20c   :  { %v9356_v34 = vadd.f32 %v7367_v28, %v9097_v40  ;;  %v1827_v49 = vpop.f32.mrb[41].mxu1 }
 0x20d   :  { %7586 = vmatprep.mubr.f32.mxu0 %v12027_v53  ;;  %v9361_v27 = vadd.f32 %v9097_v40, %v1827_v49 }
 0x20e   :  { %12296 = vst [vmem:[#allocation45_spill] sm:$0xff] %v9356_v34  ;;  %7587 = vmatmul.mubr.f32.gmra.mrb[166].mxu0 %v12028_v22  ;;  %v12032_v11 = vmax.f32 %v9356_v34, 0.0 }
 0x20f   :  { %12297 = vst [vmem:[#allocation46_spill] sm:$0xff] %v9361_v27  ;;  %v12031_v37 = vmax.f32 %v9361_v27, 0.0  ;;  %v7370_v9 = vpop.f32.mrb[42].mxu1 }
 0x210   :  { %v9368_v14 = vadd.f32 %v7370_v9, %v9097_v40  ;;  %v1837_v28 = vpop.f32.mrb[43].mxu1 }
 0x211   :  { %7589 = vmatprep.mubr.f32.mxu0 %v12031_v37  ;;  %v9373_v53 = vadd.f32 %v9097_v40, %v1837_v28 }
 0x212   :  { %12298 = vst [vmem:[#allocation47_spill] sm:$0xff] %v9368_v14  ;;  %7590 = vmatmul.mubr.f32.gmra.mrb[168].mxu0 %v12032_v11  ;;  %v12036_v49 = vmax.f32 %v9368_v14, 0.0 }
 0x213   :  { %12299 = vst [vmem:[#allocation48_spill] sm:$0xff] %v9373_v53  ;;  %v12035_v22 = vmax.f32 %v9373_v53, 0.0  ;;  %v7373_v54 = vpop.f32.mrb[44].mxu1 }
 0x214   :  { %v9380_v60 = vadd.f32 %v7373_v54, %v9097_v40  ;;  %v1847_v9 = vpop.f32.mrb[45].mxu1 }
 0x215   :  { %7592 = vmatprep.mubr.f32.mxu0 %v12035_v22  ;;  %v9385_v37 = vadd.f32 %v9097_v40, %v1847_v9  ;;  %v176_v9 = vld [vmem:[%s11987_s1] sm:$0xff] }
 0x216   :  { %12300 = vst [vmem:[#allocation49_spill] sm:$0xff] %v9380_v60  ;;  %7593 = vmatmul.mubr.f32.gmra.mrb[170].mxu0 %v12036_v49  ;;  %v12040_v28 = vmax.f32 %v9380_v60, 0.0  ;;  %6376 = vmatprep.mubr.msk.f32.mxu1 %vm316_vm0, %v176_v9 }
 0x217   :  { %12301 = vst [vmem:[#allocation50_spill] sm:$0xff] %v9385_v37  ;;  %v12039_v11 = vmax.f32 %v9385_v37, 0.0  ;;  %v7376_v39 = vpop.f32.mrb[46].mxu1 }
 0x218   :  { %v9392_v43 = vadd.f32 %v7376_v39, %v9097_v40  ;;  %v1857_v54 = vpop.f32.mrb[47].mxu1 }
 0x219   :  { %7595 = vmatprep.mubr.f32.mxu0 %v12039_v11  ;;  %v9397_v22 = vadd.f32 %v9097_v40, %v1857_v54 }
 0x21a   :  { %12302 = vst [vmem:[#allocation51_spill] sm:$0xff] %v9392_v43  ;;  %7596 = vmatmul.mubr.f32.gmra.mrb[172].mxu0 %v12040_v28  ;;  %v12044_v49 = vmax.f32 %v9392_v43, 0.0 }
 0x21b   :  { %12303 = vst [vmem:[#allocation52_spill] sm:$0xff] %v9397_v22  ;;  %v12043_v39 = vmax.f32 %v9397_v22, 0.0  ;;  %v7379_v26 = vpop.f32.mrb[48].mxu1 }
 0x21c   :  { %v9408_v30 = vadd.f32 %v7379_v26, %v9097_v40  ;;  %v1867_v11 = vpop.f32.mrb[49].mxu1 }
 0x21d   :  { %7598 = vmatprep.mubr.f32.mxu0 %v12043_v39  ;;  %v9413_v54 = vadd.f32 %v9097_v40, %v1867_v11 }
 0x21e   :  { %12304 = vst [vmem:[#allocation53_spill] sm:$0xff] %v9408_v30  ;;  %7599 = vmatmul.mubr.f32.gmra.mrb[174].mxu0 %v12044_v49  ;;  %v12048_v28 = vmax.f32 %v9408_v30, 0.0 }
 0x21f   :  { %12305 = vst [vmem:[#allocation54_spill] sm:$0xff] %v9413_v54  ;;  %v12047_v9 = vmax.f32 %v9413_v54, 0.0  ;;  %v7382_v13 = vpop.f32.mrb[50].mxu1 }
 0x220   :  { %v9420_v16 = vadd.f32 %v7382_v13, %v9097_v40  ;;  %v1877_v26 = vpop.f32.mrb[51].mxu1 }
 0x221   :  { %7601 = vmatprep.mubr.f32.mxu0 %v12047_v9  ;;  %v9425_v39 = vadd.f32 %v9097_v40, %v1877_v26 }
 0x222   :  { %12306 = vst [vmem:[#allocation55_spill] sm:$0xff] %v9420_v16  ;;  %7602 = vmatmul.mubr.f32.gmra.mrb[176].mxu0 %v12048_v28  ;;  %v12052_v11 = vmax.f32 %v9420_v16, 0.0 }
 0x223   :  { %12307 = vst [vmem:[#allocation56_spill] sm:$0xff] %v9425_v39  ;;  %v12051_v49 = vmax.f32 %v9425_v39, 0.0  ;;  %v7385_v1 = vpop.f32.mrb[52].mxu1 }
 0x224   :  { %v9432_v4 = vadd.f32 %v7385_v1, %v9097_v40  ;;  %v1887_v13 = vpop.f32.mrb[53].mxu1 }
 0x225   :  { %7604 = vmatprep.mubr.f32.mxu0 %v12051_v49  ;;  %v9437_v9 = vadd.f32 %v9097_v40, %v1887_v13 }
 0x226   :  { %12308 = vst [vmem:[#allocation57_spill] sm:$0xff] %v9432_v4  ;;  %7605 = vmatmul.mubr.f32.gmra.mrb[178].mxu0 %v12052_v11  ;;  %v12057_v26 = vmax.f32 %v9432_v4, 0.0 }
 0x227   :  { %12309 = vst [vmem:[#allocation58_spill] sm:$0xff] %v9437_v9  ;;  %v12056_v28 = vmax.f32 %v9437_v9, 0.0  ;;  %v7388_v58 = vpop.f32.mrb[54].mxu1 }
 0x228   :  { %v9444_v56 = vadd.f32 %v7388_v58, %v9097_v40  ;;  %v1897_v1 = vpop.f32.mrb[55].mxu1 }
 0x229   :  { %7607 = vmatprep.mubr.f32.mxu0 %v12056_v28  ;;  %v9449_v49 = vadd.f32 %v9097_v40, %v1897_v1 }
 0x22a   :  { %12310 = vst [vmem:[#allocation59_spill] sm:$0xff] %v9444_v56  ;;  %7608 = vmatmul.mubr.f32.gmra.mrb[180].mxu0 %v12057_v26  ;;  %v12061_v13 = vmax.f32 %v9444_v56, 0.0 }
 0x22b   :  { %12311 = vst [vmem:[#allocation60_spill] sm:$0xff] %v9449_v49  ;;  %v12060_v11 = vmax.f32 %v9449_v49, 0.0  ;;  %v7391_v19 = vpop.f32.mrb[56].mxu1 }
 0x22c   :  { %v9456_v16 = vadd.f32 %v7391_v19, %v9097_v40  ;;  %v1907_v58 = vpop.f32.mrb[57].mxu1 }
 0x22d   :  { %7610 = vmatprep.mubr.f32.mxu0 %v12060_v11  ;;  %v9461_v28 = vadd.f32 %v9097_v40, %v1907_v58 }
 0x22e   :  { %12312 = vst [vmem:[#allocation61_spill] sm:$0xff] %v9456_v16  ;;  %7611 = vmatmul.mubr.f32.gmra.mrb[182].mxu0 %v12061_v13  ;;  %v12065_v1 = vmax.f32 %v9456_v16, 0.0 }
 0x22f   :  { %12313 = vst [vmem:[#allocation62_spill] sm:$0xff] %v9461_v28  ;;  %v12064_v26 = vmax.f32 %v9461_v28, 0.0  ;;  %v7394_v4 = vpop.f32.mrb[58].mxu1 }
 0x230   :  { %v9468_v9 = vadd.f32 %v7394_v4, %v9097_v40  ;;  %v1917_v19 = vpop.f32.mrb[59].mxu1 }
 0x231   :  { %7613 = vmatprep.mubr.f32.mxu0 %v12064_v26  ;;  %v9473_v11 = vadd.f32 %v9097_v40, %v1917_v19 }
 0x232   :  { %12314 = vst [vmem:[#allocation63_spill] sm:$0xff] %v9468_v9  ;;  %7614 = vmatmul.mubr.f32.gmra.mrb[184].mxu0 %v12065_v1  ;;  %v12069_v58 = vmax.f32 %v9468_v9, 0.0 }
 0x233   :  { %12315 = vst [vmem:[#allocation64_spill] sm:$0xff] %v9473_v11  ;;  %v12068_v13 = vmax.f32 %v9473_v11, 0.0  ;;  %v7397_v56 = vpop.f32.mrb[60].mxu1 }
 0x234   :  { %v9480_v49 = vadd.f32 %v7397_v56, %v9097_v40  ;;  %v1927_v4 = vpop.f32.mrb[61].mxu1 }
 0x235   :  { %7616 = vmatprep.mubr.f32.mxu0 %v12068_v13  ;;  %v9485_v26 = vadd.f32 %v9097_v40, %v1927_v4 }
 0x236   :  { %12316 = vst [vmem:[#allocation65_spill] sm:$0xff] %v9480_v49  ;;  %7617 = vmatmul.mubr.f32.gmra.mrb[186].mxu0 %v12069_v58  ;;  %v12073_v19 = vmax.f32 %v9480_v49, 0.0 }
 0x237   :  { %12317 = vst [vmem:[#allocation66_spill] sm:$0xff] %v9485_v26  ;;  %v12072_v1 = vmax.f32 %v9485_v26, 0.0  ;;  %v7400_v16 = vpop.f32.mrb[62].mxu1 }
 0x238   :  { %v9492_v28 = vadd.f32 %v7400_v16, %v9097_v40  ;;  %v1937_v56 = vpop.f32.mrb[63].mxu1 }
 0x239   :  { %7619 = vmatprep.mubr.f32.mxu0 %v12072_v1  ;;  %v9497_v13 = vadd.f32 %v9097_v40, %v1937_v56 }
 0x23a   :  { %12318 = vst [vmem:[#allocation67_spill] sm:$0xff] %v9492_v28  ;;  %7620 = vmatmul.mubr.f32.gmra.mrb[188].mxu0 %v12073_v19  ;;  %v12077_v4 = vmax.f32 %v9492_v28, 0.0 }
 0x23b   :  { %12319 = vst [vmem:[#allocation68_spill] sm:$0xff] %v9497_v13  ;;  %v12076_v58 = vmax.f32 %v9497_v13, 0.0  ;;  %v7403_v9 = vpop.f32.mrb[64].mxu1 }
 0x23c   :  { %v9504_v11 = vadd.f32 %v7403_v9, %v9097_v40  ;;  %v1947_v16 = vpop.f32.mrb[65].mxu1 }
 0x23d   :  { %7622 = vmatprep.mubr.f32.mxu0 %v12076_v58  ;;  %v9509_v1 = vadd.f32 %v9097_v40, %v1947_v16 }
 0x23e   :  { %12320 = vst [vmem:[#allocation69_spill] sm:$0xff] %v9504_v11  ;;  %7623 = vmatmul.mubr.f32.gmra.mrb[190].mxu0 %v12077_v4  ;;  %v12080_v56 = vmax.f32 %v9504_v11, 0.0 }
 0x23f   :  { %12321 = vst [vmem:[#allocation70_spill] sm:$0xff] %v9509_v1  ;;  %v12081_v19 = vmax.f32 %v9509_v1, 0.0  ;;  %v7406_v49 = vpop.f32.mrb[66].mxu1 }
 0x240   :  { %v9516_v26 = vadd.f32 %v7406_v49, %v9097_v40  ;;  %v1957_v9 = vpop.f32.mrb[67].mxu1 }
 0x241   :  { %7625 = vmatprep.mubr.f32.mxu0 %v12081_v19  ;;  %v9521_v58 = vadd.f32 %v9097_v40, %v1957_v9 }
 0x242   :  { %12322 = vst [vmem:[#allocation71_spill] sm:$0xff] %v9516_v26  ;;  %7626 = vmatmul.mubr.f32.gmra.mrb[192].mxu0 %v12080_v56  ;;  %v12085_v4 = vmax.f32 %v9516_v26, 0.0 }
 0x243   :  { %12323 = vst [vmem:[#allocation72_spill] sm:$0xff] %v9521_v58  ;;  %v12084_v16 = vmax.f32 %v9521_v58, 0.0  ;;  %v7409_v28 = vpop.f32.mrb[68].mxu1 }
 0x244   :  { %v1967_v13 = vpop.f32.mrb[69].mxu1  ;;  %v9535_v9 = vadd.f32 %v7409_v28, %v9097_v40 }
 0x245   :  { %7628 = vmatprep.mubr.f32.mxu0 %v12084_v16  ;;  %v9532_v49 = vadd.f32 %v9097_v40, %v1967_v13 }
 0x246   :  { %7629 = vmatmul.mubr.f32.gmra.mrb[194].mxu0 %v12085_v4  ;;  %12325 = vst [vmem:[#allocation74_spill] sm:$0xff] %v9535_v9  ;;  %v12088_v19 = vmax.f32 %v9535_v9, 0.0 }
 0x247   :  { %12324 = vst [vmem:[#allocation73_spill] sm:$0xff] %v9532_v49  ;;  %v12089_v56 = vmax.f32 %v9532_v49, 0.0  ;;  %v7412_v11 = vpop.f32.mrb[70].mxu1 }
 0x248   :  { %v1977_v1 = vpop.f32.mrb[71].mxu1  ;;  %v9547_v13 = vadd.f32 %v7412_v11, %v9097_v40 }
 0x249   :  { %7631 = vmatprep.mubr.f32.mxu0 %v12089_v56  ;;  %v9544_v16 = vadd.f32 %v9097_v40, %v1977_v1 }
 0x24a   :  { %7632 = vmatmul.mubr.f32.gmra.mrb[196].mxu0 %v12088_v19  ;;  %12327 = vst [vmem:[#allocation76_spill] sm:$0xff] %v9547_v13  ;;  %v12092_v4 = vmax.f32 %v9547_v13, 0.0 }
 0x24b   :  { %12326 = vst [vmem:[#allocation75_spill] sm:$0xff] %v9544_v16  ;;  %v12093_v28 = vmax.f32 %v9544_v16, 0.0  ;;  %v7415_v58 = vpop.f32.mrb[72].mxu1 }
 0x24c   :  { %v1987_v39 = vpop.f32.mrb[73].mxu1  ;;  %v9559_v1 = vadd.f32 %v7415_v58, %v9097_v40 }
 0x24d   :  { %7634 = vmatprep.mubr.f32.mxu0 %v12093_v28  ;;  %v9556_v19 = vadd.f32 %v9097_v40, %v1987_v39 }
 0x24e   :  { %7635 = vmatmul.mubr.f32.gmra.mrb[198].mxu0 %v12092_v4  ;;  %12329 = vst [vmem:[#allocation78_spill] sm:$0xff] %v9559_v1  ;;  %v12096_v56 = vmax.f32 %v9559_v1, 0.0 }
 0x24f   :  { %12328 = vst [vmem:[#allocation77_spill] sm:$0xff] %v9556_v19  ;;  %v12097_v11 = vmax.f32 %v9556_v19, 0.0  ;;  %v7418_v30 = vpop.f32.mrb[74].mxu1 }
 0x250   :  { %v1997_v54 = vpop.f32.mrb[75].mxu1  ;;  %v9571_v39 = vadd.f32 %v7418_v30, %v9097_v40 }
 0x251   :  { %7637 = vmatprep.mubr.f32.mxu0 %v12097_v11  ;;  %v9568_v4 = vadd.f32 %v9097_v40, %v1997_v54 }
 0x252   :  { %7638 = vmatmul.mubr.f32.gmra.mrb[200].mxu0 %v12096_v56  ;;  %12331 = vst [vmem:[#allocation80_spill] sm:$0xff] %v9571_v39  ;;  %v12100_v28 = vmax.f32 %v9571_v39, 0.0 }
 0x253   :  { %12330 = vst [vmem:[#allocation79_spill] sm:$0xff] %v9568_v4  ;;  %v12101_v58 = vmax.f32 %v9568_v4, 0.0  ;;  %v7421_v43 = vpop.f32.mrb[76].mxu1 }
 0x254   :  { %v2007_v22 = vpop.f32.mrb[77].mxu1  ;;  %v9583_v54 = vadd.f32 %v7421_v43, %v9097_v40 }
 0x255   :  { %7640 = vmatprep.mubr.f32.mxu0 %v12101_v58  ;;  %v9580_v56 = vadd.f32 %v9097_v40, %v2007_v22 }
 0x256   :  { %7641 = vmatmul.mubr.f32.gmra.mrb[202].mxu0 %v12100_v28  ;;  %12333 = vst [vmem:[#allocation82_spill] sm:$0xff] %v9583_v54  ;;  %v12104_v11 = vmax.f32 %v9583_v54, 0.0 }
 0x257   :  { %12332 = vst [vmem:[#allocation81_spill] sm:$0xff] %v9580_v56  ;;  %v12105_v30 = vmax.f32 %v9580_v56, 0.0  ;;  %v7424_v60 = vpop.f32.mrb[78].mxu1 }
 0x258   :  { %v2017_v37 = vpop.f32.mrb[79].mxu1  ;;  %v9595_v22 = vadd.f32 %v7424_v60, %v9097_v40 }
 0x259   :  { %7643 = vmatprep.mubr.f32.mxu0 %v12105_v30  ;;  %v9592_v28 = vadd.f32 %v9097_v40, %v2017_v37 }
 0x25a   :  { %7644 = vmatmul.mubr.f32.gmra.mrb[204].mxu0 %v12104_v11  ;;  %12335 = vst [vmem:[#allocation84_spill] sm:$0xff] %v9595_v22  ;;  %v12108_v58 = vmax.f32 %v9595_v22, 0.0 }
 0x25b   :  { %12334 = vst [vmem:[#allocation83_spill] sm:$0xff] %v9592_v28  ;;  %v12109_v43 = vmax.f32 %v9592_v28, 0.0  ;;  %v7427_v14 = vpop.f32.mrb[80].mxu1 }
 0x25c   :  { %v2027_v53 = vpop.f32.mrb[81].mxu1  ;;  %v9607_v37 = vadd.f32 %v7427_v14, %v9097_v40 }
 0x25d   :  { %7646 = vmatprep.mubr.f32.mxu0 %v12109_v43  ;;  %v9604_v11 = vadd.f32 %v9097_v40, %v2027_v53 }
 0x25e   :  { %7647 = vmatmul.mubr.f32.gmra.mrb[206].mxu0 %v12108_v58  ;;  %12337 = vst [vmem:[#allocation86_spill] sm:$0xff] %v9607_v37  ;;  %v12112_v30 = vmax.f32 %v9607_v37, 0.0 }
 0x25f   :  { %12336 = vst [vmem:[#allocation85_spill] sm:$0xff] %v9604_v11  ;;  %v12113_v60 = vmax.f32 %v9604_v11, 0.0  ;;  %v7430_v34 = vpop.f32.mrb[82].mxu1 }
 0x260   :  { %v2037_v27 = vpop.f32.mrb[83].mxu1  ;;  %v9619_v53 = vadd.f32 %v7430_v34, %v9097_v40 }
 0x261   :  { %7649 = vmatprep.mubr.f32.mxu0 %v12113_v60  ;;  %v9616_v58 = vadd.f32 %v9097_v40, %v2037_v27 }
 0x262   :  { %7650 = vmatmul.mubr.f32.gmra.mrb[208].mxu0 %v12112_v30  ;;  %12339 = vst [vmem:[#allocation88_spill] sm:$0xff] %v9619_v53  ;;  %v12116_v43 = vmax.f32 %v9619_v53, 0.0 }
 0x263   :  { %12338 = vst [vmem:[#allocation87_spill] sm:$0xff] %v9616_v58  ;;  %v12117_v14 = vmax.f32 %v9616_v58, 0.0  ;;  %v7433_v55 = vpop.f32.mrb[84].mxu1 }
 0x264   :  { %v2047_v42 = vpop.f32.mrb[85].mxu1  ;;  %v9631_v27 = vadd.f32 %v7433_v55, %v9097_v40 }
 0x265   :  { %7652 = vmatprep.mubr.f32.mxu0 %v12117_v14  ;;  %v9628_v30 = vadd.f32 %v9097_v40, %v2047_v42 }
 0x266   :  { %7653 = vmatmul.mubr.f32.gmra.mrb[210].mxu0 %v12116_v43  ;;  %12341 = vst [vmem:[#allocation90_spill] sm:$0xff] %v9631_v27  ;;  %v12120_v60 = vmax.f32 %v9631_v27, 0.0 }
 0x267   :  { %12340 = vst [vmem:[#allocation89_spill] sm:$0xff] %v9628_v30  ;;  %v12121_v34 = vmax.f32 %v9628_v30, 0.0  ;;  %v7436_v29 = vpop.f32.mrb[86].mxu1 }
 0x268   :  { %v2057_v61 = vpop.f32.mrb[87].mxu1  ;;  %v9643_v42 = vadd.f32 %v7436_v29, %v9097_v40 }
 0x269   :  { %7655 = vmatprep.mubr.f32.mxu0 %v12121_v34  ;;  %v9640_v43 = vadd.f32 %v9097_v40, %v2057_v61 }
 0x26a   :  { %7656 = vmatmul.mubr.f32.gmra.mrb[212].mxu0 %v12120_v60  ;;  %12343 = vst [vmem:[#allocation92_spill] sm:$0xff] %v9643_v42  ;;  %v12129_v14 = vmax.f32 %v9643_v42, 0.0 }
 0x26b   :  { %12342 = vst [vmem:[#allocation91_spill] sm:$0xff] %v9640_v43  ;;  %v12127_v55 = vmax.f32 %v9640_v43, 0.0  ;;  %v7439_v25 = vpop.f32.mrb[88].mxu1  ;;  %v190_v43 = vld [vmem:[%s11987_s1 + $0x70] sm:$0xff] }
 0x26c   :  { %v2067_v60 = vpop.f32.mrb[89].mxu1  ;;  %v9661_v3 = vadd.f32 %v7439_v25, %v9097_v40 }
 0x26d   :  { %7658 = vmatprep.mubr.f32.mxu0 %v12127_v55  ;;  %v9657_v61 = vadd.f32 %v9097_v40, %v2067_v60  ;;  %v177_v55 = vld [vmem:[%s11987_s1 + $0x8] sm:$0xff] }
 0x26e   :  { %7659 = vmatmul.mubr.f32.gmra.mrb[214].mxu0 %v12129_v14  ;;  %12345 = vst [vmem:[#allocation94_spill] sm:$0xff] %v9661_v3  ;;  %v12136_v60 = vmax.f32 %v9661_v3, 0.0 }
 0x26f   :  { %12344 = vst [vmem:[#allocation93_spill] sm:$0xff] %v9657_v61  ;;  %v12133_v14 = vmax.f32 %v9657_v61, 0.0  ;;  %v7442_v2 = vpop.f32.mrb[90].mxu1 }
 0x270   :  { %v2077_v25 = vpop.f32.mrb[91].mxu1 }
 0x271   :  { %7661 = vmatprep.mubr.f32.mxu0 %v12133_v14 }
 0x272   :  { %7662 = vmatmul.mubr.f32.gmra.mrb[216].mxu0 %v12136_v60  ;;  %v179_v60 = vld [vmem:[%s11987_s1 + $0x18] sm:$0xff] }
 0x273   :  { %v7445_v14 = vpop.f32.mrb[92].mxu1 }
 0x295   :  { %v7531_v34 = vpop.f32.mrb[128].mxu0 }
 0x296   :  { %v2483_v29 = vpop.f32.mrb[129].mxu0  ;;  %v2489_v57 = vadd.f32 %v7531_v34, %v9650_v12 }
 0x297   :  { %v2484_v41 = vadd.f32 %v9650_v12, %v2483_v29 }
 0x298   :  { %v3123_v34 = vmax.f32 %v2489_v57, 0.0  ;;  %v2087_v57 = vpop.f32.mrb[93].mxu1 }
 0x299   :  { %v3122_v17 = vmax.f32 %v2484_v41, 0.0  ;;  %v7534_v32 = vpop.f32.mrb[130].mxu0  ;;  %v9693_v35 = vadd.f32 %v9097_v40, %v2087_v57 }
 0x29a   :  { %v2493_v48 = vpop.f32.mrb[131].mxu0  ;;  %v2499_v52 = vadd.f32 %v7534_v32, %v9650_v12  ;;  %v7448_v32 = vpop.f32.mrb[94].mxu1 }
 0x29b   :  { %3730 = vmatmul.mubr.f32.vlgmr.msra.gmra.mrb[128].mxu1 %v3122_v17  ;;  %v2494_v41 = vadd.f32 %v9650_v12, %v2493_v48  ;;  %v9679_v17 = vadd.f32 %v9097_v40, %v2077_v25  ;;  %12348 = vst [vmem:[#allocation97_spill] sm:$0xff] %v9693_v35  ;;  %v12145_v57 = vmax.f32 %v9693_v35, 0.0 }
 0x29c   :  { %6377 = vmatprep.mubr.msk.f32.mxu1 %vm316_vm0, %v177_v55  ;;  %v9682_v55 = vadd.f32 %v7442_v2, %v9097_v40  ;;  %v3125_v21 = vmax.f32 %v2499_v52, 0.0 }
 0x29d   :  { %v7537_v29 = vpop.f32.mrb[132].mxu0  ;;  %12346 = vst [vmem:[#allocation95_spill] sm:$0xff] %v9679_v17  ;;  %v12140_v48 = vmax.f32 %v9679_v17, 0.0  ;;  %v3124_v31 = vmax.f32 %v2494_v41, 0.0  ;;  %v2097_v41 = vpop.f32.mrb[95].mxu1 }
 0x29e   :  { %v2503_v45 = vpop.f32.mrb[133].mxu0  ;;  %12347 = vst [vmem:[#allocation96_spill] sm:$0xff] %v9682_v55 }
 0x29f   :  { %3735 = vmatmul.mubr.f32.gmra.mrb[130].mxu1 %v3123_v34  ;;  %v9696_v34 = vadd.f32 %v7445_v14, %v9097_v40  ;;  %7664 = vmatprep.mubr.f32.mxu0 %v12140_v48  ;;  %v2504_v15 = vadd.f32 %v9650_v12, %v2503_v45  ;;  %v180_v14 = vld [vmem:[%s11987_s1 + $0x20] sm:$0xff]  ;;  %v7451_v45 = vpop.f32.mrb[96].mxu1 }
 0x2a0   :  { %6378 = vmatprep.mubr.msk.f32.mxu1 %vm316_vm0, %v178_v8  ;;  %v12142_v8 = vmax.f32 %v9682_v55, 0.0  ;;  %v2107_v52 = vpop.f32.mrb[97].mxu1  ;;  %v2509_v55 = vadd.f32 %v7537_v29, %v9650_v12 }
 0x2a1   :  { %v9690_v25 = vpop.f32.mrb[134].mxu0  ;;  %12349 = vst [vmem:[#allocation98_spill] sm:$0xff] %v9696_v34  ;;  %v3126_v6 = vmax.f32 %v2504_v15, 0.0  ;;  %v7454_v15 = vpop.f32.mrb[98].mxu1 }
 0x2a2   :  { %v2513_v2 = vpop.f32.mrb[135].mxu0  ;;  %7665 = vmatmul.mubr.f32.gmra.mrb[218].mxu0 %v12142_v8  ;;  %v12147_v8 = vmax.f32 %v9696_v34, 0.0  ;;  %v182_v34 = vld [vmem:[%s11987_s1 + $0x30] sm:$0xff] }
 0x2a3   :  { %3740 = vmatmul.mubr.f32.gmra.mrb[132].mxu1 %v3124_v31  ;;  %v9712_v31 = vadd.f32 %v9097_v40, %v2097_v41  ;;  %7667 = vmatprep.mubr.f32.mxu0 %v12145_v57 }
 0x2a4   :  { %6379 = vmatprep.mubr.msk.f32.mxu1 %vm316_vm0, %v179_v60  ;;  %v9715_v60 = vadd.f32 %v7448_v32, %v9097_v40  ;;  %v181_v32 = vld [vmem:[%s11987_s1 + $0x28] sm:$0xff] }
 0x2a5   :  { %v9709_v48 = vpop.f32.mrb[136].mxu0  ;;  %12350 = vst [vmem:[#allocation99_spill] sm:$0xff] %v9712_v31  ;;  %v12148_v41 = vmax.f32 %v9712_v31, 0.0  ;;  %v3127_v31 = vmax.f32 %v2509_v55, 0.0 }
 0x2a6   :  { %v2523_v63 = vpop.f32.mrb[137].mxu0  ;;  %12351 = vst [vmem:[#allocation100_spill] sm:$0xff] %v9715_v60  ;;  %7668 = vmatmul.mubr.f32.gmra.mrb[220].mxu0 %v12147_v8  ;;  %v12152_v29 = vmax.f32 %v9715_v60, 0.0  ;;  %v4498_v8 = vld [vmem:[%s11996_s10] sm:$0xff] }
 0x2a7   :  { %3745 = vmatmul.mubr.f32.gmra.mrb[134].mxu1 %v3125_v21  ;;  %v9731_v21 = vadd.f32 %v9097_v40, %v2107_v52  ;;  %7670 = vmatprep.mubr.f32.mxu0 %v12148_v41  ;;  %v4499_v52 = vld [vmem:[%s11996_s10 + $0x8] sm:$0xff] }
 0x2a8   :  { %6380 = vmatprep.mubr.msk.f32.mxu1 %vm316_vm0, %v180_v14  ;;  %v9736_v14 = vadd.f32 %v7451_v45, %v9097_v40  ;;  %v8047_v40 = vpack.c.bf16 %v4499_v52, %v4498_v8  ;;  %v2117_v45 = vpop.f32.mrb[99].mxu1 }
 0x2a9   :  { %v9728_v57 = vpop.f32.mrb[138].mxu0  ;;  %12352 = vst [vmem:[#allocation101_spill] sm:$0xff] %v9731_v21  ;;  %v12155_v41 = vmax.f32 %v9731_v21, 0.0 }
 0x2aa   :  { %v9733_v35 = vpop.f32.mrb[139].mxu0  ;;  %12353 = vst [vmem:[#allocation102_spill] sm:$0xff] %v9736_v14  ;;  %7671 = vmatmul.mubr.f32.gmra.mrb[222].mxu0 %v12152_v29  ;;  %8048 = vmatprep.subr.bf16.mxu0 %v8047_v40  ;;  %v12157_v55 = vmax.f32 %v9736_v14, 0.0  ;;  %v2524_v14 = vadd.f32 %v9650_v12, %v2523_v63  ;;  %v2539_v61 = vadd.f32 %v9728_v57, %v9650_v12 }
 0x2ab   :  { %3750 = vmatmul.mubr.f32.gmra.mrb[136].mxu1 %v3126_v6  ;;  %v2514_v6 = vadd.f32 %v9650_v12, %v2513_v2  ;;  %7673 = vmatprep.mubr.f32.mxu0 %v12155_v41  ;;  %v7457_v2 = vpop.f32.mrb[100].mxu1  ;;  %v183_v41 = vld [vmem:[%s11987_s1 + $0x38] sm:$0xff]  ;;  %v2534_v44 = vadd.f32 %v9650_v12, %v9733_v35 }
 0x2ac   :  { %6381 = vmatprep.mubr.msk.f32.mxu1 %vm316_vm0, %v181_v32  ;;  %v9760_v32 = vld [vmem:[%s11991_s5] ss:$0 sm:$0xff]  ;;  %8050 = vmatpush3.bf16.msra.mxu0 %v8047_v40 }
 0x2ad   :  { %v9755_v17 = vpop.f32.mrb[140].mxu0  ;;  %v9763_v29 = vadd.f32 %v9760_v32, %v2117_v45  ;;  %v9768_v52 = vadd.f32 %v9760_v32, %v7454_v15  ;;  %v2127_v45 = vpop.f32.mrb[101].mxu1  ;;  %v2519_v15 = vadd.f32 %v9690_v25, %v9650_v12  ;;  %v3128_v38 = vmax.f32 %v2514_v6, 0.0 }
 0x2ae   :  { %v9765_v8 = vpop.f32.mrb[141].mxu0  ;;  %7674 = vmatmul.mubr.f32.gmra.mrb[224].mxu0 %v12157_v55  ;;  %v9790_v40 = vadd.f32 %v9760_v32, %v7457_v2  ;;  %v7460_v6 = vpop.f32.mrb[102].mxu1  ;;  %v184_v2 = vld [vmem:[%s11987_s1 + $0x40] sm:$0xff]  ;;  %v2549_v42 = vadd.f32 %v9755_v17, %v9650_v12 }
 0x2af   :  { %12354 = vst [vmem:[#allocation103_spill] sm:$0xff] %v9763_v29  ;;  %12355 = vst [vmem:[#allocation104_spill] sm:$0xff] %v9768_v52  ;;  %3755 = vmatmul.mubr.f32.gmra.mrb[138].mxu1 %v3127_v31  ;;  %v12160_v60 = vmax.f32 %v9763_v29, 0.0  ;;  %v9785_v31 = vadd.f32 %v9760_v32, %v2127_v45  ;;  %v12162_v25 = vmax.f32 %v9768_v52, 0.0  ;;  %v2137_v55 = vpop.f32.mrb[103].mxu1  ;;  %v3129_v3 = vmax.f32 %v2519_v15, 0.0 }
 0x2b0   :  { %6382 = vmatprep.mubr.msk.f32.mxu1 %vm316_vm0, %v182_v34  ;;  %12357 = vst [vmem:[#allocation106_spill] sm:$0xff] %v9790_v40  ;;  %v12166_v63 = vmax.f32 %v9790_v40, 0.0  ;;  %v7463_v15 = vpop.f32.mrb[104].mxu1  ;;  %v2529_v52 = vadd.f32 %v9709_v48, %v9650_v12  ;;  %v2544_v18 = vadd.f32 %v9650_v12, %v9765_v8  ;;  %v3135_v24 = vmax.f32 %v2549_v42, 0.0 }
 0x2b1   :  { %v9782_v21 = vpop.f32.mrb[142].mxu0  ;;  %12356 = vst [vmem:[#allocation105_spill] sm:$0xff] %v9785_v31  ;;  %7676 = vmatprep.mubr.f32.mxu0 %v12160_v60  ;;  %v12164_v45 = vmax.f32 %v9785_v31, 0.0 }
 0x2b2   :  { %v9787_v34 = vpop.f32.mrb[143].mxu0  ;;  %7677 = vmatmul.mubr.f32.gmra.mrb[226].mxu0 %v12162_v25  ;;  %v2147_v25 = vpop.f32.mrb[105].mxu1 }
 0x2b3   :  { %3760 = vmatmul.mubr.f32.gmra.mrb[140].mxu1 %v3128_v38  ;;  %v9806_v38 = vadd.f32 %v9760_v32, %v2137_v55  ;;  %7679 = vmatprep.mubr.f32.mxu0 %v12164_v45  ;;  %v185_v45 = vld [vmem:[%s11987_s1 + $0x48] sm:$0xff] }
 0x2b4   :  { %6383 = vmatprep.mubr.msk.f32.mxu1 %vm316_vm0, %v183_v41  ;;  %v9811_v41 = vadd.f32 %v9760_v32, %v7460_v6  ;;  %v3130_v6 = vmax.f32 %v2524_v14, 0.0  ;;  %v7466_v14 = vpop.f32.mrb[106].mxu1 }
 0x2b5   :  { %v9803_v60 = vpop.f32.mrb[144].mxu0  ;;  %12358 = vst [vmem:[#allocation107_spill] sm:$0xff] %v9806_v38  ;;  %v12169_v55 = vmax.f32 %v9806_v38, 0.0  ;;  %v2157_v40 = vpop.f32.mrb[107].mxu1 }
 0x2b6   :  { %v9808_v29 = vpop.f32.mrb[145].mxu0  ;;  %12359 = vst [vmem:[#allocation108_spill] sm:$0xff] %v9811_v41  ;;  %7680 = vmatmul.mubr.f32.gmra.mrb[228].mxu0 %v12166_v63  ;;  %v9833_v63 = vadd.f32 %v9760_v32, %v7463_v15  ;;  %v12171_v48 = vmax.f32 %v9811_v41, 0.0  ;;  %v3131_v15 = vmax.f32 %v2529_v52, 0.0  ;;  %v7469_v52 = vpop.f32.mrb[108].mxu1 }
 0x2b7   :  { %3765 = vmatmul.mubr.f32.gmra.mrb[142].mxu1 %v3129_v3  ;;  %v9828_v3 = vadd.f32 %v9760_v32, %v2147_v25  ;;  %7682 = vmatprep.mubr.f32.mxu0 %v12169_v55  ;;  %v186_v55 = vld [vmem:[%s11987_s1 + $0x50] sm:$0xff]  ;;  %v2167_v41 = vpop.f32.mrb[109].mxu1 }
 0x2b8   :  { %6384 = vmatprep.mubr.msk.f32.mxu1 %vm316_vm0, %v184_v2  ;;  %12361 = vst [vmem:[#allocation110_spill] sm:$0xff] %v9833_v63  ;;  %v12176_v35 = vmax.f32 %v9833_v63, 0.0 }
 0x2b9   :  { %v9825_v31 = vpop.f32.mrb[146].mxu0  ;;  %12360 = vst [vmem:[#allocation109_spill] sm:$0xff] %v9828_v3  ;;  %v12174_v25 = vmax.f32 %v9828_v3, 0.0 }
 0x2ba   :  { %v9830_v2 = vpop.f32.mrb[147].mxu0  ;;  %7683 = vmatmul.mubr.f32.gmra.mrb[230].mxu0 %v12171_v48  ;;  %v9855_v48 = vadd.f32 %v9760_v32, %v7466_v14  ;;  %v3132_v14 = vmax.f32 %v2534_v44, 0.0  ;;  %v7472_v44 = vpop.f32.mrb[110].mxu1 }
 0x2bb   :  { %3770 = vmatmul.mubr.f32.gmra.mrb[144].mxu1 %v3130_v6  ;;  %v9850_v6 = vadd.f32 %v9760_v32, %v2157_v40  ;;  %7685 = vmatprep.mubr.f32.mxu0 %v12174_v25  ;;  %v187_v25 = vld [vmem:[%s11987_s1 + $0x58] sm:$0xff]  ;;  %v2177_v63 = vpop.f32.mrb[111].mxu1 }
 0x2bc   :  { %6385 = vmatprep.mubr.msk.f32.mxu1 %vm316_vm0, %v185_v45  ;;  %12363 = vst [vmem:[#allocation112_spill] sm:$0xff] %v9855_v48  ;;  %v12181_v57 = vmax.f32 %v9855_v48, 0.0 }
 0x2bd   :  { %v9847_v38 = vpop.f32.mrb[148].mxu0  ;;  %12362 = vst [vmem:[#allocation111_spill] sm:$0xff] %v9850_v6  ;;  %v12179_v40 = vmax.f32 %v9850_v6, 0.0 }
 0x2be   :  { %v9852_v45 = vpop.f32.mrb[149].mxu0  ;;  %7686 = vmatmul.mubr.f32.gmra.mrb[232].mxu0 %v12176_v35  ;;  %v9877_v35 = vadd.f32 %v9760_v32, %v7469_v52  ;;  %v3133_v52 = vmax.f32 %v2539_v61, 0.0  ;;  %v7475_v61 = vpop.f32.mrb[112].mxu1 }
 0x2bf   :  { %3775 = vmatmul.mubr.f32.gmra.mrb[146].mxu1 %v3131_v15  ;;  %v9872_v15 = vadd.f32 %v9760_v32, %v2167_v41  ;;  %7688 = vmatprep.mubr.f32.mxu0 %v12179_v40  ;;  %v188_v40 = vld [vmem:[%s11987_s1 + $0x60] sm:$0xff]  ;;  %v2187_v48 = vpop.f32.mrb[113].mxu1 }
 0x2c0   :  { %6386 = vmatprep.mubr.msk.f32.mxu1 %vm316_vm0, %v186_v55  ;;  %12365 = vst [vmem:[#allocation114_spill] sm:$0xff] %v9877_v35  ;;  %v12186_v8 = vmax.f32 %v9877_v35, 0.0  ;;  %v4500_v35 = vld [vmem:[%s11996_s10 + $0x10] sm:$0xff] }
 0x2c1   :  { %v9869_v3 = vpop.f32.mrb[150].mxu0  ;;  %12364 = vst [vmem:[#allocation113_spill] sm:$0xff] %v9872_v15  ;;  %v12184_v41 = vmax.f32 %v9872_v15, 0.0 }
 0x2c2   :  { %v9874_v55 = vpop.f32.mrb[151].mxu0  ;;  %7689 = vmatmul.mubr.f32.gmra.mrb[234].mxu0 %v12181_v57  ;;  %v9899_v57 = vadd.f32 %v9760_v32, %v7472_v44  ;;  %v3134_v44 = vmax.f32 %v2544_v18, 0.0  ;;  %v7478_v18 = vpop.f32.mrb[114].mxu1 }
 0x2c3   :  { %3780 = vmatmul.mubr.f32.gmra.mrb[148].mxu1 %v3132_v14  ;;  %v9894_v14 = vadd.f32 %v9760_v32, %v2177_v63  ;;  %7691 = vmatprep.mubr.f32.mxu0 %v12184_v41  ;;  %v189_v41 = vld [vmem:[%s11987_s1 + $0x68] sm:$0xff] }
 0x2c4   :  { %6387 = vmatprep.mubr.msk.f32.mxu1 %vm316_vm0, %v187_v25  ;;  %12367 = vst [vmem:[#allocation116_spill] sm:$0xff] %v9899_v57  ;;  %v12194_v17 = vmax.f32 %v9899_v57, 0.0  ;;  %v2569_v57 = vadd.f32 %v9803_v60, %v9650_v12 }
 0x2c5   :  { %v9891_v6 = vpop.f32.mrb[152].mxu0  ;;  %12366 = vst [vmem:[#allocation115_spill] sm:$0xff] %v9894_v14  ;;  %v12189_v63 = vmax.f32 %v9894_v14, 0.0  ;;  %v2197_v14 = vpop.f32.mrb[115].mxu1 }
 0x2c6   :  { %v9896_v25 = vpop.f32.mrb[153].mxu0  ;;  %7692 = vmatmul.mubr.f32.gmra.mrb[236].mxu0 %v12186_v8  ;;  %v9921_v8 = vadd.f32 %v9760_v32, %v7475_v61  ;;  %v9944_v27 = vadd.f32 %v9760_v32, %v2197_v14 }
 0x2c7   :  { %3785 = vmatmul.mubr.f32.gmra.mrb[150].mxu1 %v3133_v52  ;;  %v9916_v52 = vadd.f32 %v9760_v32, %v2187_v48  ;;  %7694 = vmatprep.mubr.f32.mxu0 %v12189_v63  ;;  %v4501_v48 = vld [vmem:[%s11996_s10 + $0x18] sm:$0xff] }
 0x2c8   :  { %6388 = vmatprep.mubr.msk.f32.mxu1 %vm316_vm0, %v188_v40  ;;  %12369 = vst [vmem:[#allocation118_spill] sm:$0xff] %v9921_v8  ;;  %v8051_v61 = vpack.c.bf16 %v4501_v48, %v4500_v35  ;;  %12370 = vst [vmem:[#allocation119_spill] sm:$0xff] %v9944_v27  ;;  %v9949_v35 = vadd.f32 %v9760_v32, %v7478_v18  ;;  %v12197_v42 = vmax.f32 %v9921_v8, 0.0  ;;  %v12199_v48 = vmax.f32 %v9944_v27, 0.0 }
 0x2c9   :  { %v9913_v15 = vpop.f32.mrb[154].mxu0  ;;  %12368 = vst [vmem:[#allocation117_spill] sm:$0xff] %v9916_v52  ;;  %v12195_v63 = vmax.f32 %v9916_v52, 0.0  ;;  %v2559_v18 = vadd.f32 %v9782_v21, %v9650_v12  ;;  %v2564_v8 = vadd.f32 %v9650_v12, %v9808_v29 }
 0x2ca   :  { %v9918_v40 = vpop.f32.mrb[155].mxu0  ;;  %7695 = vmatmul.mubr.f32.gmra.mrb[238].mxu0 %v12194_v17  ;;  %12371 = vst [vmem:[#allocation120_spill] sm:$0xff] %v9949_v35  ;;  %8052 = vmatprep.subr.bf16.mxu0 %v8051_v61  ;;  %v12201_v21 = vmax.f32 %v9949_v35, 0.0 }
 0x2cb   :  { %3790 = vmatmul.mubr.f32.gmra.mrb[152].mxu1 %v3134_v44  ;;  %v2554_v44 = vadd.f32 %v9650_v12, %v9787_v34  ;;  %7697 = vmatprep.mubr.f32.mxu0 %v12195_v63  ;;  %v7481_v34 = vpop.f32.mrb[116].mxu1  ;;  %v191_v63 = vld [vmem:[%s11987_s1 + $0x78] sm:$0xff] }
 0x2cc   :  { %6389 = vmatprep.mubr.msk.f32.mxu1 %vm316_vm0, %v189_v41  ;;  %8054 = vmatpush3.bf16.msra.mxu0 %v8051_v61  ;;  %v2207_v14 = vpop.f32.mrb[117].mxu1  ;;  %v9971_v61 = vadd.f32 %v9760_v32, %v7481_v34  ;;  %v3137_v34 = vmax.f32 %v2559_v18, 0.0 }
 0x2cd   :  { %v9941_v0 = vpop.f32.mrb[156].mxu0  ;;  %v3136_v17 = vmax.f32 %v2554_v44, 0.0  ;;  %v7484_v44 = vpop.f32.mrb[118].mxu1 }
 0x2ce   :  { %v9946_v41 = vpop.f32.mrb[157].mxu0  ;;  %7698 = vmatmul.mubr.f32.gmra.mrb[240].mxu0 %v12197_v42  ;;  %12373 = vst [vmem:[#allocation122_spill] sm:$0xff] %v9971_v61  ;;  %v2217_v42 = vpop.f32.mrb[119].mxu1  ;;  %v12206_v29 = vmax.f32 %v9971_v61, 0.0 }
 0x2cf   :  { %3795 = vmatmul.mubr.f32.gmra.mrb[154].mxu1 %v3135_v24  ;;  %v9966_v24 = vadd.f32 %v9760_v32, %v2207_v14  ;;  %7700 = vmatprep.mubr.f32.mxu0 %v12199_v48  ;;  %v192_v48 = vld [vmem:[%s11987_s1 + $0x80] sm:$0xff]  ;;  %v7487_v18 = vpop.f32.mrb[120].mxu1 }
 0x2d0   :  { %6390 = vmatprep.mubr.msk.f32.mxu1 %vm316_vm0, %v190_v43  ;;  %v2227_v35 = vpop.f32.mrb[121].mxu1 }
 0x2d1   :  { %v9963_v52 = vpop.f32.mrb[158].mxu0  ;;  %12372 = vst [vmem:[#allocation121_spill] sm:$0xff] %v9966_v24  ;;  %v12204_v14 = vmax.f32 %v9966_v24, 0.0 }
 0x2d2   :  { %v9968_v43 = vpop.f32.mrb[159].mxu0  ;;  %7701 = vmatmul.mubr.f32.gmra.mrb[242].mxu0 %v12201_v21  ;;  %v9993_v21 = vadd.f32 %v9760_v32, %v7484_v44  ;;  %v3138_v44 = vmax.f32 %v2564_v8, 0.0  ;;  %v7490_v8 = vpop.f32.mrb[122].mxu1 }
 0x2d3   :  { %3800 = vmatmul.mubr.f32.gmra.mrb[156].mxu1 %v3136_v17  ;;  %v9988_v17 = vadd.f32 %v9760_v32, %v2217_v42  ;;  %7703 = vmatprep.mubr.f32.mxu0 %v12204_v14  ;;  %v193_v14 = vld [vmem:[%s11987_s1 + $0x88] sm:$0xff]  ;;  %v2237_v61 = vpop.f32.mrb[123].mxu1  ;;  %v10043_v30 = vadd.f32 %v9760_v32, %v7490_v8  ;;  %v4504_v8 = vld [vmem:[%s11996_s10 + $0x30] sm:$0xff] }
 0x2d4   :  { %6391 = vmatprep.mubr.msk.f32.mxu1 %vm316_vm0, %v191_v63  ;;  %12375 = vst [vmem:[#allocation124_spill] sm:$0xff] %v9993_v21  ;;  %v12210_v60 = vmax.f32 %v9993_v21, 0.0 }
 0x2d5   :  { %v9985_v27 = vpop.f32.mrb[160].mxu0  ;;  %12374 = vst [vmem:[#allocation123_spill] sm:$0xff] %v9988_v17  ;;  %v12208_v42 = vmax.f32 %v9988_v17, 0.0  ;;  %v3139_v17 = vmax.f32 %v2569_v57, 0.0  ;;  %12379 = vst [vmem:[#allocation128_spill] sm:$0xff] %v10043_v30  ;;  %v7493_v57 = vpop.f32.mrb[124].mxu1 }
 0x2d6   :  { %v9990_v63 = vpop.f32.mrb[161].mxu0  ;;  %7704 = vmatmul.mubr.f32.gmra.mrb[244].mxu0 %v12206_v29  ;;  %v10015_v29 = vadd.f32 %v9760_v32, %v7487_v18  ;;  %v4502_v18 = vld [vmem:[%s11996_s10 + $0x20] sm:$0xff]  ;;  %v10071_v53 = vadd.f32 %v9760_v32, %v7493_v57 }
 0x2d7   :  { %3805 = vmatmul.mubr.f32.gmra.mrb[158].mxu1 %v3137_v34  ;;  %v10010_v34 = vadd.f32 %v9760_v32, %v2227_v35  ;;  %7706 = vmatprep.mubr.f32.mxu0 %v12208_v42  ;;  %v4503_v42 = vld [vmem:[%s11996_s10 + $0x28] sm:$0xff]  ;;  %v10038_v35 = vadd.f32 %v9760_v32, %v2237_v61  ;;  %v2247_v61 = vpop.f32.mrb[125].mxu1  ;;  %v4506_v57 = vld [vmem:[%s11996_s10 + $0x40] sm:$0xff] }
 0x2d8   :  { %6392 = vmatprep.mubr.msk.f32.mxu1 %vm316_vm0, %v192_v48  ;;  %12377 = vst [vmem:[#allocation126_spill] sm:$0xff] %v10015_v29  ;;  %v8055_v21 = vpack.c.bf16 %v4503_v42, %v4502_v18  ;;  %v10066_v42 = vadd.f32 %v9760_v32, %v2247_v61  ;;  %12382 = vst [vmem:[#allocation130_spill] sm:$0xff] %v10071_v53 }
 0x2d9   :  { %v10007_v24 = vpop.f32.mrb[162].mxu0  ;;  %12376 = vst [vmem:[#allocation125_spill] sm:$0xff] %v10010_v34  ;;  %12378 = vst [vmem:[#allocation127_spill] sm:$0xff] %v10038_v35  ;;  %v12380_v46 = vmax.f32 %v10010_v34, 0.0  ;;  %v12383_v51 = vmax.f32 %v10038_v35, 0.0 }
 0x2da   :  { %v10012_v48 = vpop.f32.mrb[163].mxu0  ;;  %7707 = vmatmul.mubr.f32.gmra.mrb[246].mxu0 %v12210_v60  ;;  %8056 = vmatprep.subr.bf16.mxu0 %v8055_v21  ;;  %12381 = vst [vmem:[#allocation129_spill] sm:$0xff] %v10066_v42  ;;  %v12386_v58 = vmax.f32 %v10066_v42, 0.0 }
 0x2db   :  { %3810 = vmatmul.mubr.f32.gmra.mrb[160].mxu1 %v3138_v44  ;;  %v2574_v44 = vadd.f32 %v9650_v12, %v9830_v2  ;;  %7709 = vmatprep.mubr.f32.mxu0 %v12380_v46  ;;  %v12215_v2 = vmax.f32 %v10015_v29, 0.0  ;;  %v4505_v46 = vld [vmem:[%s11996_s10 + $0x38] sm:$0xff] }
 0x2dc   :  { %6393 = vmatprep.mubr.msk.f32.mxu1 %vm316_vm0, %v193_v14  ;;  %v194_v14 = vld [vmem:[%s11987_s1 + $0x90] sm:$0xff]  ;;  %8058 = vmatpush3.bf16.msra.mxu0 %v8055_v21  ;;  %v8059_v29 = vpack.c.bf16 %v4505_v46, %v4504_v8  ;;  %v2584_v8 = vadd.f32 %v9650_v12, %v9852_v45  ;;  %v12226_v45 = vmax.f32 %v10071_v53, 0.0 }
 0x2dd   :  { %v10035_v60 = vpop.f32.mrb[164].mxu0  ;;  %v3140_v18 = vmax.f32 %v2574_v44, 0.0  ;;  %v7496_v44 = vpop.f32.mrb[126].mxu1 }
 0x2de   :  { %v10040_v5 = vpop.f32.mrb[165].mxu0  ;;  %7710 = vmatmul.mubr.f32.gmra.mrb[248].mxu0 %v12215_v2  ;;  %8060 = vmatprep.subr.bf16.mxu0 %v8059_v29  ;;  %v2257_v21 = vpop.f32.mrb[127].mxu1  ;;  %v10099_v35 = vadd.f32 %v9760_v32, %v7496_v44  ;;  %v3142_v44 = vmax.f32 %v2584_v8, 0.0  ;;  %v2594_v8 = vadd.f32 %v9650_v12, %v9874_v55  ;;  %v4513_v55 = vld [vmem:[%s11996_s10 + $0x78] sm:$0xff] }
 0x2df   :  { %3815 = vmatmul.mubr.f32.gmra.mrb[162].mxu1 %v3139_v17  ;;  %v2579_v17 = vadd.f32 %v9825_v31, %v9650_v12  ;;  %7712 = vmatprep.mubr.f32.mxu0 %v12383_v51  ;;  %v12220_v31 = vmax.f32 %v10043_v30, 0.0  ;;  %v4507_v51 = vld [vmem:[%s11996_s10 + $0x48] sm:$0xff] }
 0x2e0   :  { %6394 = vmatprep.mubr.msk.f32.mxu1 %vm316_vm0, %v194_v14  ;;  %v195_v14 = vld [vmem:[%s11987_s1 + $0x98] sm:$0xff]  ;;  %8062 = vmatpush3.bf16.msra.mxu0 %v8059_v29  ;;  %v8063_v61 = vpack.c.bf16 %v4507_v51, %v4506_v57  ;;  %12385 = vst [vmem:[#allocation132_spill] sm:$0xff] %v10099_v35 }
 0x2e1   :  { %v10063_v2 = vpop.f32.mrb[166].mxu0  ;;  %v3141_v46 = vmax.f32 %v2579_v17, 0.0  ;;  %v4508_v17 = vld [vmem:[%s11996_s10 + $0x50] sm:$0xff] }
 0x2e2   :  { %v10068_v34 = vpop.f32.mrb[167].mxu0  ;;  %7713 = vmatmul.mubr.f32.gmra.mrb[250].mxu0 %v12220_v31  ;;  %v10094_v31 = vadd.f32 %v9760_v32, %v2257_v21  ;;  %8064 = vmatprep.subr.bf16.mxu0 %v8063_v61  ;;  %v4509_v32 = vld [vmem:[%s11996_s10 + $0x58] sm:$0xff]  ;;  %v197_v21 = vld [vmem:[%s11987_s1 + $0xa8] sm:$0xff] }
 0x2e3   :  { %3820 = vmatmul.mubr.f32.gmra.mrb[164].mxu1 %v3140_v18  ;;  %v196_v18 = vld [vmem:[%s11987_s1 + $0xa0] sm:$0xff]  ;;  %7715 = vmatprep.mubr.f32.mxu0 %v12386_v58  ;;  %v2589_v58 = vadd.f32 %v9847_v38, %v9650_v12  ;;  %v8067_v51 = vpack.c.bf16 %v4509_v32, %v4508_v17  ;;  %v198_v32 = vld [vmem:[%s11987_s1 + $0xb0] sm:$0xff] }
 0x2e4   :  { %6395 = vmatprep.mubr.msk.f32.mxu1 %vm316_vm0, %v195_v14  ;;  %12384 = vst [vmem:[#allocation131_spill] sm:$0xff] %v10094_v31  ;;  %v12225_v29 = vmax.f32 %v10094_v31, 0.0  ;;  %8066 = vmatpush3.bf16.msra.mxu0 %v8063_v61  ;;  %v4510_v38 = vld [vmem:[%s11996_s10 + $0x60] sm:$0xff]  ;;  %v4511_v61 = vld [vmem:[%s11996_s10 + $0x68] sm:$0xff] }
 0x2e5   :  { %v10091_v14 = vpop.f32.mrb[168].mxu0  ;;  %8068 = vmatprep.subr.bf16.mxu0 %v8067_v51  ;;  %v3143_v17 = vmax.f32 %v2589_v58, 0.0  ;;  %v2599_v58 = vadd.f32 %v9869_v3, %v9650_v12  ;;  %v200_v3 = vld [vmem:[%s11987_s1 + $0xc0] sm:$0xff] }
 0x2e6   :  { %v10096_v30 = vpop.f32.mrb[169].mxu0  ;;  %7716 = vmatmul.mubr.f32.gmra.mrb[252].mxu0 %v12226_v45  ;;  %v3144_v45 = vmax.f32 %v2594_v8, 0.0 }
 0x2e7   :  { %3825 = vmatmul.mubr.f32.gmra.mrb[166].mxu1 %v3141_v46  ;;  %7718 = vmatprep.mubr.f32.mxu0 %v12225_v29  ;;  %v4512_v29 = vld [vmem:[%s11996_s10 + $0x70] sm:$0xff] }
 0x2e8   :  { %6396 = vmatprep.mubr.msk.f32.mxu1 %vm316_vm0, %v196_v18  ;;  %v12224_v18 = vmax.f32 %v10099_v35, 0.0  ;;  %8070 = vmatpush3.bf16.msra.mxu0 %v8067_v51  ;;  %v199_v51 = vld [vmem:[%s11987_s1 + $0xb8] sm:$0xff]  ;;  %v3145_v35 = vmax.f32 %v2599_v58, 0.0 }
 0x2e9   :  { %v10119_v57 = vpop.f32.mrb[170].mxu0 }
 0x2ea   :  { %v10121_v46 = vpop.f32.mrb[171].mxu0  ;;  %7719 = vmatmul.mubr.f32.gmra.mrb[254].mxu0 %v12224_v18 }
 0x2eb   :  { %3830 = vmatmul.mubr.f32.gmra.mrb[168].mxu1 %v3142_v44 }
 0x2ec   :  { %6397 = vmatprep.mubr.msk.f32.mxu1 %vm316_vm0, %v197_v21  ;;  %v8071_v21 = vpack.c.bf16 %v4511_v61, %v4510_v38  ;;  %v8075_v61 = vpack.c.bf16 %v4513_v55, %v4512_v29  ;;  %v12387_v29 = vmov 0.0|0.0  }
 0x2ed   :  { %v10140_v44 = vpop.f32.mrb[172].mxu0 }
 0x2ee   :  { %v10142_v18 = vpop.f32.mrb[173].mxu0  ;;  %8072 = vmatprep.subr.bf16.mxu0 %v8071_v21 }
 0x2ef   :  { %3835 = vmatmul.mubr.f32.gmra.mrb[170].mxu1 %v3143_v17  ;;  %8074 = vmatpush3.bf16.msra.mxu0 %v8071_v21 }
 0x2f0   :  { %6398 = vmatprep.mubr.msk.f32.mxu1 %vm316_vm0, %v198_v32  ;;  %8076 = vmatprep.subr.bf16.mxu0 %v8075_v61  ;;  %v2604_v32 = vadd.f32 %v9650_v12, %v9896_v25  ;;  %v201_v25 = vld [vmem:[%s11987_s1 + $0xc8] sm:$0xff] }
 0x2f1   :  { %v10156_v38 = vpop.f32.mrb[174].mxu0 }
 0x2f2   :  { %v10158_v17 = vpop.f32.mrb[175].mxu0  ;;  %v3146_v21 = vmax.f32 %v2604_v32, 0.0 }
 0x2f3   :  { %3840 = vmatmul.mubr.f32.gmra.mrb[172].mxu1 %v3144_v45  ;;  %8078 = vmatpush3.bf16.msra.mxu0 %v8075_v61  ;;  %v2609_v45 = vadd.f32 %v9891_v6, %v9650_v12  ;;  %v202_v6 = vld [vmem:[%s11987_s1 + $0xd0] sm:$0xff] }
 0x2f4   :  { %6399 = vmatprep.mubr.msk.f32.mxu1 %vm316_vm0, %v199_v51  ;;  %8079 = vmatprep.subr.bf16.mxu0 %v12387_v29 }
 0x2f5   :  { %v10166_v8 = vpop.f32.mrb[176].mxu0  ;;  %v3147_v51 = vmax.f32 %v2609_v45, 0.0 }
 0x2f6   :  { %v10168_v31 = vpop.f32.mrb[177].mxu0 }
 0x2f7   :  { %3845 = vmatmul.mubr.f32.gmra.mrb[174].mxu1 %v3145_v35  ;;  %v2614_v35 = vadd.f32 %v9650_v12, %v9918_v40  ;;  %v203_v40 = vld [vmem:[%s11987_s1 + $0xd8] sm:$0xff] }
 0x2f8   :  { %6400 = vmatprep.mubr.msk.f32.mxu1 %vm316_vm0, %v200_v3  ;;  %v2619_v3 = vadd.f32 %v9913_v15, %v9650_v12  ;;  %v204_v15 = vld [vmem:[%s11987_s1 + $0xe0] sm:$0xff] }
 0x2f9   :  { %v10177_v55 = vpop.f32.mrb[178].mxu0 }
 0x2fa   :  { %v10179_v58 = vpop.f32.mrb[179].mxu0  ;;  %v3149_v53 = vmax.f32 %v2619_v3, 0.0 }
 0x2fb   :  { %3850 = vmatmul.mubr.f32.gmra.mrb[176].mxu1 %v3146_v21  ;;  %v3148_v21 = vmax.f32 %v2614_v35, 0.0 }
 0x2fc   :  { %6401 = vmatprep.mubr.msk.f32.mxu1 %vm316_vm0, %v201_v25 }
 0x2fd   :  { %v10187_v61 = vpop.f32.mrb[180].mxu0 }
 0x2fe   :  { %v10189_v32 = vpop.f32.mrb[181].mxu0 }
 0x2ff   :  { %3855 = vmatmul.mubr.f32.gmra.mrb[178].mxu1 %v3147_v51  ;;  %v2624_v51 = vadd.f32 %v9650_v12, %v9946_v41  ;;  %v205_v41 = vld [vmem:[%s11987_s1 + $0xe8] sm:$0xff] }
 0x300   :  { %6402 = vmatprep.mubr.msk.f32.mxu1 %vm316_vm0, %v202_v6 }
 0x301   :  { %v10197_v45 = vpop.f32.mrb[182].mxu0  ;;  %v3150_v42 = vmax.f32 %v2624_v51, 0.0 }
 0x302   :  { %v10199_v25 = vpop.f32.mrb[183].mxu0 }
 0x303   :  { %3860 = vmatmul.mubr.f32.gmra.mrb[180].mxu1 %v3148_v21  ;;  %v2629_v21 = vadd.f32 %v9941_v0, %v9650_v12  ;;  %v206_v0 = vld [vmem:[%s11987_s1 + $0xf0] sm:$0xff] }
 0x304   :  { %6403 = vmatprep.mubr.msk.f32.mxu1 %vm316_vm0, %v203_v40 }
 0x305   :  { %v10207_v35 = vpop.f32.mrb[184].mxu0  ;;  %v3151_v33 = vmax.f32 %v2629_v21, 0.0 }
 0x306   :  { %v10209_v6 = vpop.f32.mrb[185].mxu0 }
 0x307   :  { %3865 = vmatmul.mubr.f32.gmra.mrb[182].mxu1 %v3149_v53  ;;  %v2634_v53 = vadd.f32 %v9650_v12, %v9968_v43  ;;  %v2639_v43 = vadd.f32 %v9963_v52, %v9650_v12  ;;  %v208_v52 = vld [vmem:[%s11987_s1 + $0x100] sm:$0xff] }
 0x308   :  { %6404 = vmatprep.mubr.msk.f32.mxu1 %vm316_vm0, %v204_v15  ;;  %v5354_v15 = vld [vmem:[%s11998_s12] sm:$0xff] }
 0x309   :  { %v10217_v3 = vpop.f32.mrb[186].mxu0  ;;  %v3152_v21 = vmax.f32 %v2634_v53, 0.0 }
 0x30a   :  { %v10219_v40 = vpop.f32.mrb[187].mxu0 }
 0x30b   :  { %3870 = vmatmul.mubr.f32.gmra.mrb[184].mxu1 %v3150_v42  ;;  %v5355_v42 = vld [vmem:[%s11998_s12 + $0x8] sm:$0xff] }
 0x30c   :  { %6405 = vmatprep.mubr.msk.f32.mxu1 %vm316_vm0, %v205_v41  ;;  %v10237_v41 = vpack.c.bf16 %v5355_v42, %v5354_v15  ;;  %v2649_v42 = vadd.f32 %v9985_v27, %v9650_v12  ;;  %v210_v27 = vld [vmem:[%s11987_s1 + $0x110] sm:$0xff] }
 0x30d   :  { %v10227_v51 = vpop.f32.mrb[188].mxu0 }
 0x30e   :  { %v10235_v37 = vpop.f32.mrb[189].mxu0  ;;  %8143 = vmatpush1.bf16.msra.mxu1 %v10237_v41  ;;  %v3155_v22 = vmax.f32 %v2649_v42, 0.0  ;;  %v212_v42 = vld [vmem:[%s11987_s1 + $0x120] sm:$0xff] }
 0x30f   :  { %3875 = vmatmul.mubr.f32.gmra.mrb[186].mxu1 %v3151_v33  ;;  %8128 = vmatprep.subr.bf16.mxu1 %v12387_v29  ;;  %v2644_v33 = vadd.f32 %v9650_v12, %v9990_v63 }
 0x310   :  { %6406 = vmatprep.mubr.msk.f32.mxu1 %vm316_vm0, %v206_v0  ;;  %v3153_v0 = vmax.f32 %v2639_v43, 0.0 }
 0x311   :  { %v10246_v11 = vpop.f32.mrb[190].mxu0 }
 0x312   :  { %v10249_v20 = vpop.f32.mrb[191].mxu0 }
 0x313   :  { %3880 = vmatmul.mubr.f32.gmra.mrb[188].mxu1 %v3152_v21  ;;  %v3154_v21 = vmax.f32 %v2644_v33, 0.0 }
 0x314   :  { %6407 = vmatprep.mubr.msk.f32.mxu1 %vm316_vm0, %v207_v36  ;;  %v209_v36 = vld [vmem:[%s11987_s1 + $0x108] sm:$0xff] }
 0x315   :  { %v10257_v53 = vpop.f32.mrb[192].mxu0 }
 0x316   :  { %v10259_v15 = vpop.f32.mrb[193].mxu0 }
 0x317   :  { %3885 = vmatmul.mubr.f32.gmra.mrb[190].mxu1 %v3153_v0  ;;  %v2654_v0 = vadd.f32 %v9650_v12, %v10012_v48 }
 0x318   :  { %6408 = vmatprep.mubr.msk.f32.mxu1 %vm316_vm0, %v208_v52  ;;  %v2659_v52 = vadd.f32 %v10007_v24, %v9650_v12 }
 0x319   :  { %v10267_v63 = vpop.f32.mrb[194].mxu0  ;;  %v3156_v23 = vmax.f32 %v2654_v0, 0.0  ;;  %v2669_v0 = vadd.f32 %v10035_v60, %v9650_v12  ;;  %v5356_v60 = vld [vmem:[%s11998_s12 + $0x10] sm:$0xff] }
 0x31a   :  { %v10269_v43 = vpop.f32.mrb[195].mxu0  ;;  %v3157_v48 = vmax.f32 %v2659_v52, 0.0 }
 0x31b   :  { %3890 = vmatmul.mubr.f32.gmra.mrb[192].mxu1 %v3154_v21  ;;  %v211_v21 = vld [vmem:[%s11987_s1 + $0x118] sm:$0xff]  ;;  %v3159_v52 = vmax.f32 %v2669_v0, 0.0  ;;  %v2679_v0 = vadd.f32 %v10063_v2, %v9650_v12  ;;  %v216_v2 = vld [vmem:[%s11987_s1 + $0x140] sm:$0xff] }
 0x31c   :  { %6409 = vmatprep.mubr.msk.f32.mxu1 %vm316_vm0, %v209_v36 }
 0x31d   :  { %v10278_v33 = vpop.f32.mrb[196].mxu0 }
 0x31e   :  { %v10285_v36 = vpop.f32.mrb[197].mxu0 }
 0x31f   :  { %3895 = vmatmul.mubr.f32.gmra.mrb[194].mxu1 %v3155_v22  ;;  %v2664_v22 = vadd.f32 %v9650_v12, %v10040_v5  ;;  %v2674_v5 = vadd.f32 %v9650_v12, %v10068_v34 }
 0x320   :  { %6410 = vmatprep.mubr.msk.f32.mxu1 %vm316_vm0, %v210_v27 }
 0x321   :  { %v10294_v24 = vpop.f32.mrb[198].mxu0  ;;  %v3158_v27 = vmax.f32 %v2664_v22, 0.0  ;;  %v5357_v22 = vld [vmem:[%s11998_s12 + $0x18] sm:$0xff] }
 0x323   :  { %3900 = vmatmul.mubr.f32.gmra.mrb[196].mxu1 %v3156_v23  ;;  %v213_v23 = vld [vmem:[%s11987_s1 + $0x128] sm:$0xff] }
 0x324   :  { %6411 = vmatprep.mubr.msk.f32.mxu1 %vm316_vm0, %v211_v21  ;;  %v10301_v21 = vpop.f32.mrb[199].mxu0 }
 0x325   :  { %v10319_v34 = vpop.f32.mrb[200].mxu0 }
 0x326   :  { %v10326_v28 = vpop.f32.mrb[201].mxu0 }
 0x327   :  { %3905 = vmatmul.mubr.f32.gmra.mrb[198].mxu1 %v3157_v48  ;;  %v214_v48 = vld [vmem:[%s11987_s1 + $0x130] sm:$0xff] }
 0x328   :  { %6412 = vmatprep.mubr.msk.f32.mxu1 %vm316_vm0, %v212_v42  ;;  %v10315_v42 = vpack.c.bf16 %v5357_v22, %v5356_v60  ;;  %v2689_v60 = vadd.f32 %v10091_v14, %v9650_v12 }
 0x32a   :  { %8144 = vmatpush1.bf16.msra.mxu1 %v10315_v42 }
 0x32b   :  { %3910 = vmatmul.mubr.f32.gmra.mrb[200].mxu1 %v3158_v27  ;;  %v3160_v27 = vmax.f32 %v2674_v5, 0.0  ;;  %8129 = vmatprep.subr.bf16.mxu1 %v12387_v29  ;;  %v10336_v5 = vpop.f32.mrb[202].mxu0 }
 0x32c   :  { %6413 = vmatprep.mubr.msk.f32.mxu1 %vm316_vm0, %v213_v23  ;;  %v215_v23 = vld [vmem:[%s11987_s1 + $0x138] sm:$0xff] }
 0x32f   :  { %3915 = vmatmul.mubr.f32.gmra.mrb[202].mxu1 %v3159_v52  ;;  %v2684_v52 = vadd.f32 %v9650_v12, %v10096_v30  ;;  %v2694_v30 = vadd.f32 %v9650_v12, %v10121_v46  ;;  %v2704_v46 = vadd.f32 %v9650_v12, %v10142_v18 }
 0x330   :  { %6414 = vmatprep.mubr.msk.f32.mxu1 %vm316_vm0, %v214_v48  ;;  %v3161_v48 = vmax.f32 %v2679_v0, 0.0  ;;  %v3163_v0 = vmax.f32 %v2689_v60, 0.0 }
 0x331   :  { %v3162_v22 = vmax.f32 %v2684_v52, 0.0  ;;  %v2699_v52 = vadd.f32 %v10119_v57, %v9650_v12  ;;  %v221_v12 = vld [vmem:[%s11987_s1 + $0x168] sm:$0xff] }
 0x333   :  { %3920 = vmatmul.mubr.f32.gmra.mrb[204].mxu1 %v3160_v27  ;;  %v217_v27 = vld [vmem:[%s11987_s1 + $0x148] sm:$0xff]  ;;  %v3165_v60 = vmax.f32 %v2699_v52, 0.0 }
 0x334   :  { %6415 = vmatprep.mubr.msk.f32.mxu1 %vm316_vm0, %v215_v23  ;;  %v10343_v23 = vpop.f32.mrb[203].mxu0 }
 0x335   :  { %v10352_v14 = vpop.f32.mrb[204].mxu0 }
 0x337   :  { %3925 = vmatmul.mubr.f32.gmra.mrb[206].mxu1 %v3161_v48  ;;  %v218_v48 = vld [vmem:[%s11987_s1 + $0x150] sm:$0xff] }
 0x338   :  { %6416 = vmatprep.mubr.msk.f32.mxu1 %vm316_vm0, %v216_v2  ;;  %v3164_v2 = vmax.f32 %v2694_v30, 0.0  ;;  %v10373_v30 = vld [vmem:[%s11993_s7] ss:$0 sm:$0xff] }
 0x339   :  { %v2714_v52 = vadd.f32 %v10373_v30, %v10158_v17  ;;  %v2839_v49 = vadd.f32 %v10373_v30, %v10294_v24 }
 0x33b   :  { %3930 = vmatmul.mubr.f32.gmra.mrb[208].mxu1 %v3162_v22  ;;  %v219_v22 = vld [vmem:[%s11987_s1 + $0x158] sm:$0xff] }
 0x33c   :  { %6417 = vmatprep.mubr.msk.f32.mxu1 %vm316_vm0, %v217_v27  ;;  %v10359_v27 = vpop.f32.mrb[205].mxu0 }
 0x33d   :  { %v10368_v57 = vpop.f32.mrb[206].mxu0 }
 0x33e   :  { %v10380_v18 = vpop.f32.mrb[207].mxu0 }
 0x33f   :  { %3935 = vmatmul.mubr.f32.gmra.mrb[210].mxu1 %v3163_v0  ;;  %v220_v0 = vld [vmem:[%s11987_s1 + $0x160] sm:$0xff]  ;;  %v10398_v17 = vpop.f32.mrb[208].mxu0 }
 0x340   :  { %6418 = vmatprep.mubr.msk.f32.mxu1 %vm316_vm0, %v218_v48  ;;  %v2709_v48 = vadd.f32 %v10373_v30, %v10140_v44  ;;  %v5358_v44 = vld [vmem:[%s11998_s12 + $0x20] sm:$0xff]  ;;  %v10405_v7 = vpop.f32.mrb[209].mxu0 }
 0x343   :  { %3940 = vmatmul.mubr.f32.gmra.mrb[212].mxu1 %v3164_v2  ;;  %v3166_v2 = vmax.f32 %v2704_v46, 0.0  ;;  %v5359_v46 = vld [vmem:[%s11998_s12 + $0x28] sm:$0xff] }
 0x344   :  { %6419 = vmatprep.mubr.msk.f32.mxu1 %vm316_vm0, %v219_v22  ;;  %v3167_v22 = vmax.f32 %v2709_v48, 0.0  ;;  %v2719_v48 = vadd.f32 %v10373_v30, %v10156_v38  ;;  %v224_v38 = vld [vmem:[%s11987_s1 + $0x180] sm:$0xff] }
 0x347   :  { %3945 = vmatmul.mubr.f32.gmra.mrb[214].mxu1 %v3165_v60  ;;  %v222_v60 = vld [vmem:[%s11987_s1 + $0x170] sm:$0xff] }
 0x348   :  { %6420 = vmatprep.mubr.msk.f32.mxu1 %vm316_vm0, %v220_v0  ;;  %v10394_v0 = vpack.c.bf16 %v5359_v46, %v5358_v44  ;;  %v2729_v44 = vadd.f32 %v10373_v30, %v10166_v8 }
 0x34a   :  { %8145 = vmatpush1.bf16.msra.mxu1 %v10394_v0 }
 0x34b   :  { %3950 = vmatmul.mubr.f32.gmra.mrb[216].mxu1 %v3166_v2  ;;  %v3168_v2 = vmax.f32 %v2714_v52, 0.0  ;;  %8130 = vmatprep.subr.bf16.mxu1 %v12387_v29  ;;  %v10415_v52 = vpop.f32.mrb[210].mxu0 }
 0x34c   :  { %6421 = vmatprep.mubr.msk.f32.mxu1 %vm316_vm0, %v221_v12  ;;  %v223_v12 = vld [vmem:[%s11987_s1 + $0x178] sm:$0xff] }
 0x34f   :  { %3955 = vmatmul.mubr.f32.gmra.mrb[218].mxu1 %v3167_v22  ;;  %v2724_v22 = vadd.f32 %v10373_v30, %v10168_v31  ;;  %v2734_v31 = vadd.f32 %v10373_v30, %v10179_v58  ;;  %v2744_v58 = vadd.f32 %v10373_v30, %v10189_v32  ;;  %v10459_v32 = vld [vmem:[%s11995_s9] ss:$0 sm:$0xff] }
 0x350   :  { %6422 = vmatprep.mubr.msk.f32.mxu1 %vm316_vm0, %v222_v60  ;;  %v3169_v60 = vmax.f32 %v2719_v48, 0.0  ;;  %v3171_v48 = vmax.f32 %v2729_v44, 0.0 }
 0x351   :  { %v3170_v46 = vmax.f32 %v2724_v22, 0.0  ;;  %v2739_v22 = vadd.f32 %v10373_v30, %v10177_v55 }
 0x353   :  { %3960 = vmatmul.mubr.f32.gmra.mrb[220].mxu1 %v3168_v2  ;;  %v225_v2 = vld [vmem:[%s11987_s1 + $0x188] sm:$0xff]  ;;  %v3173_v44 = vmax.f32 %v2739_v22, 0.0  ;;  %v2754_v22 = vadd.f32 %v10373_v30, %v10199_v25 }
 0x354   :  { %6423 = vmatprep.mubr.msk.f32.mxu1 %vm316_vm0, %v223_v12  ;;  %v10422_v12 = vpop.f32.mrb[211].mxu0 }
 0x355   :  { %v10431_v8 = vpop.f32.mrb[212].mxu0  ;;  %v3176_v56 = vmax.f32 %v2754_v22, 0.0 }
 0x357   :  { %3965 = vmatmul.mubr.f32.gmra.mrb[222].mxu1 %v3169_v60  ;;  %v226_v60 = vld [vmem:[%s11987_s1 + $0x190] sm:$0xff] }
 0x358   :  { %6424 = vmatprep.mubr.msk.f32.mxu1 %vm316_vm0, %v224_v38  ;;  %v3172_v38 = vmax.f32 %v2734_v31, 0.0  ;;  %v2749_v31 = vadd.f32 %v10373_v30, %v10187_v61  ;;  %v230_v61 = vld [vmem:[%s11987_s1 + $0x1b0] sm:$0xff] }
 0x35b   :  { %3970 = vmatmul.mubr.f32.gmra.mrb[224].mxu1 %v3170_v46  ;;  %v227_v46 = vld [vmem:[%s11987_s1 + $0x198] sm:$0xff] }
 0x35c   :  { %6425 = vmatprep.mubr.msk.f32.mxu1 %vm316_vm0, %v225_v2  ;;  %v10438_v2 = vpop.f32.mrb[213].mxu0 }
 0x35d   :  { %v10447_v55 = vpop.f32.mrb[214].mxu0 }
 0x35f   :  { %3975 = vmatmul.mubr.f32.gmra.mrb[226].mxu1 %v3171_v48  ;;  %v228_v48 = vld [vmem:[%s11987_s1 + $0x1a0] sm:$0xff] }
 0x360   :  { %6426 = vmatprep.mubr.msk.f32.mxu1 %vm316_vm0, %v226_v60  ;;  %v3174_v60 = vmax.f32 %v2744_v58, 0.0  ;;  %v5360_v58 = vld [vmem:[%s11998_s12 + $0x30] sm:$0xff] }
 0x363   :  { %3980 = vmatmul.mubr.f32.gmra.mrb[228].mxu1 %v3172_v38  ;;  %v229_v38 = vld [vmem:[%s11987_s1 + $0x1a8] sm:$0xff] }
 0x364   :  { %6427 = vmatprep.mubr.msk.f32.mxu1 %vm316_vm0, %v227_v46  ;;  %v10454_v46 = vpop.f32.mrb[215].mxu0 }
 0x365   :  { %v10478_v25 = vpop.f32.mrb[216].mxu0 }
 0x367   :  { %3985 = vmatmul.mubr.f32.gmra.mrb[230].mxu1 %v3173_v44  ;;  %v3175_v44 = vmax.f32 %v2749_v31, 0.0  ;;  %v2759_v31 = vadd.f32 %v10373_v30, %v10197_v45  ;;  %v2764_v45 = vadd.f32 %v10373_v30, %v10209_v6 }
 0x368   :  { %6428 = vmatprep.mubr.msk.f32.mxu1 %vm316_vm0, %v228_v48  ;;  %v5361_v48 = vld [vmem:[%s11998_s12 + $0x38] sm:$0xff] }
 0x369   :  { %v10473_v54 = vpack.c.bf16 %v5361_v48, %v5360_v58  ;;  %v231_v58 = vld [vmem:[%s11987_s1 + $0x1b8] sm:$0xff]  ;;  %v10485_v48 = vpop.f32.mrb[217].mxu0  ;;  %v3178_v6 = vmax.f32 %v2764_v45, 0.0 }
 0x36b   :  { %3990 = vmatmul.mubr.f32.gmra.mrb[232].mxu1 %v3174_v60 }
 0x36c   :  { %6429 = vmatprep.mubr.msk.f32.mxu1 %vm316_vm0, %v229_v38  ;;  %8146 = vmatpush1.bf16.msra.mxu1 %v10473_v54 }
 0x36d   :  { %8131 = vmatprep.subr.bf16.mxu1 %v12387_v29 }
 0x36e   :  { %v3731_v60 = vpop.f32.mrb[128].mxu1 }
 0x36f   :  { %v3732_v38 = vadd.f32 %v10459_v32, %v3731_v60  ;;  %v3733_v10 = vpop.f32.mrb[129].mxu1  ;;  %3995 = vmatmul.mubr.f32.gmra.mrb[234].mxu1 %v3175_v44  ;;  %v3177_v60 = vmax.f32 %v2759_v31, 0.0 }
 0x370   :  { %6430 = vmatprep.mubr.msk.f32.mxu1 %vm316_vm0, %v230_v61 }
 0x371   :  { %v4370_v59 = vmax.f32 %v3732_v38, 0.0  ;;  %v232_v38 = vld [vmem:[%s11987_s1 + $0x1c0] sm:$0xff] }
 0x372   :  { %v3736_v10 = vpop.f32.mrb[130].mxu1 }
 0x373   :  { %v3737_v44 = vadd.f32 %v10459_v32, %v3736_v10  ;;  %v3738_v61 = vpop.f32.mrb[131].mxu1  ;;  %4000 = vmatmul.mubr.f32.gmra.mrb[236].mxu1 %v3176_v56  ;;  %7753 = vmatprep.mubr.f32.mxu0 %v4370_v59  ;;  %v2769_v56 = vadd.f32 %v10373_v30, %v10207_v35 }
 0x374   :  { %6431 = vmatprep.mubr.msk.f32.mxu1 %vm316_vm0, %v231_v58 }
 0x375   :  { %v4371_v22 = vmax.f32 %v3737_v44, 0.0  ;;  %v10496_v10 = vpop.f32.mrb[218].mxu0  ;;  %v3179_v45 = vmax.f32 %v2769_v56, 0.0 }
 0x376   :  { %v3741_v39 = vpop.f32.mrb[132].mxu1  ;;  %v10499_v59 = vpop.f32.mrb[219].mxu0 }
 0x377   :  { %v3742_v62 = vadd.f32 %v10459_v32, %v3741_v39  ;;  %v3743_v4 = vpop.f32.mrb[133].mxu1  ;;  %4005 = vmatmul.mubr.f32.gmra.mrb[238].mxu1 %v3177_v60  ;;  %7754 = vmatmul.mubr.f32.vlgmr.msra.gmra.mrb[0].mxu0 %v4371_v22  ;;  %v233_v39 = vld [vmem:[%s11987_s1 + $0x1c8] sm:$0xff]  ;;  %v234_v22 = vld [vmem:[%s11987_s1 + $0x1d0] sm:$0xff] }
 0x378   :  { %6432 = vmatprep.mubr.msk.f32.mxu1 %vm316_vm0, %v232_v38  ;;  %8081 = vmatpush1.bf16.msra.mxu0 %v10237_v41 }
 0x379   :  { %v4372_v31 = vmax.f32 %v3742_v62, 0.0  ;;  %8082 = vmatprep.subr.bf16.mxu0 %v12387_v29  ;;  %v10509_v61 = vpop.f32.mrb[220].mxu0  ;;  %v2774_v62 = vadd.f32 %v10373_v30, %v10219_v40  ;;  %v2779_v40 = vadd.f32 %v10373_v30, %v10217_v3  ;;  %v2784_v3 = vadd.f32 %v10373_v30, %v10235_v37 }
 0x37a   :  { %v3746_v4 = vpop.f32.mrb[134].mxu1  ;;  %v10512_v41 = vpop.f32.mrb[221].mxu0  ;;  %v2789_v37 = vadd.f32 %v10373_v30, %v10227_v51  ;;  %v2794_v51 = vadd.f32 %v10373_v30, %v10249_v20 }
 0x37b   :  { %v3747_v58 = vadd.f32 %v10459_v32, %v3746_v4  ;;  %v3748_v44 = vpop.f32.mrb[135].mxu1  ;;  %4010 = vmatmul.mubr.f32.gmra.mrb[240].mxu1 %v3178_v6  ;;  %7756 = vmatprep.mubr.f32.mxu0 %v4372_v31  ;;  %v3180_v56 = vmax.f32 %v2774_v62, 0.0  ;;  %v235_v4 = vld [vmem:[%s11987_s1 + $0x1d8] sm:$0xff] }
 0x37c   :  { %6433 = vmatprep.mubr.msk.f32.mxu1 %vm316_vm0, %v233_v39  ;;  %8084 = vmatpush1.bf16.msra.mxu0 %v10315_v42  ;;  %v3184_v47 = vmax.f32 %v2794_v51, 0.0  ;;  %v2804_v51 = vadd.f32 %v10373_v30, %v10259_v15  ;;  %v2809_v15 = vadd.f32 %v10373_v30, %v10257_v53  ;;  %v2814_v53 = vadd.f32 %v10373_v30, %v10269_v43 }
 0x37d   :  { %v4373_v35 = vmax.f32 %v3747_v58, 0.0  ;;  %8085 = vmatprep.subr.bf16.mxu0 %v12387_v29  ;;  %v10522_v31 = vpop.f32.mrb[222].mxu0  ;;  %v2819_v43 = vadd.f32 %v10373_v30, %v10267_v63  ;;  %v2824_v63 = vadd.f32 %v10373_v30, %v10285_v36  ;;  %v2829_v36 = vadd.f32 %v10373_v30, %v10278_v33 }
 0x37e   :  { %v3751_v60 = vpop.f32.mrb[136].mxu1  ;;  %v10525_v42 = vpop.f32.mrb[223].mxu0  ;;  %v2834_v33 = vadd.f32 %v10373_v30, %v10301_v21 }
 0x37f   :  { %v3752_v38 = vadd.f32 %v10459_v32, %v3751_v60  ;;  %v3753_v6 = vpop.f32.mrb[137].mxu1  ;;  %4015 = vmatmul.mubr.f32.gmra.mrb[242].mxu1 %v3179_v45  ;;  %7757 = vmatmul.mubr.f32.gmra.mrb[2].mxu0 %v4373_v35  ;;  %v236_v60 = vld [vmem:[%s11987_s1 + $0x1e0] sm:$0xff] }
 0x380   :  { %6434 = vmatprep.mubr.msk.f32.mxu1 %vm316_vm0, %v234_v22  ;;  %8087 = vmatpush1.bf16.msra.mxu0 %v10394_v0  ;;  %v3181_v22 = vmax.f32 %v2779_v40, 0.0  ;;  %v3182_v40 = vmax.f32 %v2784_v3, 0.0  ;;  %v3192_v26 = vmax.f32 %v2834_v33, 0.0  ;;  %v3193_v33 = vmax.f32 %v2839_v49, 0.0 }
 0x381   :  { %v4374_v39 = vmax.f32 %v3752_v38, 0.0  ;;  %8088 = vmatprep.subr.bf16.mxu0 %v12387_v29  ;;  %v10535_v45 = vpop.f32.mrb[224].mxu0  ;;  %v2849_v49 = vadd.f32 %v10373_v30, %v10319_v34  ;;  %v2854_v34 = vadd.f32 %v10373_v30, %v10343_v23  ;;  %v2859_v23 = vadd.f32 %v10373_v30, %v10336_v5  ;;  %v252_v5 = vld [vmem:[%s11987_s1 + $0x260] sm:$0xff] }
 0x382   :  { %v3756_v58 = vpop.f32.mrb[138].mxu1  ;;  %v10538_v0 = vpop.f32.mrb[225].mxu0 }
 0x383   :  { %v3757_v44 = vadd.f32 %v10459_v32, %v3756_v58  ;;  %v3758_v35 = vpop.f32.mrb[139].mxu1  ;;  %4020 = vmatmul.mubr.f32.gmra.mrb[244].mxu1 %v3180_v56  ;;  %7759 = vmatprep.mubr.f32.mxu0 %v4374_v39  ;;  %v237_v58 = vld [vmem:[%s11987_s1 + $0x1e8] sm:$0xff] }
 0x384   :  { %6435 = vmatprep.mubr.msk.f32.mxu1 %vm316_vm0, %v235_v4  ;;  %8090 = vmatpush1.bf16.msra.mxu0 %v10473_v54 }
 0x385   :  { %v4375_v62 = vmax.f32 %v3757_v44, 0.0  ;;  %8091 = vmatprep.subr.bf16.mxu0 %v12387_v29  ;;  %v10548_v39 = vpop.f32.mrb[226].mxu0 }
 0x386   :  { %v3761_v38 = vpop.f32.mrb[140].mxu1  ;;  %v10551_v54 = vpop.f32.mrb[227].mxu0 }
 0x387   :  { %v3762_v6 = vadd.f32 %v10459_v32, %v3761_v38  ;;  %v3763_v56 = vpop.f32.mrb[141].mxu1  ;;  %4025 = vmatmul.mubr.f32.gmra.mrb[246].mxu1 %v3181_v22  ;;  %7760 = vmatmul.mubr.f32.gmra.mrb[4].mxu0 %v4375_v62  ;;  %v3183_v38 = vmax.f32 %v2789_v37, 0.0 }
 0x388   :  { %6436 = vmatprep.mubr.msk.f32.mxu1 %vm316_vm0, %v236_v60  ;;  %v5362_v56 = vld [vmem:[%s11998_s12 + $0x40] sm:$0xff] }
 0x389   :  { %v4376_v4 = vmax.f32 %v3762_v6, 0.0  ;;  %v10559_v62 = vpop.f32.mrb[228].mxu0  ;;  %v238_v6 = vld [vmem:[%s11987_s1 + $0x1f0] sm:$0xff] }
 0x38a   :  { %v3766_v44 = vpop.f32.mrb[142].mxu1  ;;  %v10562_v60 = vpop.f32.mrb[229].mxu0 }
 0x38b   :  { %v3767_v35 = vadd.f32 %v10459_v32, %v3766_v44  ;;  %v3768_v22 = vpop.f32.mrb[143].mxu1  ;;  %4030 = vmatmul.mubr.f32.gmra.mrb[248].mxu1 %v3182_v40  ;;  %7762 = vmatprep.mubr.f32.mxu0 %v4376_v4  ;;  %v5363_v40 = vld [vmem:[%s11998_s12 + $0x48] sm:$0xff] }
 0x38c   :  { %6437 = vmatprep.mubr.msk.f32.mxu1 %vm316_vm0, %v237_v58  ;;  %v8092_v58 = vpack.c.bf16 %v5363_v40, %v5362_v56  ;;  %v239_v56 = vld [vmem:[%s11987_s1 + $0x1f8] sm:$0xff] }
 0x38d   :  { %v4377_v3 = vmax.f32 %v3767_v35, 0.0  ;;  %v10576_v20 = vpop.f32.mrb[230].mxu0  ;;  %v2799_v35 = vadd.f32 %v10373_v30, %v10246_v11 }
 0x38e   :  { %v3771_v4 = vpop.f32.mrb[144].mxu1  ;;  %8147 = vmatpush1.bf16.msra.mxu1 %v8092_v58  ;;  %v10579_v37 = vpop.f32.mrb[231].mxu0  ;;  %8093 = vmatpush1.bf16.msra.mxu0 %v8092_v58  ;;  %v240_v58 = vld [vmem:[%s11987_s1 + $0x200] sm:$0xff] }
 0x38f   :  { %v3772_v44 = vadd.f32 %v10459_v32, %v3771_v4  ;;  %v3773_v22 = vpop.f32.mrb[145].mxu1  ;;  %4035 = vmatmul.mubr.f32.gmra.mrb[250].mxu1 %v3183_v38  ;;  %7763 = vmatmul.mubr.f32.gmra.mrb[6].mxu0 %v4377_v3 }
 0x390   :  { %6438 = vmatprep.mubr.msk.f32.mxu1 %vm316_vm0, %v238_v6  ;;  %8132 = vmatprep.subr.bf16.mxu1 %v12387_v29 }
 0x391   :  { %v4378_v1 = vmax.f32 %v3772_v44, 0.0  ;;  %8094 = vmatprep.subr.bf16.mxu0 %v12387_v29  ;;  %v10589_v40 = vpop.f32.mrb[232].mxu0  ;;  %v3185_v44 = vmax.f32 %v2799_v35, 0.0  ;;  %v3186_v35 = vmax.f32 %v2804_v51, 0.0 }
 0x392   :  { %v3776_v3 = vpop.f32.mrb[146].mxu1  ;;  %v10592_v11 = vpop.f32.mrb[233].mxu0 }
 0x393   :  { %v3777_v38 = vadd.f32 %v10459_v32, %v3776_v3  ;;  %v3778_v6 = vpop.f32.mrb[147].mxu1  ;;  %4040 = vmatmul.mubr.f32.gmra.mrb[252].mxu1 %v3184_v47  ;;  %7765 = vmatprep.mubr.f32.mxu0 %v4378_v1 }
 0x394   :  { %6439 = vmatprep.mubr.msk.f32.mxu1 %vm316_vm0, %v239_v56  ;;  %v241_v6 = vld [vmem:[%s11987_s1 + $0x208] sm:$0xff] }
 0x395   :  { %v4379_v4 = vmax.f32 %v3777_v38, 0.0  ;;  %v10600_v1 = vpop.f32.mrb[234].mxu0 }
 0x396   :  { %v3781_v22 = vpop.f32.mrb[148].mxu1  ;;  %v10603_v56 = vpop.f32.mrb[235].mxu0 }
 0x397   :  { %v3782_v3 = vadd.f32 %v10459_v32, %v3781_v22  ;;  %v3783_v47 = vpop.f32.mrb[149].mxu1  ;;  %4045 = vmatmul.mubr.f32.gmra.mrb[254].mxu1 %v3185_v44  ;;  %7766 = vmatmul.mubr.f32.gmra.mrb[8].mxu0 %v4379_v4 }
 0x398   :  { %6440 = vmatprep.mubr.msk.f32.mxu1 %vm316_vm0, %v240_v58  ;;  %v3187_v47 = vmax.f32 %v2809_v15, 0.0  ;;  %v3188_v15 = vmax.f32 %v2814_v53, 0.0 }
 0x399   :  { %v4380_v38 = vmax.f32 %v3782_v3, 0.0  ;;  %v10611_v4 = vpop.f32.mrb[236].mxu0  ;;  %v242_v3 = vld [vmem:[%s11987_s1 + $0x210] sm:$0xff] }
 0x39a   :  { %v3786_v50 = vpop.f32.mrb[150].mxu1  ;;  %v10614_v58 = vpop.f32.mrb[237].mxu0 }
 0x39b   :  { %v3787_v22 = vadd.f32 %v10459_v32, %v3786_v50  ;;  %v3788_v44 = vpop.f32.mrb[151].mxu1  ;;  %4050 = vmatmul.mubr.f32.gmra.mrb[0].mxu1 %v3186_v35  ;;  %7768 = vmatprep.mubr.f32.mxu0 %v4380_v38 }
 0x39c   :  { %6441 = vmatprep.mubr.msk.f32.mxu1 %vm316_vm0, %v241_v6  ;;  %v243_v44 = vld [vmem:[%s11987_s1 + $0x218] sm:$0xff] }
 0x39d   :  { %v4381_v51 = vmax.f32 %v3787_v22, 0.0  ;;  %v10622_v38 = vpop.f32.mrb[238].mxu0 }
 0x39e   :  { %v3791_v19 = vpop.f32.mrb[152].mxu1  ;;  %v10625_v6 = vpop.f32.mrb[239].mxu0 }
 0x39f   :  { %v3792_v50 = vadd.f32 %v10459_v32, %v3791_v19  ;;  %v3793_v35 = vpop.f32.mrb[153].mxu1  ;;  %4055 = vmatmul.mubr.f32.gmra.mrb[2].mxu1 %v3187_v47  ;;  %7769 = vmatmul.mubr.f32.gmra.mrb[10].mxu0 %v4381_v51 }
 0x3a0   :  { %6442 = vmatprep.mubr.msk.f32.mxu1 %vm316_vm0, %v242_v3  ;;  %v3189_v35 = vmax.f32 %v2819_v43, 0.0  ;;  %v3190_v43 = vmax.f32 %v2824_v63, 0.0 }
 0x3a1   :  { %v4382_v22 = vmax.f32 %v3792_v50, 0.0  ;;  %v10633_v51 = vpop.f32.mrb[240].mxu0  ;;  %v244_v50 = vld [vmem:[%s11987_s1 + $0x220] sm:$0xff] }
 0x3a2   :  { %v3796_v13 = vpop.f32.mrb[154].mxu1  ;;  %v10636_v3 = vpop.f32.mrb[241].mxu0 }
 0x3a3   :  { %v3797_v19 = vadd.f32 %v10459_v32, %v3796_v13  ;;  %v3798_v47 = vpop.f32.mrb[155].mxu1  ;;  %4060 = vmatmul.mubr.f32.gmra.mrb[4].mxu1 %v3188_v15  ;;  %7771 = vmatprep.mubr.f32.mxu0 %v4382_v22 }
 0x3a4   :  { %6443 = vmatprep.mubr.msk.f32.mxu1 %vm316_vm0, %v243_v44  ;;  %v245_v47 = vld [vmem:[%s11987_s1 + $0x228] sm:$0xff] }
 0x3a5   :  { %v4383_v53 = vmax.f32 %v3797_v19, 0.0  ;;  %v10644_v22 = vpop.f32.mrb[242].mxu0 }
 0x3a6   :  { %v3801_v16 = vpop.f32.mrb[156].mxu1  ;;  %v10647_v44 = vpop.f32.mrb[243].mxu0 }
 0x3a7   :  { %v3802_v13 = vadd.f32 %v10459_v32, %v3801_v16  ;;  %v3803_v15 = vpop.f32.mrb[157].mxu1  ;;  %4065 = vmatmul.mubr.f32.gmra.mrb[6].mxu1 %v3189_v35  ;;  %7772 = vmatmul.mubr.f32.gmra.mrb[12].mxu0 %v4383_v53 }
 0x3a8   :  { %6444 = vmatprep.mubr.msk.f32.mxu1 %vm316_vm0, %v244_v50  ;;  %v3191_v15 = vmax.f32 %v2829_v36, 0.0 }
 0x3a9   :  { %v4384_v19 = vmax.f32 %v3802_v13, 0.0  ;;  %v10655_v53 = vpop.f32.mrb[244].mxu0  ;;  %v246_v13 = vld [vmem:[%s11987_s1 + $0x230] sm:$0xff] }
 0x3aa   :  { %v3806_v9 = vpop.f32.mrb[158].mxu1  ;;  %12388 = vst [vmem:[#allocation133_spill] sm:$0xff] %v10655_v53  ;;  %v10658_v50 = vpop.f32.mrb[245].mxu0 }
 0x3ab   :  { %v3807_v16 = vadd.f32 %v10459_v32, %v3806_v9  ;;  %v3808_v35 = vpop.f32.mrb[159].mxu1  ;;  %4070 = vmatmul.mubr.f32.gmra.mrb[8].mxu1 %v3190_v43  ;;  %7774 = vmatprep.mubr.f32.mxu0 %v4384_v19  ;;  %v5364_v9 = vld [vmem:[%s11998_s12 + $0x50] sm:$0xff]  ;;  %v5365_v43 = vld [vmem:[%s11998_s12 + $0x58] sm:$0xff] }
 0x3ac   :  { %6445 = vmatprep.mubr.msk.f32.mxu1 %vm316_vm0, %v245_v47  ;;  %v8095_v47 = vpack.c.bf16 %v5365_v43, %v5364_v9  ;;  %v247_v9 = vld [vmem:[%s11987_s1 + $0x238] sm:$0xff] }
 0x3ad   :  { %v4385_v63 = vmax.f32 %v3807_v16, 0.0  ;;  %v10672_v21 = vpop.f32.mrb[246].mxu0 }
 0x3ae   :  { %v3811_v19 = vpop.f32.mrb[160].mxu1  ;;  %8148 = vmatpush1.bf16.msra.mxu1 %v8095_v47  ;;  %v10675_v16 = vpop.f32.mrb[247].mxu0  ;;  %8096 = vmatpush1.bf16.msra.mxu0 %v8095_v47  ;;  %v248_v47 = vld [vmem:[%s11987_s1 + $0x240] sm:$0xff] }
 0x3af   :  { %v3812_v36 = vadd.f32 %v10459_v32, %v3811_v19  ;;  %v3813_v35 = vpop.f32.mrb[161].mxu1  ;;  %4075 = vmatmul.mubr.f32.gmra.mrb[10].mxu1 %v3191_v15  ;;  %7775 = vmatmul.mubr.f32.gmra.mrb[14].mxu0 %v4385_v63  ;;  %v2844_v19 = vadd.f32 %v10373_v30, %v10326_v28 }
 0x3b0   :  { %6446 = vmatprep.mubr.msk.f32.mxu1 %vm316_vm0, %v246_v13  ;;  %8133 = vmatprep.subr.bf16.mxu1 %v12387_v29 }
 0x3b1   :  { %v4386_v53 = vmax.f32 %v3812_v36, 0.0  ;;  %8097 = vmatprep.subr.bf16.mxu0 %v12387_v29  ;;  %v10685_v43 = vpop.f32.mrb[248].mxu0  ;;  %v3194_v28 = vmax.f32 %v2844_v19, 0.0 }
 0x3b2   :  { %v3816_v15 = vpop.f32.mrb[162].mxu1  ;;  %12389 = vst [vmem:[#allocation134_spill] sm:$0xff] %v10685_v43  ;;  %v10688_v24 = vpop.f32.mrb[249].mxu0 }
 0x3b3   :  { %v3817_v63 = vadd.f32 %v10459_v32, %v3816_v15  ;;  %v3818_v13 = vpop.f32.mrb[163].mxu1  ;;  %4080 = vmatmul.mubr.f32.gmra.mrb[12].mxu1 %v3192_v26  ;;  %7777 = vmatprep.mubr.f32.mxu0 %v4386_v53 }
 0x3b4   :  { %6447 = vmatprep.mubr.msk.f32.mxu1 %vm316_vm0, %v247_v9  ;;  %v249_v13 = vld [vmem:[%s11987_s1 + $0x248] sm:$0xff] }
 0x3b5   :  { %v4387_v36 = vmax.f32 %v3817_v63, 0.0  ;;  %v10696_v53 = vpop.f32.mrb[250].mxu0 }
 0x3b6   :  { %v3821_v35 = vpop.f32.mrb[164].mxu1  ;;  %12390 = vst [vmem:[#allocation135_spill] sm:$0xff] %v10696_v53  ;;  %v10699_v9 = vpop.f32.mrb[251].mxu0 }
 0x3b7   :  { %v3822_v15 = vadd.f32 %v10459_v32, %v3821_v35  ;;  %v3823_v26 = vpop.f32.mrb[165].mxu1  ;;  %4085 = vmatmul.mubr.f32.gmra.mrb[14].mxu1 %v3193_v33  ;;  %7778 = vmatmul.mubr.f32.gmra.mrb[16].mxu0 %v4387_v36 }
 0x3b8   :  { %6448 = vmatprep.mubr.msk.f32.mxu1 %vm316_vm0, %v248_v47  ;;  %v3195_v26 = vmax.f32 %v2849_v49, 0.0  ;;  %v3196_v49 = vmax.f32 %v2854_v34, 0.0 }
 0x3b9   :  { %v4388_v63 = vmax.f32 %v3822_v15, 0.0  ;;  %v10707_v36 = vpop.f32.mrb[252].mxu0  ;;  %v250_v15 = vld [vmem:[%s11987_s1 + $0x250] sm:$0xff] }
 0x3ba   :  { %v3826_v43 = vpop.f32.mrb[166].mxu1  ;;  %12391 = vst [vmem:[#allocation136_spill] sm:$0xff] %v10707_v36  ;;  %v10710_v47 = vpop.f32.mrb[253].mxu0 }
 0x3bb   :  { %v3827_v35 = vadd.f32 %v10459_v32, %v3826_v43  ;;  %v3828_v33 = vpop.f32.mrb[167].mxu1  ;;  %4090 = vmatmul.mubr.f32.gmra.mrb[16].mxu1 %v3194_v28  ;;  %7780 = vmatprep.mubr.f32.mxu0 %v4388_v63 }
 0x3bc   :  { %6449 = vmatprep.mubr.msk.f32.mxu1 %vm316_vm0, %v249_v13  ;;  %v251_v33 = vld [vmem:[%s11987_s1 + $0x258] sm:$0xff] }
 0x3bd   :  { %v4389_v19 = vmax.f32 %v3827_v35, 0.0  ;;  %v10718_v63 = vpop.f32.mrb[254].mxu0 }
 0x3be   :  { %v3831_v53 = vpop.f32.mrb[168].mxu1  ;;  %12392 = vst [vmem:[#allocation137_spill] sm:$0xff] %v10718_v63  ;;  %v10721_v13 = vpop.f32.mrb[255].mxu0 }
 0x3bf   :  { %v3832_v43 = vadd.f32 %v10459_v32, %v3831_v53  ;;  %v3833_v28 = vpop.f32.mrb[169].mxu1  ;;  %4095 = vmatmul.mubr.f32.gmra.mrb[18].mxu1 %v3195_v26  ;;  %7781 = vmatmul.mubr.f32.gmra.mrb[18].mxu0 %v4389_v19  ;;  %v3197_v19 = vmax.f32 %v2859_v23, 0.0 }
 0x3c0   :  { %6450 = vmatprep.mubr.msk.f32.mxu1 %vm316_vm0, %v250_v15  ;;  %v2864_v15 = vadd.f32 %v10373_v30, %v10359_v27  ;;  %v253_v27 = vld [vmem:[%s11987_s1 + $0x268] sm:$0xff] }
 0x3c1   :  { %v4390_v35 = vmax.f32 %v3832_v43, 0.0 }
 0x3c2   :  { %v3836_v36 = vpop.f32.mrb[170].mxu1  ;;  %v3198_v23 = vmax.f32 %v2864_v15, 0.0 }
 0x3c3   :  { %v3837_v53 = vadd.f32 %v10459_v32, %v3836_v36  ;;  %v3838_v26 = vpop.f32.mrb[171].mxu1  ;;  %4100 = vmatmul.mubr.f32.gmra.mrb[20].mxu1 %v3196_v49  ;;  %7783 = vmatprep.mubr.f32.mxu0 %v4390_v35  ;;  %v2869_v36 = vadd.f32 %v10373_v30, %v10352_v14  ;;  %v254_v14 = vld [vmem:[%s11987_s1 + $0x270] sm:$0xff] }
 0x3c4   :  { %6451 = vmatprep.mubr.msk.f32.mxu1 %vm316_vm0, %v251_v33  ;;  %v2874_v26 = vadd.f32 %v10373_v30, %v10380_v18 }
 0x3c5   :  { %v4391_v28 = vmax.f32 %v3837_v53, 0.0 }
 0x3c6   :  { %v3841_v34 = vpop.f32.mrb[172].mxu1 }
 0x3c7   :  { %v3842_v43 = vadd.f32 %v10459_v32, %v3841_v34  ;;  %v3843_v63 = vpop.f32.mrb[173].mxu1  ;;  %4105 = vmatmul.mubr.f32.gmra.mrb[22].mxu1 %v3197_v19  ;;  %7784 = vmatmul.mubr.f32.gmra.mrb[20].mxu0 %v4391_v28  ;;  %v5366_v28 = vld [vmem:[%s11998_s12 + $0x60] sm:$0xff] }
 0x3c8   :  { %6452 = vmatprep.mubr.msk.f32.mxu1 %vm316_vm0, %v252_v5  ;;  %v3199_v63 = vmax.f32 %v2869_v36, 0.0  ;;  %v5367_v5 = vld [vmem:[%s11998_s12 + $0x68] sm:$0xff]  ;;  %v2879_v36 = vadd.f32 %v10373_v30, %v10368_v57 }
 0x3c9   :  { %v4392_v49 = vmax.f32 %v3842_v43, 0.0  ;;  %v8098_v18 = vpack.c.bf16 %v5367_v5, %v5366_v28  ;;  %v2889_v5 = vadd.f32 %v10373_v30, %v10398_v17  ;;  %v258_v17 = vld [vmem:[%s11987_s1 + $0x290] sm:$0xff] }
 0x3ca   :  { %v3846_v35 = vpop.f32.mrb[174].mxu1  ;;  %v3201_v57 = vmax.f32 %v2879_v36, 0.0 }
 0x3cb   :  { %v3847_v33 = vadd.f32 %v10459_v32, %v3846_v35  ;;  %v3848_v53 = vpop.f32.mrb[175].mxu1  ;;  %4110 = vmatmul.mubr.f32.gmra.mrb[24].mxu1 %v3198_v23  ;;  %7786 = vmatprep.mubr.f32.mxu0 %v4392_v49  ;;  %v3200_v23 = vmax.f32 %v2874_v26, 0.0 }
 0x3cc   :  { %6453 = vmatprep.mubr.msk.f32.mxu1 %vm316_vm0, %v253_v27  ;;  %v255_v27 = vld [vmem:[%s11987_s1 + $0x278] sm:$0xff]  ;;  %8149 = vmatpush1.bf16.msra.mxu1 %v8098_v18 }
 0x3cd   :  { %v4393_v19 = vmax.f32 %v3847_v33, 0.0  ;;  %8099 = vmatpush1.bf16.msra.mxu0 %v8098_v18  ;;  %8134 = vmatprep.subr.bf16.mxu1 %v12387_v29 }
 0x3ce   :  { %v3851_v15 = vpop.f32.mrb[176].mxu1  ;;  %8100 = vmatprep.subr.bf16.mxu0 %v12387_v29 }
 0x3cf   :  { %v3852_v34 = vadd.f32 %v10459_v32, %v3851_v15  ;;  %v3853_v43 = vpop.f32.mrb[177].mxu1  ;;  %4115 = vmatmul.mubr.f32.gmra.mrb[26].mxu1 %v3199_v63  ;;  %7787 = vmatmul.mubr.f32.gmra.mrb[22].mxu0 %v4393_v19  ;;  %v2884_v63 = vadd.f32 %v10373_v30, %v10405_v7  ;;  %v256_v19 = vld [vmem:[%s11987_s1 + $0x280] sm:$0xff]  ;;  %v257_v7 = vld [vmem:[%s11987_s1 + $0x288] sm:$0xff] }
 0x3d0   :  { %6454 = vmatprep.mubr.msk.f32.mxu1 %vm316_vm0, %v254_v14 }
 0x3d1   :  { %v4394_v49 = vmax.f32 %v3852_v34, 0.0  ;;  %v3202_v34 = vmax.f32 %v2884_v63, 0.0  ;;  %v2899_v63 = vadd.f32 %v10373_v30, %v10415_v52  ;;  %v260_v52 = vld [vmem:[%s11987_s1 + $0x2a0] sm:$0xff] }
 0x3d2   :  { %v3856_v35 = vpop.f32.mrb[178].mxu1 }
 0x3d3   :  { %v3857_v33 = vadd.f32 %v10459_v32, %v3856_v35  ;;  %v3858_v53 = vpop.f32.mrb[179].mxu1  ;;  %4120 = vmatmul.mubr.f32.gmra.mrb[28].mxu1 %v3200_v23  ;;  %7789 = vmatprep.mubr.f32.mxu0 %v4394_v49  ;;  %v3203_v49 = vmax.f32 %v2889_v5, 0.0  ;;  %v3205_v5 = vmax.f32 %v2899_v63, 0.0 }
 0x3d4   :  { %6455 = vmatprep.mubr.msk.f32.mxu1 %vm316_vm0, %v255_v27  ;;  %v2894_v27 = vadd.f32 %v10373_v30, %v10422_v12  ;;  %v259_v12 = vld [vmem:[%s11987_s1 + $0x298] sm:$0xff] }
 0x3d5   :  { %v4395_v26 = vmax.f32 %v3857_v33, 0.0 }
 0x3d6   :  { %v3861_v14 = vpop.f32.mrb[180].mxu1 }
 0x3d7   :  { %v3862_v15 = vadd.f32 %v10459_v32, %v3861_v14  ;;  %v3863_v28 = vpop.f32.mrb[181].mxu1  ;;  %4125 = vmatmul.mubr.f32.gmra.mrb[30].mxu1 %v3201_v57  ;;  %7790 = vmatmul.mubr.f32.gmra.mrb[24].mxu0 %v4395_v26  ;;  %v3204_v26 = vmax.f32 %v2894_v27, 0.0 }
 0x3d8   :  { %6456 = vmatprep.mubr.msk.f32.mxu1 %vm316_vm0, %v256_v19 }
 0x3d9   :  { %v4396_v43 = vmax.f32 %v3862_v15, 0.0 }
 0x3da   :  { %v3866_v18 = vpop.f32.mrb[182].mxu1 }
 0x3db   :  { %v3867_v36 = vadd.f32 %v10459_v32, %v3866_v18  ;;  %v3868_v23 = vpop.f32.mrb[183].mxu1  ;;  %4130 = vmatmul.mubr.f32.gmra.mrb[32].mxu1 %v3202_v34  ;;  %7792 = vmatprep.mubr.f32.mxu0 %v4396_v43  ;;  %v2904_v34 = vadd.f32 %v10373_v30, %v10438_v2  ;;  %v261_v2 = vld [vmem:[%s11987_s1 + $0x2a8] sm:$0xff] }
 0x3dc   :  { %6457 = vmatprep.mubr.msk.f32.mxu1 %vm316_vm0, %v257_v7  ;;  %v2909_v23 = vadd.f32 %v10373_v30, %v10431_v8  ;;  %v262_v8 = vld [vmem:[%s11987_s1 + $0x2b0] sm:$0xff] }
 0x3dd   :  { %v4397_v35 = vmax.f32 %v3867_v36, 0.0 }
 0x3de   :  { %v3871_v33 = vpop.f32.mrb[184].mxu1 }
 0x3df   :  { %v3872_v53 = vadd.f32 %v10459_v32, %v3871_v33  ;;  %v3873_v57 = vpop.f32.mrb[185].mxu1  ;;  %4135 = vmatmul.mubr.f32.gmra.mrb[34].mxu1 %v3203_v49  ;;  %7793 = vmatmul.mubr.f32.gmra.mrb[26].mxu0 %v4397_v35  ;;  %v3206_v49 = vmax.f32 %v2904_v34, 0.0 }
 0x3e0   :  { %6458 = vmatprep.mubr.msk.f32.mxu1 %vm316_vm0, %v258_v17  ;;  %v2914_v57 = vadd.f32 %v10373_v30, %v10454_v46 }
 0x3e1   :  { %v4398_v19 = vmax.f32 %v3872_v53, 0.0  ;;  %v3207_v53 = vmax.f32 %v2909_v23, 0.0 }
 0x3e2   :  { %v3876_v14 = vpop.f32.mrb[186].mxu1 }
 0x3e3   :  { %v3877_v15 = vadd.f32 %v10459_v32, %v3876_v14  ;;  %v3878_v28 = vpop.f32.mrb[187].mxu1  ;;  %4140 = vmatmul.mubr.f32.gmra.mrb[36].mxu1 %v3204_v26  ;;  %7795 = vmatprep.mubr.f32.mxu0 %v4398_v19  ;;  %v5368_v19 = vld [vmem:[%s11998_s12 + $0x70] sm:$0xff] }
 0x3e4   :  { %6459 = vmatprep.mubr.msk.f32.mxu1 %vm316_vm0, %v259_v12  ;;  %v5369_v12 = vld [vmem:[%s11998_s12 + $0x78] sm:$0xff]  ;;  %v2919_v28 = vadd.f32 %v10373_v30, %v10447_v55 }
 0x3e5   :  { %v4399_v43 = vmax.f32 %v3877_v15, 0.0  ;;  %v8101_v46 = vpack.c.bf16 %v5369_v12, %v5368_v19  ;;  %v2934_v19 = vadd.f32 %v10373_v30, %v10499_v59  ;;  %v267_v59 = vld [vmem:[%s11987_s1 + $0x2d8] sm:$0xff] }
 0x3e6   :  { %v3881_v7 = vpop.f32.mrb[188].mxu1  ;;  %v3209_v55 = vmax.f32 %v2919_v28, 0.0  ;;  %v2939_v28 = vadd.f32 %v10373_v30, %v10496_v10 }
 0x3e7   :  { %v3882_v18 = vadd.f32 %v10459_v32, %v3881_v7  ;;  %v3883_v36 = vpop.f32.mrb[189].mxu1  ;;  %4145 = vmatmul.mubr.f32.gmra.mrb[38].mxu1 %v3205_v5  ;;  %7796 = vmatmul.mubr.f32.gmra.mrb[28].mxu0 %v4399_v43  ;;  %v3208_v5 = vmax.f32 %v2914_v57, 0.0  ;;  %v263_v43 = vld [vmem:[%s11987_s1 + $0x2b8] sm:$0xff] }
 0x3e8   :  { %6460 = vmatprep.mubr.msk.f32.mxu1 %vm316_vm0, %v260_v52  ;;  %8150 = vmatpush1.bf16.msra.mxu1 %v8101_v46  ;;  %v2924_v36 = vadd.f32 %v10373_v30, %v10485_v48  ;;  %v265_v48 = vld [vmem:[%s11987_s1 + $0x2c8] sm:$0xff] }
 0x3e9   :  { %v4400_v27 = vmax.f32 %v3882_v18, 0.0  ;;  %8102 = vmatpush1.bf16.msra.mxu0 %v8101_v46  ;;  %8135 = vmatprep.subr.bf16.mxu1 %v12387_v29 }
 0x3ea   :  { %v3886_v35 = vpop.f32.mrb[190].mxu1  ;;  %8103 = vmatprep.subr.bf16.mxu0 %v12387_v29 }
 0x3eb   :  { %v3887_v17 = vadd.f32 %v10459_v32, %v3886_v35  ;;  %v3888_v33 = vpop.f32.mrb[191].mxu1  ;;  %4150 = vmatmul.mubr.f32.gmra.mrb[40].mxu1 %v3206_v49  ;;  %7798 = vmatprep.mubr.f32.mxu0 %v4400_v27  ;;  %v264_v49 = vld [vmem:[%s11987_s1 + $0x2c0] sm:$0xff] }
 0x3ec   :  { %6461 = vmatprep.mubr.msk.f32.mxu1 %vm316_vm0, %v261_v2  ;;  %v3210_v33 = vmax.f32 %v2924_v36, 0.0  ;;  %v268_v36 = vld [vmem:[%s11987_s1 + $0x2e0] sm:$0xff] }
 0x3ed   :  { %v4401_v63 = vmax.f32 %v3887_v17, 0.0  ;;  %v2929_v17 = vadd.f32 %v10373_v30, %v10478_v25  ;;  %v266_v25 = vld [vmem:[%s11987_s1 + $0x2d0] sm:$0xff] }
 0x3ee   :  { %v3891_v26 = vpop.f32.mrb[192].mxu1 }
 0x3ef   :  { %v3892_v14 = vadd.f32 %v10459_v32, %v3891_v26  ;;  %v3893_v15 = vpop.f32.mrb[193].mxu1  ;;  %4155 = vmatmul.mubr.f32.gmra.mrb[42].mxu1 %v3207_v53  ;;  %7799 = vmatmul.mubr.f32.gmra.mrb[30].mxu0 %v4401_v63  ;;  %v3211_v26 = vmax.f32 %v2929_v17, 0.0 }
 0x3f0   :  { %6462 = vmatprep.mubr.msk.f32.mxu1 %vm316_vm0, %v262_v8 }
 0x3f1   :  { %v4402_v34 = vmax.f32 %v3892_v14, 0.0 }
 0x3f2   :  { %v3896_v52 = vpop.f32.mrb[194].mxu1 }
 0x3f3   :  { %v3897_v7 = vadd.f32 %v10459_v32, %v3896_v52  ;;  %v3898_v18 = vpop.f32.mrb[195].mxu1  ;;  %4160 = vmatmul.mubr.f32.gmra.mrb[44].mxu1 %v3208_v5  ;;  %7801 = vmatprep.mubr.f32.mxu0 %v4402_v34  ;;  %v3212_v5 = vmax.f32 %v2934_v19, 0.0  ;;  %v5370_v19 = vld [vmem:[%s11998_s12 + $0x80] sm:$0xff] }
 0x3f4   :  { %6463 = vmatprep.mubr.msk.f32.mxu1 %vm316_vm0, %v263_v43  ;;  %v3213_v18 = vmax.f32 %v2939_v28, 0.0 }
 0x3f5   :  { %v4403_v23 = vmax.f32 %v3897_v7, 0.0 }
 0x3f6   :  { %v3901_v27 = vpop.f32.mrb[196].mxu1 }
 0x3f7   :  { %v3902_v2 = vadd.f32 %v10459_v32, %v3901_v27  ;;  %v3903_v35 = vpop.f32.mrb[197].mxu1  ;;  %4165 = vmatmul.mubr.f32.gmra.mrb[46].mxu1 %v3209_v55  ;;  %7802 = vmatmul.mubr.f32.gmra.mrb[32].mxu0 %v4403_v23  ;;  %v10861_v55 = vld [vmem:[%s11993_s7] ss:$0 sm:$0xff] }
 0x3f8   :  { %6464 = vmatprep.mubr.msk.f32.mxu1 %vm316_vm0, %v264_v49  ;;  %v2944_v30 = vadd.f32 %v10861_v55, %v10512_v41  ;;  %v269_v41 = vld [vmem:[%s11987_s1 + $0x2e8] sm:$0xff] }
 0x3f9   :  { %v4404_v53 = vmax.f32 %v3902_v2, 0.0  ;;  %v2949_v2 = vadd.f32 %v10861_v55, %v10509_v61  ;;  %v270_v61 = vld [vmem:[%s11987_s1 + $0x2f0] sm:$0xff] }
 0x3fa   :  { %v3906_v57 = vpop.f32.mrb[198].mxu1  ;;  %v3214_v35 = vmax.f32 %v2944_v30, 0.0 }
 0x3fb   :  { %v3907_v63 = vadd.f32 %v10459_v32, %v3906_v57  ;;  %v3908_v8 = vpop.f32.mrb[199].mxu1  ;;  %4170 = vmatmul.mubr.f32.gmra.mrb[48].mxu1 %v3210_v33  ;;  %7804 = vmatprep.mubr.f32.mxu0 %v4404_v53  ;;  %v3215_v57 = vmax.f32 %v2949_v2, 0.0 }
 0x3fc   :  { %6465 = vmatprep.mubr.msk.f32.mxu1 %vm316_vm0, %v265_v48 }
 0x3fd   :  { %v4405_v12 = vmax.f32 %v3907_v63, 0.0  ;;  %v2954_v63 = vadd.f32 %v10861_v55, %v10525_v42 }
 0x3fe   :  { %v3911_v14 = vpop.f32.mrb[200].mxu1 }
 0x3ff   :  { %v3912_v15 = vadd.f32 %v10459_v32, %v3911_v14  ;;  %v3913_v46 = vpop.f32.mrb[201].mxu1  ;;  %4175 = vmatmul.mubr.f32.gmra.mrb[50].mxu1 %v3211_v26  ;;  %7805 = vmatmul.mubr.f32.gmra.mrb[34].mxu0 %v4405_v12  ;;  %v5371_v12 = vld [vmem:[%s11998_s12 + $0x88] sm:$0xff] }
 0x400   :  { %6466 = vmatprep.mubr.msk.f32.mxu1 %vm316_vm0, %v266_v25  ;;  %v8104_v42 = vpack.c.bf16 %v5371_v12, %v5370_v19  ;;  %v3216_v46 = vmax.f32 %v2954_v63, 0.0 }
 0x401   :  { %v4406_v34 = vmax.f32 %v3912_v15, 0.0  ;;  %v2959_v15 = vadd.f32 %v10861_v55, %v10522_v31 }
 0x402   :  { %v3916_v43 = vpop.f32.mrb[202].mxu1  ;;  %8151 = vmatpush1.bf16.msra.mxu1 %v8104_v42  ;;  %8105 = vmatpush1.bf16.msra.mxu0 %v8104_v42  ;;  %v2984_v42 = vadd.f32 %v10861_v55, %v10562_v60  ;;  %v277_v60 = vld [vmem:[%s11987_s1 + $0x328] sm:$0xff] }
 0x403   :  { %v3917_v52 = vadd.f32 %v10459_v32, %v3916_v43  ;;  %v3918_v7 = vpop.f32.mrb[203].mxu1  ;;  %4180 = vmatmul.mubr.f32.gmra.mrb[52].mxu1 %v3212_v5  ;;  %7807 = vmatprep.mubr.f32.mxu0 %v4406_v34  ;;  %v271_v5 = vld [vmem:[%s11987_s1 + $0x2f8] sm:$0xff]  ;;  %v3217_v31 = vmax.f32 %v2959_v15, 0.0 }
 0x404   :  { %6467 = vmatprep.mubr.msk.f32.mxu1 %vm316_vm0, %v267_v59  ;;  %8136 = vmatprep.subr.bf16.mxu1 %v12387_v29 }
 0x405   :  { %v4407_v10 = vmax.f32 %v3917_v52, 0.0  ;;  %8106 = vmatprep.subr.bf16.mxu0 %v12387_v29  ;;  %v2964_v52 = vadd.f32 %v10861_v55, %v10538_v0  ;;  %v2969_v0 = vadd.f32 %v10861_v55, %v10535_v45  ;;  %v274_v45 = vld [vmem:[%s11987_s1 + $0x310] sm:$0xff] }
 0x406   :  { %v3921_v23 = vpop.f32.mrb[204].mxu1 }
 0x407   :  { %v3922_v49 = vadd.f32 %v10459_v32, %v3921_v23  ;;  %v3923_v27 = vpop.f32.mrb[205].mxu1  ;;  %4185 = vmatmul.mubr.f32.gmra.mrb[54].mxu1 %v3213_v18  ;;  %7808 = vmatmul.mubr.f32.gmra.mrb[36].mxu0 %v4407_v10  ;;  %v272_v18 = vld [vmem:[%s11987_s1 + $0x300] sm:$0xff]  ;;  %v3218_v23 = vmax.f32 %v2964_v52, 0.0 }
 0x408   :  { %6468 = vmatprep.mubr.msk.f32.mxu1 %vm316_vm0, %v268_v36  ;;  %v10907_v10 = vld [vmem:[%s11995_s9] ss:$0 sm:$0xff]  ;;  %v273_v27 = vld [vmem:[%s11987_s1 + $0x308] sm:$0xff] }
 0x409   :  { %v4408_v17 = vmax.f32 %v3922_v49, 0.0 }
 0x40a   :  { %v3926_v33 = vpop.f32.mrb[206].mxu1 }
 0x40b   :  { %v3927_v53 = vadd.f32 %v10459_v32, %v3926_v33  ;;  %v3928_v48 = vpop.f32.mrb[207].mxu1  ;;  %4190 = vmatmul.mubr.f32.gmra.mrb[56].mxu1 %v3214_v35  ;;  %7810 = vmatprep.mubr.f32.mxu0 %v4408_v17  ;;  %v2974_v33 = vadd.f32 %v10861_v55, %v10551_v54  ;;  %v275_v54 = vld [vmem:[%s11987_s1 + $0x318] sm:$0xff] }
 0x40c   :  { %6469 = vmatprep.mubr.msk.f32.mxu1 %vm316_vm0, %v269_v41  ;;  %v3219_v41 = vmax.f32 %v2969_v0, 0.0  ;;  %v5372_v0 = vld [vmem:[%s11998_s12 + $0x90] sm:$0xff] }
 0x40d   :  { %v4409_v8 = vmax.f32 %v3927_v53, 0.0 }
 0x40e   :  { %v3931_v26 = vpop.f32.mrb[208].mxu1 }
 0x40f   :  { %v3932_v25 = vadd.f32 %v10459_v32, %v3931_v26  ;;  %v3933_v14 = vpop.f32.mrb[209].mxu1  ;;  %4195 = vmatmul.mubr.f32.gmra.mrb[58].mxu1 %v3215_v57  ;;  %7811 = vmatmul.mubr.f32.gmra.mrb[38].mxu0 %v4409_v8  ;;  %v2979_v8 = vadd.f32 %v10861_v55, %v10548_v39  ;;  %v276_v39 = vld [vmem:[%s11987_s1 + $0x320] sm:$0xff] }
 0x410   :  { %6470 = vmatprep.mubr.msk.f32.mxu1 %vm316_vm0, %v270_v61  ;;  %v3220_v61 = vmax.f32 %v2974_v33, 0.0 }
 0x411   :  { %v4410_v28 = vmax.f32 %v3932_v25, 0.0  ;;  %v3221_v14 = vmax.f32 %v2979_v8, 0.0 }
 0x412   :  { %v3936_v34 = vpop.f32.mrb[210].mxu1 }
 0x413   :  { %v3937_v59 = vadd.f32 %v10459_v32, %v3936_v34  ;;  %v3938_v43 = vpop.f32.mrb[211].mxu1  ;;  %4200 = vmatmul.mubr.f32.gmra.mrb[60].mxu1 %v3216_v46  ;;  %7813 = vmatprep.mubr.f32.mxu0 %v4410_v28  ;;  %v2989_v34 = vadd.f32 %v10861_v55, %v10559_v62  ;;  %v278_v62 = vld [vmem:[%s11987_s1 + $0x330] sm:$0xff] }
 0x414   :  { %6471 = vmatprep.mubr.msk.f32.mxu1 %vm316_vm0, %v271_v5 }
 0x415   :  { %v4411_v7 = vmax.f32 %v3937_v59, 0.0  ;;  %v3222_v59 = vmax.f32 %v2984_v42, 0.0 }
 0x416   :  { %v3941_v30 = vpop.f32.mrb[212].mxu1 }
 0x417   :  { %v3942_v32 = vadd.f32 %v10907_v10, %v3941_v30  ;;  %v3943_v36 = vpop.f32.mrb[213].mxu1  ;;  %4205 = vmatmul.mubr.f32.gmra.mrb[62].mxu1 %v3217_v31  ;;  %7814 = vmatmul.mubr.f32.gmra.mrb[40].mxu0 %v4411_v7  ;;  %v2994_v30 = vadd.f32 %v10861_v55, %v10579_v37 }
 0x418   :  { %6472 = vmatprep.mubr.msk.f32.mxu1 %vm316_vm0, %v272_v18  ;;  %v3223_v18 = vmax.f32 %v2989_v34, 0.0 }
 0x419   :  { %v4412_v49 = vmax.f32 %v3942_v32, 0.0 }
 0x41a   :  { %v3946_v2 = vpop.f32.mrb[214].mxu1 }
 0x41b   :  { %v3947_v35 = vadd.f32 %v10907_v10, %v3946_v2  ;;  %v3948_v17 = vpop.f32.mrb[215].mxu1  ;;  %4210 = vmatmul.mubr.f32.gmra.mrb[64].mxu1 %v3218_v23  ;;  %7816 = vmatprep.mubr.f32.mxu0 %v4412_v49  ;;  %v5373_v23 = vld [vmem:[%s11998_s12 + $0x98] sm:$0xff]  ;;  %v2999_v2 = vadd.f32 %v10861_v55, %v10576_v20 }
 0x41c   :  { %6473 = vmatprep.mubr.msk.f32.mxu1 %vm316_vm0, %v273_v27  ;;  %v8107_v37 = vpack.c.bf16 %v5373_v23, %v5372_v0  ;;  %v3029_v23 = vadd.f32 %v10861_v55, %v10611_v4  ;;  %v3034_v4 = vadd.f32 %v10861_v55, %v10625_v6 }
 0x41d   :  { %v4413_v53 = vmax.f32 %v3947_v35, 0.0  ;;  %v3224_v35 = vmax.f32 %v2994_v30, 0.0  ;;  %v3225_v20 = vmax.f32 %v2999_v2, 0.0  ;;  %v3024_v30 = vadd.f32 %v10861_v55, %v10614_v58  ;;  %v285_v58 = vld [vmem:[%s11987_s1 + $0x368] sm:$0xff] }
 0x41e   :  { %v3951_v48 = vpop.f32.mrb[216].mxu1  ;;  %8152 = vmatpush1.bf16.msra.mxu1 %v8107_v37  ;;  %8108 = vmatpush1.bf16.msra.mxu0 %v8107_v37 }
 0x41f   :  { %v3952_v57 = vadd.f32 %v10907_v10, %v3951_v48  ;;  %v3953_v63 = vpop.f32.mrb[217].mxu1  ;;  %4215 = vmatmul.mubr.f32.gmra.mrb[66].mxu1 %v3219_v41  ;;  %7817 = vmatmul.mubr.f32.gmra.mrb[42].mxu0 %v4413_v53  ;;  %v279_v41 = vld [vmem:[%s11987_s1 + $0x338] sm:$0xff]  ;;  %v3004_v48 = vadd.f32 %v10861_v55, %v10592_v11  ;;  %v281_v11 = vld [vmem:[%s11987_s1 + $0x348] sm:$0xff] }
 0x420   :  { %6474 = vmatprep.mubr.msk.f32.mxu1 %vm316_vm0, %v274_v45  ;;  %8137 = vmatprep.subr.bf16.mxu1 %v12387_v29  ;;  %v280_v63 = vld [vmem:[%s11987_s1 + $0x340] sm:$0xff] }
 0x421   :  { %v4414_v26 = vmax.f32 %v3952_v57, 0.0  ;;  %8109 = vmatprep.subr.bf16.mxu0 %v12387_v29 }
 0x422   :  { %v3956_v19 = vpop.f32.mrb[218].mxu1 }
 0x423   :  { %v3957_v12 = vadd.f32 %v10907_v10, %v3956_v19  ;;  %v3958_v25 = vpop.f32.mrb[219].mxu1  ;;  %4220 = vmatmul.mubr.f32.gmra.mrb[68].mxu1 %v3220_v61  ;;  %7819 = vmatprep.mubr.f32.mxu0 %v4414_v26  ;;  %v3226_v19 = vmax.f32 %v3004_v48, 0.0  ;;  %v5374_v48 = vld [vmem:[%s11998_s12 + $0xa0] sm:$0xff] }
 0x424   :  { %6475 = vmatprep.mubr.msk.f32.mxu1 %vm316_vm0, %v275_v54  ;;  %v3009_v54 = vadd.f32 %v10861_v55, %v10589_v40  ;;  %v282_v40 = vld [vmem:[%s11987_s1 + $0x350] sm:$0xff] }
 0x425   :  { %v4415_v15 = vmax.f32 %v3957_v12, 0.0 }
 0x426   :  { %v3961_v46 = vpop.f32.mrb[220].mxu1 }
 0x427   :  { %v3962_v28 = vadd.f32 %v10907_v10, %v3961_v46  ;;  %v3963_v5 = vpop.f32.mrb[221].mxu1  ;;  %4225 = vmatmul.mubr.f32.gmra.mrb[70].mxu1 %v3221_v14  ;;  %7820 = vmatmul.mubr.f32.gmra.mrb[44].mxu0 %v4415_v15  ;;  %v3227_v15 = vmax.f32 %v3009_v54, 0.0 }
 0x428   :  { %6476 = vmatprep.mubr.msk.f32.mxu1 %vm316_vm0, %v276_v39  ;;  %v3014_v39 = vadd.f32 %v10861_v55, %v10603_v56  ;;  %v283_v56 = vld [vmem:[%s11987_s1 + $0x358] sm:$0xff] }
 0x429   :  { %v4416_v43 = vmax.f32 %v3962_v28, 0.0 }
 0x42a   :  { %v3966_v31 = vpop.f32.mrb[222].mxu1 }
 0x42b   :  { %v3967_v52 = vadd.f32 %v10907_v10, %v3966_v31  ;;  %v3968_v7 = vpop.f32.mrb[223].mxu1  ;;  %4230 = vmatmul.mubr.f32.gmra.mrb[72].mxu1 %v3222_v59  ;;  %7822 = vmatprep.mubr.f32.mxu0 %v4416_v43  ;;  %v3019_v59 = vadd.f32 %v10861_v55, %v10600_v1  ;;  %v3228_v43 = vmax.f32 %v3014_v39, 0.0  ;;  %v284_v1 = vld [vmem:[%s11987_s1 + $0x360] sm:$0xff] }
 0x42c   :  { %6477 = vmatprep.mubr.msk.f32.mxu1 %vm316_vm0, %v277_v60 }
 0x42d   :  { %v4417_v32 = vmax.f32 %v3967_v52, 0.0 }
 0x42e   :  { %v3971_v36 = vpop.f32.mrb[224].mxu1 }
 0x42f   :  { %v3972_v49 = vadd.f32 %v10907_v10, %v3971_v36  ;;  %v3973_v27 = vpop.f32.mrb[225].mxu1  ;;  %4235 = vmatmul.mubr.f32.gmra.mrb[74].mxu1 %v3223_v18  ;;  %7823 = vmatmul.mubr.f32.gmra.mrb[46].mxu0 %v4417_v32  ;;  %v3229_v18 = vmax.f32 %v3019_v59, 0.0 }
 0x430   :  { %6478 = vmatprep.mubr.msk.f32.mxu1 %vm316_vm0, %v278_v62 }
 0x431   :  { %v4418_v17 = vmax.f32 %v3972_v49, 0.0  ;;  %v3230_v49 = vmax.f32 %v3024_v30, 0.0 }
 0x432   :  { %v3976_v33 = vpop.f32.mrb[226].mxu1 }
 0x433   :  { %v3977_v53 = vadd.f32 %v10907_v10, %v3976_v33  ;;  %v3978_v45 = vpop.f32.mrb[227].mxu1  ;;  %4240 = vmatmul.mubr.f32.gmra.mrb[76].mxu1 %v3224_v35  ;;  %7825 = vmatprep.mubr.f32.mxu0 %v4418_v17  ;;  %v3231_v33 = vmax.f32 %v3029_v23, 0.0 }
 0x434   :  { %6479 = vmatprep.mubr.msk.f32.mxu1 %vm316_vm0, %v279_v41  ;;  %v286_v45 = vld [vmem:[%s11987_s1 + $0x370] sm:$0xff] }
 0x435   :  { %v4419_v57 = vmax.f32 %v3977_v53, 0.0 }
 0x436   :  { %v3981_v8 = vpop.f32.mrb[228].mxu1 }
 0x437   :  { %v3982_v61 = vadd.f32 %v10907_v10, %v3981_v8  ;;  %v3983_v26 = vpop.f32.mrb[229].mxu1  ;;  %4245 = vmatmul.mubr.f32.gmra.mrb[78].mxu1 %v3225_v20  ;;  %7826 = vmatmul.mubr.f32.gmra.mrb[48].mxu0 %v4419_v57  ;;  %v5375_v57 = vld [vmem:[%s11998_s12 + $0xa8] sm:$0xff] }
 0x438   :  { %6480 = vmatprep.mubr.msk.f32.mxu1 %vm316_vm0, %v280_v63  ;;  %v8110_v6 = vpack.c.bf16 %v5375_v57, %v5374_v48  ;;  %v3232_v26 = vmax.f32 %v3034_v4, 0.0  ;;  %v12393_v57 = vld [vmem:[#allocation133_spill] sm:$0xff] }
 0x439   :  { %v4420_v12 = vmax.f32 %v3982_v61, 0.0  ;;  %v3039_v61 = vadd.f32 %v10861_v55, %v10622_v38 }
 0x43a   :  { %v3986_v25 = vpop.f32.mrb[230].mxu1  ;;  %8153 = vmatpush1.bf16.msra.mxu1 %v8110_v6  ;;  %8111 = vmatpush1.bf16.msra.mxu0 %v8110_v6 }
 0x43b   :  { %v3987_v14 = vadd.f32 %v10907_v10, %v3986_v25  ;;  %v3988_v42 = vpop.f32.mrb[231].mxu1  ;;  %4250 = vmatmul.mubr.f32.gmra.mrb[80].mxu1 %v3226_v19  ;;  %7828 = vmatprep.mubr.f32.mxu0 %v4420_v12  ;;  %v287_v19 = vld [vmem:[%s11987_s1 + $0x378] sm:$0xff] }
 0x43c   :  { %6481 = vmatprep.mubr.msk.f32.mxu1 %vm316_vm0, %v281_v11  ;;  %8138 = vmatprep.subr.bf16.mxu1 %v12387_v29  ;;  %v3233_v42 = vmax.f32 %v3039_v61, 0.0 }
 0x43d   :  { %v4421_v46 = vmax.f32 %v3987_v14, 0.0  ;;  %8112 = vmatprep.subr.bf16.mxu0 %v12387_v29 }
 0x43e   :  { %v3991_v28 = vpop.f32.mrb[232].mxu1 }
 0x43f   :  { %v3992_v5 = vadd.f32 %v10907_v10, %v3991_v28  ;;  %v3993_v34 = vpop.f32.mrb[233].mxu1  ;;  %4255 = vmatmul.mubr.f32.gmra.mrb[82].mxu1 %v3227_v15  ;;  %7829 = vmatmul.mubr.f32.gmra.mrb[50].mxu0 %v4421_v46  ;;  %v3044_v15 = vadd.f32 %v10861_v55, %v10636_v3  ;;  %v288_v46 = vld [vmem:[%s11987_s1 + $0x380] sm:$0xff]  ;;  %v289_v3 = vld [vmem:[%s11987_s1 + $0x388] sm:$0xff] }
 0x440   :  { %6482 = vmatprep.mubr.msk.f32.mxu1 %vm316_vm0, %v282_v40  ;;  %v3049_v34 = vadd.f32 %v10861_v55, %v10633_v51  ;;  %v3054_v51 = vadd.f32 %v10861_v55, %v10647_v44  ;;  %v291_v44 = vld [vmem:[%s11987_s1 + $0x398] sm:$0xff] }
 0x441   :  { %v4422_v60 = vmax.f32 %v3992_v5, 0.0  ;;  %v3234_v59 = vmax.f32 %v3044_v15, 0.0  ;;  %v294_v15 = vld [vmem:[%s11987_s1 + $0x3b0] sm:$0xff] }
 0x442   :  { %v3996_v31 = vpop.f32.mrb[234].mxu1  ;;  %v3236_v23 = vmax.f32 %v3054_v51, 0.0 }
 0x443   :  { %v3997_v52 = vadd.f32 %v10907_v10, %v3996_v31  ;;  %v3998_v7 = vpop.f32.mrb[235].mxu1  ;;  %4260 = vmatmul.mubr.f32.gmra.mrb[84].mxu1 %v3228_v43  ;;  %7831 = vmatprep.mubr.f32.mxu0 %v4422_v60 }
 0x444   :  { %6483 = vmatprep.mubr.msk.f32.mxu1 %vm316_vm0, %v283_v56 }
 0x445   :  { %v4423_v32 = vmax.f32 %v3997_v52, 0.0 }
 0x446   :  { %v4001_v62 = vpop.f32.mrb[236].mxu1 }
 0x447   :  { %v4002_v36 = vadd.f32 %v10907_v10, %v4001_v62  ;;  %v4003_v0 = vpop.f32.mrb[237].mxu1  ;;  %4265 = vmatmul.mubr.f32.gmra.mrb[86].mxu1 %v3229_v18  ;;  %7832 = vmatmul.mubr.f32.gmra.mrb[52].mxu0 %v4423_v32  ;;  %v3235_v18 = vmax.f32 %v3049_v34, 0.0  ;;  %v290_v32 = vld [vmem:[%s11987_s1 + $0x390] sm:$0xff]  ;;  %v3079_v34 = vadd.f32 %v10861_v55, %v10672_v21 }
 0x448   :  { %6484 = vmatprep.mubr.msk.f32.mxu1 %vm316_vm0, %v284_v1  ;;  %v3059_v0 = vadd.f32 %v10861_v55, %v10644_v22  ;;  %v3064_v22 = vadd.f32 %v10861_v55, %v10658_v50  ;;  %v293_v50 = vld [vmem:[%s11987_s1 + $0x3a8] sm:$0xff] }
 0x449   :  { %v4424_v27 = vmax.f32 %v4002_v36, 0.0  ;;  %v3241_v51 = vmax.f32 %v3079_v34, 0.0 }
 0x44a   :  { %v4006_v37 = vpop.f32.mrb[238].mxu1  ;;  %v11008_v2 = vpop.f32.mrb[0].mxu0 }
 0x44b   :  { %v4007_v35 = vadd.f32 %v10907_v10, %v4006_v37  ;;  %v4008_v17 = vpop.f32.mrb[239].mxu1  ;;  %4270 = vmatmul.mubr.f32.gmra.mrb[88].mxu1 %v3230_v49  ;;  %v11011_v41 = vpop.f32.mrb[1].mxu0  ;;  %7834 = vmatprep.mubr.f32.mxu0 %v4424_v27 }
 0x44c   :  { %6485 = vmatprep.mubr.msk.f32.mxu1 %vm316_vm0, %v285_v58 }
 0x44d   :  { %v4425_v53 = vmax.f32 %v4007_v35, 0.0 }
 0x44e   :  { %v4011_v20 = vpop.f32.mrb[240].mxu1 }
 0x44f   :  { %v4012_v63 = vadd.f32 %v10907_v10, %v4011_v20  ;;  %v4013_v8 = vpop.f32.mrb[241].mxu1  ;;  %4275 = vmatmul.mubr.f32.gmra.mrb[90].mxu1 %v3231_v33  ;;  %7835 = vmatmul.mubr.f32.gmra.mrb[54].mxu0 %v4425_v53  ;;  %v3237_v33 = vmax.f32 %v3059_v0, 0.0  ;;  %v292_v53 = vld [vmem:[%s11987_s1 + $0x3a0] sm:$0xff] }
 0x450   :  { %6486 = vmatprep.mubr.msk.f32.mxu1 %vm316_vm0, %v286_v45  ;;  %v3238_v8 = vmax.f32 %v3064_v22, 0.0 }
 0x451   :  { %v4426_v54 = vmax.f32 %v4012_v63, 0.0  ;;  %v3069_v63 = vadd.f32 %v10861_v55, %v12393_v57 }
 0x452   :  { %v4016_v12 = vpop.f32.mrb[242].mxu1  ;;  %v11032_v11 = vpop.f32.mrb[2].mxu0 }
 0x453   :  { %v4017_v25 = vadd.f32 %v10907_v10, %v4016_v12  ;;  %v4018_v14 = vpop.f32.mrb[243].mxu1  ;;  %4280 = vmatmul.mubr.f32.gmra.mrb[92].mxu1 %v3232_v26  ;;  %v11037_v38 = vpop.f32.mrb[3].mxu0  ;;  %7837 = vmatprep.mubr.f32.mxu0 %v4426_v54 }
 0x454   :  { %6487 = vmatprep.mubr.msk.f32.mxu1 %vm316_vm0, %v287_v19  ;;  %v3074_v14 = vadd.f32 %v10861_v55, %v10675_v16 }
 0x455   :  { %v4427_v39 = vmax.f32 %v4017_v25, 0.0  ;;  %v3239_v25 = vmax.f32 %v3069_v63, 0.0 }
 0x456   :  { %v4021_v40 = vpop.f32.mrb[244].mxu1 }
 0x457   :  { %v4022_v28 = vadd.f32 %v10907_v10, %v4021_v40  ;;  %v4023_v5 = vpop.f32.mrb[245].mxu1  ;;  %4285 = vmatmul.mubr.f32.gmra.mrb[94].mxu1 %v3233_v42  ;;  %7838 = vmatmul.mubr.f32.gmra.mrb[56].mxu0 %v4427_v39  ;;  %v5377_v40 = vld [vmem:[%s11998_s12 + $0xb8] sm:$0xff] }
 0x458   :  { %6488 = vmatprep.mubr.msk.f32.mxu1 %vm316_vm0, %v288_v46  ;;  %v5376_v46 = vld [vmem:[%s11998_s12 + $0xb0] sm:$0xff] }
 0x459   :  { %v4428_v43 = vmax.f32 %v4022_v28, 0.0  ;;  %v8113_v16 = vpack.c.bf16 %v5377_v40, %v5376_v46  ;;  %v3104_v46 = vadd.f32 %v10861_v55, %v10710_v47  ;;  %v301_v47 = vld [vmem:[%s11987_s1 + $0x3e8] sm:$0xff] }
 0x45a   :  { %v4026_v60 = vpop.f32.mrb[246].mxu1  ;;  %v11052_v56 = vpop.f32.mrb[4].mxu0 }
 0x45b   :  { %v4027_v31 = vadd.f32 %v10907_v10, %v4026_v60  ;;  %v4028_v52 = vpop.f32.mrb[247].mxu1  ;;  %4290 = vmatmul.mubr.f32.gmra.mrb[96].mxu1 %v3234_v59  ;;  %v11055_v7 = vpop.f32.mrb[5].mxu0  ;;  %7840 = vmatprep.mubr.f32.mxu0 %v4428_v43  ;;  %v3240_v59 = vmax.f32 %v3074_v14, 0.0 }
 0x45c   :  { %6489 = vmatprep.mubr.msk.f32.mxu1 %vm316_vm0, %v289_v3  ;;  %v295_v3 = vld [vmem:[%s11987_s1 + $0x3b8] sm:$0xff]  ;;  %8154 = vmatpush1.bf16.msra.mxu1 %v8113_v16 }
 0x45d   :  { %v4429_v30 = vmax.f32 %v4027_v31, 0.0  ;;  %8114 = vmatpush1.bf16.msra.mxu0 %v8113_v16  ;;  %8139 = vmatprep.subr.bf16.mxu1 %v12387_v29 }
 0x45e   :  { %v4031_v1 = vpop.f32.mrb[248].mxu1  ;;  %8115 = vmatprep.subr.bf16.mxu0 %v12387_v29 }
 0x45f   :  { %v4032_v62 = vadd.f32 %v10907_v10, %v4031_v1  ;;  %v4033_v36 = vpop.f32.mrb[249].mxu1  ;;  %4295 = vmatmul.mubr.f32.gmra.mrb[98].mxu1 %v3235_v18  ;;  %7841 = vmatmul.mubr.f32.gmra.mrb[58].mxu0 %v4429_v30  ;;  %v3084_v30 = vadd.f32 %v10861_v55, %v10688_v24  ;;  %v296_v1 = vld [vmem:[%s11987_s1 + $0x3c0] sm:$0xff]  ;;  %v297_v24 = vld [vmem:[%s11987_s1 + $0x3c8] sm:$0xff] }
 0x460   :  { %6490 = vmatprep.mubr.msk.f32.mxu1 %vm316_vm0, %v290_v32 }
 0x461   :  { %v4430_v49 = vmax.f32 %v4032_v62, 0.0 }
 0x462   :  { %v4036_v27 = vpop.f32.mrb[250].mxu1  ;;  %v11070_v58 = vpop.f32.mrb[6].mxu0 }
 0x463   :  { %v4037_v37 = vadd.f32 %v10907_v10, %v4036_v27  ;;  %v4038_v35 = vpop.f32.mrb[251].mxu1  ;;  %4300 = vmatmul.mubr.f32.gmra.mrb[100].mxu1 %v3236_v23  ;;  %v11073_v17 = vpop.f32.mrb[7].mxu0  ;;  %7843 = vmatprep.mubr.f32.mxu0 %v4430_v49  ;;  %v12394_v23 = vld [vmem:[#allocation134_spill] sm:$0xff] }
 0x464   :  { %6491 = vmatprep.mubr.msk.f32.mxu1 %vm316_vm0, %v291_v44  ;;  %v3089_v49 = vadd.f32 %v10861_v55, %v12394_v23  ;;  %v3242_v44 = vmax.f32 %v3084_v30, 0.0 }
 0x465   :  { %v4431_v4 = vmax.f32 %v4037_v37, 0.0 }
 0x466   :  { %v4041_v45 = vpop.f32.mrb[252].mxu1 }
 0x467   :  { %v4042_v20 = vadd.f32 %v10907_v10, %v4041_v45  ;;  %v4043_v48 = vpop.f32.mrb[253].mxu1  ;;  %4305 = vmatmul.mubr.f32.gmra.mrb[102].mxu1 %v3237_v33  ;;  %7844 = vmatmul.mubr.f32.gmra.mrb[60].mxu0 %v4431_v4  ;;  %v3094_v45 = vadd.f32 %v10861_v55, %v10699_v9  ;;  %v299_v9 = vld [vmem:[%s11987_s1 + $0x3d8] sm:$0xff] }
 0x468   :  { %6492 = vmatprep.mubr.msk.f32.mxu1 %vm316_vm0, %v292_v53  ;;  %v3243_v53 = vmax.f32 %v3089_v49, 0.0  ;;  %v298_v48 = vld [vmem:[%s11987_s1 + $0x3d0] sm:$0xff]  ;;  %v5378_v49 = vld [vmem:[%s11998_s12 + $0xc0] sm:$0xff] }
 0x469   :  { %v4432_v6 = vmax.f32 %v4042_v20, 0.0 }
 0x46a   :  { %v4046_v61 = vpop.f32.mrb[254].mxu1  ;;  %v11088_v26 = vpop.f32.mrb[8].mxu0 }
 0x46b   :  { %v4047_v54 = vadd.f32 %v10907_v10, %v4046_v61  ;;  %v4048_v19 = vpop.f32.mrb[255].mxu1  ;;  %4310 = vmatmul.mubr.f32.gmra.mrb[104].mxu1 %v3238_v8  ;;  %v11091_v12 = vpop.f32.mrb[9].mxu0  ;;  %7846 = vmatprep.mubr.f32.mxu0 %v4432_v6  ;;  %v12395_v6 = vld [vmem:[#allocation135_spill] sm:$0xff]  ;;  %v3244_v61 = vmax.f32 %v3094_v45, 0.0  ;;  %v303_v45 = vld [vmem:[%s11987_s1 + $0x3f8] sm:$0xff] }
 0x46c   :  { %6493 = vmatprep.mubr.msk.f32.mxu1 %vm316_vm0, %v293_v50  ;;  %v3099_v50 = vadd.f32 %v10861_v55, %v12395_v6 }
 0x46d   :  { %v4433_v42 = vmax.f32 %v4047_v54, 0.0 }
 0x46e   :  { %v4051_v39 = vpop.f32.mrb[0].mxu1 }
 0x46f   :  { %v4052_v28 = vadd.f32 %v10907_v10, %v4051_v39  ;;  %v4053_v5 = vpop.f32.mrb[1].mxu1  ;;  %4315 = vmatmul.mubr.f32.gmra.mrb[106].mxu1 %v3239_v25  ;;  %7847 = vmatmul.mubr.f32.gmra.mrb[62].mxu0 %v4433_v42  ;;  %v3245_v39 = vmax.f32 %v3099_v50, 0.0 }
 0x470   :  { %6494 = vmatprep.mubr.msk.f32.mxu1 %vm316_vm0, %v294_v15 }
 0x471   :  { %v4434_v43 = vmax.f32 %v4052_v28, 0.0  ;;  %v300_v28 = vld [vmem:[%s11987_s1 + $0x3e0] sm:$0xff] }
 0x472   :  { %v4056_v60 = vpop.f32.mrb[2].mxu1  ;;  %v11112_v31 = vpop.f32.mrb[10].mxu0 }
 0x473   :  { %v4057_v52 = vadd.f32 %v10907_v10, %v4056_v60  ;;  %v4058_v18 = vpop.f32.mrb[3].mxu1  ;;  %4320 = vmatmul.mubr.f32.gmra.mrb[108].mxu1 %v3240_v59  ;;  %v11117_v21 = vpop.f32.mrb[11].mxu0  ;;  %7849 = vmatprep.mubr.f32.mxu0 %v4434_v43  ;;  %v12396_v59 = vld [vmem:[#allocation136_spill] sm:$0xff] }
 0x474   :  { %6495 = vmatprep.mubr.msk.f32.mxu1 %vm316_vm0, %v295_v3  ;;  %v3109_v43 = vadd.f32 %v10861_v55, %v12396_v59  ;;  %v3246_v3 = vmax.f32 %v3104_v46, 0.0 }
 0x475   :  { %v4435_v32 = vmax.f32 %v4057_v52, 0.0 }
 0x476   :  { %v4061_v62 = vpop.f32.mrb[4].mxu1 }
 0x477   :  { %v4062_v36 = vadd.f32 %v10907_v10, %v4061_v62  ;;  %v4063_v0 = vpop.f32.mrb[5].mxu1  ;;  %4325 = vmatmul.mubr.f32.gmra.mrb[110].mxu1 %v3241_v51  ;;  %7850 = vmatmul.mubr.f32.gmra.mrb[64].mxu0 %v4435_v32  ;;  %v3114_v62 = vadd.f32 %v10861_v55, %v10721_v13 }
 0x478   :  { %6496 = vmatprep.mubr.msk.f32.mxu1 %vm316_vm0, %v296_v1  ;;  %v3247_v1 = vmax.f32 %v3109_v43, 0.0  ;;  %v302_v0 = vld [vmem:[%s11987_s1 + $0x3f0] sm:$0xff] }
 0x479   :  { %v4436_v27 = vmax.f32 %v4062_v36, 0.0 }
 0x47a   :  { %v4066_v37 = vpop.f32.mrb[6].mxu1  ;;  %v11132_v35 = vpop.f32.mrb[12].mxu0 }
 0x47b   :  { %v4067_v33 = vadd.f32 %v10907_v10, %v4066_v37  ;;  %v4068_v22 = vpop.f32.mrb[7].mxu1  ;;  %4330 = vmatmul.mubr.f32.gmra.mrb[112].mxu1 %v3242_v44  ;;  %v11135_v4 = vpop.f32.mrb[13].mxu0  ;;  %7852 = vmatprep.mubr.f32.mxu0 %v4436_v27  ;;  %v5379_v44 = vld [vmem:[%s11998_s12 + $0xc8] sm:$0xff]  ;;  %v12397_v37 = vld [vmem:[#allocation137_spill] sm:$0xff] }
 0x47c   :  { %6497 = vmatprep.mubr.msk.f32.mxu1 %vm316_vm0, %v297_v24  ;;  %v8116_v13 = vpack.c.bf16 %v5379_v44, %v5378_v49  ;;  %v3248_v22 = vmax.f32 %v3114_v62, 0.0 }
 0x47d   :  { %v4437_v20 = vmax.f32 %v4067_v33, 0.0  ;;  %v3119_v33 = vadd.f32 %v10861_v55, %v12397_v37 }
 0x47e   :  { %v4071_v57 = vpop.f32.mrb[8].mxu1  ;;  %8155 = vmatpush1.bf16.msra.mxu1 %v8116_v13  ;;  %8117 = vmatpush1.bf16.msra.mxu0 %v8116_v13 }
 0x47f   :  { %v4072_v63 = vadd.f32 %v10907_v10, %v4071_v57  ;;  %v4073_v8 = vpop.f32.mrb[9].mxu1  ;;  %4335 = vmatmul.mubr.f32.gmra.mrb[114].mxu1 %v3243_v53  ;;  %7853 = vmatmul.mubr.f32.gmra.mrb[66].mxu0 %v4437_v20 }
 0x480   :  { %6498 = vmatprep.mubr.msk.f32.mxu1 %vm316_vm0, %v298_v48  ;;  %8140 = vmatprep.subr.bf16.mxu1 %v12387_v29  ;;  %v3249_v8 = vmax.f32 %v3119_v33, 0.0  ;;  %v5380_v33 = vld [vmem:[%s11998_s12 + $0xd0] sm:$0xff] }
 0x481   :  { %v4438_v54 = vmax.f32 %v4072_v63, 0.0  ;;  %8118 = vmatprep.subr.bf16.mxu0 %v12387_v29 }
 0x482   :  { %v4076_v19 = vpop.f32.mrb[10].mxu1  ;;  %v11150_v25 = vpop.f32.mrb[14].mxu0 }
 0x483   :  { %v4077_v14 = vadd.f32 %v10907_v10, %v4076_v19  ;;  %v4078_v42 = vpop.f32.mrb[11].mxu1  ;;  %4340 = vmatmul.mubr.f32.gmra.mrb[116].mxu1 %v3244_v61  ;;  %v11153_v15 = vpop.f32.mrb[15].mxu0  ;;  %7855 = vmatprep.mubr.f32.mxu0 %v4438_v54 }
 0x484   :  { %6499 = vmatprep.mubr.msk.f32.mxu1 %vm316_vm0, %v299_v9  ;;  %v12398_v9 = vld [vmem:[#allocation71_spill] sm:$0xff] }
 0x485   :  { %v4439_v40 = vmax.f32 %v4077_v14, 0.0  ;;  %v12399_v19 = vmax.f32 %v12398_v9, 0.0 }
 0x486   :  { %v4081_v5 = vpop.f32.mrb[12].mxu1 }
 0x487   :  { %v4082_v16 = vadd.f32 %v10907_v10, %v4081_v5  ;;  %v4083_v34 = vpop.f32.mrb[13].mxu1  ;;  %4345 = vmatmul.mubr.f32.gmra.mrb[118].mxu1 %v3245_v39  ;;  %7856 = vmatmul.mubr.f32.gmra.mrb[68].mxu0 %v4439_v40 }
 0x488   :  { %6500 = vmatprep.mubr.msk.f32.mxu1 %vm316_vm0, %v300_v28 }
 0x489   :  { %v4440_v60 = vmax.f32 %v4082_v16, 0.0 }
 0x48a   :  { %v4086_v52 = vpop.f32.mrb[14].mxu1  ;;  %v11168_v18 = vpop.f32.mrb[16].mxu0 }
 0x48b   :  { %v4087_v51 = vadd.f32 %v10907_v10, %v4086_v52  ;;  %v4088_v30 = vpop.f32.mrb[15].mxu1  ;;  %4350 = vmatmul.mubr.f32.gmra.mrb[120].mxu1 %v3246_v3  ;;  %v11171_v32 = vpop.f32.mrb[17].mxu0  ;;  %7858 = vmatprep.mubr.f32.mxu0 %v4440_v60 }
 0x48c   :  { %6501 = vmatprep.mubr.msk.f32.mxu1 %vm316_vm0, %v301_v47 }
 0x48d   :  { %v4441_v36 = vmax.f32 %v4087_v51, 0.0 }
 0x48e   :  { %v4091_v23 = vpop.f32.mrb[16].mxu1 }
 0x48f   :  { %v4092_v27 = vadd.f32 %v10907_v10, %v4091_v23  ;;  %v4093_v24 = vpop.f32.mrb[17].mxu1  ;;  %4355 = vmatmul.mubr.f32.gmra.mrb[122].mxu1 %v3247_v1  ;;  %7859 = vmatmul.mubr.f32.gmra.mrb[70].mxu0 %v4441_v36 }
 0x490   :  { %6502 = vmatprep.mubr.msk.f32.mxu1 %vm316_vm0, %v302_v0 }
 0x491   :  { %v4442_v53 = vmax.f32 %v4092_v27, 0.0 }
 0x492   :  { %v4096_v20 = vpop.f32.mrb[18].mxu1  ;;  %v11192_v48 = vpop.f32.mrb[18].mxu0 }
 0x493   :  { %v4097_v57 = vadd.f32 %v10907_v10, %v4096_v20  ;;  %v4098_v63 = vpop.f32.mrb[19].mxu1  ;;  %4360 = vmatmul.mubr.f32.gmra.mrb[124].mxu1 %v3248_v22  ;;  %v11197_v55 = vpop.f32.mrb[19].mxu0  ;;  %7861 = vmatprep.mubr.f32.mxu0 %v4442_v53  ;;  %v5381_v22 = vld [vmem:[%s11998_s12 + $0xd8] sm:$0xff] }
 0x494   :  { %6503 = vmatprep.mubr.msk.f32.mxu1 %vm316_vm0, %v303_v45  ;;  %v8119_v20 = vpack.c.bf16 %v5381_v22, %v5380_v33 }
 0x495   :  { %v4443_v6 = vmax.f32 %v4097_v57, 0.0 }
 0x496   :  { %v4101_v50 = vpop.f32.mrb[20].mxu1  ;;  %8156 = vmatpush1.bf16.msra.mxu1 %v8119_v20  ;;  %8120 = vmatpush1.bf16.msra.mxu0 %v8119_v20 }
 0x497   :  { %v4102_v61 = vadd.f32 %v10907_v10, %v4101_v50  ;;  %v4103_v54 = vpop.f32.mrb[21].mxu1  ;;  %4365 = vmatmul.mubr.f32.gmra.mrb[126].mxu1 %v3249_v8  ;;  %7862 = vmatmul.mubr.f32.gmra.mrb[72].mxu0 %v4443_v6 }
 0x498   :  { %5792 = vmatprep.mubr.f32.mxu1 %v12399_v19  ;;  %8141 = vmatprep.subr.bf16.mxu1 %v12387_v29 }
 0x499   :  { %v4444_v14 = vmax.f32 %v4102_v61, 0.0  ;;  %8121 = vmatprep.subr.bf16.mxu0 %v12387_v29 }
 0x49a   :  { %v4106_v42 = vpop.f32.mrb[22].mxu1  ;;  %v11203_v39 = vpop.f32.mrb[20].mxu0 }
 0x49b   :  { %v4107_v46 = vadd.f32 %v10907_v10, %v4106_v42  ;;  %v4108_v40 = vpop.f32.mrb[23].mxu1  ;;  %v11206_v28 = vpop.f32.mrb[21].mxu0  ;;  %7864 = vmatprep.mubr.f32.mxu0 %v4444_v14 }
 0x49d   :  { %v4445_v5 = vmax.f32 %v4107_v46, 0.0 }
 0x49e   :  { %v4111_v16 = vpop.f32.mrb[24].mxu1 }
 0x49f   :  { %v4112_v34 = vadd.f32 %v10907_v10, %v4111_v16  ;;  %v4113_v59 = vpop.f32.mrb[25].mxu1  ;;  %7865 = vmatmul.mubr.f32.gmra.mrb[74].mxu0 %v4445_v5 }
 0x4a1   :  { %v4446_v43 = vmax.f32 %v4112_v34, 0.0 }
 0x4a2   :  { %v4116_v3 = vpop.f32.mrb[26].mxu1  ;;  %v11209_v60 = vpop.f32.mrb[22].mxu0 }
 0x4a3   :  { %v4117_v47 = vadd.f32 %v10907_v10, %v4116_v3  ;;  %v4118_v52 = vpop.f32.mrb[27].mxu1  ;;  %v11212_v51 = vpop.f32.mrb[23].mxu0  ;;  %7867 = vmatprep.mubr.f32.mxu0 %v4446_v43 }
 0x4a5   :  { %v4447_v30 = vmax.f32 %v4117_v47, 0.0 }
 0x4a6   :  { %v4121_v1 = vpop.f32.mrb[28].mxu1 }
 0x4a7   :  { %v4122_v62 = vadd.f32 %v10907_v10, %v4121_v1  ;;  %v4123_v36 = vpop.f32.mrb[29].mxu1  ;;  %7868 = vmatmul.mubr.f32.gmra.mrb[76].mxu0 %v4447_v30 }
 0x4a9   :  { %v4448_v0 = vmax.f32 %v4122_v62, 0.0 }
 0x4aa   :  { %v4126_v23 = vpop.f32.mrb[30].mxu1  ;;  %v11215_v49 = vpop.f32.mrb[24].mxu0 }
 0x4ab   :  { %v4127_v44 = vadd.f32 %v10907_v10, %v4126_v23  ;;  %v4128_v27 = vpop.f32.mrb[31].mxu1  ;;  %v11218_v24 = vpop.f32.mrb[25].mxu0  ;;  %7870 = vmatprep.mubr.f32.mxu0 %v4448_v0 }
 0x4ad   :  { %v4449_v13 = vmax.f32 %v4127_v44, 0.0 }
 0x4ae   :  { %v4131_v37 = vpop.f32.mrb[32].mxu1 }
 0x4af   :  { %v4132_v53 = vadd.f32 %v10907_v10, %v4131_v37  ;;  %v4133_v45 = vpop.f32.mrb[33].mxu1  ;;  %7871 = vmatmul.mubr.f32.gmra.mrb[78].mxu0 %v4449_v13 }
 0x4b1   :  { %v4450_v57 = vmax.f32 %v4132_v53, 0.0 }
 0x4b2   :  { %v4136_v63 = vpop.f32.mrb[34].mxu1  ;;  %v11227_v8 = vpop.f32.mrb[26].mxu0 }
 0x4b3   :  { %v4137_v6 = vadd.f32 %v10907_v10, %v4136_v63  ;;  %v4138_v50 = vpop.f32.mrb[35].mxu1  ;;  %v11232_v61 = vpop.f32.mrb[27].mxu0  ;;  %7873 = vmatprep.mubr.f32.mxu0 %v4450_v57  ;;  %v5382_v63 = vld [vmem:[%s11998_s12 + $0xe0] sm:$0xff] }
 0x4b5   :  { %v4451_v54 = vmax.f32 %v4137_v6, 0.0  ;;  %v5383_v6 = vld [vmem:[%s11998_s12 + $0xe8] sm:$0xff] }
 0x4b6   :  { %v4141_v9 = vpop.f32.mrb[36].mxu1 }
 0x4b7   :  { %v4142_v19 = vadd.f32 %v10907_v10, %v4141_v9  ;;  %v4143_v14 = vpop.f32.mrb[37].mxu1  ;;  %7874 = vmatmul.mubr.f32.gmra.mrb[80].mxu0 %v4451_v54  ;;  %v8122_v54 = vpack.c.bf16 %v5383_v6, %v5382_v63 }
 0x4b9   :  { %v4452_v42 = vmax.f32 %v4142_v19, 0.0  ;;  %8157 = vmatpush1.bf16.msra.mxu1 %v8122_v54  ;;  %8123 = vmatpush1.bf16.msra.mxu0 %v8122_v54 }
 0x4ba   :  { %v4146_v46 = vpop.f32.mrb[38].mxu1  ;;  %v11235_v40 = vpop.f32.mrb[28].mxu0  ;;  %8142 = vmatprep.subr.bf16.mxu1 %v12387_v29  ;;  %8124 = vmatprep.subr.bf16.mxu0 %v12387_v29 }
 0x4bb   :  { %v4147_v5 = vadd.f32 %v10907_v10, %v4146_v46  ;;  %v4148_v16 = vpop.f32.mrb[39].mxu1  ;;  %v11238_v34 = vpop.f32.mrb[29].mxu0  ;;  %7876 = vmatprep.mubr.f32.mxu0 %v4452_v42  ;;  %v5384_v42 = vld [vmem:[%s11998_s12 + $0xf0] sm:$0xff]  ;;  %v5385_v46 = vld [vmem:[%s11998_s12 + $0xf8] sm:$0xff] }
 0x4bd   :  { %v4453_v59 = vmax.f32 %v4147_v5, 0.0 }
 0x4be   :  { %v4151_v43 = vpop.f32.mrb[40].mxu1 }
 0x4bf   :  { %v4152_v3 = vadd.f32 %v10907_v10, %v4151_v43  ;;  %v4153_v47 = vpop.f32.mrb[41].mxu1  ;;  %7877 = vmatmul.mubr.f32.gmra.mrb[82].mxu0 %v4453_v59  ;;  %v8125_v59 = vpack.c.bf16 %v5385_v46, %v5384_v42 }
 0x4c1   :  { %v4454_v52 = vmax.f32 %v4152_v3, 0.0  ;;  %8158 = vmatpush1.bf16.msra.mxu1 %v8125_v59  ;;  %8126 = vmatpush1.bf16.msra.mxu0 %v8125_v59 }
 0x4c2   :  { %v4156_v30 = vpop.f32.mrb[42].mxu1  ;;  %v11241_v1 = vpop.f32.mrb[30].mxu0 }
 0x4c3   :  { %v4157_v62 = vadd.f32 %v10907_v10, %v4156_v30  ;;  %v4158_v36 = vpop.f32.mrb[43].mxu1  ;;  %v11244_v0 = vpop.f32.mrb[31].mxu0  ;;  %7879 = vmatprep.mubr.f32.mxu0 %v4454_v52 }
 0x4c5   :  { %v4455_v23 = vmax.f32 %v4157_v62, 0.0 }
 0x4c6   :  { %v4161_v44 = vpop.f32.mrb[44].mxu1 }
 0x4c7   :  { %v4162_v27 = vadd.f32 %v10907_v10, %v4161_v44  ;;  %v4163_v13 = vpop.f32.mrb[45].mxu1  ;;  %7880 = vmatmul.mubr.f32.gmra.mrb[84].mxu0 %v4455_v23 }
 0x4c9   :  { %v4456_v37 = vmax.f32 %v4162_v27, 0.0 }
 0x4ca   :  { %v4166_v33 = vpop.f32.mrb[46].mxu1  ;;  %v11247_v22 = vpop.f32.mrb[32].mxu0 }
 0x4cb   :  { %v4167_v53 = vadd.f32 %v10907_v10, %v4166_v33  ;;  %v4168_v45 = vpop.f32.mrb[47].mxu1  ;;  %v11250_v20 = vpop.f32.mrb[33].mxu0  ;;  %7882 = vmatprep.mubr.f32.mxu0 %v4456_v37 }
 0x4cd   :  { %v4457_v57 = vmax.f32 %v4167_v53, 0.0 }
 0x4ce   :  { %v4171_v50 = vpop.f32.mrb[48].mxu1 }
 0x4cf   :  { %v4172_v9 = vadd.f32 %v10907_v10, %v4171_v50  ;;  %v4173_v19 = vpop.f32.mrb[49].mxu1  ;;  %7883 = vmatmul.mubr.f32.gmra.mrb[86].mxu0 %v4457_v57 }
 0x4d1   :  { %v4458_v14 = vmax.f32 %v4172_v9, 0.0 }
 0x4d2   :  { %v4176_v5 = vpop.f32.mrb[50].mxu1  ;;  %v11267_v16 = vpop.f32.mrb[34].mxu0 }
 0x4d3   :  { %v4177_v43 = vadd.f32 %v10907_v10, %v4176_v5  ;;  %v4178_v3 = vpop.f32.mrb[51].mxu1  ;;  %v11270_v47 = vpop.f32.mrb[35].mxu0  ;;  %7885 = vmatprep.mubr.f32.mxu0 %v4458_v14 }
 0x4d5   :  { %v4459_v52 = vmax.f32 %v4177_v43, 0.0 }
 0x4d6   :  { %v4181_v30 = vpop.f32.mrb[52].mxu1 }
 0x4d7   :  { %v4182_v62 = vadd.f32 %v10907_v10, %v4181_v30  ;;  %v4183_v36 = vpop.f32.mrb[53].mxu1  ;;  %7886 = vmatmul.mubr.f32.gmra.mrb[88].mxu0 %v4459_v52  ;;  %v11290_v52 = vld [vmem:[%s11995_s9] ss:$0 sm:$0xff] }
 0x4d9   :  { %v4460_v23 = vmax.f32 %v4182_v62, 0.0 }
 0x4da   :  { %v4186_v29 = vpop.f32.mrb[54].mxu1  ;;  %v11273_v44 = vpop.f32.mrb[36].mxu0 }
 0x4db   :  { %v4187_v27 = vadd.f32 %v10907_v10, %v4186_v29  ;;  %v4188_v13 = vpop.f32.mrb[55].mxu1  ;;  %v11276_v37 = vpop.f32.mrb[37].mxu0  ;;  %7888 = vmatprep.mubr.f32.mxu0 %v4460_v23 }
 0x4dd   :  { %v4461_v33 = vmax.f32 %v4187_v27, 0.0 }
 0x4de   :  { %v4191_v53 = vpop.f32.mrb[56].mxu1 }
 0x4df   :  { %v4192_v45 = vadd.f32 %v10907_v10, %v4191_v53  ;;  %v4193_v57 = vpop.f32.mrb[57].mxu1  ;;  %7889 = vmatmul.mubr.f32.gmra.mrb[90].mxu0 %v4461_v33 }
 0x4e1   :  { %v4462_v63 = vmax.f32 %v4192_v45, 0.0 }
 0x4e2   :  { %v4196_v6 = vpop.f32.mrb[58].mxu1  ;;  %v11279_v50 = vpop.f32.mrb[38].mxu0 }
 0x4e3   :  { %v4197_v54 = vadd.f32 %v10907_v10, %v4196_v6  ;;  %v4198_v9 = vpop.f32.mrb[59].mxu1  ;;  %v11282_v19 = vpop.f32.mrb[39].mxu0  ;;  %7891 = vmatprep.mubr.f32.mxu0 %v4462_v63 }
 0x4e5   :  { %v4463_v14 = vmax.f32 %v4197_v54, 0.0 }
 0x4e6   :  { %v4201_v42 = vpop.f32.mrb[60].mxu1 }
 0x4e7   :  { %v4202_v46 = vadd.f32 %v10907_v10, %v4201_v42  ;;  %v4203_v5 = vpop.f32.mrb[61].mxu1  ;;  %7892 = vmatmul.mubr.f32.gmra.mrb[92].mxu0 %v4463_v14 }
 0x4e9   :  { %v4464_v59 = vmax.f32 %v4202_v46, 0.0 }
 0x4ea   :  { %v4206_v43 = vpop.f32.mrb[62].mxu1  ;;  %v11285_v3 = vpop.f32.mrb[40].mxu0 }
 0x4eb   :  { %v4207_v30 = vadd.f32 %v11290_v52, %v4206_v43  ;;  %v4208_v62 = vpop.f32.mrb[63].mxu1  ;;  %v11293_v36 = vpop.f32.mrb[41].mxu0  ;;  %7894 = vmatprep.mubr.f32.mxu0 %v4464_v59 }
 0x4ed   :  { %v4465_v23 = vmax.f32 %v4207_v30, 0.0 }
 0x4ee   :  { %v4211_v29 = vpop.f32.mrb[64].mxu1 }
 0x4ef   :  { %v4212_v10 = vadd.f32 %v11290_v52, %v4211_v29  ;;  %v4213_v27 = vpop.f32.mrb[65].mxu1  ;;  %7895 = vmatmul.mubr.f32.gmra.mrb[94].mxu0 %v4465_v23 }
 0x4f1   :  { %v4466_v13 = vmax.f32 %v4212_v10, 0.0 }
 0x4f2   :  { %v4216_v33 = vpop.f32.mrb[66].mxu1  ;;  %v11296_v53 = vpop.f32.mrb[42].mxu0 }
 0x4f3   :  { %v4217_v45 = vadd.f32 %v11290_v52, %v4216_v33  ;;  %v4218_v57 = vpop.f32.mrb[67].mxu1  ;;  %v11299_v63 = vpop.f32.mrb[43].mxu0  ;;  %7897 = vmatprep.mubr.f32.mxu0 %v4466_v13 }
 0x4f5   :  { %v4467_v6 = vmax.f32 %v4217_v45, 0.0 }
 0x4f6   :  { %v4221_v54 = vpop.f32.mrb[68].mxu1 }
 0x4f7   :  { %v4222_v9 = vadd.f32 %v11290_v52, %v4221_v54  ;;  %v4223_v14 = vpop.f32.mrb[69].mxu1  ;;  %7898 = vmatmul.mubr.f32.gmra.mrb[96].mxu0 %v4467_v6 }
 0x4f9   :  { %v4468_v42 = vmax.f32 %v4222_v9, 0.0 }
 0x4fa   :  { %v4226_v46 = vpop.f32.mrb[70].mxu1  ;;  %v11302_v5 = vpop.f32.mrb[44].mxu0 }
 0x4fb   :  { %12400 = vst [vmem:[#allocation133_spill] sm:$0xff] %v11302_v5  ;;  %v4227_v59 = vadd.f32 %v11290_v52, %v4226_v46  ;;  %v4228_v43 = vpop.f32.mrb[71].mxu1  ;;  %v11305_v30 = vpop.f32.mrb[45].mxu0  ;;  %7900 = vmatprep.mubr.f32.mxu0 %v4468_v42 }
 0x4fd   :  { %v4469_v62 = vmax.f32 %v4227_v59, 0.0 }
 0x4fe   :  { %v4231_v23 = vpop.f32.mrb[72].mxu1 }
 0x4ff   :  { %v4232_v29 = vadd.f32 %v11290_v52, %v4231_v23  ;;  %v4233_v10 = vpop.f32.mrb[73].mxu1  ;;  %7901 = vmatmul.mubr.f32.gmra.mrb[98].mxu0 %v4469_v62 }
 0x501   :  { %v4470_v27 = vmax.f32 %v4232_v29, 0.0 }
 0x502   :  { %v4236_v13 = vpop.f32.mrb[74].mxu1  ;;  %v11308_v33 = vpop.f32.mrb[46].mxu0 }
 0x503   :  { %12401 = vst [vmem:[#allocation134_spill] sm:$0xff] %v11308_v33  ;;  %v4237_v45 = vadd.f32 %v11290_v52, %v4236_v13  ;;  %v4238_v57 = vpop.f32.mrb[75].mxu1  ;;  %v11311_v6 = vpop.f32.mrb[47].mxu0  ;;  %7903 = vmatprep.mubr.f32.mxu0 %v4470_v27 }
 0x504   :  { %12402 = vst [vmem:[#allocation135_spill] sm:$0xff] %v11311_v6 }
 0x505   :  { %v4471_v54 = vmax.f32 %v4237_v45, 0.0 }
 0x506   :  { %v4241_v9 = vpop.f32.mrb[76].mxu1 }
 0x507   :  { %v4242_v14 = vadd.f32 %v11290_v52, %v4241_v9  ;;  %v4243_v42 = vpop.f32.mrb[77].mxu1  ;;  %7904 = vmatmul.mubr.f32.gmra.mrb[100].mxu0 %v4471_v54 }
 0x509   :  { %v4472_v46 = vmax.f32 %v4242_v14, 0.0 }
 0x50a   :  { %v4246_v59 = vpop.f32.mrb[78].mxu1  ;;  %v11314_v43 = vpop.f32.mrb[48].mxu0 }
 0x50b   :  { %12403 = vst [vmem:[#allocation136_spill] sm:$0xff] %v11314_v43  ;;  %v4247_v62 = vadd.f32 %v11290_v52, %v4246_v59  ;;  %v4248_v23 = vpop.f32.mrb[79].mxu1  ;;  %v11317_v29 = vpop.f32.mrb[49].mxu0  ;;  %7906 = vmatprep.mubr.f32.mxu0 %v4472_v46 }
 0x50c   :  { %12404 = vst [vmem:[#allocation137_spill] sm:$0xff] %v11317_v29 }
 0x50d   :  { %v4473_v10 = vmax.f32 %v4247_v62, 0.0 }
 0x50e   :  { %v4251_v13 = vpop.f32.mrb[80].mxu1 }
 0x50f   :  { %v4252_v27 = vadd.f32 %v11290_v52, %v4251_v13  ;;  %v4253_v45 = vpop.f32.mrb[81].mxu1  ;;  %7907 = vmatmul.mubr.f32.gmra.mrb[102].mxu0 %v4473_v10 }
 0x511   :  { %v4474_v57 = vmax.f32 %v4252_v27, 0.0 }
 0x512   :  { %v4256_v9 = vpop.f32.mrb[82].mxu1  ;;  %v11320_v42 = vpop.f32.mrb[50].mxu0 }
 0x513   :  { %12405 = vst [vmem:[#allocation71_spill] sm:$0xff] %v11320_v42  ;;  %v4257_v54 = vadd.f32 %v11290_v52, %v4256_v9  ;;  %v4258_v14 = vpop.f32.mrb[83].mxu1  ;;  %v11323_v43 = vpop.f32.mrb[51].mxu0  ;;  %7909 = vmatprep.mubr.f32.mxu0 %v4474_v57 }
 0x514   :  { %12406 = vst [vmem:[#allocation138_spill] sm:$0xff] %v11323_v43 }
 0x515   :  { %v4475_v59 = vmax.f32 %v4257_v54, 0.0 }
 0x516   :  { %v4261_v23 = vpop.f32.mrb[84].mxu1 }
 0x517   :  { %v4262_v46 = vadd.f32 %v11290_v52, %v4261_v23  ;;  %v4263_v62 = vpop.f32.mrb[85].mxu1  ;;  %7910 = vmatmul.mubr.f32.gmra.mrb[104].mxu0 %v4475_v59 }
 0x519   :  { %v4476_v29 = vmax.f32 %v4262_v46, 0.0 }
 0x51a   :  { %v4266_v13 = vpop.f32.mrb[86].mxu1  ;;  %v11326_v45 = vpop.f32.mrb[52].mxu0 }
 0x51b   :  { %12407 = vst [vmem:[#allocation139_spill] sm:$0xff] %v11326_v45  ;;  %v4267_v10 = vadd.f32 %v11290_v52, %v4266_v13  ;;  %v4268_v27 = vpop.f32.mrb[87].mxu1  ;;  %v11329_v42 = vpop.f32.mrb[53].mxu0  ;;  %7912 = vmatprep.mubr.f32.mxu0 %v4476_v29 }
 0x51c   :  { %12408 = vst [vmem:[#allocation140_spill] sm:$0xff] %v11329_v42 }
 0x51d   :  { %v4477_v9 = vmax.f32 %v4267_v10, 0.0 }
 0x51e   :  { %v4271_v14 = vpop.f32.mrb[88].mxu1 }
 0x51f   :  { %v4272_v57 = vadd.f32 %v11290_v52, %v4271_v14  ;;  %v4273_v54 = vpop.f32.mrb[89].mxu1  ;;  %7913 = vmatmul.mubr.f32.gmra.mrb[106].mxu0 %v4477_v9 }
 0x521   :  { %v4478_v43 = vmax.f32 %v4272_v57, 0.0 }
 0x522   :  { %v4276_v23 = vpop.f32.mrb[90].mxu1  ;;  %v11332_v62 = vpop.f32.mrb[54].mxu0 }
 0x523   :  { %12409 = vst [vmem:[#allocation141_spill] sm:$0xff] %v11332_v62  ;;  %v4277_v59 = vadd.f32 %v11290_v52, %v4276_v23  ;;  %v4278_v46 = vpop.f32.mrb[91].mxu1  ;;  %v11335_v45 = vpop.f32.mrb[55].mxu0  ;;  %7915 = vmatprep.mubr.f32.mxu0 %v4478_v43 }
 0x524   :  { %12410 = vst [vmem:[#allocation142_spill] sm:$0xff] %v11335_v45 }
 0x525   :  { %v4479_v13 = vmax.f32 %v4277_v59, 0.0 }
 0x526   :  { %v4281_v27 = vpop.f32.mrb[92].mxu1 }
 0x527   :  { %v4282_v29 = vadd.f32 %v11290_v52, %v4281_v27  ;;  %v4283_v10 = vpop.f32.mrb[93].mxu1  ;;  %7916 = vmatmul.mubr.f32.gmra.mrb[108].mxu0 %v4479_v13 }
 0x529   :  { %v4480_v42 = vmax.f32 %v4282_v29, 0.0 }
 0x52a   :  { %v4286_v14 = vpop.f32.mrb[94].mxu1  ;;  %v11338_v54 = vpop.f32.mrb[56].mxu0 }
 0x52b   :  { %12411 = vst [vmem:[#allocation143_spill] sm:$0xff] %v11338_v54  ;;  %v4287_v9 = vadd.f32 %v11290_v52, %v4286_v14  ;;  %v4288_v57 = vpop.f32.mrb[95].mxu1  ;;  %v11341_v62 = vpop.f32.mrb[57].mxu0  ;;  %7918 = vmatprep.mubr.f32.mxu0 %v4480_v42 }
 0x52c   :  { %12412 = vst [vmem:[#allocation144_spill] sm:$0xff] %v11341_v62 }
 0x52d   :  { %v4481_v23 = vmax.f32 %v4287_v9, 0.0 }
 0x52e   :  { %v4291_v46 = vpop.f32.mrb[96].mxu1 }
 0x52f   :  { %v4292_v43 = vadd.f32 %v11290_v52, %v4291_v46  ;;  %v4293_v59 = vpop.f32.mrb[97].mxu1  ;;  %7919 = vmatmul.mubr.f32.gmra.mrb[110].mxu0 %v4481_v23 }
 0x531   :  { %v4482_v45 = vmax.f32 %v4292_v43, 0.0 }
 0x532   :  { %v4296_v27 = vpop.f32.mrb[98].mxu1  ;;  %v11344_v10 = vpop.f32.mrb[58].mxu0 }
 0x533   :  { %12413 = vst [vmem:[#allocation145_spill] sm:$0xff] %v11344_v10  ;;  %v4297_v13 = vadd.f32 %v11290_v52, %v4296_v27  ;;  %v4298_v29 = vpop.f32.mrb[99].mxu1  ;;  %v11347_v54 = vpop.f32.mrb[59].mxu0  ;;  %7921 = vmatprep.mubr.f32.mxu0 %v4482_v45 }
 0x534   :  { %12414 = vst [vmem:[#allocation146_spill] sm:$0xff] %v11347_v54 }
 0x535   :  { %v4483_v14 = vmax.f32 %v4297_v13, 0.0 }
 0x536   :  { %v4301_v57 = vpop.f32.mrb[100].mxu1 }
 0x537   :  { %v4302_v42 = vadd.f32 %v11290_v52, %v4301_v57  ;;  %v4303_v9 = vpop.f32.mrb[101].mxu1  ;;  %7922 = vmatmul.mubr.f32.gmra.mrb[112].mxu0 %v4483_v14 }
 0x539   :  { %v4484_v62 = vmax.f32 %v4302_v42, 0.0 }
 0x53a   :  { %v4306_v46 = vpop.f32.mrb[102].mxu1  ;;  %v11350_v59 = vpop.f32.mrb[60].mxu0 }
 0x53b   :  { %12415 = vst [vmem:[#allocation147_spill] sm:$0xff] %v11350_v59  ;;  %v4307_v23 = vadd.f32 %v11290_v52, %v4306_v46  ;;  %v4308_v43 = vpop.f32.mrb[103].mxu1  ;;  %v11353_v10 = vpop.f32.mrb[61].mxu0  ;;  %7924 = vmatprep.mubr.f32.mxu0 %v4484_v62 }
 0x53c   :  { %12416 = vst [vmem:[#allocation148_spill] sm:$0xff] %v11353_v10 }
 0x53d   :  { %v4485_v27 = vmax.f32 %v4307_v23, 0.0 }
 0x53e   :  { %v4311_v29 = vpop.f32.mrb[104].mxu1 }
 0x53f   :  { %v4312_v45 = vadd.f32 %v11290_v52, %v4311_v29  ;;  %v4313_v13 = vpop.f32.mrb[105].mxu1  ;;  %7925 = vmatmul.mubr.f32.gmra.mrb[114].mxu0 %v4485_v27 }
 0x541   :  { %v4486_v54 = vmax.f32 %v4312_v45, 0.0 }
 0x542   :  { %v4316_v57 = vpop.f32.mrb[106].mxu1  ;;  %v11356_v9 = vpop.f32.mrb[62].mxu0 }
 0x543   :  { %12417 = vst [vmem:[#allocation149_spill] sm:$0xff] %v11356_v9  ;;  %v4317_v14 = vadd.f32 %v11290_v52, %v4316_v57  ;;  %v4318_v42 = vpop.f32.mrb[107].mxu1  ;;  %v11359_v59 = vpop.f32.mrb[63].mxu0  ;;  %7927 = vmatprep.mubr.f32.mxu0 %v4486_v54 }
 0x544   :  { %12418 = vst [vmem:[#allocation150_spill] sm:$0xff] %v11359_v59 }
 0x545   :  { %v4487_v46 = vmax.f32 %v4317_v14, 0.0 }
 0x546   :  { %v4321_v43 = vpop.f32.mrb[108].mxu1 }
 0x547   :  { %v4322_v62 = vadd.f32 %v11290_v52, %v4321_v43  ;;  %v4323_v23 = vpop.f32.mrb[109].mxu1  ;;  %7928 = vmatmul.mubr.f32.gmra.mrb[116].mxu0 %v4487_v46  ;;  %v11371_v46 = vld [vmem:[%s11997_s11] ss:$0 sm:$0xff] }
 0x549   :  { %v4488_v10 = vmax.f32 %v4322_v62, 0.0 }
 0x54a   :  { %v4326_v29 = vpop.f32.mrb[110].mxu1  ;;  %v11362_v13 = vpop.f32.mrb[64].mxu0 }
 0x54b   :  { %12419 = vst [vmem:[#allocation151_spill] sm:$0xff] %v11362_v13  ;;  %v4327_v27 = vadd.f32 %v11290_v52, %v4326_v29  ;;  %v4328_v45 = vpop.f32.mrb[111].mxu1  ;;  %v11365_v9 = vpop.f32.mrb[65].mxu0  ;;  %7930 = vmatprep.mubr.f32.mxu0 %v4488_v10  ;;  %v12422_v13 = vld [vmem:[#allocation73_spill] sm:$0xff] }
 0x54c   :  { %12420 = vst [vmem:[#allocation152_spill] sm:$0xff] %v11365_v9  ;;  %v12423_v9 = vmax.f32 %v12422_v13, 0.0  ;;  %v12424_v13 = vld [vmem:[#allocation74_spill] sm:$0xff] }
 0x54d   :  { %v4489_v57 = vmax.f32 %v4327_v27, 0.0 }
 0x54e   :  { %v4331_v42 = vpop.f32.mrb[112].mxu1 }
 0x54f   :  { %v4332_v54 = vadd.f32 %v11290_v52, %v4331_v42  ;;  %v4333_v14 = vpop.f32.mrb[113].mxu1  ;;  %7931 = vmatmul.mubr.f32.gmra.mrb[118].mxu0 %v4489_v57 }
 0x551   :  { %v4490_v59 = vmax.f32 %v4332_v54, 0.0 }
 0x552   :  { %v4336_v43 = vpop.f32.mrb[114].mxu1  ;;  %v7854_v62 = vpop.f32.mrb[66].mxu0 }
 0x553   :  { %v4337_v23 = vadd.f32 %v11290_v52, %v4336_v43  ;;  %v4923_v29 = vadd.f32 %v7854_v62, %v11371_v46  ;;  %v4338_v45 = vpop.f32.mrb[115].mxu1  ;;  %v11375_v10 = vpop.f32.mrb[67].mxu0  ;;  %7933 = vmatprep.mubr.f32.mxu0 %v4490_v59 }
 0x554   :  { %12421 = vst [vmem:[#allocation153_spill] sm:$0xff] %v11375_v10 }
 0x555   :  { %v4491_v27 = vmax.f32 %v4337_v23, 0.0  ;;  %v5293_v42 = vmax.f32 %v4923_v29, 0.0 }
 0x556   :  { %v4341_v14 = vpop.f32.mrb[116].mxu1 }
 0x557   :  { %v4342_v57 = vadd.f32 %v11290_v52, %v4341_v14  ;;  %v4343_v54 = vpop.f32.mrb[117].mxu1  ;;  %7934 = vmatmul.mubr.f32.gmra.mrb[120].mxu0 %v4491_v27  ;;  %5793 = vmatmul.mubr.f32.vlgmr.msra.gmra.mrb[128].mxu1 %v5293_v42 }
 0x558   :  { %5797 = vmatprep.mubr.f32.mxu1 %v12423_v9 }
 0x559   :  { %v4492_v33 = vmax.f32 %v4342_v57, 0.0  ;;  %v12425_v57 = vmax.f32 %v12424_v13, 0.0 }
 0x55a   :  { %v4346_v6 = vpop.f32.mrb[118].mxu1  ;;  %v7857_v43 = vpop.f32.mrb[68].mxu0 }
 0x55b   :  { %v4347_v62 = vadd.f32 %v11290_v52, %v4346_v6  ;;  %v4348_v45 = vpop.f32.mrb[119].mxu1  ;;  %v4927_v5 = vpop.f32.mrb[69].mxu0  ;;  %7936 = vmatprep.mubr.f32.mxu0 %v4492_v33  ;;  %v4933_v29 = vadd.f32 %v7857_v43, %v11371_v46 }
 0x55c   :  { %v4928_v59 = vadd.f32 %v11371_v46, %v4927_v5 }
 0x55d   :  { %v4493_v23 = vmax.f32 %v4347_v62, 0.0  ;;  %v5295_v6 = vmax.f32 %v4933_v29, 0.0 }
 0x55e   :  { %v5294_v14 = vmax.f32 %v4928_v59, 0.0  ;;  %v4351_v54 = vpop.f32.mrb[120].mxu1 }
 0x55f   :  { %v4352_v27 = vadd.f32 %v11290_v52, %v4351_v54  ;;  %v4353_v42 = vpop.f32.mrb[121].mxu1  ;;  %7937 = vmatmul.mubr.f32.gmra.mrb[122].mxu0 %v4493_v23  ;;  %v12426_v54 = vld [vmem:[#allocation75_spill] sm:$0xff] }
 0x560   :  { %5798 = vmatmul.mubr.f32.gmra.mrb[130].mxu1 %v5294_v14  ;;  %v12427_v42 = vmax.f32 %v12426_v54, 0.0 }
 0x561   :  { %v4494_v9 = vmax.f32 %v4352_v27, 0.0  ;;  %5802 = vmatprep.mubr.f32.mxu1 %v12425_v57 }
 0x562   :  { %v4356_v45 = vpop.f32.mrb[122].mxu1  ;;  %v7860_v10 = vpop.f32.mrb[70].mxu0 }
 0x563   :  { %v4357_v33 = vadd.f32 %v11290_v52, %v4356_v45  ;;  %v4358_v5 = vpop.f32.mrb[123].mxu1  ;;  %v4937_v62 = vpop.f32.mrb[71].mxu0  ;;  %7939 = vmatprep.mubr.f32.mxu0 %v4494_v9  ;;  %v4943_v23 = vadd.f32 %v7860_v10, %v11371_v46  ;;  %v12428_v45 = vld [vmem:[#allocation76_spill] sm:$0xff] }
 0x564   :  { %v4938_v43 = vadd.f32 %v11371_v46, %v4937_v62  ;;  %5803 = vmatmul.mubr.f32.gmra.mrb[132].mxu1 %v5295_v6  ;;  %v12429_v5 = vmax.f32 %v12428_v45, 0.0 }
 0x565   :  { %v4495_v59 = vmax.f32 %v4357_v33, 0.0  ;;  %5807 = vmatprep.mubr.f32.mxu1 %v12427_v42  ;;  %v5297_v9 = vmax.f32 %v4943_v23, 0.0 }
 0x566   :  { %v5296_v14 = vmax.f32 %v4938_v43, 0.0  ;;  %v4361_v27 = vpop.f32.mrb[124].mxu1  ;;  %v4588_v43 = vadd.f32 %v11371_v46, %v11011_v41 }
 0x567   :  { %v4362_v29 = vadd.f32 %v11290_v52, %v4361_v27  ;;  %v4363_v13 = vpop.f32.mrb[125].mxu1  ;;  %7940 = vmatmul.mubr.f32.gmra.mrb[124].mxu0 %v4495_v59 }
 0x568   :  { %5808 = vmatmul.mubr.f32.gmra.mrb[134].mxu1 %v5296_v14  ;;  %v12430_v14 = vld [vmem:[#allocation77_spill] sm:$0xff]  ;;  %v12432_v13 = vld [vmem:[#allocation6_spill] sm:$0xff] }
 0x569   :  { %v4496_v57 = vmax.f32 %v4362_v29, 0.0  ;;  %5812 = vmatprep.mubr.f32.mxu1 %v12429_v5  ;;  %v12431_v27 = vmax.f32 %v12430_v14, 0.0  ;;  %v12433_v45 = vmax.f32 %v12432_v13, 0.0  ;;  %v12434_v5 = vld [vmem:[#allocation78_spill] sm:$0xff]  ;;  %v12438_v14 = vld [vmem:[#allocation79_spill] sm:$0xff]  ;;  %v4603_v13 = vadd.f32 %v11032_v11, %v11371_v46 }
 0x56a   :  { %v4366_v62 = vpop.f32.mrb[126].mxu1  ;;  %v7863_v6 = vpop.f32.mrb[72].mxu0 }
 0x56b   :  { %v4367_v33 = vadd.f32 %v11290_v52, %v4366_v62  ;;  %v4368_v54 = vpop.f32.mrb[127].mxu1  ;;  %v4947_v42 = vpop.f32.mrb[73].mxu0  ;;  %7942 = vmatprep.mubr.f32.mxu0 %v4496_v57  ;;  %v4953_v29 = vadd.f32 %v7863_v6, %v11371_v46  ;;  %v4593_v52 = vadd.f32 %v11008_v2, %v11371_v46  ;;  %v5226_v57 = vmax.f32 %v4588_v43, 0.0  ;;  %v12436_v6 = vld [vmem:[#allocation5_spill] sm:$0xff] }
 0x56c   :  { %v4948_v10 = vadd.f32 %v11371_v46, %v4947_v42  ;;  %5813 = vmatmul.mubr.f32.gmra.mrb[136].mxu1 %v5297_v9  ;;  %v12435_v9 = vmax.f32 %v12434_v5, 0.0  ;;  %v12437_v42 = vmax.f32 %v12436_v6, 0.0  ;;  %v12439_v2 = vmax.f32 %v12438_v14, 0.0  ;;  %v12448_v14 = vld [vmem:[#allocation10_spill] sm:$0xff] }
 0x56d   :  { %v4497_v59 = vmax.f32 %v4367_v33, 0.0  ;;  %5817 = vmatprep.mubr.f32.mxu1 %v12431_v27  ;;  %v5299_v41 = vmax.f32 %v4953_v29, 0.0  ;;  %v12440_v29 = vld [vmem:[#allocation8_spill] sm:$0xff]  ;;  %v4608_v6 = vadd.f32 %v11371_v46, %v11055_v7 }
 0x56e   :  { %v5298_v23 = vmax.f32 %v4948_v10, 0.0  ;;  %v5227_v10 = vmax.f32 %v4593_v52, 0.0 }
 0x56f   :  { %7943 = vmatmul.mubr.f32.gmra.mrb[126].mxu0 %v4497_v59  ;;  %v4598_v59 = vadd.f32 %v11371_v46, %v11037_v38 }
 0x570   :  { %5457 = vmatprep.mubr.f32.mxu0 %v12433_v45  ;;  %5818 = vmatmul.mubr.f32.gmra.mrb[138].mxu1 %v5298_v23  ;;  %v12441_v23 = vmax.f32 %v12440_v29, 0.0  ;;  %v12450_v29 = vld [vmem:[#allocation82_spill] sm:$0xff] }
 0x571   :  { %5822 = vmatprep.mubr.f32.mxu1 %v12435_v9  ;;  %v5228_v45 = vmax.f32 %v4598_v59, 0.0 }
 0x572   :  { %v7866_v62 = vpop.f32.mrb[74].mxu0 }
 0x573   :  { %v4957_v33 = vpop.f32.mrb[75].mxu0  ;;  %5458 = vmatmul.mubr.f32.vlgmr.msra.gmra.mrb[128].mxu0 %v5226_v57  ;;  %v4963_v43 = vadd.f32 %v7866_v62, %v11371_v46  ;;  %v12442_v57 = vld [vmem:[#allocation80_spill] sm:$0xff]  ;;  %v12444_v62 = vld [vmem:[#allocation7_spill] sm:$0xff] }
 0x574   :  { %v4958_v54 = vadd.f32 %v11371_v46, %v4957_v33  ;;  %5462 = vmatprep.mubr.f32.mxu0 %v12437_v42  ;;  %5823 = vmatmul.mubr.f32.gmra.mrb[140].mxu1 %v5299_v41  ;;  %v12443_v52 = vmax.f32 %v12442_v57, 0.0  ;;  %v12445_v33 = vmax.f32 %v12444_v62, 0.0  ;;  %v12446_v42 = vld [vmem:[#allocation81_spill] sm:$0xff] }
 0x575   :  { %5827 = vmatprep.mubr.f32.mxu1 %v12439_v2  ;;  %v5301_v5 = vmax.f32 %v4963_v43, 0.0  ;;  %v12447_v11 = vmax.f32 %v12446_v42, 0.0  ;;  %v12449_v2 = vmax.f32 %v12448_v14, 0.0  ;;  %v4613_v43 = vadd.f32 %v11052_v56, %v11371_v46 }
 0x576   :  { %v5300_v27 = vmax.f32 %v4958_v54, 0.0  ;;  %v5229_v54 = vmax.f32 %v4603_v13, 0.0  ;;  %v4623_v42 = vadd.f32 %v11070_v58, %v11371_v46 }
 0x577   :  { %5463 = vmatmul.mubr.f32.gmra.mrb[130].mxu0 %v5227_v10 }
 0x578   :  { %5467 = vmatprep.mubr.f32.mxu0 %v12441_v23  ;;  %5828 = vmatmul.mubr.f32.gmra.mrb[142].mxu1 %v5300_v27  ;;  %v5230_v27 = vmax.f32 %v4608_v6, 0.0  ;;  %v12451_v23 = vmax.f32 %v12450_v29, 0.0 }
 0x579   :  { %5832 = vmatprep.mubr.f32.mxu1 %v12443_v52  ;;  %v12452_v52 = vld [vmem:[#allocation9_spill] sm:$0xff] }
 0x57a   :  { %v7869_v38 = vpop.f32.mrb[76].mxu0 }
 0x57b   :  { %v4967_v9 = vpop.f32.mrb[77].mxu0  ;;  %5468 = vmatmul.mubr.f32.gmra.mrb[132].mxu0 %v5228_v45  ;;  %v4973_v10 = vadd.f32 %v7869_v38, %v11371_v46  ;;  %v5231_v38 = vmax.f32 %v4613_v43, 0.0 }
 0x57c   :  { %v4968_v41 = vadd.f32 %v11371_v46, %v4967_v9  ;;  %5472 = vmatprep.mubr.f32.mxu0 %v12445_v33  ;;  %5833 = vmatmul.mubr.f32.gmra.mrb[144].mxu1 %v5301_v5  ;;  %v12453_v5 = vmax.f32 %v12452_v52, 0.0  ;;  %v4618_v9 = vadd.f32 %v11371_v46, %v11073_v17  ;;  %v12464_v52 = vld [vmem:[#allocation14_spill] sm:$0xff] }
 0x57d   :  { %5837 = vmatprep.mubr.f32.mxu1 %v12447_v11  ;;  %v5303_v13 = vmax.f32 %v4973_v10, 0.0  ;;  %v12458_v10 = vld [vmem:[#allocation84_spill] sm:$0xff] }
 0x57e   :  { %v5302_v59 = vmax.f32 %v4968_v41, 0.0  ;;  %v12454_v41 = vld [vmem:[#allocation83_spill] sm:$0xff]  ;;  %v5232_v11 = vmax.f32 %v4618_v9, 0.0 }
 0x57f   :  { %5473 = vmatmul.mubr.f32.gmra.mrb[134].mxu0 %v5229_v54  ;;  %v12455_v56 = vmax.f32 %v12454_v41, 0.0  ;;  %v12456_v54 = vld [vmem:[#allocation12_spill] sm:$0xff]  ;;  %v12466_v41 = vld [vmem:[#allocation86_spill] sm:$0xff] }
 0x580   :  { %5477 = vmatprep.mubr.f32.mxu0 %v12449_v2  ;;  %5838 = vmatmul.mubr.f32.gmra.mrb[146].mxu1 %v5302_v59  ;;  %v12457_v6 = vmax.f32 %v12456_v54, 0.0  ;;  %v12459_v59 = vmax.f32 %v12458_v10, 0.0  ;;  %v4638_v10 = vadd.f32 %v11371_v46, %v11117_v21 }
 0x581   :  { %5842 = vmatprep.mubr.f32.mxu1 %v12451_v23  ;;  %v5233_v23 = vmax.f32 %v4623_v42, 0.0 }
 0x582   :  { %v7872_v7 = vpop.f32.mrb[78].mxu0 }
 0x583   :  { %v4977_v45 = vpop.f32.mrb[79].mxu0  ;;  %5478 = vmatmul.mubr.f32.gmra.mrb[136].mxu0 %v5230_v27  ;;  %v4983_v62 = vadd.f32 %v7872_v7, %v11371_v46  ;;  %v12460_v27 = vld [vmem:[#allocation11_spill] sm:$0xff]  ;;  %v12462_v7 = vld [vmem:[#allocation85_spill] sm:$0xff] }
 0x584   :  { %v4978_v57 = vadd.f32 %v11371_v46, %v4977_v45  ;;  %5482 = vmatprep.mubr.f32.mxu0 %v12453_v5  ;;  %5843 = vmatmul.mubr.f32.gmra.mrb[148].mxu1 %v5303_v13  ;;  %v12461_v29 = vmax.f32 %v12460_v27, 0.0  ;;  %v4628_v13 = vadd.f32 %v11371_v46, %v11091_v12  ;;  %v12463_v58 = vmax.f32 %v12462_v7, 0.0 }
 0x585   :  { %5847 = vmatprep.mubr.f32.mxu1 %v12455_v56  ;;  %v5305_v14 = vmax.f32 %v4983_v62, 0.0  ;;  %v12465_v5 = vmax.f32 %v12464_v52, 0.0  ;;  %v12467_v56 = vmax.f32 %v12466_v41, 0.0  ;;  %v4643_v27 = vadd.f32 %v11112_v31, %v11371_v46 }
 0x586   :  { %v5304_v33 = vmax.f32 %v4978_v57, 0.0  ;;  %v5234_v9 = vmax.f32 %v4628_v13, 0.0 }
 0x587   :  { %5483 = vmatmul.mubr.f32.gmra.mrb[138].mxu0 %v5231_v38  ;;  %v4633_v38 = vadd.f32 %v11088_v26, %v11371_v46 }
 0x588   :  { %5487 = vmatprep.mubr.f32.mxu0 %v12457_v6  ;;  %5848 = vmatmul.mubr.f32.gmra.mrb[150].mxu1 %v5304_v33  ;;  %v12468_v6 = vld [vmem:[#allocation13_spill] sm:$0xff] }
 0x589   :  { %5852 = vmatprep.mubr.f32.mxu1 %v12459_v59  ;;  %v12469_v42 = vmax.f32 %v12468_v6, 0.0  ;;  %v12470_v59 = vld [vmem:[#allocation87_spill] sm:$0xff]  ;;  %v12482_v6 = vld [vmem:[#allocation90_spill] sm:$0xff] }
 0x58a   :  { %v7875_v17 = vpop.f32.mrb[80].mxu0  ;;  %v12471_v26 = vmax.f32 %v12470_v59, 0.0 }
 0x58b   :  { %v4987_v2 = vpop.f32.mrb[81].mxu0  ;;  %5488 = vmatmul.mubr.f32.gmra.mrb[140].mxu0 %v5232_v11  ;;  %v4993_v45 = vadd.f32 %v7875_v17, %v11371_v46  ;;  %v5235_v11 = vmax.f32 %v4633_v38, 0.0  ;;  %v4648_v38 = vadd.f32 %v11371_v46, %v11135_v4 }
 0x58c   :  { %v4988_v43 = vadd.f32 %v11371_v46, %v4987_v2  ;;  %5492 = vmatprep.mubr.f32.mxu0 %v12461_v29  ;;  %5853 = vmatmul.mubr.f32.gmra.mrb[152].mxu1 %v5305_v14  ;;  %v12472_v2 = vld [vmem:[#allocation16_spill] sm:$0xff]  ;;  %v5236_v29 = vmax.f32 %v4638_v10, 0.0 }
 0x58d   :  { %5857 = vmatprep.mubr.f32.mxu1 %v12463_v58  ;;  %v5307_v62 = vmax.f32 %v4993_v45, 0.0 }
 0x58e   :  { %v5306_v57 = vmax.f32 %v4988_v43, 0.0  ;;  %v12473_v43 = vmax.f32 %v12472_v2, 0.0  ;;  %v4658_v2 = vadd.f32 %v11371_v46, %v11153_v15 }
 0x58f   :  { %5493 = vmatmul.mubr.f32.gmra.mrb[142].mxu0 %v5233_v23  ;;  %v12474_v23 = vld [vmem:[#allocation88_spill] sm:$0xff] }
 0x590   :  { %5497 = vmatprep.mubr.f32.mxu0 %v12465_v5  ;;  %5858 = vmatmul.mubr.f32.gmra.mrb[154].mxu1 %v5306_v57  ;;  %v12475_v13 = vmax.f32 %v12474_v23, 0.0  ;;  %v12476_v57 = vld [vmem:[#allocation15_spill] sm:$0xff]  ;;  %v5237_v5 = vmax.f32 %v4643_v27, 0.0  ;;  %v12488_v23 = vld [vmem:[#allocation20_spill] sm:$0xff] }
 0x591   :  { %5862 = vmatprep.mubr.f32.mxu1 %v12467_v56  ;;  %v12477_v52 = vmax.f32 %v12476_v57, 0.0 }
 0x592   :  { %v7878_v12 = vpop.f32.mrb[82].mxu0 }
 0x593   :  { %v4997_v33 = vpop.f32.mrb[83].mxu0  ;;  %5498 = vmatmul.mubr.f32.gmra.mrb[144].mxu0 %v5234_v9  ;;  %v5003_v14 = vadd.f32 %v7878_v12, %v11371_v46  ;;  %v12478_v9 = vld [vmem:[#allocation89_spill] sm:$0xff] }
 0x594   :  { %v4998_v54 = vadd.f32 %v11371_v46, %v4997_v33  ;;  %5502 = vmatprep.mubr.f32.mxu0 %v12469_v42  ;;  %5863 = vmatmul.mubr.f32.gmra.mrb[156].mxu1 %v5307_v62  ;;  %v12479_v31 = vmax.f32 %v12478_v9, 0.0  ;;  %v12480_v62 = vld [vmem:[#allocation18_spill] sm:$0xff]  ;;  %v4653_v33 = vadd.f32 %v11132_v35, %v11371_v46  ;;  %v12483_v42 = vmax.f32 %v12482_v6, 0.0 }
 0x595   :  { %5867 = vmatprep.mubr.f32.mxu1 %v12471_v26  ;;  %v5309_v7 = vmax.f32 %v5003_v14, 0.0  ;;  %v12481_v12 = vmax.f32 %v12480_v62, 0.0  ;;  %v12484_v26 = vld [vmem:[#allocation17_spill] sm:$0xff]  ;;  %v4673_v6 = vadd.f32 %v11168_v18, %v11371_v46 }
 0x596   :  { %v5308_v17 = vmax.f32 %v4998_v54, 0.0  ;;  %v5238_v54 = vmax.f32 %v4648_v38, 0.0  ;;  %v12485_v14 = vmax.f32 %v12484_v26, 0.0  ;;  %v12492_v38 = vld [vmem:[#allocation19_spill] sm:$0xff] }
 0x597   :  { %5503 = vmatmul.mubr.f32.gmra.mrb[146].mxu0 %v5235_v11  ;;  %v12493_v9 = vmax.f32 %v12492_v38, 0.0 }
 0x598   :  { %5507 = vmatprep.mubr.f32.mxu0 %v12473_v43  ;;  %5868 = vmatmul.mubr.f32.gmra.mrb[158].mxu1 %v5308_v17  ;;  %v5239_v17 = vmax.f32 %v4653_v33, 0.0  ;;  %v12486_v43 = vld [vmem:[#allocation91_spill] sm:$0xff]  ;;  %v12496_v33 = vld [vmem:[#allocation22_spill] sm:$0xff] }
 0x599   :  { %5872 = vmatprep.mubr.f32.mxu1 %v12475_v13  ;;  %v12487_v35 = vmax.f32 %v12486_v43, 0.0  ;;  %v12489_v13 = vmax.f32 %v12488_v23, 0.0  ;;  %v4678_v43 = vadd.f32 %v11371_v46, %v11197_v55  ;;  %v12504_v23 = vld [vmem:[#allocation24_spill] sm:$0xff] }
 0x59a   :  { %v7881_v21 = vpop.f32.mrb[84].mxu0 }
 0x59b   :  { %v5007_v58 = vpop.f32.mrb[85].mxu0  ;;  %5508 = vmatmul.mubr.f32.gmra.mrb[148].mxu0 %v5236_v29  ;;  %v5013_v41 = vadd.f32 %v7881_v21, %v11371_v46  ;;  %v5240_v21 = vmax.f32 %v4658_v2, 0.0  ;;  %v5243_v2 = vmax.f32 %v4673_v6, 0.0  ;;  %v12514_v6 = vld [vmem:[#allocation98_spill] sm:$0xff] }
 0x59c   :  { %v5008_v45 = vadd.f32 %v11371_v46, %v5007_v58  ;;  %5512 = vmatprep.mubr.f32.mxu0 %v12477_v52  ;;  %5873 = vmatmul.mubr.f32.gmra.mrb[160].mxu1 %v5309_v7  ;;  %v4663_v7 = vadd.f32 %v11150_v25, %v11371_v46  ;;  %v12490_v58 = vld [vmem:[#allocation92_spill] sm:$0xff] }
 0x59d   :  { %5877 = vmatprep.mubr.f32.mxu1 %v12479_v31  ;;  %v5311_v11 = vmax.f32 %v5013_v41, 0.0  ;;  %v4668_v41 = vadd.f32 %v11371_v46, %v11171_v32 }
 0x59e   :  { %v5310_v56 = vmax.f32 %v5008_v45, 0.0  ;;  %v12491_v45 = vmax.f32 %v12490_v58, 0.0  ;;  %v5241_v31 = vmax.f32 %v4663_v7, 0.0  ;;  %v4683_v7 = vadd.f32 %v11192_v48, %v11371_v46  ;;  %v12506_v58 = vld [vmem:[#allocation96_spill] sm:$0xff] }
 0x59f   :  { %5513 = vmatmul.mubr.f32.gmra.mrb[150].mxu0 %v5237_v5 }
 0x5a0   :  { %5517 = vmatprep.mubr.f32.mxu0 %v12481_v12  ;;  %5878 = vmatmul.mubr.f32.gmra.mrb[162].mxu1 %v5310_v56  ;;  %v12494_v56 = vld [vmem:[#allocation93_spill] sm:$0xff] }
 0x5a1   :  { %5882 = vmatprep.mubr.f32.mxu1 %v12483_v42  ;;  %v12495_v25 = vmax.f32 %v12494_v56, 0.0  ;;  %v5242_v42 = vmax.f32 %v4668_v41, 0.0  ;;  %v12510_v41 = vld [vmem:[#allocation97_spill] sm:$0xff] }
 0x5a2   :  { %v7884_v4 = vpop.f32.mrb[86].mxu0  ;;  %v12511_v48 = vmax.f32 %v12510_v41, 0.0  ;;  %v4713_v41 = vadd.f32 %v11215_v49, %v11371_v46 }
 0x5a3   :  { %v5017_v10 = vpop.f32.mrb[87].mxu0  ;;  %5518 = vmatmul.mubr.f32.gmra.mrb[152].mxu0 %v5238_v54  ;;  %v5023_v27 = vadd.f32 %v7884_v4, %v11371_v46  ;;  %v12497_v54 = vmax.f32 %v12496_v33, 0.0  ;;  %v4693_v33 = vadd.f32 %v11203_v39, %v11371_v46 }
 0x5a4   :  { %v5018_v59 = vadd.f32 %v11371_v46, %v5017_v10  ;;  %5522 = vmatprep.mubr.f32.mxu0 %v12485_v14  ;;  %5883 = vmatmul.mubr.f32.gmra.mrb[164].mxu1 %v5311_v11  ;;  %v12498_v11 = vld [vmem:[#allocation94_spill] sm:$0xff]  ;;  %v12500_v14 = vld [vmem:[#allocation21_spill] sm:$0xff] }
 0x5a5   :  { %5887 = vmatprep.mubr.f32.mxu1 %v12487_v35  ;;  %v5313_v57 = vmax.f32 %v5023_v27, 0.0  ;;  %v12499_v4 = vmax.f32 %v12498_v11, 0.0  ;;  %v12502_v35 = vld [vmem:[#allocation95_spill] sm:$0xff] }
 0x5a6   :  { %v5312_v29 = vmax.f32 %v5018_v59, 0.0  ;;  %v12503_v18 = vmax.f32 %v12502_v35, 0.0  ;;  %v12520_v35 = vld [vmem:[#allocation28_spill] sm:$0xff] }
 0x5a7   :  { %5523 = vmatmul.mubr.f32.gmra.mrb[154].mxu0 %v5239_v17  ;;  %v12501_v17 = vmax.f32 %v12500_v14, 0.0  ;;  %v4698_v14 = vadd.f32 %v11371_v46, %v11212_v51 }
 0x5a8   :  { %5527 = vmatprep.mubr.f32.mxu0 %v12489_v13  ;;  %5888 = vmatmul.mubr.f32.gmra.mrb[166].mxu1 %v5312_v29  ;;  %v12505_v13 = vmax.f32 %v12504_v23, 0.0  ;;  %v12522_v23 = vld [vmem:[#allocation100_spill] sm:$0xff] }
 0x5a9   :  { %5892 = vmatprep.mubr.f32.mxu1 %v12491_v45  ;;  %v12507_v45 = vmax.f32 %v12506_v58, 0.0 }
 0x5aa   :  { %v7887_v15 = vpop.f32.mrb[88].mxu0 }
 0x5ab   :  { %v5027_v52 = vpop.f32.mrb[89].mxu0  ;;  %5528 = vmatmul.mubr.f32.gmra.mrb[156].mxu0 %v5240_v21  ;;  %v5033_v62 = vadd.f32 %v7887_v15, %v11371_v46  ;;  %v5244_v21 = vmax.f32 %v4678_v43, 0.0 }
 0x5ac   :  { %v5028_v5 = vadd.f32 %v11371_v46, %v5027_v52  ;;  %5532 = vmatprep.mubr.f32.mxu0 %v12493_v9  ;;  %5893 = vmatmul.mubr.f32.gmra.mrb[168].mxu1 %v5313_v57  ;;  %v5245_v9 = vmax.f32 %v4683_v7, 0.0 }
 0x5ad   :  { %5897 = vmatprep.mubr.f32.mxu1 %v12495_v25  ;;  %v5315_v10 = vmax.f32 %v5033_v62, 0.0  ;;  %v12512_v62 = vld [vmem:[#allocation26_spill] sm:$0xff] }
 0x5ae   :  { %v5314_v12 = vmax.f32 %v5028_v5, 0.0  ;;  %v12508_v5 = vld [vmem:[#allocation23_spill] sm:$0xff] }
 0x5af   :  { %5533 = vmatmul.mubr.f32.gmra.mrb[158].mxu0 %v5241_v31  ;;  %v12509_v38 = vmax.f32 %v12508_v5, 0.0  ;;  %v4688_v31 = vadd.f32 %v11371_v46, %v11206_v28 }
 0x5b0   :  { %5537 = vmatprep.mubr.f32.mxu0 %v12497_v54  ;;  %5898 = vmatmul.mubr.f32.gmra.mrb[170].mxu1 %v5314_v12  ;;  %v12513_v12 = vmax.f32 %v12512_v62, 0.0 }
 0x5b1   :  { %5902 = vmatprep.mubr.f32.mxu1 %v12499_v4  ;;  %v5246_v54 = vmax.f32 %v4688_v31, 0.0 }
 0x5b2   :  { %v7890_v32 = vpop.f32.mrb[90].mxu0 }
 0x5b3   :  { %v5037_v59 = vpop.f32.mrb[91].mxu0  ;;  %5538 = vmatmul.mubr.f32.gmra.mrb[160].mxu0 %v5242_v42  ;;  %v5043_v27 = vadd.f32 %v7890_v32, %v11371_v46  ;;  %v12515_v42 = vmax.f32 %v12514_v6, 0.0  ;;  %v12516_v32 = vld [vmem:[#allocation25_spill] sm:$0xff] }
 0x5b4   :  { %v5038_v26 = vadd.f32 %v11371_v46, %v5037_v59  ;;  %5542 = vmatprep.mubr.f32.mxu0 %v12501_v17  ;;  %5903 = vmatmul.mubr.f32.gmra.mrb[172].mxu1 %v5315_v10  ;;  %v12517_v59 = vmax.f32 %v12516_v32, 0.0  ;;  %v12518_v17 = vld [vmem:[#allocation99_spill] sm:$0xff]  ;;  %v12536_v32 = vld [vmem:[#allocation32_spill] sm:$0xff] }
 0x5b5   :  { %5907 = vmatprep.mubr.f32.mxu1 %v12503_v18  ;;  %v5317_v57 = vmax.f32 %v5043_v27, 0.0  ;;  %v12519_v39 = vmax.f32 %v12518_v17, 0.0  ;;  %v12521_v18 = vmax.f32 %v12520_v35, 0.0  ;;  %v4703_v27 = vadd.f32 %v11209_v60, %v11371_v46  ;;  %v12538_v17 = vld [vmem:[#allocation104_spill] sm:$0xff] }
 0x5b6   :  { %v5316_v29 = vmax.f32 %v5038_v26, 0.0  ;;  %v5247_v26 = vmax.f32 %v4693_v33, 0.0 }
 0x5b7   :  { %5543 = vmatmul.mubr.f32.gmra.mrb[162].mxu0 %v5243_v2 }
 0x5b8   :  { %5547 = vmatprep.mubr.f32.mxu0 %v12505_v13  ;;  %5908 = vmatmul.mubr.f32.gmra.mrb[174].mxu1 %v5316_v29  ;;  %v5248_v29 = vmax.f32 %v4698_v14, 0.0  ;;  %v12523_v13 = vmax.f32 %v12522_v23, 0.0  ;;  %v4728_v23 = vadd.f32 %v11371_v46, %v11238_v34 }
 0x5b9   :  { %5912 = vmatprep.mubr.f32.mxu1 %v12507_v45  ;;  %v12524_v45 = vld [vmem:[#allocation27_spill] sm:$0xff] }
 0x5ba   :  { %v7893_v55 = vpop.f32.mrb[92].mxu0 }
 0x5bb   :  { %v5047_v15 = vpop.f32.mrb[93].mxu0  ;;  %5548 = vmatmul.mubr.f32.gmra.mrb[164].mxu0 %v5244_v21  ;;  %v5053_v56 = vadd.f32 %v7893_v55, %v11371_v46  ;;  %v5249_v55 = vmax.f32 %v4703_v27, 0.0 }
 0x5bc   :  { %v5048_v52 = vadd.f32 %v11371_v46, %v5047_v15  ;;  %5552 = vmatprep.mubr.f32.mxu0 %v12509_v38  ;;  %5913 = vmatmul.mubr.f32.gmra.mrb[176].mxu1 %v5317_v57  ;;  %v12525_v57 = vmax.f32 %v12524_v45, 0.0  ;;  %v4708_v15 = vadd.f32 %v11371_v46, %v11218_v24  ;;  %v4733_v45 = vadd.f32 %v11235_v40, %v11371_v46 }
 0x5bd   :  { %5917 = vmatprep.mubr.f32.mxu1 %v12511_v48  ;;  %v5319_v11 = vmax.f32 %v5053_v56, 0.0  ;;  %v12530_v56 = vld [vmem:[#allocation102_spill] sm:$0xff] }
 0x5be   :  { %v5318_v25 = vmax.f32 %v5048_v52, 0.0  ;;  %v12526_v52 = vld [vmem:[#allocation101_spill] sm:$0xff]  ;;  %v5250_v48 = vmax.f32 %v4708_v15, 0.0 }
 0x5bf   :  { %5553 = vmatmul.mubr.f32.gmra.mrb[166].mxu0 %v5245_v9  ;;  %v12527_v60 = vmax.f32 %v12526_v52, 0.0  ;;  %v12528_v9 = vld [vmem:[#allocation30_spill] sm:$0xff] }
 0x5c0   :  { %5557 = vmatprep.mubr.f32.mxu0 %v12513_v12  ;;  %5918 = vmatmul.mubr.f32.gmra.mrb[178].mxu1 %v5318_v25  ;;  %v12529_v31 = vmax.f32 %v12528_v9, 0.0  ;;  %v12531_v25 = vmax.f32 %v12530_v56, 0.0 }
 0x5c1   :  { %5922 = vmatprep.mubr.f32.mxu1 %v12515_v42  ;;  %v5251_v42 = vmax.f32 %v4713_v41, 0.0  ;;  %v4738_v41 = vadd.f32 %v11371_v46, %v11244_v0 }
 0x5c2   :  { %v7896_v28 = vpop.f32.mrb[94].mxu0 }
 0x5c3   :  { %v5057_v4 = vpop.f32.mrb[95].mxu0  ;;  %5558 = vmatmul.mubr.f32.gmra.mrb[168].mxu0 %v5246_v54  ;;  %v5063_v2 = vadd.f32 %v7896_v28, %v11371_v46  ;;  %v12532_v54 = vld [vmem:[#allocation29_spill] sm:$0xff]  ;;  %v12534_v28 = vld [vmem:[#allocation103_spill] sm:$0xff] }
 0x5c4   :  { %v5058_v10 = vadd.f32 %v11371_v46, %v5057_v4  ;;  %5562 = vmatprep.mubr.f32.mxu0 %v12517_v59  ;;  %5923 = vmatmul.mubr.f32.gmra.mrb[180].mxu1 %v5319_v11  ;;  %v12533_v6 = vmax.f32 %v12532_v54, 0.0  ;;  %v4718_v11 = vadd.f32 %v11371_v46, %v11232_v61  ;;  %v12535_v49 = vmax.f32 %v12534_v28, 0.0  ;;  %v12554_v54 = vld [vmem:[#allocation108_spill] sm:$0xff] }
 0x5c5   :  { %5927 = vmatprep.mubr.f32.mxu1 %v12519_v39  ;;  %v5321_v7 = vmax.f32 %v5063_v2, 0.0  ;;  %v12537_v59 = vmax.f32 %v12536_v32, 0.0  ;;  %v12539_v39 = vmax.f32 %v12538_v17, 0.0  ;;  %v4748_v32 = vadd.f32 %v11371_v46, %v11250_v20  ;;  %v12560_v17 = vld [vmem:[#allocation38_spill] sm:$0xff] }
 0x5c6   :  { %v5320_v43 = vmax.f32 %v5058_v10, 0.0  ;;  %v5252_v14 = vmax.f32 %v4718_v11, 0.0 }
 0x5c7   :  { %5563 = vmatmul.mubr.f32.gmra.mrb[170].mxu0 %v5247_v26  ;;  %v4723_v26 = vadd.f32 %v11227_v8, %v11371_v46 }
 0x5c8   :  { %5567 = vmatprep.mubr.f32.mxu0 %v12521_v18  ;;  %5928 = vmatmul.mubr.f32.gmra.mrb[182].mxu1 %v5320_v43  ;;  %v12540_v18 = vld [vmem:[#allocation31_spill] sm:$0xff] }
 0x5c9   :  { %5932 = vmatprep.mubr.f32.mxu1 %v12523_v13  ;;  %v12541_v27 = vmax.f32 %v12540_v18, 0.0  ;;  %v12542_v13 = vld [vmem:[#allocation105_spill] sm:$0xff] }
 0x5ca   :  { %v7899_v51 = vpop.f32.mrb[96].mxu0  ;;  %v12543_v8 = vmax.f32 %v12542_v13, 0.0 }
 0x5cb   :  { %v5067_v21 = vpop.f32.mrb[97].mxu0  ;;  %5568 = vmatmul.mubr.f32.gmra.mrb[172].mxu0 %v5248_v29  ;;  %v5073_v5 = vadd.f32 %v7899_v51, %v11371_v46  ;;  %v5253_v29 = vmax.f32 %v4723_v26, 0.0 }
 0x5cc   :  { %v5068_v58 = vadd.f32 %v11371_v46, %v5067_v21  ;;  %5572 = vmatprep.mubr.f32.mxu0 %v12525_v57  ;;  %5933 = vmatmul.mubr.f32.gmra.mrb[184].mxu1 %v5321_v7  ;;  %v12544_v21 = vld [vmem:[#allocation34_spill] sm:$0xff]  ;;  %v5254_v57 = vmax.f32 %v4728_v23, 0.0  ;;  %v12564_v23 = vld [vmem:[#allocation37_spill] sm:$0xff] }
 0x5cd   :  { %5937 = vmatprep.mubr.f32.mxu1 %v12527_v60  ;;  %v5323_v62 = vmax.f32 %v5073_v5, 0.0  ;;  %v12565_v13 = vmax.f32 %v12564_v23, 0.0  ;;  %v4788_v23 = vadd.f32 %v11371_v46, %v11293_v36 }
 0x5ce   :  { %v5322_v38 = vmax.f32 %v5068_v58, 0.0  ;;  %v12545_v58 = vmax.f32 %v12544_v21, 0.0 }
 0x5cf   :  { %5573 = vmatmul.mubr.f32.gmra.mrb[174].mxu0 %v5249_v55  ;;  %v12546_v55 = vld [vmem:[#allocation106_spill] sm:$0xff] }
 0x5d0   :  { %5577 = vmatprep.mubr.f32.mxu0 %v12529_v31  ;;  %5938 = vmatmul.mubr.f32.gmra.mrb[186].mxu1 %v5322_v38  ;;  %v12547_v15 = vmax.f32 %v12546_v55, 0.0  ;;  %v12548_v38 = vld [vmem:[#allocation33_spill] sm:$0xff]  ;;  %v5255_v31 = vmax.f32 %v4733_v45, 0.0  ;;  %v12568_v45 = vld [vmem:[#allocation40_spill] sm:$0xff]  ;;  %v4763_v55 = vadd.f32 %v11267_v16, %v11371_v46 }
 0x5d1   :  { %5942 = vmatprep.mubr.f32.mxu1 %v12531_v25  ;;  %v12549_v9 = vmax.f32 %v12548_v38, 0.0 }
 0x5d2   :  { %v7902_v24 = vpop.f32.mrb[98].mxu0 }
 0x5d3   :  { %v5077_v12 = vpop.f32.mrb[99].mxu0  ;;  %5578 = vmatmul.mubr.f32.gmra.mrb[176].mxu0 %v5250_v48  ;;  %v5083_v4 = vadd.f32 %v7902_v24, %v11371_v46  ;;  %v12550_v48 = vld [vmem:[#allocation107_spill] sm:$0xff] }
 0x5d4   :  { %v5078_v33 = vadd.f32 %v11371_v46, %v5077_v12  ;;  %5582 = vmatprep.mubr.f32.mxu0 %v12533_v6  ;;  %5943 = vmatmul.mubr.f32.gmra.mrb[188].mxu1 %v5323_v62  ;;  %v12551_v40 = vmax.f32 %v12550_v48, 0.0  ;;  %v12552_v62 = vld [vmem:[#allocation36_spill] sm:$0xff]  ;;  %v4743_v12 = vadd.f32 %v11241_v1, %v11371_v46  ;;  %v12555_v6 = vmax.f32 %v12554_v54, 0.0  ;;  %v12578_v54 = vld [vmem:[#allocation114_spill] sm:$0xff] }
 0x5d5   :  { %5947 = vmatprep.mubr.f32.mxu1 %v12535_v49  ;;  %v5325_v2 = vmax.f32 %v5083_v4, 0.0  ;;  %v12553_v24 = vmax.f32 %v12552_v62, 0.0  ;;  %v12556_v49 = vld [vmem:[#allocation35_spill] sm:$0xff]  ;;  %v4768_v48 = vadd.f32 %v11371_v46, %v11276_v37  ;;  %v12576_v62 = vld [vmem:[#allocation42_spill] sm:$0xff] }
 0x5d6   :  { %v5324_v10 = vmax.f32 %v5078_v33, 0.0  ;;  %v5256_v33 = vmax.f32 %v4738_v41, 0.0  ;;  %v12557_v4 = vmax.f32 %v12556_v49, 0.0  ;;  %v5261_v41 = vmax.f32 %v4763_v55, 0.0 }
 0x5d7   :  { %5583 = vmatmul.mubr.f32.gmra.mrb[178].mxu0 %v5251_v42 }
 0x5d8   :  { %5587 = vmatprep.mubr.f32.mxu0 %v12537_v59  ;;  %5948 = vmatmul.mubr.f32.gmra.mrb[190].mxu1 %v5324_v10  ;;  %v5257_v10 = vmax.f32 %v4743_v12, 0.0  ;;  %v12558_v59 = vld [vmem:[#allocation109_spill] sm:$0xff]  ;;  %v4773_v12 = vadd.f32 %v11273_v44, %v11371_v46 }
 0x5d9   :  { %5952 = vmatprep.mubr.f32.mxu1 %v12539_v39  ;;  %v12559_v1 = vmax.f32 %v12558_v59, 0.0  ;;  %v12561_v39 = vmax.f32 %v12560_v17, 0.0  ;;  %v4783_v17 = vadd.f32 %v11279_v50, %v11371_v46 }
 0x5da   :  { %v7905_v61 = vpop.f32.mrb[100].mxu0 }
 0x5db   :  { %v5087_v43 = vpop.f32.mrb[101].mxu0  ;;  %5588 = vmatmul.mubr.f32.gmra.mrb[180].mxu0 %v5252_v14  ;;  %v5093_v7 = vadd.f32 %v7905_v61, %v11371_v46  ;;  %v5258_v61 = vmax.f32 %v4748_v32, 0.0  ;;  %v12582_v32 = vld [vmem:[#allocation115_spill] sm:$0xff] }
 0x5dc   :  { %v5088_v35 = vadd.f32 %v11371_v46, %v5087_v43  ;;  %5592 = vmatprep.mubr.f32.mxu0 %v12541_v27  ;;  %5953 = vmatmul.mubr.f32.gmra.mrb[192].mxu1 %v5325_v2  ;;  %v4753_v2 = vadd.f32 %v11247_v22, %v11371_v46  ;;  %v12562_v43 = vld [vmem:[#allocation110_spill] sm:$0xff]  ;;  %v12583_v44 = vmax.f32 %v12582_v32, 0.0 }
 0x5dd   :  { %5957 = vmatprep.mubr.f32.mxu1 %v12543_v8  ;;  %v5327_v52 = vmax.f32 %v5093_v7, 0.0  ;;  %v4758_v7 = vadd.f32 %v11371_v46, %v11270_v47 }
 0x5de   :  { %v5326_v51 = vmax.f32 %v5088_v35, 0.0  ;;  %v12563_v35 = vmax.f32 %v12562_v43, 0.0  ;;  %v5259_v8 = vmax.f32 %v4753_v2, 0.0  ;;  %v12586_v2 = vld [vmem:[#allocation116_spill] sm:$0xff] }
 0x5df   :  { %5593 = vmatmul.mubr.f32.gmra.mrb[182].mxu0 %v5253_v29 }
 0x5e0   :  { %5597 = vmatprep.mubr.f32.mxu0 %v12545_v58  ;;  %5958 = vmatmul.mubr.f32.gmra.mrb[194].mxu1 %v5326_v51  ;;  %v12566_v51 = vld [vmem:[#allocation111_spill] sm:$0xff] }
 0x5e1   :  { %5962 = vmatprep.mubr.f32.mxu1 %v12547_v15  ;;  %v12567_v22 = vmax.f32 %v12566_v51, 0.0  ;;  %v5260_v15 = vmax.f32 %v4758_v7, 0.0  ;;  %v12592_v51 = vld [vmem:[#allocation46_spill] sm:$0xff] }
 0x5e2   :  { %v7908_v34 = vpop.f32.mrb[102].mxu0 }
 0x5e3   :  { %v5097_v60 = vpop.f32.mrb[103].mxu0  ;;  %5598 = vmatmul.mubr.f32.gmra.mrb[184].mxu0 %v5254_v57  ;;  %v5103_v56 = vadd.f32 %v7908_v34, %v11371_v46  ;;  %v12569_v57 = vmax.f32 %v12568_v45, 0.0  ;;  %v12594_v45 = vld [vmem:[#allocation118_spill] sm:$0xff] }
 0x5e4   :  { %v5098_v5 = vadd.f32 %v11371_v46, %v5097_v60  ;;  %5602 = vmatprep.mubr.f32.mxu0 %v12549_v9  ;;  %5963 = vmatmul.mubr.f32.gmra.mrb[196].mxu1 %v5327_v52  ;;  %v12570_v52 = vld [vmem:[#allocation112_spill] sm:$0xff]  ;;  %v12572_v9 = vld [vmem:[#allocation39_spill] sm:$0xff] }
 0x5e5   :  { %5967 = vmatprep.mubr.f32.mxu1 %v12551_v40  ;;  %v5329_v42 = vmax.f32 %v5103_v56, 0.0  ;;  %v12571_v34 = vmax.f32 %v12570_v52, 0.0  ;;  %v12574_v40 = vld [vmem:[#allocation113_spill] sm:$0xff] }
 0x5e6   :  { %v5328_v25 = vmax.f32 %v5098_v5, 0.0  ;;  %v12575_v16 = vmax.f32 %v12574_v40, 0.0  ;;  %v4803_v40 = vadd.f32 %v11296_v53, %v11371_v46 }
 0x5e7   :  { %5603 = vmatmul.mubr.f32.gmra.mrb[186].mxu0 %v5255_v31  ;;  %v12573_v31 = vmax.f32 %v12572_v9, 0.0 }
 0x5e8   :  { %5607 = vmatprep.mubr.f32.mxu0 %v12553_v24  ;;  %5968 = vmatmul.mubr.f32.gmra.mrb[198].mxu1 %v5328_v25  ;;  %v12577_v24 = vmax.f32 %v12576_v62, 0.0 }
 0x5e9   :  { %5972 = vmatprep.mubr.f32.mxu1 %v12555_v6  ;;  %v12579_v6 = vmax.f32 %v12578_v54, 0.0 }
 0x5ea   :  { %v7911_v0 = vpop.f32.mrb[104].mxu0 }
 0x5eb   :  { %v5107_v11 = vpop.f32.mrb[105].mxu0  ;;  %5608 = vmatmul.mubr.f32.gmra.mrb[188].mxu0 %v5256_v33  ;;  %v5113_v26 = vadd.f32 %v7911_v0, %v11371_v46  ;;  %v5262_v33 = vmax.f32 %v4768_v48, 0.0 }
 0x5ec   :  { %v5108_v28 = vadd.f32 %v11371_v46, %v5107_v11  ;;  %5612 = vmatprep.mubr.f32.mxu0 %v12557_v4  ;;  %5973 = vmatmul.mubr.f32.gmra.mrb[200].mxu1 %v5329_v42  ;;  %v5263_v4 = vmax.f32 %v4773_v12, 0.0 }
 0x5ed   :  { %5977 = vmatprep.mubr.f32.mxu1 %v12559_v1  ;;  %v5331_v18 = vmax.f32 %v5113_v26, 0.0  ;;  %v12584_v26 = vld [vmem:[#allocation44_spill] sm:$0xff] }
 0x5ee   :  { %v5330_v14 = vmax.f32 %v5108_v28, 0.0  ;;  %v12580_v28 = vld [vmem:[#allocation41_spill] sm:$0xff] }
 0x5ef   :  { %5613 = vmatmul.mubr.f32.gmra.mrb[190].mxu0 %v5257_v10  ;;  %v12581_v49 = vmax.f32 %v12580_v28, 0.0  ;;  %v4778_v10 = vadd.f32 %v11371_v46, %v11282_v19  ;;  %v12608_v28 = vld [vmem:[#allocation50_spill] sm:$0xff] }
 0x5f0   :  { %5617 = vmatprep.mubr.f32.mxu0 %v12561_v39  ;;  %5978 = vmatmul.mubr.f32.gmra.mrb[202].mxu1 %v5330_v14  ;;  %v12585_v14 = vmax.f32 %v12584_v26, 0.0 }
 0x5f1   :  { %5982 = vmatprep.mubr.f32.mxu1 %v12563_v35  ;;  %v5264_v39 = vmax.f32 %v4778_v10, 0.0 }
 0x5f2   :  { %v7914_v20 = vpop.f32.mrb[106].mxu0 }
 0x5f3   :  { %v5117_v27 = vpop.f32.mrb[107].mxu0  ;;  %5618 = vmatmul.mubr.f32.gmra.mrb[192].mxu0 %v5258_v61  ;;  %v5123_v21 = vadd.f32 %v7914_v20, %v11371_v46  ;;  %v12587_v61 = vmax.f32 %v12586_v2, 0.0  ;;  %v12588_v20 = vld [vmem:[#allocation43_spill] sm:$0xff] }
 0x5f4   :  { %v5118_v29 = vadd.f32 %v11371_v46, %v5117_v27  ;;  %5622 = vmatprep.mubr.f32.mxu0 %v12565_v13  ;;  %5983 = vmatmul.mubr.f32.gmra.mrb[204].mxu1 %v5331_v18  ;;  %v12589_v27 = vmax.f32 %v12588_v20, 0.0  ;;  %v12590_v13 = vld [vmem:[#allocation117_spill] sm:$0xff] }
 0x5f5   :  { %5987 = vmatprep.mubr.f32.mxu1 %v12567_v22  ;;  %v5333_v60 = vmax.f32 %v5123_v21, 0.0  ;;  %v12591_v50 = vmax.f32 %v12590_v13, 0.0  ;;  %v12593_v22 = vmax.f32 %v12592_v51, 0.0  ;;  %v4793_v21 = vadd.f32 %v11285_v3, %v11371_v46  ;;  %v12620_v13 = vld [vmem:[#allocation134_spill] sm:$0xff] }
 0x5f6   :  { %v5332_v58 = vmax.f32 %v5118_v29, 0.0  ;;  %v5265_v29 = vmax.f32 %v4783_v17, 0.0  ;;  %v12613_v17 = vld [vmem:[#allocation49_spill] sm:$0xff] }
 0x5f7   :  { %5623 = vmatmul.mubr.f32.gmra.mrb[194].mxu0 %v5259_v8 }
 0x5f8   :  { %5627 = vmatprep.mubr.f32.mxu0 %v12569_v57  ;;  %5988 = vmatmul.mubr.f32.gmra.mrb[206].mxu1 %v5332_v58  ;;  %v5266_v58 = vmax.f32 %v4788_v23, 0.0  ;;  %v12595_v57 = vmax.f32 %v12594_v45, 0.0  ;;  %v11728_v23 = vld [vmem:[%s11999_s13] ss:$0 sm:$0xff] }
 0x5f9   :  { %5992 = vmatprep.mubr.f32.mxu1 %v12571_v34  ;;  %v12596_v34 = vld [vmem:[#allocation45_spill] sm:$0xff] }
 0x5fa   :  { %v7917_v47 = vpop.f32.mrb[108].mxu0 }
 0x5fb   :  { %v5127_v5 = vpop.f32.mrb[109].mxu0  ;;  %5628 = vmatmul.mubr.f32.gmra.mrb[196].mxu0 %v5260_v15  ;;  %v5133_v56 = vadd.f32 %v7917_v47, %v11371_v46  ;;  %v5267_v47 = vmax.f32 %v4793_v21, 0.0 }
 0x5fc   :  { %v5128_v38 = vadd.f32 %v11371_v46, %v5127_v5  ;;  %5632 = vmatprep.mubr.f32.mxu0 %v12573_v31  ;;  %5993 = vmatmul.mubr.f32.gmra.mrb[208].mxu1 %v5333_v60  ;;  %v12597_v60 = vmax.f32 %v12596_v34, 0.0  ;;  %v4798_v5 = vadd.f32 %v11371_v46, %v11299_v63 }
 0x5fd   :  { %5997 = vmatprep.mubr.f32.mxu1 %v12575_v16  ;;  %v5335_v42 = vmax.f32 %v5133_v56, 0.0  ;;  %v12602_v56 = vld [vmem:[#allocation120_spill] sm:$0xff] }
 0x5fe   :  { %v5334_v25 = vmax.f32 %v5128_v38, 0.0  ;;  %v12598_v38 = vld [vmem:[#allocation119_spill] sm:$0xff]  ;;  %v5268_v16 = vmax.f32 %v4798_v5, 0.0  ;;  %v12626_v5 = vld [vmem:[#allocation125_spill] sm:$0xff] }
 0x5ff   :  { %5633 = vmatmul.mubr.f32.gmra.mrb[198].mxu0 %v5261_v41  ;;  %v12599_v3 = vmax.f32 %v12598_v38, 0.0  ;;  %v12600_v41 = vld [vmem:[#allocation48_spill] sm:$0xff]  ;;  %v12627_v38 = vmax.f32 %v12626_v5, 0.0 }
 0x600   :  { %5637 = vmatprep.mubr.f32.mxu0 %v12577_v24  ;;  %5998 = vmatmul.mubr.f32.gmra.mrb[210].mxu1 %v5334_v25  ;;  %v12601_v48 = vmax.f32 %v12600_v41, 0.0  ;;  %v12603_v25 = vmax.f32 %v12602_v56, 0.0  ;;  %v12631_v56 = vld [vmem:[#allocation126_spill] sm:$0xff] }
 0x601   :  { %6002 = vmatprep.mubr.f32.mxu1 %v12579_v6  ;;  %v5269_v6 = vmax.f32 %v4803_v40, 0.0 }
 0x602   :  { %v7920_v37 = vpop.f32.mrb[110].mxu0 }
 0x603   :  { %v5137_v0 = vpop.f32.mrb[111].mxu0  ;;  %5638 = vmatmul.mubr.f32.gmra.mrb[200].mxu0 %v5262_v33  ;;  %v5143_v59 = vadd.f32 %v7920_v37, %v11371_v46  ;;  %v12604_v33 = vld [vmem:[#allocation47_spill] sm:$0xff]  ;;  %v12606_v37 = vld [vmem:[#allocation121_spill] sm:$0xff] }
 0x604   :  { %v5138_v11 = vadd.f32 %v11371_v46, %v5137_v0  ;;  %5642 = vmatprep.mubr.f32.mxu0 %v12581_v49  ;;  %6003 = vmatmul.mubr.f32.gmra.mrb[212].mxu1 %v5335_v42  ;;  %v12605_v54 = vmax.f32 %v12604_v33, 0.0  ;;  %v4808_v42 = vadd.f32 %v11371_v46, %v11305_v30  ;;  %v12607_v53 = vmax.f32 %v12606_v37, 0.0  ;;  %v11752_v33 = vld [vmem:[%s11997_s11] ss:$0 sm:$0xff] }
 0x605   :  { %6007 = vmatprep.mubr.f32.mxu1 %v12583_v44  ;;  %v5337_v43 = vmax.f32 %v5143_v59, 0.0  ;;  %v12609_v49 = vmax.f32 %v12608_v28, 0.0  ;;  %v12611_v44 = vld [vmem:[#allocation122_spill] sm:$0xff]  ;;  %v12636_v28 = vld [vmem:[#allocation127_spill] sm:$0xff] }
 0x606   :  { %v5336_v1 = vmax.f32 %v5138_v11, 0.0  ;;  %v5270_v32 = vmax.f32 %v4808_v42, 0.0  ;;  %v12612_v59 = vmax.f32 %v12611_v44, 0.0  ;;  %v12633_v42 = vld [vmem:[#allocation53_spill] sm:$0xff] }
 0x607   :  { %5643 = vmatmul.mubr.f32.gmra.mrb[202].mxu0 %v5263_v4  ;;  %v12610_v4 = vld [vmem:[#allocation133_spill] sm:$0xff] }
 0x608   :  { %5647 = vmatprep.mubr.f32.mxu0 %v12585_v14  ;;  %6008 = vmatmul.mubr.f32.gmra.mrb[214].mxu1 %v5336_v1  ;;  %v4813_v10 = vadd.f32 %v12610_v4, %v11371_v46 }
 0x609   :  { %6012 = vmatprep.mubr.f32.mxu1 %v12587_v61  ;;  %v12615_v61 = vld [vmem:[#allocation135_spill] sm:$0xff] }
 0x60a   :  { %v7923_v19 = vpop.f32.mrb[112].mxu0  ;;  %v5271_v2 = vmax.f32 %v4813_v10, 0.0 }
 0x60b   :  { %v5147_v35 = vpop.f32.mrb[113].mxu0  ;;  %5648 = vmatmul.mubr.f32.gmra.mrb[204].mxu0 %v5264_v39  ;;  %v5153_v8 = vadd.f32 %v7923_v19, %v11371_v46  ;;  %v12614_v39 = vmax.f32 %v12613_v17, 0.0  ;;  %v12616_v19 = vld [vmem:[#allocation123_spill] sm:$0xff] }
 0x60c   :  { %v5148_v18 = vadd.f32 %v11371_v46, %v5147_v35  ;;  %5652 = vmatprep.mubr.f32.mxu0 %v12589_v27  ;;  %6013 = vmatmul.mubr.f32.gmra.mrb[216].mxu1 %v5337_v43  ;;  %v4818_v43 = vadd.f32 %v11371_v46, %v12615_v61  ;;  %v12617_v35 = vmax.f32 %v12616_v19, 0.0  ;;  %v12618_v27 = vld [vmem:[#allocation52_spill] sm:$0xff] }
 0x60d   :  { %6017 = vmatprep.mubr.f32.mxu1 %v12591_v50  ;;  %v5339_v55 = vmax.f32 %v5153_v8, 0.0  ;;  %v4823_v50 = vadd.f32 %v12620_v13, %v11371_v46 }
 0x60e   :  { %v5338_v7 = vmax.f32 %v5148_v18, 0.0  ;;  %v5272_v8 = vmax.f32 %v4818_v43, 0.0 }
 0x60f   :  { %5653 = vmatmul.mubr.f32.gmra.mrb[206].mxu0 %v5265_v29  ;;  %v12619_v29 = vmax.f32 %v12618_v27, 0.0  ;;  %v5273_v34 = vmax.f32 %v4823_v50, 0.0  ;;  %v12643_v27 = vld [vmem:[#allocation55_spill] sm:$0xff] }
 0x610   :  { %5657 = vmatprep.mubr.f32.mxu0 %v12593_v22  ;;  %6018 = vmatmul.mubr.f32.gmra.mrb[218].mxu1 %v5338_v7  ;;  %v12621_v7 = vld [vmem:[#allocation124_spill] sm:$0xff] }
 0x611   :  { %6022 = vmatprep.mubr.f32.mxu1 %v12595_v57  ;;  %v12622_v51 = vmax.f32 %v12621_v7, 0.0 }
 0x612   :  { %v7926_v36 = vpop.f32.mrb[114].mxu0 }
 0x613   :  { %v5157_v15 = vpop.f32.mrb[115].mxu0  ;;  %5658 = vmatmul.mubr.f32.gmra.mrb[208].mxu0 %v5266_v58  ;;  %v5163_v9 = vadd.f32 %v7926_v36, %v11371_v46 }
 0x614   :  { %v5158_v52 = vadd.f32 %v11371_v46, %v5157_v15  ;;  %5662 = vmatprep.mubr.f32.mxu0 %v12597_v60  ;;  %6023 = vmatmul.mubr.f32.gmra.mrb[220].mxu1 %v5339_v55  ;;  %v12623_v15 = vld [vmem:[#allocation51_spill] sm:$0xff]  ;;  %v12625_v60 = vld [vmem:[#allocation137_spill] sm:$0xff] }
 0x615   :  { %6027 = vmatprep.mubr.f32.mxu1 %v12599_v3  ;;  %v5341_v62 = vmax.f32 %v5163_v9, 0.0 }
 0x616   :  { %v5340_v31 = vmax.f32 %v5158_v52, 0.0  ;;  %v12624_v52 = vmax.f32 %v12623_v15, 0.0 }
 0x617   :  { %5663 = vmatmul.mubr.f32.gmra.mrb[210].mxu0 %v5267_v47  ;;  %v4828_v47 = vadd.f32 %v11371_v46, %v12625_v60 }
 0x618   :  { %5667 = vmatprep.mubr.f32.mxu0 %v12601_v48  ;;  %6028 = vmatmul.mubr.f32.gmra.mrb[222].mxu1 %v5340_v31  ;;  %v12628_v31 = vld [vmem:[#allocation54_spill] sm:$0xff]  ;;  %v12630_v48 = vld [vmem:[#allocation136_spill] sm:$0xff] }
 0x619   :  { %6032 = vmatprep.mubr.f32.mxu1 %v12603_v25  ;;  %v12629_v41 = vmax.f32 %v12628_v31, 0.0  ;;  %v4833_v40 = vadd.f32 %v12630_v48, %v11371_v46  ;;  %v12632_v25 = vmax.f32 %v12631_v56, 0.0 }
 0x61a   :  { %v7929_v63 = vpop.f32.mrb[116].mxu0 }
 0x61b   :  { %v5167_v24 = vpop.f32.mrb[117].mxu0  ;;  %5668 = vmatmul.mubr.f32.gmra.mrb[212].mxu0 %v5268_v16  ;;  %v5173_v0 = vadd.f32 %v7929_v63, %v11371_v46  ;;  %v5274_v16 = vmax.f32 %v4828_v47, 0.0  ;;  %v12651_v47 = vld [vmem:[#allocation130_spill] sm:$0xff] }
 0x61c   :  { %v5168_v12 = vadd.f32 %v11371_v46, %v5167_v24  ;;  %5672 = vmatprep.mubr.f32.mxu0 %v12605_v54  ;;  %6033 = vmatmul.mubr.f32.gmra.mrb[224].mxu1 %v5341_v62  ;;  %v12652_v5 = vmax.f32 %v12651_v47, 0.0 }
 0x61d   :  { %6037 = vmatprep.mubr.f32.mxu1 %v12607_v53  ;;  %v5343_v1 = vmax.f32 %v5173_v0, 0.0  ;;  %v5275_v53 = vmax.f32 %v4833_v40, 0.0  ;;  %v12635_v0 = vld [vmem:[#allocation138_spill] sm:$0xff]  ;;  %v12653_v40 = vld [vmem:[#allocation57_spill] sm:$0xff] }
 0x61e   :  { %v5342_v11 = vmax.f32 %v5168_v12, 0.0 }
 0x61f   :  { %5673 = vmatmul.mubr.f32.gmra.mrb[214].mxu0 %v5269_v6 }
 0x620   :  { %5677 = vmatprep.mubr.f32.mxu0 %v12609_v49  ;;  %6038 = vmatmul.mubr.f32.gmra.mrb[226].mxu1 %v5342_v11  ;;  %v4838_v11 = vadd.f32 %v11752_v33, %v12635_v0  ;;  %v12637_v49 = vmax.f32 %v12636_v28, 0.0 }
 0x621   :  { %6042 = vmatprep.mubr.f32.mxu1 %v12612_v59  ;;  %v12638_v59 = vld [vmem:[#allocation56_spill] sm:$0xff] }
 0x622   :  { %v7932_v30 = vpop.f32.mrb[118].mxu0  ;;  %v5276_v17 = vmax.f32 %v4838_v11, 0.0  ;;  %v12658_v11 = vld [vmem:[#allocation60_spill] sm:$0xff] }
 0x623   :  { %v5177_v26 = vpop.f32.mrb[119].mxu0  ;;  %5678 = vmatmul.mubr.f32.gmra.mrb[216].mxu0 %v5270_v32  ;;  %v5183_v18 = vadd.f32 %v7932_v30, %v11371_v46  ;;  %v12659_v28 = vmax.f32 %v12658_v11, 0.0  ;;  %v12677_v11 = vld [vmem:[#allocation148_spill] sm:$0xff] }
 0x624   :  { %v5178_v14 = vadd.f32 %v11371_v46, %v5177_v26  ;;  %5682 = vmatprep.mubr.f32.mxu0 %v12614_v39  ;;  %6043 = vmatmul.mubr.f32.gmra.mrb[228].mxu1 %v5343_v1  ;;  %v12639_v1 = vmax.f32 %v12638_v59, 0.0  ;;  %v12640_v26 = vld [vmem:[#allocation71_spill] sm:$0xff]  ;;  %v12641_v39 = vld [vmem:[#allocation128_spill] sm:$0xff] }
 0x625   :  { %6047 = vmatprep.mubr.f32.mxu1 %v12617_v35  ;;  %v5345_v22 = vmax.f32 %v5183_v18, 0.0 }
 0x626   :  { %v5344_v20 = vmax.f32 %v5178_v14, 0.0  ;;  %v4843_v14 = vadd.f32 %v11752_v33, %v12640_v26 }
 0x627   :  { %5683 = vmatmul.mubr.f32.gmra.mrb[218].mxu0 %v5271_v2  ;;  %v12642_v2 = vmax.f32 %v12641_v39, 0.0 }
 0x628   :  { %5687 = vmatprep.mubr.f32.mxu0 %v12619_v29  ;;  %6048 = vmatmul.mubr.f32.gmra.mrb[230].mxu1 %v5344_v20  ;;  %v12644_v29 = vmax.f32 %v12643_v27, 0.0  ;;  %v5277_v50 = vmax.f32 %v4843_v14, 0.0 }
 0x629   :  { %6052 = vmatprep.mubr.f32.mxu1 %v12622_v51  ;;  %v12646_v51 = vld [vmem:[#allocation129_spill] sm:$0xff] }
 0x62a   :  { %v7935_v21 = vpop.f32.mrb[120].mxu0  ;;  %v5794_v58 = vpop.f32.mrb[128].mxu1 }
 0x62b   :  { %v5795_v45 = vadd.f32 %v11728_v23, %v5794_v58  ;;  %v5187_v57 = vpop.f32.mrb[121].mxu0  ;;  %5688 = vmatmul.mubr.f32.gmra.mrb[220].mxu0 %v5272_v8  ;;  %v5796_v55 = vpop.f32.mrb[129].mxu1  ;;  %v5193_v3 = vadd.f32 %v7935_v21, %v11371_v46  ;;  %v12645_v8 = vld [vmem:[#allocation140_spill] sm:$0xff] }
 0x62c   :  { %v5188_v36 = vadd.f32 %v11371_v46, %v5187_v57  ;;  %5692 = vmatprep.mubr.f32.mxu0 %v12624_v52  ;;  %6053 = vmatmul.mubr.f32.gmra.mrb[232].mxu1 %v5345_v22  ;;  %v12634_v46 = vmax.f32 %v12633_v42, 0.0  ;;  %v4848_v7 = vadd.f32 %v11752_v33, %v12645_v8  ;;  %v12647_v22 = vmax.f32 %v12646_v51, 0.0  ;;  %v12648_v55 = vld [vmem:[#allocation58_spill] sm:$0xff]  ;;  %v12650_v52 = vld [vmem:[#allocation139_spill] sm:$0xff] }
 0x62d   :  { %6165 = vst [vmem:[#allocation2 + $0x218] sm:$0xff] %v5795_v45  ;;  %6057 = vmatprep.mubr.f32.mxu1 %v12627_v38  ;;  %v5347_v62 = vmax.f32 %v5193_v3, 0.0  ;;  %v12666_v8 = vld [vmem:[#allocation62_spill] sm:$0xff] }
 0x62e   :  { %v5346_v9 = vmax.f32 %v5188_v36, 0.0  ;;  %v12649_v36 = vmax.f32 %v12648_v55, 0.0  ;;  %v5278_v60 = vmax.f32 %v4848_v7, 0.0  ;;  %v12667_v7 = vmax.f32 %v12666_v8, 0.0 }
 0x62f   :  { %5693 = vmatmul.mubr.f32.gmra.mrb[222].mxu0 %v5273_v34  ;;  %v4853_v34 = vadd.f32 %v11752_v33, %v12650_v52  ;;  %v12669_v52 = vld [vmem:[#allocation61_spill] sm:$0xff] }
 0x630   :  { %5697 = vmatprep.mubr.f32.mxu0 %v12629_v41  ;;  %6058 = vmatmul.mubr.f32.gmra.mrb[234].mxu1 %v5346_v9 }
 0x631   :  { %6062 = vmatprep.mubr.f32.mxu1 %v12632_v25  ;;  %v5279_v25 = vmax.f32 %v4853_v34, 0.0  ;;  %v12670_v34 = vmax.f32 %v12669_v52, 0.0 }
 0x632   :  { %v7938_v63 = vpop.f32.mrb[122].mxu0 }
 0x633   :  { %v5197_v24 = vpop.f32.mrb[123].mxu0  ;;  %5698 = vmatmul.mubr.f32.gmra.mrb[224].mxu0 %v5274_v16  ;;  %v5799_v12 = vpop.f32.mrb[130].mxu1  ;;  %v5203_v4 = vadd.f32 %v11752_v33, %v7938_v63  ;;  %v12654_v16 = vmax.f32 %v12653_v40, 0.0  ;;  %v12672_v40 = vld [vmem:[#allocation64_spill] sm:$0xff] }
 0x634   :  { %v5198_v54 = vadd.f32 %v11752_v33, %v5197_v24  ;;  %v5800_v6 = vadd.f32 %v11728_v23, %v5799_v12  ;;  %5702 = vmatprep.mubr.f32.mxu0 %v12634_v46  ;;  %v5801_v37 = vpop.f32.mrb[131].mxu1  ;;  %6063 = vmatmul.mubr.f32.gmra.mrb[236].mxu1 %v5347_v62  ;;  %v12655_v62 = vld [vmem:[#allocation142_spill] sm:$0xff]  ;;  %v12656_v24 = vld [vmem:[#allocation131_spill] sm:$0xff] }
 0x635   :  { %6067 = vmatprep.mubr.f32.mxu1 %v12637_v49  ;;  %v5349_v61 = vmax.f32 %v5203_v4, 0.0  ;;  %v4858_v63 = vadd.f32 %v11752_v33, %v12655_v62  ;;  %v12657_v12 = vmax.f32 %v12656_v24, 0.0  ;;  %v12660_v4 = vld [vmem:[#allocation141_spill] sm:$0xff] }
 0x636   :  { %v5348_v10 = vmax.f32 %v5198_v54, 0.0  ;;  %6166 = vst [vmem:[#allocation2 + $0x220] sm:$0xff] %v5800_v6 }
 0x637   :  { %5703 = vmatmul.mubr.f32.gmra.mrb[226].mxu0 %v5275_v53  ;;  %v5804_v32 = vpop.f32.mrb[132].mxu1 }
 0x638   :  { %v5805_v44 = vadd.f32 %v11728_v23, %v5804_v32  ;;  %5707 = vmatprep.mubr.f32.mxu0 %v12639_v1  ;;  %v5806_v30 = vpop.f32.mrb[133].mxu1  ;;  %6068 = vmatmul.mubr.f32.gmra.mrb[238].mxu1 %v5348_v10  ;;  %v4863_v10 = vadd.f32 %v11752_v33, %v12660_v4  ;;  %v5280_v32 = vmax.f32 %v4858_v63, 0.0 }
 0x639   :  { %6072 = vmatprep.mubr.f32.mxu1 %v12642_v2  ;;  %v12663_v2 = vld [vmem:[#allocation59_spill] sm:$0xff] }
 0x63a   :  { %6167 = vst [vmem:[#allocation2 + $0x228] sm:$0xff] %v5805_v44  ;;  %v7941_v43 = vpop.f32.mrb[124].mxu0  ;;  %v12661_v44 = vld [vmem:[#allocation132_spill] sm:$0xff] }
 0x63b   :  { %v5207_v19 = vpop.f32.mrb[125].mxu0  ;;  %5708 = vmatmul.mubr.f32.gmra.mrb[228].mxu0 %v5276_v17  ;;  %v5809_v35 = vpop.f32.mrb[134].mxu1  ;;  %v5213_v21 = vadd.f32 %v11752_v33, %v7941_v43  ;;  %v12662_v59 = vmax.f32 %v12661_v44, 0.0 }
 0x63c   :  { %v5208_v18 = vadd.f32 %v11752_v33, %v5207_v19  ;;  %v5810_v20 = vadd.f32 %v11728_v23, %v5809_v35  ;;  %5712 = vmatprep.mubr.f32.mxu0 %v12644_v29  ;;  %v5811_v13 = vpop.f32.mrb[135].mxu1  ;;  %6073 = vmatmul.mubr.f32.gmra.mrb[240].mxu1 %v5349_v61  ;;  %v12664_v61 = vmax.f32 %v12663_v2, 0.0  ;;  %v5281_v19 = vmax.f32 %v4863_v10, 0.0  ;;  %v12665_v35 = vld [vmem:[#allocation144_spill] sm:$0xff] }
 0x63d   :  { %6077 = vmatprep.mubr.f32.mxu1 %v12647_v22  ;;  %v5351_v38 = vmax.f32 %v5213_v21, 0.0  ;;  %v12668_v22 = vld [vmem:[#allocation143_spill] sm:$0xff] }
 0x63e   :  { %v5350_v58 = vmax.f32 %v5208_v18, 0.0  ;;  %6168 = vst [vmem:[#allocation2 + $0x230] sm:$0xff] %v5810_v20  ;;  %v4868_v18 = vadd.f32 %v11752_v33, %v12665_v35  ;;  %v4873_v21 = vadd.f32 %v11752_v33, %v12668_v22  ;;  %v12681_v35 = vld [vmem:[#allocation65_spill] sm:$0xff] }
 0x63f   :  { %5713 = vmatmul.mubr.f32.gmra.mrb[230].mxu0 %v5277_v50  ;;  %v5814_v45 = vpop.f32.mrb[136].mxu1 }
 0x640   :  { %v5815_v57 = vadd.f32 %v11728_v23, %v5814_v45  ;;  %5717 = vmatprep.mubr.f32.mxu0 %v12649_v36  ;;  %v5816_v15 = vpop.f32.mrb[137].mxu1  ;;  %6078 = vmatmul.mubr.f32.gmra.mrb[242].mxu1 %v5350_v58  ;;  %v5282_v58 = vmax.f32 %v4868_v18, 0.0  ;;  %v5283_v47 = vmax.f32 %v4873_v21, 0.0  ;;  %v12682_v18 = vmax.f32 %v12681_v35, 0.0  ;;  %v12684_v21 = vld [vmem:[#allocation68_spill] sm:$0xff] }
 0x641   :  { %6082 = vmatprep.mubr.f32.mxu1 %v12652_v5  ;;  %v12671_v5 = vld [vmem:[#allocation146_spill] sm:$0xff] }
 0x642   :  { %6169 = vst [vmem:[#allocation2 + $0x238] sm:$0xff] %v5815_v57  ;;  %v7944_v3 = vpop.f32.mrb[126].mxu0 }
 0x643   :  { %v5217_v9 = vpop.f32.mrb[127].mxu0  ;;  %5718 = vmatmul.mubr.f32.gmra.mrb[232].mxu0 %v5278_v60  ;;  %v5819_v31 = vpop.f32.mrb[138].mxu1  ;;  %v5223_v54 = vadd.f32 %v11752_v33, %v7944_v3 }
 0x644   :  { %v5218_v41 = vadd.f32 %v11752_v33, %v5217_v9  ;;  %v5820_v48 = vadd.f32 %v11728_v23, %v5819_v31  ;;  %5722 = vmatprep.mubr.f32.mxu0 %v12654_v16  ;;  %v5821_v56 = vpop.f32.mrb[139].mxu1  ;;  %6083 = vmatmul.mubr.f32.gmra.mrb[244].mxu1 %v5351_v38  ;;  %v4878_v38 = vadd.f32 %v11752_v33, %v12671_v5  ;;  %v12673_v16 = vmax.f32 %v12672_v40, 0.0  ;;  %v12687_v5 = vld [vmem:[#allocation67_spill] sm:$0xff] }
 0x645   :  { %6087 = vmatprep.mubr.f32.mxu1 %v12657_v12  ;;  %v5353_v1 = vmax.f32 %v5223_v54, 0.0 }
 0x646   :  { %v5352_v6 = vmax.f32 %v5218_v41, 0.0  ;;  %6170 = vst [vmem:[#allocation2 + $0x240] sm:$0xff] %v5820_v48  ;;  %v5459_v42 = vpop.f32.mrb[128].mxu0  ;;  %v5284_v63 = vmax.f32 %v4878_v38, 0.0  ;;  %v12688_v38 = vmax.f32 %v12687_v5, 0.0 }
 0x647   :  { %v5460_v46 = vadd.f32 %v11728_v23, %v5459_v42  ;;  %v5461_v37 = vpop.f32.mrb[129].mxu0  ;;  %5723 = vmatmul.mubr.f32.gmra.mrb[234].mxu0 %v5279_v25  ;;  %v5824_v53 = vpop.f32.mrb[140].mxu1  ;;  %v12674_v25 = vld [vmem:[#allocation145_spill] sm:$0xff] }
 0x648   :  { %v5825_v0 = vadd.f32 %v11728_v23, %v5824_v53  ;;  %5727 = vmatprep.mubr.f32.mxu0 %v12659_v28  ;;  %v5826_v49 = vpop.f32.mrb[141].mxu1  ;;  %6088 = vmatmul.mubr.f32.gmra.mrb[246].mxu1 %v5352_v6  ;;  %v4883_v62 = vadd.f32 %v11752_v33, %v12674_v25  ;;  %v4888_v28 = vadd.f32 %v11752_v33, %v12677_v11  ;;  %v12693_v11 = vld [vmem:[#allocation69_spill] sm:$0xff] }
 0x649   :  { %6098 = vst [vmem:[#allocation2] sm:$0xff] %v5460_v46  ;;  %6092 = vmatprep.mubr.f32.mxu1 %v12662_v59  ;;  %v12675_v46 = vld [vmem:[#allocation63_spill] sm:$0xff]  ;;  %v12678_v59 = vld [vmem:[#allocation66_spill] sm:$0xff] }
 0x64a   :  { %6171 = vst [vmem:[#allocation2 + $0x248] sm:$0xff] %v5825_v0  ;;  %v5464_v30 = vpop.f32.mrb[130].mxu0  ;;  %v12676_v37 = vmax.f32 %v12675_v46, 0.0  ;;  %v5285_v0 = vmax.f32 %v4883_v62, 0.0  ;;  %v12690_v62 = vld [vmem:[#allocation70_spill] sm:$0xff] }
 0x64b   :  { %v5465_v26 = vadd.f32 %v11728_v23, %v5464_v30  ;;  %v5466_v14 = vpop.f32.mrb[131].mxu0  ;;  %5728 = vmatmul.mubr.f32.gmra.mrb[236].mxu0 %v5280_v32  ;;  %v5829_v17 = vpop.f32.mrb[142].mxu1 }
 0x64c   :  { %v5830_v39 = vadd.f32 %v11728_v23, %v5829_v17  ;;  %5732 = vmatprep.mubr.f32.mxu0 %v12664_v61  ;;  %v5831_v43 = vpop.f32.mrb[143].mxu1  ;;  %6093 = vmatmul.mubr.f32.gmra.mrb[248].mxu1 %v5353_v1  ;;  %v12679_v1 = vmax.f32 %v12678_v59, 0.0  ;;  %v5286_v17 = vmax.f32 %v4888_v28, 0.0  ;;  %v12694_v28 = vmax.f32 %v12693_v11, 0.0 }
 0x64d   :  { %6099 = vst [vmem:[#allocation2 + $0x8] sm:$0xff] %v5465_v26  ;;  %v12680_v26 = vld [vmem:[#allocation147_spill] sm:$0xff] }
 0x64e   :  { %6172 = vst [vmem:[#allocation2 + $0x250] sm:$0xff] %v5830_v39  ;;  %v5469_v20 = vpop.f32.mrb[132].mxu0  ;;  %v4893_v14 = vadd.f32 %v11752_v33, %v12680_v26 }
 0x64f   :  { %v5470_v27 = vadd.f32 %v11728_v23, %v5469_v20  ;;  %v5471_v29 = vpop.f32.mrb[133].mxu0  ;;  %5733 = vmatmul.mubr.f32.gmra.mrb[238].mxu0 %v5281_v19  ;;  %v5834_v13 = vpop.f32.mrb[144].mxu1 }
 0x650   :  { %v5835_v50 = vadd.f32 %v11728_v23, %v5834_v13  ;;  %5737 = vmatprep.mubr.f32.mxu0 %v12667_v7  ;;  %v5836_v51 = vpop.f32.mrb[145].mxu1  ;;  %v12683_v29 = vld [vmem:[#allocation150_spill] sm:$0xff] }
 0x651   :  { %6100 = vst [vmem:[#allocation2 + $0x10] sm:$0xff] %v5470_v27  ;;  %v5287_v27 = vmax.f32 %v4893_v14, 0.0  ;;  %v4898_v13 = vadd.f32 %v11752_v33, %v12683_v29  ;;  %v12696_v14 = vld [vmem:[#allocation72_spill] sm:$0xff] }
 0x652   :  { %6173 = vst [vmem:[#allocation2 + $0x258] sm:$0xff] %v5835_v50  ;;  %v5474_v45 = vpop.f32.mrb[134].mxu0 }
 0x653   :  { %v5475_v57 = vadd.f32 %v11728_v23, %v5474_v45  ;;  %v5476_v55 = vpop.f32.mrb[135].mxu0  ;;  %5738 = vmatmul.mubr.f32.gmra.mrb[240].mxu0 %v5282_v58  ;;  %v5839_v36 = vpop.f32.mrb[146].mxu1  ;;  %v12685_v58 = vmax.f32 %v12684_v21, 0.0 }
 0x654   :  { %v5840_v15 = vadd.f32 %v11728_v23, %v5839_v36  ;;  %5742 = vmatprep.mubr.f32.mxu0 %v12670_v34  ;;  %v5841_v60 = vpop.f32.mrb[147].mxu1  ;;  %v5288_v36 = vmax.f32 %v4898_v13, 0.0 }
 0x655   :  { %6101 = vst [vmem:[#allocation2 + $0x18] sm:$0xff] %v5475_v57  ;;  %v12686_v57 = vld [vmem:[#allocation149_spill] sm:$0xff] }
 0x656   :  { %6174 = vst [vmem:[#allocation2 + $0x260] sm:$0xff] %v5840_v15  ;;  %v5479_v3 = vpop.f32.mrb[136].mxu0  ;;  %v4903_v55 = vadd.f32 %v11752_v33, %v12686_v57 }
 0x657   :  { %v5480_v9 = vadd.f32 %v11728_v23, %v5479_v3  ;;  %v5481_v31 = vpop.f32.mrb[137].mxu0  ;;  %5743 = vmatmul.mubr.f32.gmra.mrb[242].mxu0 %v5283_v47  ;;  %v5844_v41 = vpop.f32.mrb[148].mxu1 }
 0x658   :  { %v5845_v48 = vadd.f32 %v11728_v23, %v5844_v41  ;;  %5747 = vmatprep.mubr.f32.mxu0 %v12673_v16  ;;  %v5846_v56 = vpop.f32.mrb[149].mxu1  ;;  %v12689_v31 = vld [vmem:[#allocation152_spill] sm:$0xff] }
 0x659   :  { %6102 = vst [vmem:[#allocation2 + $0x20] sm:$0xff] %v5480_v9  ;;  %v5289_v9 = vmax.f32 %v4903_v55, 0.0  ;;  %v4908_v41 = vadd.f32 %v11752_v33, %v12689_v31 }
 0x65a   :  { %6175 = vst [vmem:[#allocation2 + $0x268] sm:$0xff] %v5845_v48  ;;  %v5484_v24 = vpop.f32.mrb[138].mxu0 }
 0x65b   :  { %v5485_v12 = vadd.f32 %v11728_v23, %v5484_v24  ;;  %v5486_v54 = vpop.f32.mrb[139].mxu0  ;;  %5748 = vmatmul.mubr.f32.gmra.mrb[244].mxu0 %v5284_v63  ;;  %v5849_v6 = vpop.f32.mrb[150].mxu1  ;;  %v12691_v63 = vmax.f32 %v12690_v62, 0.0 }
 0x65c   :  { %v5850_v42 = vadd.f32 %v11728_v23, %v5849_v6  ;;  %5752 = vmatprep.mubr.f32.mxu0 %v12676_v37  ;;  %v5851_v53 = vpop.f32.mrb[151].mxu1  ;;  %v5290_v6 = vmax.f32 %v4908_v41, 0.0 }
 0x65d   :  { %6103 = vst [vmem:[#allocation2 + $0x28] sm:$0xff] %v5485_v12  ;;  %v12692_v12 = vld [vmem:[#allocation151_spill] sm:$0xff] }
 0x65e   :  { %6176 = vst [vmem:[#allocation2 + $0x270] sm:$0xff] %v5850_v42  ;;  %v5489_v49 = vpop.f32.mrb[140].mxu0  ;;  %v4913_v54 = vadd.f32 %v11752_v33, %v12692_v12 }
 0x65f   :  { %v5490_v4 = vadd.f32 %v11728_v23, %v5489_v49  ;;  %v5491_v10 = vpop.f32.mrb[141].mxu0  ;;  %5753 = vmatmul.mubr.f32.gmra.mrb[246].mxu0 %v5285_v0  ;;  %v5854_v32 = vpop.f32.mrb[152].mxu1 }
 0x660   :  { %v5855_v44 = vadd.f32 %v11728_v23, %v5854_v32  ;;  %5757 = vmatprep.mubr.f32.mxu0 %v12679_v1  ;;  %v5856_v30 = vpop.f32.mrb[153].mxu1  ;;  %v12695_v10 = vld [vmem:[#allocation153_spill] sm:$0xff] }
 0x661   :  { %6104 = vst [vmem:[#allocation2 + $0x30] sm:$0xff] %v5490_v4  ;;  %v5291_v4 = vmax.f32 %v4913_v54, 0.0  ;;  %v4918_v32 = vadd.f32 %v11752_v33, %v12695_v10 }
 0x662   :  { %6177 = vst [vmem:[#allocation2 + $0x278] sm:$0xff] %v5855_v44  ;;  %v5494_v39 = vpop.f32.mrb[142].mxu0 }
 0x663   :  { %v5495_v2 = vadd.f32 %v11728_v23, %v5494_v39  ;;  %v5496_v61 = vpop.f32.mrb[143].mxu0  ;;  %5758 = vmatmul.mubr.f32.gmra.mrb[248].mxu0 %v5286_v17  ;;  %v5859_v43 = vpop.f32.mrb[154].mxu1  ;;  %v12697_v17 = vmax.f32 %v12696_v14, 0.0 }
 0x664   :  { %v5860_v19 = vadd.f32 %v11728_v23, %v5859_v43  ;;  %5762 = vmatprep.mubr.f32.mxu0 %v12682_v18  ;;  %v5861_v20 = vpop.f32.mrb[155].mxu1 }
 0x665   :  { %6105 = vst [vmem:[#allocation2 + $0x38] sm:$0xff] %v5495_v2  ;;  %v5292_v2 = vmax.f32 %v4918_v32, 0.0 }
 0x666   :  { %6178 = vst [vmem:[#allocation2 + $0x280] sm:$0xff] %v5860_v19  ;;  %v5499_v50 = vpop.f32.mrb[144].mxu0 }
 0x667   :  { %v5500_v8 = vadd.f32 %v11728_v23, %v5499_v50  ;;  %v5501_v7 = vpop.f32.mrb[145].mxu0  ;;  %5763 = vmatmul.mubr.f32.gmra.mrb[250].mxu0 %v5287_v27  ;;  %v5864_v51 = vpop.f32.mrb[156].mxu1 }
 0x668   :  { %v5865_v22 = vadd.f32 %v11728_v23, %v5864_v51  ;;  %5767 = vmatprep.mubr.f32.mxu0 %v12685_v58  ;;  %v5866_v45 = vpop.f32.mrb[157].mxu1 }
 0x669   :  { %6106 = vst [vmem:[#allocation2 + $0x40] sm:$0xff] %v5500_v8 }
 0x66a   :  { %6179 = vst [vmem:[#allocation2 + $0x288] sm:$0xff] %v5865_v22  ;;  %v5504_v15 = vpop.f32.mrb[146].mxu0 }
 0x66b   :  { %v5505_v52 = vadd.f32 %v11728_v23, %v5504_v15  ;;  %v5506_v34 = vpop.f32.mrb[147].mxu0  ;;  %5768 = vmatmul.mubr.f32.gmra.mrb[252].mxu0 %v5288_v36  ;;  %v5869_v60 = vpop.f32.mrb[158].mxu1 }
 0x66c   :  { %v5870_v47 = vadd.f32 %v11728_v23, %v5869_v60  ;;  %5772 = vmatprep.mubr.f32.mxu0 %v12688_v38  ;;  %v5871_v3 = vpop.f32.mrb[159].mxu1 }
 0x66d   :  { %6107 = vst [vmem:[#allocation2 + $0x48] sm:$0xff] %v5505_v52 }
 0x66e   :  { %6180 = vst [vmem:[#allocation2 + $0x290] sm:$0xff] %v5870_v47  ;;  %v5509_v48 = vpop.f32.mrb[148].mxu0 }
 0x66f   :  { %v5510_v40 = vadd.f32 %v11728_v23, %v5509_v48  ;;  %v5511_v16 = vpop.f32.mrb[149].mxu0  ;;  %5773 = vmatmul.mubr.f32.gmra.mrb[254].mxu0 %v5289_v9  ;;  %v5874_v56 = vpop.f32.mrb[160].mxu1 }
 0x670   :  { %v5875_v25 = vadd.f32 %v11728_v23, %v5874_v56  ;;  %5777 = vmatprep.mubr.f32.mxu0 %v12691_v63  ;;  %v5876_v24 = vpop.f32.mrb[161].mxu1 }
 0x671   :  { %6108 = vst [vmem:[#allocation2 + $0x50] sm:$0xff] %v5510_v40 }
 0x672   :  { %6181 = vst [vmem:[#allocation2 + $0x298] sm:$0xff] %v5875_v25  ;;  %v5514_v42 = vpop.f32.mrb[150].mxu0 }
 0x673   :  { %v5515_v46 = vadd.f32 %v11728_v23, %v5514_v42  ;;  %v5516_v37 = vpop.f32.mrb[151].mxu0  ;;  %5778 = vmatmul.mubr.f32.gmra.mrb[0].mxu0 %v5290_v6  ;;  %v5879_v53 = vpop.f32.mrb[162].mxu1 }
 0x674   :  { %v5880_v0 = vadd.f32 %v11728_v23, %v5879_v53  ;;  %5782 = vmatprep.mubr.f32.mxu0 %v12694_v28  ;;  %v5881_v49 = vpop.f32.mrb[163].mxu1 }
 0x675   :  { %6109 = vst [vmem:[#allocation2 + $0x58] sm:$0xff] %v5515_v46 }
 0x676   :  { %6182 = vst [vmem:[#allocation2 + $0x2a0] sm:$0xff] %v5880_v0  ;;  %v5519_v44 = vpop.f32.mrb[152].mxu0 }
 0x677   :  { %v5520_v59 = vadd.f32 %v11728_v23, %v5519_v44  ;;  %v5521_v1 = vpop.f32.mrb[153].mxu0  ;;  %5783 = vmatmul.mubr.f32.gmra.mrb[2].mxu0 %v5291_v4  ;;  %v5884_v30 = vpop.f32.mrb[164].mxu1 }
 0x678   :  { %v5885_v26 = vadd.f32 %v11728_v23, %v5884_v30  ;;  %5787 = vmatprep.mubr.f32.mxu0 %v12697_v17  ;;  %v5886_v39 = vpop.f32.mrb[165].mxu1 }
 0x679   :  { %6110 = vst [vmem:[#allocation2 + $0x60] sm:$0xff] %v5520_v59 }
 0x67a   :  { %6183 = vst [vmem:[#allocation2 + $0x2a8] sm:$0xff] %v5885_v26  ;;  %v5524_v61 = vpop.f32.mrb[154].mxu0 }
 0x67b   :  { %v5525_v33 = vadd.f32 %v11728_v23, %v5524_v61  ;;  %v5526_v43 = vpop.f32.mrb[155].mxu0  ;;  %5788 = vmatmul.mubr.f32.gmra.mrb[4].mxu0 %v5292_v2  ;;  %v5889_v19 = vpop.f32.mrb[166].mxu1 }
 0x67c   :  { %v5890_v35 = vadd.f32 %v11728_v23, %v5889_v19  ;;  %v5891_v18 = vpop.f32.mrb[167].mxu1 }
 0x67d   :  { %6111 = vst [vmem:[#allocation2 + $0x68] sm:$0xff] %v5525_v33 }
 0x67e   :  { %6184 = vst [vmem:[#allocation2 + $0x2b0] sm:$0xff] %v5890_v35  ;;  %v5529_v20 = vpop.f32.mrb[156].mxu0 }
 0x67f   :  { %v5530_v27 = vadd.f32 %v11728_v23, %v5529_v20  ;;  %v5531_v29 = vpop.f32.mrb[157].mxu0  ;;  %v5894_v13 = vpop.f32.mrb[168].mxu1 }
 0x680   :  { %v5895_v50 = vadd.f32 %v11728_v23, %v5894_v13  ;;  %v5896_v8 = vpop.f32.mrb[169].mxu1 }
 0x681   :  { %6112 = vst [vmem:[#allocation2 + $0x70] sm:$0xff] %v5530_v27 }
 0x682   :  { %6185 = vst [vmem:[#allocation2 + $0x2b8] sm:$0xff] %v5895_v50  ;;  %v5534_v7 = vpop.f32.mrb[158].mxu0 }
 0x683   :  { %v5535_v51 = vadd.f32 %v11728_v23, %v5534_v7  ;;  %v5536_v22 = vpop.f32.mrb[159].mxu0  ;;  %v5899_v21 = vpop.f32.mrb[170].mxu1 }
 0x684   :  { %v5900_v58 = vadd.f32 %v11728_v23, %v5899_v21  ;;  %v5901_v45 = vpop.f32.mrb[171].mxu1 }
 0x685   :  { %6113 = vst [vmem:[#allocation2 + $0x78] sm:$0xff] %v5535_v51 }
 0x686   :  { %6186 = vst [vmem:[#allocation2 + $0x2c0] sm:$0xff] %v5900_v58  ;;  %v5539_v57 = vpop.f32.mrb[160].mxu0 }
 0x687   :  { %v5540_v55 = vadd.f32 %v11728_v23, %v5539_v57  ;;  %v5541_v36 = vpop.f32.mrb[161].mxu0  ;;  %v5904_v15 = vpop.f32.mrb[172].mxu1 }
 0x688   :  { %v5905_v52 = vadd.f32 %v11728_v23, %v5904_v15  ;;  %v5906_v34 = vpop.f32.mrb[173].mxu1 }
 0x689   :  { %6114 = vst [vmem:[#allocation2 + $0x80] sm:$0xff] %v5540_v55 }
 0x68a   :  { %6187 = vst [vmem:[#allocation2 + $0x2c8] sm:$0xff] %v5905_v52  ;;  %v5544_v60 = vpop.f32.mrb[162].mxu0 }
 0x68b   :  { %v5545_v47 = vadd.f32 %v11728_v23, %v5544_v60  ;;  %v5546_v5 = vpop.f32.mrb[163].mxu0  ;;  %v5909_v38 = vpop.f32.mrb[174].mxu1 }
 0x68c   :  { %v5910_v3 = vadd.f32 %v11728_v23, %v5909_v38  ;;  %v5911_v9 = vpop.f32.mrb[175].mxu1 }
 0x68d   :  { %6115 = vst [vmem:[#allocation2 + $0x88] sm:$0xff] %v5545_v47 }
 0x68e   :  { %6188 = vst [vmem:[#allocation2 + $0x2d0] sm:$0xff] %v5910_v3  ;;  %v5549_v31 = vpop.f32.mrb[164].mxu0 }
 0x68f   :  { %v5550_v41 = vadd.f32 %v11728_v23, %v5549_v31  ;;  %v5551_v48 = vpop.f32.mrb[165].mxu0  ;;  %v5914_v40 = vpop.f32.mrb[176].mxu1 }
 0x690   :  { %v5915_v16 = vadd.f32 %v11728_v23, %v5914_v40  ;;  %v5916_v56 = vpop.f32.mrb[177].mxu1 }
 0x691   :  { %6116 = vst [vmem:[#allocation2 + $0x90] sm:$0xff] %v5550_v41 }
 0x692   :  { %6189 = vst [vmem:[#allocation2 + $0x2d8] sm:$0xff] %v5915_v16  ;;  %v5554_v25 = vpop.f32.mrb[166].mxu0 }
 0x693   :  { %v5555_v62 = vadd.f32 %v11728_v23, %v5554_v25  ;;  %v5556_v63 = vpop.f32.mrb[167].mxu0  ;;  %v5919_v24 = vpop.f32.mrb[178].mxu1 }
 0x694   :  { %v5920_v12 = vadd.f32 %v11728_v23, %v5919_v24  ;;  %v5921_v54 = vpop.f32.mrb[179].mxu1 }
 0x695   :  { %6117 = vst [vmem:[#allocation2 + $0x98] sm:$0xff] %v5555_v62 }
 0x696   :  { %6190 = vst [vmem:[#allocation2 + $0x2e0] sm:$0xff] %v5920_v12  ;;  %v5559_v6 = vpop.f32.mrb[168].mxu0 }
 0x697   :  { %v5560_v42 = vadd.f32 %v11728_v23, %v5559_v6  ;;  %v5561_v46 = vpop.f32.mrb[169].mxu0  ;;  %v5924_v37 = vpop.f32.mrb[180].mxu1 }
 0x698   :  { %v5925_v53 = vadd.f32 %v11728_v23, %v5924_v37  ;;  %v5926_v0 = vpop.f32.mrb[181].mxu1 }
 0x699   :  { %6118 = vst [vmem:[#allocation2 + $0xa0] sm:$0xff] %v5560_v42 }
 0x69a   :  { %6191 = vst [vmem:[#allocation2 + $0x2e8] sm:$0xff] %v5925_v53  ;;  %v5564_v11 = vpop.f32.mrb[170].mxu0 }
 0x69b   :  { %v5565_v28 = vadd.f32 %v11728_v23, %v5564_v11  ;;  %v5566_v49 = vpop.f32.mrb[171].mxu0  ;;  %v5929_v4 = vpop.f32.mrb[182].mxu1 }
 0x69c   :  { %v5930_v10 = vadd.f32 %v11728_v23, %v5929_v4  ;;  %v5931_v32 = vpop.f32.mrb[183].mxu1 }
 0x69d   :  { %6119 = vst [vmem:[#allocation2 + $0xa8] sm:$0xff] %v5565_v28 }
 0x69e   :  { %6192 = vst [vmem:[#allocation2 + $0x2f0] sm:$0xff] %v5930_v10  ;;  %v5569_v44 = vpop.f32.mrb[172].mxu0 }
 0x69f   :  { %v5570_v59 = vadd.f32 %v11728_v23, %v5569_v44  ;;  %v5571_v1 = vpop.f32.mrb[173].mxu0  ;;  %v5934_v30 = vpop.f32.mrb[184].mxu1 }
 0x6a0   :  { %v5935_v26 = vadd.f32 %v11728_v23, %v5934_v30  ;;  %v5936_v14 = vpop.f32.mrb[185].mxu1 }
 0x6a1   :  { %6120 = vst [vmem:[#allocation2 + $0xb0] sm:$0xff] %v5570_v59 }
 0x6a2   :  { %6193 = vst [vmem:[#allocation2 + $0x2f8] sm:$0xff] %v5935_v26  ;;  %v5574_v17 = vpop.f32.mrb[174].mxu0 }
 0x6a3   :  { %v5575_v39 = vadd.f32 %v11728_v23, %v5574_v17  ;;  %v5576_v2 = vpop.f32.mrb[175].mxu0  ;;  %v5939_v61 = vpop.f32.mrb[186].mxu1 }
 0x6a4   :  { %v5940_v33 = vadd.f32 %v11728_v23, %v5939_v61  ;;  %v5941_v43 = vpop.f32.mrb[187].mxu1 }
 0x6a5   :  { %6121 = vst [vmem:[#allocation2 + $0xb8] sm:$0xff] %v5575_v39 }
 0x6a6   :  { %6194 = vst [vmem:[#allocation2 + $0x300] sm:$0xff] %v5940_v33  ;;  %v5579_v19 = vpop.f32.mrb[176].mxu0 }
 0x6a7   :  { %v5580_v35 = vadd.f32 %v11728_v23, %v5579_v19  ;;  %v5581_v18 = vpop.f32.mrb[177].mxu0  ;;  %v5944_v20 = vpop.f32.mrb[188].mxu1 }
 0x6a8   :  { %v5945_v27 = vadd.f32 %v11728_v23, %v5944_v20  ;;  %v5946_v29 = vpop.f32.mrb[189].mxu1 }
 0x6a9   :  { %6122 = vst [vmem:[#allocation2 + $0xc0] sm:$0xff] %v5580_v35 }
 0x6aa   :  { %6195 = vst [vmem:[#allocation2 + $0x308] sm:$0xff] %v5945_v27  ;;  %v5584_v13 = vpop.f32.mrb[178].mxu0 }
 0x6ab   :  { %v5585_v50 = vadd.f32 %v11728_v23, %v5584_v13  ;;  %v5586_v8 = vpop.f32.mrb[179].mxu0  ;;  %v5949_v7 = vpop.f32.mrb[190].mxu1 }
 0x6ac   :  { %v5950_v51 = vadd.f32 %v11728_v23, %v5949_v7  ;;  %v5951_v22 = vpop.f32.mrb[191].mxu1 }
 0x6ad   :  { %6123 = vst [vmem:[#allocation2 + $0xc8] sm:$0xff] %v5585_v50 }
 0x6ae   :  { %6196 = vst [vmem:[#allocation2 + $0x310] sm:$0xff] %v5950_v51  ;;  %v5589_v21 = vpop.f32.mrb[180].mxu0 }
 0x6af   :  { %v5590_v58 = vadd.f32 %v11728_v23, %v5589_v21  ;;  %v5591_v45 = vpop.f32.mrb[181].mxu0  ;;  %v5954_v57 = vpop.f32.mrb[192].mxu1 }
 0x6b0   :  { %v5955_v55 = vadd.f32 %v11728_v23, %v5954_v57  ;;  %v5956_v36 = vpop.f32.mrb[193].mxu1 }
 0x6b1   :  { %6124 = vst [vmem:[#allocation2 + $0xd0] sm:$0xff] %v5590_v58 }
 0x6b2   :  { %6197 = vst [vmem:[#allocation2 + $0x318] sm:$0xff] %v5955_v55  ;;  %v5594_v15 = vpop.f32.mrb[182].mxu0 }
 0x6b3   :  { %v5595_v52 = vadd.f32 %v11728_v23, %v5594_v15  ;;  %v5596_v34 = vpop.f32.mrb[183].mxu0  ;;  %v5959_v60 = vpop.f32.mrb[194].mxu1 }
 0x6b4   :  { %v5960_v47 = vadd.f32 %v11728_v23, %v5959_v60  ;;  %v5961_v5 = vpop.f32.mrb[195].mxu1 }
 0x6b5   :  { %6125 = vst [vmem:[#allocation2 + $0xd8] sm:$0xff] %v5595_v52 }
 0x6b6   :  { %6198 = vst [vmem:[#allocation2 + $0x320] sm:$0xff] %v5960_v47  ;;  %v5599_v38 = vpop.f32.mrb[184].mxu0 }
 0x6b7   :  { %v5600_v3 = vadd.f32 %v11728_v23, %v5599_v38  ;;  %v5601_v9 = vpop.f32.mrb[185].mxu0  ;;  %v5964_v31 = vpop.f32.mrb[196].mxu1 }
 0x6b8   :  { %v5965_v41 = vadd.f32 %v11728_v23, %v5964_v31  ;;  %v5966_v48 = vpop.f32.mrb[197].mxu1 }
 0x6b9   :  { %6126 = vst [vmem:[#allocation2 + $0xe0] sm:$0xff] %v5600_v3 }
 0x6ba   :  { %6199 = vst [vmem:[#allocation2 + $0x328] sm:$0xff] %v5965_v41  ;;  %v5604_v40 = vpop.f32.mrb[186].mxu0 }
 0x6bb   :  { %v5605_v16 = vadd.f32 %v11728_v23, %v5604_v40  ;;  %v5606_v56 = vpop.f32.mrb[187].mxu0  ;;  %v5969_v25 = vpop.f32.mrb[198].mxu1 }
 0x6bc   :  { %v5970_v62 = vadd.f32 %v11728_v23, %v5969_v25  ;;  %v5971_v63 = vpop.f32.mrb[199].mxu1 }
 0x6bd   :  { %6127 = vst [vmem:[#allocation2 + $0xe8] sm:$0xff] %v5605_v16 }
 0x6be   :  { %6200 = vst [vmem:[#allocation2 + $0x330] sm:$0xff] %v5970_v62  ;;  %v5609_v24 = vpop.f32.mrb[188].mxu0 }
 0x6bf   :  { %v5610_v12 = vadd.f32 %v11728_v23, %v5609_v24  ;;  %v5611_v54 = vpop.f32.mrb[189].mxu0  ;;  %v5974_v6 = vpop.f32.mrb[200].mxu1 }
 0x6c0   :  { %v5975_v42 = vadd.f32 %v11728_v23, %v5974_v6  ;;  %v5976_v46 = vpop.f32.mrb[201].mxu1 }
 0x6c1   :  { %6128 = vst [vmem:[#allocation2 + $0xf0] sm:$0xff] %v5610_v12 }
 0x6c2   :  { %6201 = vst [vmem:[#allocation2 + $0x338] sm:$0xff] %v5975_v42  ;;  %v5614_v37 = vpop.f32.mrb[190].mxu0 }
 0x6c3   :  { %v5615_v53 = vadd.f32 %v11728_v23, %v5614_v37  ;;  %v5616_v0 = vpop.f32.mrb[191].mxu0  ;;  %v5979_v11 = vpop.f32.mrb[202].mxu1 }
 0x6c4   :  { %v5980_v28 = vadd.f32 %v11728_v23, %v5979_v11  ;;  %v5981_v49 = vpop.f32.mrb[203].mxu1 }
 0x6c5   :  { %6129 = vst [vmem:[#allocation2 + $0xf8] sm:$0xff] %v5615_v53 }
 0x6c6   :  { %6202 = vst [vmem:[#allocation2 + $0x340] sm:$0xff] %v5980_v28  ;;  %v5619_v4 = vpop.f32.mrb[192].mxu0 }
 0x6c7   :  { %v5620_v10 = vadd.f32 %v11728_v23, %v5619_v4  ;;  %v5621_v32 = vpop.f32.mrb[193].mxu0  ;;  %v5984_v44 = vpop.f32.mrb[204].mxu1 }
 0x6c8   :  { %v5985_v59 = vadd.f32 %v11728_v23, %v5984_v44  ;;  %v5986_v1 = vpop.f32.mrb[205].mxu1 }
 0x6c9   :  { %6130 = vst [vmem:[#allocation2 + $0x100] sm:$0xff] %v5620_v10 }
 0x6ca   :  { %6203 = vst [vmem:[#allocation2 + $0x348] sm:$0xff] %v5985_v59  ;;  %v5624_v30 = vpop.f32.mrb[194].mxu0 }
 0x6cb   :  { %v5625_v26 = vadd.f32 %v11728_v23, %v5624_v30  ;;  %v5626_v14 = vpop.f32.mrb[195].mxu0  ;;  %v5989_v17 = vpop.f32.mrb[206].mxu1 }
 0x6cc   :  { %v5990_v39 = vadd.f32 %v11728_v23, %v5989_v17  ;;  %v5991_v2 = vpop.f32.mrb[207].mxu1 }
 0x6cd   :  { %6131 = vst [vmem:[#allocation2 + $0x108] sm:$0xff] %v5625_v26 }
 0x6ce   :  { %6204 = vst [vmem:[#allocation2 + $0x350] sm:$0xff] %v5990_v39  ;;  %v5629_v61 = vpop.f32.mrb[196].mxu0 }
 0x6cf   :  { %v5630_v33 = vadd.f32 %v11728_v23, %v5629_v61  ;;  %v5631_v43 = vpop.f32.mrb[197].mxu0  ;;  %v5994_v19 = vpop.f32.mrb[208].mxu1 }
 0x6d0   :  { %v5995_v35 = vadd.f32 %v11728_v23, %v5994_v19  ;;  %v5996_v18 = vpop.f32.mrb[209].mxu1 }
 0x6d1   :  { %6132 = vst [vmem:[#allocation2 + $0x110] sm:$0xff] %v5630_v33 }
 0x6d2   :  { %6205 = vst [vmem:[#allocation2 + $0x358] sm:$0xff] %v5995_v35  ;;  %v5634_v20 = vpop.f32.mrb[198].mxu0 }
 0x6d3   :  { %v5635_v27 = vadd.f32 %v11728_v23, %v5634_v20  ;;  %v5636_v29 = vpop.f32.mrb[199].mxu0  ;;  %v5999_v13 = vpop.f32.mrb[210].mxu1 }
 0x6d4   :  { %v6000_v50 = vadd.f32 %v11728_v23, %v5999_v13  ;;  %v6001_v8 = vpop.f32.mrb[211].mxu1 }
 0x6d5   :  { %6133 = vst [vmem:[#allocation2 + $0x118] sm:$0xff] %v5635_v27  ;;  %v11941_v27 = vld [vmem:[%s11999_s13] ss:$0 sm:$0xff]  ;;  %s8198_s13 = smov [#allocation2]  }
 0x6d6   :  { %6206 = vst [vmem:[#allocation2 + $0x360] sm:$0xff] %v6000_v50  ;;  %v5639_v7 = vpop.f32.mrb[200].mxu0  ;;  %s6231_s18 = sshll.u32 %s8198_s13, 4  ;;  %s6232_s18 = int_to_ptr.vmem [resolvable:$true] %s6231_s18 }
 0x6d7   :  { %v5640_v51 = vadd.f32 %v11728_v23, %v5639_v7  ;;  %v5641_v22 = vpop.f32.mrb[201].mxu0  ;;  %v6004_v21 = vpop.f32.mrb[212].mxu1  ;;  %s8172_s19 = scalar_lea.vmem %s6232_s18, 16384  ;;  %p8177_p1 = scmp.lt.s32.totalorder %s6232_s18, %s6232_s18 }
 0x6d8   :  { %v6005_v58 = vadd.f32 %v11728_v23, %v6004_v21  ;;  %v6006_v45 = vpop.f32.mrb[213].mxu1  ;;  %p8173_p0 = scmp.ne.s32.totalorder %s6232_s18, %s8172_s19  ;;  %p8178_p2 = scmp.lt.s32.totalorder %s8172_s19, %s8172_s19 }
 0x6d9   :  { %6134 = vst [vmem:[#allocation2 + $0x120] sm:$0xff] %v5640_v51 }
 0x6da   :  { %6207 = vst [vmem:[#allocation2 + $0x368] sm:$0xff] %v6005_v58  ;;  %v5644_v57 = vpop.f32.mrb[202].mxu0  ;;  %p8179_p3 = por %p8178_p2, %p8177_p1 }
 0x6db   :  { %v5645_v55 = vadd.f32 %v11728_v23, %v5644_v57  ;;  %v5646_v36 = vpop.f32.mrb[203].mxu0  ;;  %v6009_v15 = vpop.f32.mrb[214].mxu1 }
 0x6dc   :  { %v6010_v52 = vadd.f32 %v11728_v23, %v6009_v15  ;;  %v6011_v34 = vpop.f32.mrb[215].mxu1  ;;  %p8180_p4 = pnand %p8179_p3, %p8173_p0 }
 0x6dd   :  { %6135 = vst [vmem:[#allocation2 + $0x128] sm:$0xff] %v5645_v55 }
 0x6de   :  { %6208 = vst [vmem:[#allocation2 + $0x370] sm:$0xff] %v6010_v52  ;;  %v5649_v60 = vpop.f32.mrb[204].mxu0 }
 0x6df   :  { %v5650_v47 = vadd.f32 %v11728_v23, %v5649_v60  ;;  %v5651_v5 = vpop.f32.mrb[205].mxu0  ;;  %v6014_v38 = vpop.f32.mrb[216].mxu1 }
 0x6e0   :  { %v6015_v3 = vadd.f32 %v11728_v23, %v6014_v38  ;;  %v6016_v9 = vpop.f32.mrb[217].mxu1 }
 0x6e1   :  { %6136 = vst [vmem:[#allocation2 + $0x130] sm:$0xff] %v5650_v47 }
 0x6e2   :  { %6209 = vst [vmem:[#allocation2 + $0x378] sm:$0xff] %v6015_v3  ;;  %v5654_v31 = vpop.f32.mrb[206].mxu0 }
 0x6e3   :  { %v5655_v41 = vadd.f32 %v11728_v23, %v5654_v31  ;;  %v5656_v48 = vpop.f32.mrb[207].mxu0  ;;  %v6019_v40 = vpop.f32.mrb[218].mxu1 }
 0x6e4   :  { %v6020_v16 = vadd.f32 %v11728_v23, %v6019_v40  ;;  %v6021_v56 = vpop.f32.mrb[219].mxu1 }
 0x6e5   :  { %6137 = vst [vmem:[#allocation2 + $0x138] sm:$0xff] %v5655_v41 }
 0x6e6   :  { %6210 = vst [vmem:[#allocation2 + $0x380] sm:$0xff] %v6020_v16  ;;  %v5659_v25 = vpop.f32.mrb[208].mxu0 }
 0x6e7   :  { %v5660_v62 = vadd.f32 %v11728_v23, %v5659_v25  ;;  %v5661_v63 = vpop.f32.mrb[209].mxu0  ;;  %v6024_v24 = vpop.f32.mrb[220].mxu1 }
 0x6e8   :  { %v6025_v12 = vadd.f32 %v11728_v23, %v6024_v24  ;;  %v6026_v54 = vpop.f32.mrb[221].mxu1 }
 0x6e9   :  { %6138 = vst [vmem:[#allocation2 + $0x140] sm:$0xff] %v5660_v62 }
 0x6ea   :  { %6211 = vst [vmem:[#allocation2 + $0x388] sm:$0xff] %v6025_v12  ;;  %v5664_v6 = vpop.f32.mrb[210].mxu0 }
 0x6eb   :  { %v5665_v42 = vadd.f32 %v11728_v23, %v5664_v6  ;;  %v5666_v46 = vpop.f32.mrb[211].mxu0  ;;  %v6029_v37 = vpop.f32.mrb[222].mxu1 }
 0x6ec   :  { %v6030_v53 = vadd.f32 %v11728_v23, %v6029_v37  ;;  %v6031_v0 = vpop.f32.mrb[223].mxu1 }
 0x6ed   :  { %6139 = vst [vmem:[#allocation2 + $0x148] sm:$0xff] %v5665_v42 }
 0x6ee   :  { %6212 = vst [vmem:[#allocation2 + $0x390] sm:$0xff] %v6030_v53  ;;  %v5669_v11 = vpop.f32.mrb[212].mxu0 }
 0x6ef   :  { %v5670_v28 = vadd.f32 %v11728_v23, %v5669_v11  ;;  %v5671_v49 = vpop.f32.mrb[213].mxu0  ;;  %v6034_v4 = vpop.f32.mrb[224].mxu1 }
 0x6f0   :  { %v6035_v10 = vadd.f32 %v11728_v23, %v6034_v4  ;;  %v6036_v32 = vpop.f32.mrb[225].mxu1 }
 0x6f1   :  { %6140 = vst [vmem:[#allocation2 + $0x150] sm:$0xff] %v5670_v28 }
 0x6f2   :  { %6213 = vst [vmem:[#allocation2 + $0x398] sm:$0xff] %v6035_v10  ;;  %v5674_v44 = vpop.f32.mrb[214].mxu0 }
 0x6f3   :  { %v5675_v59 = vadd.f32 %v11728_v23, %v5674_v44  ;;  %v5676_v1 = vpop.f32.mrb[215].mxu0  ;;  %v6039_v30 = vpop.f32.mrb[226].mxu1 }
 0x6f4   :  { %v6040_v26 = vadd.f32 %v11728_v23, %v6039_v30  ;;  %v6041_v14 = vpop.f32.mrb[227].mxu1 }
 0x6f5   :  { %6141 = vst [vmem:[#allocation2 + $0x158] sm:$0xff] %v5675_v59 }
 0x6f6   :  { %6214 = vst [vmem:[#allocation2 + $0x3a0] sm:$0xff] %v6040_v26  ;;  %v5679_v17 = vpop.f32.mrb[216].mxu0 }
 0x6f7   :  { %v5680_v39 = vadd.f32 %v11728_v23, %v5679_v17  ;;  %v5681_v2 = vpop.f32.mrb[217].mxu0  ;;  %v6044_v61 = vpop.f32.mrb[228].mxu1 }
 0x6f8   :  { %v6045_v33 = vadd.f32 %v11728_v23, %v6044_v61  ;;  %v6046_v43 = vpop.f32.mrb[229].mxu1 }
 0x6f9   :  { %6142 = vst [vmem:[#allocation2 + $0x160] sm:$0xff] %v5680_v39 }
 0x6fa   :  { %6215 = vst [vmem:[#allocation2 + $0x3a8] sm:$0xff] %v6045_v33  ;;  %v5684_v19 = vpop.f32.mrb[218].mxu0 }
 0x6fb   :  { %v5685_v35 = vadd.f32 %v11728_v23, %v5684_v19  ;;  %v5686_v18 = vpop.f32.mrb[219].mxu0  ;;  %v6049_v20 = vpop.f32.mrb[230].mxu1 }
 0x6fc   :  { %v6050_v29 = vadd.f32 %v11941_v27, %v6049_v20  ;;  %v6051_v13 = vpop.f32.mrb[231].mxu1 }
 0x6fd   :  { %6143 = vst [vmem:[#allocation2 + $0x168] sm:$0xff] %v5685_v35 }
 0x6fe   :  { %6216 = vst [vmem:[#allocation2 + $0x3b0] sm:$0xff] %v6050_v29  ;;  %v5689_v50 = vpop.f32.mrb[220].mxu0 }
 0x6ff   :  { %v5690_v8 = vadd.f32 %v11941_v27, %v5689_v50  ;;  %v5691_v7 = vpop.f32.mrb[221].mxu0  ;;  %v6054_v51 = vpop.f32.mrb[232].mxu1 }
 0x700   :  { %v6055_v22 = vadd.f32 %v11941_v27, %v6054_v51  ;;  %v6056_v23 = vpop.f32.mrb[233].mxu1 }
 0x701   :  { %6144 = vst [vmem:[#allocation2 + $0x170] sm:$0xff] %v5690_v8 }
 0x702   :  { %6217 = vst [vmem:[#allocation2 + $0x3b8] sm:$0xff] %v6055_v22  ;;  %v5694_v21 = vpop.f32.mrb[222].mxu0 }
 0x703   :  { %v5695_v58 = vadd.f32 %v11941_v27, %v5694_v21  ;;  %v5696_v45 = vpop.f32.mrb[223].mxu0  ;;  %v6059_v57 = vpop.f32.mrb[234].mxu1 }
 0x704   :  { %v6060_v55 = vadd.f32 %v11941_v27, %v6059_v57  ;;  %v6061_v36 = vpop.f32.mrb[235].mxu1 }
 0x705   :  { %6145 = vst [vmem:[#allocation2 + $0x178] sm:$0xff] %v5695_v58 }
 0x706   :  { %6218 = vst [vmem:[#allocation2 + $0x3c0] sm:$0xff] %v6060_v55  ;;  %v5699_v15 = vpop.f32.mrb[224].mxu0 }
 0x707   :  { %v5700_v52 = vadd.f32 %v11941_v27, %v5699_v15  ;;  %v5701_v34 = vpop.f32.mrb[225].mxu0  ;;  %v6064_v60 = vpop.f32.mrb[236].mxu1 }
 0x708   :  { %v6065_v47 = vadd.f32 %v11941_v27, %v6064_v60  ;;  %v6066_v5 = vpop.f32.mrb[237].mxu1 }
 0x709   :  { %6146 = vst [vmem:[#allocation2 + $0x180] sm:$0xff] %v5700_v52 }
 0x70a   :  { %6219 = vst [vmem:[#allocation2 + $0x3c8] sm:$0xff] %v6065_v47  ;;  %v5704_v38 = vpop.f32.mrb[226].mxu0 }
 0x70b   :  { %v5705_v3 = vadd.f32 %v11941_v27, %v5704_v38  ;;  %v5706_v9 = vpop.f32.mrb[227].mxu0  ;;  %v6069_v31 = vpop.f32.mrb[238].mxu1 }
 0x70c   :  { %v6070_v41 = vadd.f32 %v11941_v27, %v6069_v31  ;;  %v6071_v48 = vpop.f32.mrb[239].mxu1 }
 0x70d   :  { %6147 = vst [vmem:[#allocation2 + $0x188] sm:$0xff] %v5705_v3 }
 0x70e   :  { %6220 = vst [vmem:[#allocation2 + $0x3d0] sm:$0xff] %v6070_v41  ;;  %v5709_v40 = vpop.f32.mrb[228].mxu0 }
 0x70f   :  { %v5710_v16 = vadd.f32 %v11941_v27, %v5709_v40  ;;  %v5711_v56 = vpop.f32.mrb[229].mxu0  ;;  %v6074_v25 = vpop.f32.mrb[240].mxu1 }
 0x710   :  { %v6075_v62 = vadd.f32 %v11941_v27, %v6074_v25  ;;  %v6076_v63 = vpop.f32.mrb[241].mxu1 }
 0x711   :  { %6148 = vst [vmem:[#allocation2 + $0x190] sm:$0xff] %v5710_v16 }
 0x712   :  { %6221 = vst [vmem:[#allocation2 + $0x3d8] sm:$0xff] %v6075_v62  ;;  %v5714_v24 = vpop.f32.mrb[230].mxu0 }
 0x713   :  { %v5715_v12 = vadd.f32 %v11941_v27, %v5714_v24  ;;  %v5716_v54 = vpop.f32.mrb[231].mxu0  ;;  %v6079_v6 = vpop.f32.mrb[242].mxu1 }
 0x714   :  { %v6080_v42 = vadd.f32 %v11941_v27, %v6079_v6  ;;  %v6081_v46 = vpop.f32.mrb[243].mxu1 }
 0x715   :  { %6149 = vst [vmem:[#allocation2 + $0x198] sm:$0xff] %v5715_v12 }
 0x716   :  { %6222 = vst [vmem:[#allocation2 + $0x3e0] sm:$0xff] %v6080_v42  ;;  %v5719_v37 = vpop.f32.mrb[232].mxu0 }
 0x717   :  { %v5720_v53 = vadd.f32 %v11941_v27, %v5719_v37  ;;  %v5721_v0 = vpop.f32.mrb[233].mxu0  ;;  %v6084_v11 = vpop.f32.mrb[244].mxu1 }
 0x718   :  { %v6085_v28 = vadd.f32 %v11941_v27, %v6084_v11  ;;  %v6086_v49 = vpop.f32.mrb[245].mxu1 }
 0x719   :  { %6150 = vst [vmem:[#allocation2 + $0x1a0] sm:$0xff] %v5720_v53 }
 0x71a   :  { %6223 = vst [vmem:[#allocation2 + $0x3e8] sm:$0xff] %v6085_v28  ;;  %v5724_v4 = vpop.f32.mrb[234].mxu0 }
 0x71b   :  { %v5725_v10 = vadd.f32 %v11941_v27, %v5724_v4  ;;  %v5726_v32 = vpop.f32.mrb[235].mxu0  ;;  %v6089_v44 = vpop.f32.mrb[246].mxu1 }
 0x71c   :  { %v6090_v59 = vadd.f32 %v11941_v27, %v6089_v44  ;;  %v6091_v1 = vpop.f32.mrb[247].mxu1 }
 0x71d   :  { %6151 = vst [vmem:[#allocation2 + $0x1a8] sm:$0xff] %v5725_v10 }
 0x71e   :  { %6224 = vst [vmem:[#allocation2 + $0x3f0] sm:$0xff] %v6090_v59  ;;  %v5729_v30 = vpop.f32.mrb[236].mxu0 }
 0x71f   :  { %v5730_v26 = vadd.f32 %v11941_v27, %v5729_v30  ;;  %v5731_v14 = vpop.f32.mrb[237].mxu0  ;;  %v6094_v17 = vpop.f32.mrb[248].mxu1 }
 0x720   :  { %v6095_v39 = vadd.f32 %v11941_v27, %v6094_v17  ;;  %v6096_v2 = vpop.f32.mrb[249].mxu1 }
 0x721   :  { %6152 = vst [vmem:[#allocation2 + $0x1b0] sm:$0xff] %v5730_v26 }
 0x722   :  { %6225 = vst [vmem:[#allocation2 + $0x3f8] sm:$0xff] %v6095_v39  ;;  %v5734_v61 = vpop.f32.mrb[238].mxu0 }
 0x723   :  { %v5735_v33 = vadd.f32 %v11941_v27, %v5734_v61  ;;  %v5736_v43 = vpop.f32.mrb[239].mxu0 }
 0x725   :  { %6153 = vst [vmem:[#allocation2 + $0x1b8] sm:$0xff] %v5735_v33 }
 0x726   :  { %v5739_v19 = vpop.f32.mrb[240].mxu0 }
 0x727   :  { %v5740_v35 = vadd.f32 %v11941_v27, %v5739_v19  ;;  %v5741_v18 = vpop.f32.mrb[241].mxu0 }
 0x729   :  { %6154 = vst [vmem:[#allocation2 + $0x1c0] sm:$0xff] %v5740_v35 }
 0x72a   :  { %v5744_v20 = vpop.f32.mrb[242].mxu0 }
 0x72b   :  { %v5745_v29 = vadd.f32 %v11941_v27, %v5744_v20  ;;  %v5746_v13 = vpop.f32.mrb[243].mxu0 }
 0x72d   :  { %6155 = vst [vmem:[#allocation2 + $0x1c8] sm:$0xff] %v5745_v29 }
 0x72e   :  { %v5749_v50 = vpop.f32.mrb[244].mxu0 }
 0x72f   :  { %v5750_v8 = vadd.f32 %v11941_v27, %v5749_v50  ;;  %v5751_v7 = vpop.f32.mrb[245].mxu0 }
 0x731   :  { %6156 = vst [vmem:[#allocation2 + $0x1d0] sm:$0xff] %v5750_v8 }
 0x732   :  { %v5754_v51 = vpop.f32.mrb[246].mxu0 }
 0x733   :  { %v5755_v22 = vadd.f32 %v11941_v27, %v5754_v51  ;;  %v5756_v23 = vpop.f32.mrb[247].mxu0 }
 0x735   :  { %6157 = vst [vmem:[#allocation2 + $0x1d8] sm:$0xff] %v5755_v22 }
 0x736   :  { %v5759_v21 = vpop.f32.mrb[248].mxu0 }
 0x737   :  { %v5760_v58 = vadd.f32 %v11941_v27, %v5759_v21  ;;  %v5761_v45 = vpop.f32.mrb[249].mxu0 }
 0x739   :  { %6158 = vst [vmem:[#allocation2 + $0x1e0] sm:$0xff] %v5760_v58 }
 0x73a   :  { %v5764_v57 = vpop.f32.mrb[250].mxu0 }
 0x73b   :  { %v5765_v55 = vadd.f32 %v11941_v27, %v5764_v57  ;;  %v5766_v36 = vpop.f32.mrb[251].mxu0 }
 0x73d   :  { %6159 = vst [vmem:[#allocation2 + $0x1e8] sm:$0xff] %v5765_v55 }
 0x73e   :  { %v5769_v15 = vpop.f32.mrb[252].mxu0 }
 0x73f   :  { %v5770_v52 = vadd.f32 %v11941_v27, %v5769_v15  ;;  %v5771_v34 = vpop.f32.mrb[253].mxu0 }
 0x741   :  { %6160 = vst [vmem:[#allocation2 + $0x1f0] sm:$0xff] %v5770_v52 }
 0x742   :  { %v5774_v60 = vpop.f32.mrb[254].mxu0 }
 0x743   :  { %v5775_v47 = vadd.f32 %v11941_v27, %v5774_v60  ;;  %v5776_v5 = vpop.f32.mrb[255].mxu0 }
 0x745   :  { %6161 = vst [vmem:[#allocation2 + $0x1f8] sm:$0xff] %v5775_v47 }
 0x746   :  { %v5779_v38 = vpop.f32.mrb[0].mxu0 }
 0x747   :  { %v5780_v3 = vadd.f32 %v11941_v27, %v5779_v38  ;;  %v5781_v9 = vpop.f32.mrb[1].mxu0 }
 0x749   :  { %6162 = vst [vmem:[#allocation2 + $0x200] sm:$0xff] %v5780_v3 }
 0x74a   :  { %v5784_v31 = vpop.f32.mrb[2].mxu0 }
 0x74b   :  { %v5785_v41 = vadd.f32 %v11941_v27, %v5784_v31  ;;  %v5786_v48 = vpop.f32.mrb[3].mxu0 }
 0x74d   :  { %6163 = vst [vmem:[#allocation2 + $0x208] sm:$0xff] %v5785_v41 }
 0x74e   :  { %v5789_v40 = vpop.f32.mrb[4].mxu0 }
 0x74f   :  { %v5790_v16 = vadd.f32 %v11941_v27, %v5789_v40  ;;  %v5791_v56 = vpop.f32.mrb[5].mxu0 }
 0x751   :  { %6164 = vst [vmem:[#allocation2 + $0x210] sm:$0xff] %v5790_v16 }
 0x752   :  { %8183 = shalt.err (!%p8180_p4)
}
 0x753   :  { %s8184_s20 = scalar_lea.hbm %s12000_s14, 16384 }
 0x754   :  { %p8185_p5 = scmp.ne.s32.totalorder %s12000_s14, %s8184_s20  ;;  %p8188_p6 = scmp.lt.u32.totalorder %s8184_s20, %s12000_s14 }
 0x756   :  { %p8190_p7 = pnand %p8188_p6, %p8185_p5 }
 0x758   :  { %8193 = shalt.err (!%p8190_p7)
}
 0x759   :  { %s8199_s23 = smov 128   ;;  %s8200_s24 = smov 8  }
 0x75a   :  { %6237 = dma.vmem_to_hbm [thread:$0]  %s6232_s18, 16384, %s12000_s14, [#allocation3], %s8199_s23, %s8199_s23, %s8200_s24  }
 0x75b   :  { %8194 = dma.done.wait [#allocation3], 16384  }
 0x75c   :  { %8195 = vsyncadd [#allocation3], 4294950912 }
 0x75d   :  { %6241 = vsyncpa [#allocation3], 1 }

</bundles_post_ra>
